<compile_context>
chip_gen: v5e
topology: v5e:2x2
jax: 0.10.0
libtpu: 0.0.40
codegen_flags: <defaults>
</compile_context>

<pallas_src>
import jax
import jax.numpy as jnp
from jax import lax
from jax.experimental import pallas as pl
from jax.experimental.pallas import tpu as pltpu

NUM_CLASSES = 5
N1 = 8
N2 = 8
BN_EPS = 1e-5


# ----------------------------------------------------------------------------
# Weight preparation (tiny, runs in the XLA wrapper)
# ----------------------------------------------------------------------------
def _prep_conv1a(w, b):
    # w: (Cout=8, Cin=3, kh=N1, kw=2) -> per-kh taps, rows ordered (kw, cin).
    kh, cout = w.shape[2], w.shape[0]
    wt = jnp.transpose(w, (2, 3, 1, 0)).reshape(kh, 2 * 3, cout)
    wt = jnp.pad(wt, ((0, 0), (0, 2), (0, 0)))             # pad Cin 6 -> 8
    return wt.astype(jnp.bfloat16), b.reshape(1, -1).astype(jnp.float32)


def _prep_conv1b(w, b):
    # w: (Cout=8, Cin=3, kh=2, kw=N2) -> per-kw taps, rows ordered (kh, cin).
    kw, cout = w.shape[3], w.shape[0]
    wt = jnp.transpose(w, (3, 2, 1, 0)).reshape(kw, 2 * 3, cout)
    wt = jnp.pad(wt, ((0, 0), (0, 2), (0, 0)))             # pad Cin 6 -> 8
    return wt.astype(jnp.bfloat16), b.reshape(1, -1).astype(jnp.float32)


def _prep_conv3x3(w, bias, bn):
    # w: (Cout, Cin, 3, 3) -> (9, Cin, Cout), tap t = i*3 + j.
    co, ci = w.shape[0], w.shape[1]
    wt = jnp.transpose(w, (2, 3, 1, 0)).reshape(9, ci, co).astype(jnp.bfloat16)
    gamma, beta, mean, var = bn
    s = gamma / jnp.sqrt(var + BN_EPS)
    scale = s.reshape(1, co).astype(jnp.float32)
    shift = ((bias - mean) * s + beta).reshape(1, co).astype(jnp.float32)
    return wt, scale, shift


# ----------------------------------------------------------------------------
# The fused kernel
# ----------------------------------------------------------------------------
def _make_kernel(*, W1, P1h, P1w, C2w, P2h, P2w, C3w, P3h, P3w,
                 C4h, C4w, C5h, C5w):
    f32 = jnp.float32
    bf16 = jnp.bfloat16

    def sel(n_out, n_in, parity):
        # (n_out, n_in) 0/1 matrix selecting rows 2*p + parity (exact).
        r = lax.broadcasted_iota(jnp.int32, (n_out, n_in), 0)
        c = lax.broadcasted_iota(jnp.int32, (n_out, n_in), 1)
        return (c == 2 * r + parity).astype(f32)

    def kernel(xa_ref, xb_ref, w1a_ref, w1b_ref, b1a_ref, b1b_ref,
               w2_ref, s2_ref, h2_ref, w3_ref, s3_ref, h3_ref,
               w4_ref, s4_ref, h4_ref, w5_ref, s5_ref, h5_ref,
               wbu_ref, wtd_ref, logits_ref, probas_ref,
               p1_ref, p2_ref, p3_ref, a4_ref):

        def conv3x3_row(src_ref, w_ref, ho, width):
            # One output row of a 3x3 valid conv: 9 tap matmuls over channels.
            acc = None
            for t in range(9):
                i, j = divmod(t, 3)
                piece = src_ref[ho + i, pl.ds(j, width), :]        # (width, Cin)
                d = jnp.dot(piece, w_ref[t], preferred_element_type=f32)
                acc = d if acc is None else acc + d
            return acc

        # -------- stage 1: conv1a | conv1b  ->  channel concat  ->  maxpool 2x2
        b1a = b1a_ref[...]
        b1b = b1b_ref[...]
        se1 = sel(P1w, W1, 0)
        so1 = sel(P1w, W1, 1)

        @pl.loop(0, P1h)
        def _stage1(hp):
            def row_a(ho):
                acc = jnp.dot(xa_ref[0, ho, :, :], w1a_ref[0],
                              preferred_element_type=f32)
                for i in range(1, N1):
                    acc = acc + jnp.dot(xa_ref[0, ho + i, :, :], w1a_ref[i],
                                        preferred_element_type=f32)
                return acc + b1a

            def row_b(ho):
                acc = jnp.dot(xb_ref[0, ho, pl.ds(0, W1), :], w1b_ref[0],
                              preferred_element_type=f32)
                for j in range(1, N2):
                    acc = acc + jnp.dot(xb_ref[0, ho, pl.ds(j, W1), :],
                                        w1b_ref[j],
                                        preferred_element_type=f32)
                return acc + b1b

            m_a = jnp.maximum(row_a(2 * hp), row_a(2 * hp + 1))
            p_a = jnp.maximum(jnp.dot(se1, m_a, preferred_element_type=f32),
                              jnp.dot(so1, m_a, preferred_element_type=f32))
            p1_ref[hp, :, 0:8] = p_a.astype(bf16)

            m_b = jnp.maximum(row_b(2 * hp), row_b(2 * hp + 1))
            p_b = jnp.maximum(jnp.dot(se1, m_b, preferred_element_type=f32),
                              jnp.dot(so1, m_b, preferred_element_type=f32))
            p1_ref[hp, :, 8:16] = p_b.astype(bf16)

        # -------- stage 2: conv2 + BN + ReLU + maxpool 2x2
        s2 = s2_ref[...]
        h2 = h2_ref[...]
        se2 = sel(P2w, C2w, 0)
        so2 = sel(P2w, C2w, 1)

        @pl.loop(0, P2h)
        def _stage2(hp):
            y0 = jnp.maximum(conv3x3_row(p1_ref, w2_ref, 2 * hp, C2w) * s2 + h2, 0.0)
            y1 = jnp.maximum(conv3x3_row(p1_ref, w2_ref, 2 * hp + 1, C2w) * s2 + h2, 0.0)
            m = jnp.maximum(y0, y1)
            p = jnp.maximum(jnp.dot(se2, m, preferred_element_type=f32),
                            jnp.dot(so2, m, preferred_element_type=f32))
            p2_ref[hp, :, :] = p.astype(bf16)

        # -------- stage 3: conv3 + BN + ReLU + maxpool 2x2
        s3 = s3_ref[...]
        h3 = h3_ref[...]
        se3 = sel(P3w, C3w, 0)
        so3 = sel(P3w, C3w, 1)

        @pl.loop(0, P3h)
        def _stage3(hp):
            y0 = jnp.maximum(conv3x3_row(p2_ref, w3_ref, 2 * hp, C3w) * s3 + h3, 0.0)
            y1 = jnp.maximum(conv3x3_row(p2_ref, w3_ref, 2 * hp + 1, C3w) * s3 + h3, 0.0)
            m = jnp.maximum(y0, y1)
            p = jnp.maximum(jnp.dot(se3, m, preferred_element_type=f32),
                            jnp.dot(so3, m, preferred_element_type=f32))
            p3_ref[hp, :, :] = p.astype(bf16)

        # -------- stage 4: conv4 + BN + ReLU (no pool)
        s4 = s4_ref[...]
        h4 = h4_ref[...]

        @pl.loop(0, C4h)
        def _stage4(ho):
            y = jnp.maximum(conv3x3_row(p3_ref, w4_ref, ho, C4w) * s4 + h4, 0.0)
            a4_ref[ho, :, :] = y.astype(bf16)

        # -------- stage 5: conv5 + BN + ReLU + attention + avg-pool + softmax
        s5 = s5_ref[...]
        h5 = h5_ref[...]
        wbu = wbu_ref[...]
        wtd = wtd_ref[...]

        total = jnp.zeros((1, NUM_CLASSES), f32)
        for ho in range(C5h):
            y = jnp.maximum(conv3x3_row(a4_ref, w5_ref, ho, C5w) * s5 + h5, 0.0)
            x1 = jnp.sum(y * wbu, axis=1, keepdims=True)             # (C5w, 1)
            x2 = jnp.dot(y, wtd, preferred_element_type=f32)         # (C5w, NC)
            total = total + jnp.sum(x1 * x2, axis=0, keepdims=True)  # (1, NC)
        logits = total * (1.0 / float(C5h * C5w))
        logits_ref[0] = logits
        mx = jnp.max(logits, axis=1, keepdims=True)
        e = jnp.exp(logits - mx)
        probas_ref[0] = e / jnp.sum(e, axis=1, keepdims=True)

    return kernel


# ----------------------------------------------------------------------------
# Forward pass wrapper
# ----------------------------------------------------------------------------
def net_forward(x, params):
    """x: (B, 3, H, W) float32 in NCHW (PyTorch convention)."""
    B, _, H, W = x.shape
    assert N1 % 2 == 0 and N2 % 2 == 0
    H1, W1 = H + 1, W + 1                  # conv1a / conv1b output size
    P1h, P1w = H1 // 2, W1 // 2            # after maxpool 1
    C2h, C2w = P1h - 2, P1w - 2            # conv2 output
    P2h, P2w = C2h // 2, C2w // 2          # after maxpool 2
    C3h, C3w = P2h - 2, P2w - 2            # conv3 output
    P3h, P3w = C3h // 2, C3w // 2          # after maxpool 3
    C4h, C4w = P3h - 2, P3w - 2            # conv4 output
    C5h, C5w = C4h - 2, C4w - 2            # conv5 output
    assert C5h >= 1 and C5w >= 1, "input is spatially too small"

    xn = jnp.transpose(x, (0, 2, 3, 1)).astype(jnp.float32)   # NHWC, once

    # conv1a input: pad H by n1//2, W by 1, fold the kw=2 window into channels.
    xpa = jnp.pad(xn, ((0, 0), (N1 // 2, N1 // 2), (1, 1), (0, 0)))
    xa = jnp.concatenate([xpa[:, :, :-1, :], xpa[:, :, 1:, :]], axis=-1)
    xa = jnp.pad(xa, ((0, 0), (0, 0), (0, 0), (0, 2))).astype(jnp.bfloat16)
    # -> (B, H1 + N1 - 1, W1, 8)

    # conv1b input: pad W by n2//2, H by 1, fold the kh=2 window into channels.
    xpb = jnp.pad(xn, ((0, 0), (1, 1), (N2 // 2, N2 // 2), (0, 0)))
    xb = jnp.concatenate([xpb[:, :-1, :, :], xpb[:, 1:, :, :]], axis=-1)
    xb = jnp.pad(xb, ((0, 0), (0, 0), (0, 0), (0, 2))).astype(jnp.bfloat16)
    # -> (B, H1, W1 + N2 - 1, 8)

    w1a, b1a = _prep_conv1a(params["w1a"], params["b1a"])
    w1b, b1b = _prep_conv1b(params["w1b"], params["b1b"])
    w2, s2, h2 = _prep_conv3x3(params["w2"], params["b2"], params["bn2"])
    w3, s3, h3 = _prep_conv3x3(params["w3"], params["b3"], params["bn3"])
    w4, s4, h4 = _prep_conv3x3(params["w4"], params["b4"], params["bn4"])
    w5, s5, h5 = _prep_conv3x3(params["w5"], params["b5"], params["bn5"])
    wbu = params["w_bu"].reshape(1, -1).astype(jnp.float32)               # (1, 80)
    wtd = params["w_td"].reshape(NUM_CLASSES, -1).T.astype(jnp.float32)   # (80, NC)

    kernel = _make_kernel(W1=W1, P1h=P1h, P1w=P1w, C2w=C2w, P2h=P2h, P2w=P2w,
                          C3w=C3w, P3h=P3h, P3w=P3w, C4h=C4h, C4w=C4w,
                          C5h=C5h, C5w=C5w)

    def batch_spec(a):
        n = a.ndim - 1
        return pl.BlockSpec((1,) + a.shape[1:], lambda b, _n=n: (b,) + (0,) * _n)

    def rep_spec(a):
        z = (0,) * a.ndim
        return pl.BlockSpec(a.shape, lambda b, _z=z: _z)

    inputs = (xa, xb, w1a, w1b, b1a, b1b, w2, s2, h2, w3, s3, h3,
              w4, s4, h4, w5, s5, h5, wbu, wtd)
    in_specs = [batch_spec(xa), batch_spec(xb)] + [rep_spec(a) for a in inputs[2:]]
    out_spec = pl.BlockSpec((1, 1, NUM_CLASSES), lambda b: (b, 0, 0))

    logits3, probas3 = pl.pallas_call(
        kernel,
        out_shape=(jax.ShapeDtypeStruct((B, 1, NUM_CLASSES), jnp.float32),
                   jax.ShapeDtypeStruct((B, 1, NUM_CLASSES), jnp.float32)),
        grid_spec=pltpu.PrefetchScalarGridSpec(
            num_scalar_prefetch=0,
            grid=(B,),
            in_specs=in_specs,
            out_specs=[out_spec, out_spec],
            scratch_shapes=[
                pltpu.VMEM((P1h, P1w, 16), jnp.bfloat16),   # pooled concat(conv1a, conv1b)
                pltpu.VMEM((P2h, P2w, 32), jnp.bfloat16),   # pooled conv2
                pltpu.VMEM((P3h, P3w, 48), jnp.bfloat16),   # pooled conv3
                pltpu.VMEM((C4h, C4w, 64), jnp.bfloat16),   # conv4
            ]),
        compiler_params=pltpu.CompilerParams(
            dimension_semantics=("parallel",)),
    )(*inputs)

    logits = logits3[:, 0, :]
    probas = probas3[:, 0, :]
    return logits, probas   # matches (x.squeeze(), softmax(x, dim=1))


# ----------------------------------------------------------------------------
# Deterministic parameter init (PyTorch OIHW layouts)
# ----------------------------------------------------------------------------
def init_params(key):
    ks = jax.random.split(key, 16)

    def w(k, shape):
        return jax.random.normal(k, shape, jnp.float32) * 0.05

    def bn(c):
        return (jnp.ones((c,), jnp.float32), jnp.zeros((c,), jnp.float32),
                jnp.zeros((c,), jnp.float32), jnp.ones((c,), jnp.float32))

    return {
        "w1a": w(ks[0], (8, 3, N1, 2)), "b1a": w(ks[1], (8,)),
        "w1b": w(ks[2], (8, 3, 2, N2)), "b1b": w(ks[3], (8,)),
        "w2": w(ks[4], (32, 16, 3, 3)), "b2": w(ks[5], (32,)), "bn2": bn(32),
        "w3": w(ks[6], (48, 32, 3, 3)), "b3": w(ks[7], (48,)), "bn3": bn(48),
        "w4": w(ks[8], (64, 48, 3, 3)), "b4": w(ks[9], (64,)), "bn4": bn(64),
        "w5": w(ks[10], (80, 64, 3, 3)), "b5": w(ks[11], (80,)), "bn5": bn(80),
        "w_bu": w(ks[12], (1, 80, 1, 1)),
        "w_td": w(ks[13], (NUM_CLASSES, 80, 1, 1)),
    }


if __name__ == "__main__":
    key = jax.random.PRNGKey(0)
    k_par, k_in = jax.random.split(key)
    params = init_params(k_par)

    # Smallest spatial size that survives the pooling/conv chain:
    # 63 -> 64 -> 32 -> 30 -> 15 -> 13 -> 6 -> 4 -> 2 -> avgpool 1
    x = jax.random.normal(k_in, (2, 3, 63, 63), jnp.float32)

    fwd = jax.jit(net_forward)
    logits, probas = fwd(x, params)
    jax.block_until_ready((logits, probas))

    assert logits.shape == (2, NUM_CLASSES)
    assert probas.shape == (2, NUM_CLASSES)
    assert jnp.allclose(jnp.sum(probas, axis=1), 1.0, atol=1e-5)
    print("KERNEL_OK")
</pallas_src>

<mosaic_0001>
module attributes {stable_mosaic.version = 11 : i64} {
  func.func @kernel(%arg0: i32, %arg1: memref<1x71x64x8xbf16, #tpu.memory_space<vmem>>, %arg2: memref<1x64x71x8xbf16, #tpu.memory_space<vmem>>, %arg3: memref<8x8x8xbf16, #tpu.memory_space<vmem>>, %arg4: memref<8x8x8xbf16, #tpu.memory_space<vmem>>, %arg5: memref<1x8xf32, #tpu.memory_space<vmem>>, %arg6: memref<1x8xf32, #tpu.memory_space<vmem>>, %arg7: memref<9x16x32xbf16, #tpu.memory_space<vmem>>, %arg8: memref<1x32xf32, #tpu.memory_space<vmem>>, %arg9: memref<1x32xf32, #tpu.memory_space<vmem>>, %arg10: memref<9x32x48xbf16, #tpu.memory_space<vmem>>, %arg11: memref<1x48xf32, #tpu.memory_space<vmem>>, %arg12: memref<1x48xf32, #tpu.memory_space<vmem>>, %arg13: memref<9x48x64xbf16, #tpu.memory_space<vmem>>, %arg14: memref<1x64xf32, #tpu.memory_space<vmem>>, %arg15: memref<1x64xf32, #tpu.memory_space<vmem>>, %arg16: memref<9x64x80xbf16, #tpu.memory_space<vmem>>, %arg17: memref<1x80xf32, #tpu.memory_space<vmem>>, %arg18: memref<1x80xf32, #tpu.memory_space<vmem>>, %arg19: memref<1x80xf32, #tpu.memory_space<vmem>>, %arg20: memref<80x5xf32, #tpu.memory_space<vmem>>, %arg21: memref<1x1x5xf32, #tpu.memory_space<vmem>>, %arg22: memref<1x1x5xf32, #tpu.memory_space<vmem>>, %arg23: memref<32x32x16xbf16, #tpu.memory_space<vmem>>, %arg24: memref<15x15x32xbf16, #tpu.memory_space<vmem>>, %arg25: memref<6x6x48xbf16, #tpu.memory_space<vmem>>, %arg26: memref<4x4x64xbf16, #tpu.memory_space<vmem>>) attributes {dimension_semantics = [#tpu.dimension_semantics<parallel>], iteration_bounds = array<i64: 2>, scalar_prefetch = 0 : i64, scratch_operands = 4 : i64, tpu.core_type = #tpu.core_type<tc>, window_params = [{transform_indices = @transform_0, window_bounds = array<i64: 1, 71, 64, 8>}, {transform_indices = @transform_1, window_bounds = array<i64: 1, 64, 71, 8>}, {pipeline_mode = #tpu.pipeline_mode<synchronous>, transform_indices = @transform_2, window_bounds = array<i64: 8, 8, 8>}, {pipeline_mode = #tpu.pipeline_mode<synchronous>, transform_indices = @transform_3, window_bounds = array<i64: 8, 8, 8>}, {pipeline_mode = #tpu.pipeline_mode<synchronous>, transform_indices = @transform_4, window_bounds = array<i64: 1, 8>}, {pipeline_mode = #tpu.pipeline_mode<synchronous>, transform_indices = @transform_5, window_bounds = array<i64: 1, 8>}, {pipeline_mode = #tpu.pipeline_mode<synchronous>, transform_indices = @transform_6, window_bounds = array<i64: 9, 16, 32>}, {pipeline_mode = #tpu.pipeline_mode<synchronous>, transform_indices = @transform_7, window_bounds = array<i64: 1, 32>}, {pipeline_mode = #tpu.pipeline_mode<synchronous>, transform_indices = @transform_8, window_bounds = array<i64: 1, 32>}, {pipeline_mode = #tpu.pipeline_mode<synchronous>, transform_indices = @transform_9, window_bounds = array<i64: 9, 32, 48>}, {pipeline_mode = #tpu.pipeline_mode<synchronous>, transform_indices = @transform_10, window_bounds = array<i64: 1, 48>}, {pipeline_mode = #tpu.pipeline_mode<synchronous>, transform_indices = @transform_11, window_bounds = array<i64: 1, 48>}, {pipeline_mode = #tpu.pipeline_mode<synchronous>, transform_indices = @transform_12, window_bounds = array<i64: 9, 48, 64>}, {pipeline_mode = #tpu.pipeline_mode<synchronous>, transform_indices = @transform_13, window_bounds = array<i64: 1, 64>}, {pipeline_mode = #tpu.pipeline_mode<synchronous>, transform_indices = @transform_14, window_bounds = array<i64: 1, 64>}, {pipeline_mode = #tpu.pipeline_mode<synchronous>, transform_indices = @transform_15, window_bounds = array<i64: 9, 64, 80>}, {pipeline_mode = #tpu.pipeline_mode<synchronous>, transform_indices = @transform_16, window_bounds = array<i64: 1, 80>}, {pipeline_mode = #tpu.pipeline_mode<synchronous>, transform_indices = @transform_17, window_bounds = array<i64: 1, 80>}, {pipeline_mode = #tpu.pipeline_mode<synchronous>, transform_indices = @transform_18, window_bounds = array<i64: 1, 80>}, {pipeline_mode = #tpu.pipeline_mode<synchronous>, transform_indices = @transform_19, window_bounds = array<i64: 80, 5>}, {transform_indices = @transform_20, window_bounds = array<i64: 1, 1, 5>}, {transform_indices = @transform_21, window_bounds = array<i64: 1, 1, 5>}]} {
    %c0 = arith.constant 0 : index
    %c0_0 = arith.constant 0 : index
    %0 = vector.load %arg5[%c0, %c0_0] : memref<1x8xf32, #tpu.memory_space<vmem>>, vector<1x8xf32>
    %c0_1 = arith.constant 0 : index
    %c0_2 = arith.constant 0 : index
    %1 = vector.load %arg6[%c0_1, %c0_2] : memref<1x8xf32, #tpu.memory_space<vmem>>, vector<1x8xf32>
    %2 = tpu.iota {dimensions = array<i32: 0>} : vector<32x64xi32>
    %3 = tpu.iota {dimensions = array<i32: 1>} : vector<32x64xi32>
    %c2_i32 = arith.constant 2 : i32
    %4 = vector.broadcast %c2_i32 : i32 to vector<32x64xi32>
    %5 = arith.muli %4, %2 : vector<32x64xi32>
    %c0_i32 = arith.constant 0 : i32
    %6 = vector.broadcast %c0_i32 : i32 to vector<32x64xi32>
    %7 = arith.addi %5, %6 : vector<32x64xi32>
    %8 = arith.cmpi eq, %3, %7 : vector<32x64xi32>
    %9 = arith.extui %8 : vector<32x64xi1> to vector<32x64xi32>
    %10 = arith.sitofp %9 : vector<32x64xi32> to vector<32x64xf32>
    %11 = tpu.iota {dimensions = array<i32: 0>} : vector<32x64xi32>
    %12 = tpu.iota {dimensions = array<i32: 1>} : vector<32x64xi32>
    %c2_i32_3 = arith.constant 2 : i32
    %13 = vector.broadcast %c2_i32_3 : i32 to vector<32x64xi32>
    %14 = arith.muli %13, %11 : vector<32x64xi32>
    %c1_i32 = arith.constant 1 : i32
    %15 = vector.broadcast %c1_i32 : i32 to vector<32x64xi32>
    %16 = arith.addi %14, %15 : vector<32x64xi32>
    %17 = arith.cmpi eq, %12, %16 : vector<32x64xi32>
    %18 = arith.extui %17 : vector<32x64xi1> to vector<32x64xi32>
    %19 = arith.sitofp %18 : vector<32x64xi32> to vector<32x64xf32>
    %c0_i32_4 = arith.constant 0 : i32
    %c32_i32 = arith.constant 32 : i32
    %20 = arith.addi %c0_i32_4, %c32_i32 : i32
    %c1_i32_5 = arith.constant 1 : i32
    scf.for %arg27 = %c0_i32_4 to %20 step %c1_i32_5  : i32 {
      %c1_i32_179 = arith.constant 1 : i32
      %226 = arith.muli %arg27, %c1_i32_179 : i32
      %c0_i32_180 = arith.constant 0 : i32
      %227 = arith.addi %c0_i32_180, %226 : i32
      %c2_i32_181 = arith.constant 2 : i32
      %228 = arith.muli %c2_i32_181, %227 : i32
      %c0_182 = arith.constant 0 : index
      %229 = arith.index_cast %228 : i32 to index
      %c0_183 = arith.constant 0 : index
      %c0_184 = arith.constant 0 : index
      %230 = vector.load %arg1[%c0_182, %229, %c0_183, %c0_184] : memref<1x71x64x8xbf16, #tpu.memory_space<vmem>>, vector<1x1x64x8xbf16>
      %231 = vector.shape_cast %230 : vector<1x1x64x8xbf16> to vector<64x8xbf16>
      %c0_185 = arith.constant 0 : index
      %c0_186 = arith.constant 0 : index
      %c0_187 = arith.constant 0 : index
      %232 = vector.load %arg3[%c0_185, %c0_186, %c0_187] : memref<8x8x8xbf16, #tpu.memory_space<vmem>>, vector<1x8x8xbf16>
      %233 = vector.shape_cast %232 : vector<1x8x8xbf16> to vector<8x8xbf16>
      %cst_188 = arith.constant dense<0.000000e+00> : vector<64x8xf32>
      %234 = tpu.matmul %231, %233, %cst_188 {dimension_numbers = #tpu.dot_dimension_numbers<[1], [0], [0], [1], [0, 0, 1, 1], [], []>} : vector<64x8xbf16>, vector<8x8xbf16>, vector<64x8xf32> -> vector<64x8xf32>
      %c1_i32_189 = arith.constant 1 : i32
      %235 = arith.addi %228, %c1_i32_189 : i32
      %c0_190 = arith.constant 0 : index
      %236 = arith.index_cast %235 : i32 to index
      %c0_191 = arith.constant 0 : index
      %c0_192 = arith.constant 0 : index
      %237 = vector.load %arg1[%c0_190, %236, %c0_191, %c0_192] : memref<1x71x64x8xbf16, #tpu.memory_space<vmem>>, vector<1x1x64x8xbf16>
      %238 = vector.shape_cast %237 : vector<1x1x64x8xbf16> to vector<64x8xbf16>
      %c1_193 = arith.constant 1 : index
      %c0_194 = arith.constant 0 : index
      %c0_195 = arith.constant 0 : index
      %239 = vector.load %arg3[%c1_193, %c0_194, %c0_195] : memref<8x8x8xbf16, #tpu.memory_space<vmem>>, vector<1x8x8xbf16>
      %240 = vector.shape_cast %239 : vector<1x8x8xbf16> to vector<8x8xbf16>
      %cst_196 = arith.constant dense<0.000000e+00> : vector<64x8xf32>
      %241 = tpu.matmul %238, %240, %cst_196 {dimension_numbers = #tpu.dot_dimension_numbers<[1], [0], [0], [1], [0, 0, 1, 1], [], []>} : vector<64x8xbf16>, vector<8x8xbf16>, vector<64x8xf32> -> vector<64x8xf32>
      %242 = arith.addf %234, %241 : vector<64x8xf32>
      %c2_i32_197 = arith.constant 2 : i32
      %243 = arith.addi %228, %c2_i32_197 : i32
      %c0_198 = arith.constant 0 : index
      %244 = arith.index_cast %243 : i32 to index
      %c0_199 = arith.constant 0 : index
      %c0_200 = arith.constant 0 : index
      %245 = vector.load %arg1[%c0_198, %244, %c0_199, %c0_200] : memref<1x71x64x8xbf16, #tpu.memory_space<vmem>>, vector<1x1x64x8xbf16>
      %246 = vector.shape_cast %245 : vector<1x1x64x8xbf16> to vector<64x8xbf16>
      %c2_201 = arith.constant 2 : index
      %c0_202 = arith.constant 0 : index
      %c0_203 = arith.constant 0 : index
      %247 = vector.load %arg3[%c2_201, %c0_202, %c0_203] : memref<8x8x8xbf16, #tpu.memory_space<vmem>>, vector<1x8x8xbf16>
      %248 = vector.shape_cast %247 : vector<1x8x8xbf16> to vector<8x8xbf16>
      %cst_204 = arith.constant dense<0.000000e+00> : vector<64x8xf32>
      %249 = tpu.matmul %246, %248, %cst_204 {dimension_numbers = #tpu.dot_dimension_numbers<[1], [0], [0], [1], [0, 0, 1, 1], [], []>} : vector<64x8xbf16>, vector<8x8xbf16>, vector<64x8xf32> -> vector<64x8xf32>
      %250 = arith.addf %242, %249 : vector<64x8xf32>
      %c3_i32 = arith.constant 3 : i32
      %251 = arith.addi %228, %c3_i32 : i32
      %c0_205 = arith.constant 0 : index
      %252 = arith.index_cast %251 : i32 to index
      %c0_206 = arith.constant 0 : index
      %c0_207 = arith.constant 0 : index
      %253 = vector.load %arg1[%c0_205, %252, %c0_206, %c0_207] : memref<1x71x64x8xbf16, #tpu.memory_space<vmem>>, vector<1x1x64x8xbf16>
      %254 = vector.shape_cast %253 : vector<1x1x64x8xbf16> to vector<64x8xbf16>
      %c3_208 = arith.constant 3 : index
      %c0_209 = arith.constant 0 : index
      %c0_210 = arith.constant 0 : index
      %255 = vector.load %arg3[%c3_208, %c0_209, %c0_210] : memref<8x8x8xbf16, #tpu.memory_space<vmem>>, vector<1x8x8xbf16>
      %256 = vector.shape_cast %255 : vector<1x8x8xbf16> to vector<8x8xbf16>
      %cst_211 = arith.constant dense<0.000000e+00> : vector<64x8xf32>
      %257 = tpu.matmul %254, %256, %cst_211 {dimension_numbers = #tpu.dot_dimension_numbers<[1], [0], [0], [1], [0, 0, 1, 1], [], []>} : vector<64x8xbf16>, vector<8x8xbf16>, vector<64x8xf32> -> vector<64x8xf32>
      %258 = arith.addf %250, %257 : vector<64x8xf32>
      %c4_i32_212 = arith.constant 4 : i32
      %259 = arith.addi %228, %c4_i32_212 : i32
      %c0_213 = arith.constant 0 : index
      %260 = arith.index_cast %259 : i32 to index
      %c0_214 = arith.constant 0 : index
      %c0_215 = arith.constant 0 : index
      %261 = vector.load %arg1[%c0_213, %260, %c0_214, %c0_215] : memref<1x71x64x8xbf16, #tpu.memory_space<vmem>>, vector<1x1x64x8xbf16>
      %262 = vector.shape_cast %261 : vector<1x1x64x8xbf16> to vector<64x8xbf16>
      %c4_216 = arith.constant 4 : index
      %c0_217 = arith.constant 0 : index
      %c0_218 = arith.constant 0 : index
      %263 = vector.load %arg3[%c4_216, %c0_217, %c0_218] : memref<8x8x8xbf16, #tpu.memory_space<vmem>>, vector<1x8x8xbf16>
      %264 = vector.shape_cast %263 : vector<1x8x8xbf16> to vector<8x8xbf16>
      %cst_219 = arith.constant dense<0.000000e+00> : vector<64x8xf32>
      %265 = tpu.matmul %262, %264, %cst_219 {dimension_numbers = #tpu.dot_dimension_numbers<[1], [0], [0], [1], [0, 0, 1, 1], [], []>} : vector<64x8xbf16>, vector<8x8xbf16>, vector<64x8xf32> -> vector<64x8xf32>
      %266 = arith.addf %258, %265 : vector<64x8xf32>
      %c5_i32 = arith.constant 5 : i32
      %267 = arith.addi %228, %c5_i32 : i32
      %c0_220 = arith.constant 0 : index
      %268 = arith.index_cast %267 : i32 to index
      %c0_221 = arith.constant 0 : index
      %c0_222 = arith.constant 0 : index
      %269 = vector.load %arg1[%c0_220, %268, %c0_221, %c0_222] : memref<1x71x64x8xbf16, #tpu.memory_space<vmem>>, vector<1x1x64x8xbf16>
      %270 = vector.shape_cast %269 : vector<1x1x64x8xbf16> to vector<64x8xbf16>
      %c5_223 = arith.constant 5 : index
      %c0_224 = arith.constant 0 : index
      %c0_225 = arith.constant 0 : index
      %271 = vector.load %arg3[%c5_223, %c0_224, %c0_225] : memref<8x8x8xbf16, #tpu.memory_space<vmem>>, vector<1x8x8xbf16>
      %272 = vector.shape_cast %271 : vector<1x8x8xbf16> to vector<8x8xbf16>
      %cst_226 = arith.constant dense<0.000000e+00> : vector<64x8xf32>
      %273 = tpu.matmul %270, %272, %cst_226 {dimension_numbers = #tpu.dot_dimension_numbers<[1], [0], [0], [1], [0, 0, 1, 1], [], []>} : vector<64x8xbf16>, vector<8x8xbf16>, vector<64x8xf32> -> vector<64x8xf32>
      %274 = arith.addf %266, %273 : vector<64x8xf32>
      %c6_i32_227 = arith.constant 6 : i32
      %275 = arith.addi %228, %c6_i32_227 : i32
      %c0_228 = arith.constant 0 : index
      %276 = arith.index_cast %275 : i32 to index
      %c0_229 = arith.constant 0 : index
      %c0_230 = arith.constant 0 : index
      %277 = vector.load %arg1[%c0_228, %276, %c0_229, %c0_230] : memref<1x71x64x8xbf16, #tpu.memory_space<vmem>>, vector<1x1x64x8xbf16>
      %278 = vector.shape_cast %277 : vector<1x1x64x8xbf16> to vector<64x8xbf16>
      %c6_231 = arith.constant 6 : index
      %c0_232 = arith.constant 0 : index
      %c0_233 = arith.constant 0 : index
      %279 = vector.load %arg3[%c6_231, %c0_232, %c0_233] : memref<8x8x8xbf16, #tpu.memory_space<vmem>>, vector<1x8x8xbf16>
      %280 = vector.shape_cast %279 : vector<1x8x8xbf16> to vector<8x8xbf16>
      %cst_234 = arith.constant dense<0.000000e+00> : vector<64x8xf32>
      %281 = tpu.matmul %278, %280, %cst_234 {dimension_numbers = #tpu.dot_dimension_numbers<[1], [0], [0], [1], [0, 0, 1, 1], [], []>} : vector<64x8xbf16>, vector<8x8xbf16>, vector<64x8xf32> -> vector<64x8xf32>
      %282 = arith.addf %274, %281 : vector<64x8xf32>
      %c7_i32 = arith.constant 7 : i32
      %283 = arith.addi %228, %c7_i32 : i32
      %c0_235 = arith.constant 0 : index
      %284 = arith.index_cast %283 : i32 to index
      %c0_236 = arith.constant 0 : index
      %c0_237 = arith.constant 0 : index
      %285 = vector.load %arg1[%c0_235, %284, %c0_236, %c0_237] : memref<1x71x64x8xbf16, #tpu.memory_space<vmem>>, vector<1x1x64x8xbf16>
      %286 = vector.shape_cast %285 : vector<1x1x64x8xbf16> to vector<64x8xbf16>
      %c7_238 = arith.constant 7 : index
      %c0_239 = arith.constant 0 : index
      %c0_240 = arith.constant 0 : index
      %287 = vector.load %arg3[%c7_238, %c0_239, %c0_240] : memref<8x8x8xbf16, #tpu.memory_space<vmem>>, vector<1x8x8xbf16>
      %288 = vector.shape_cast %287 : vector<1x8x8xbf16> to vector<8x8xbf16>
      %cst_241 = arith.constant dense<0.000000e+00> : vector<64x8xf32>
      %289 = tpu.matmul %286, %288, %cst_241 {dimension_numbers = #tpu.dot_dimension_numbers<[1], [0], [0], [1], [0, 0, 1, 1], [], []>} : vector<64x8xbf16>, vector<8x8xbf16>, vector<64x8xf32> -> vector<64x8xf32>
      %290 = arith.addf %282, %289 : vector<64x8xf32>
      %291 = vector.broadcast %0 : vector<1x8xf32> to vector<64x8xf32>
      %292 = arith.addf %290, %291 : vector<64x8xf32>
      %c2_i32_242 = arith.constant 2 : i32
      %293 = arith.muli %c2_i32_242, %227 : i32
      %c1_i32_243 = arith.constant 1 : i32
      %294 = arith.addi %293, %c1_i32_243 : i32
      %c0_244 = arith.constant 0 : index
      %295 = arith.index_cast %294 : i32 to index
      %c0_245 = arith.constant 0 : index
      %c0_246 = arith.constant 0 : index
      %296 = vector.load %arg1[%c0_244, %295, %c0_245, %c0_246] : memref<1x71x64x8xbf16, #tpu.memory_space<vmem>>, vector<1x1x64x8xbf16>
      %297 = vector.shape_cast %296 : vector<1x1x64x8xbf16> to vector<64x8xbf16>
      %c0_247 = arith.constant 0 : index
      %c0_248 = arith.constant 0 : index
      %c0_249 = arith.constant 0 : index
      %298 = vector.load %arg3[%c0_247, %c0_248, %c0_249] : memref<8x8x8xbf16, #tpu.memory_space<vmem>>, vector<1x8x8xbf16>
      %299 = vector.shape_cast %298 : vector<1x8x8xbf16> to vector<8x8xbf16>
      %cst_250 = arith.constant dense<0.000000e+00> : vector<64x8xf32>
      %300 = tpu.matmul %297, %299, %cst_250 {dimension_numbers = #tpu.dot_dimension_numbers<[1], [0], [0], [1], [0, 0, 1, 1], [], []>} : vector<64x8xbf16>, vector<8x8xbf16>, vector<64x8xf32> -> vector<64x8xf32>
      %c1_i32_251 = arith.constant 1 : i32
      %301 = arith.addi %294, %c1_i32_251 : i32
      %c0_252 = arith.constant 0 : index
      %302 = arith.index_cast %301 : i32 to index
      %c0_253 = arith.constant 0 : index
      %c0_254 = arith.constant 0 : index
      %303 = vector.load %arg1[%c0_252, %302, %c0_253, %c0_254] : memref<1x71x64x8xbf16, #tpu.memory_space<vmem>>, vector<1x1x64x8xbf16>
      %304 = vector.shape_cast %303 : vector<1x1x64x8xbf16> to vector<64x8xbf16>
      %c1_255 = arith.constant 1 : index
      %c0_256 = arith.constant 0 : index
      %c0_257 = arith.constant 0 : index
      %305 = vector.load %arg3[%c1_255, %c0_256, %c0_257] : memref<8x8x8xbf16, #tpu.memory_space<vmem>>, vector<1x8x8xbf16>
      %306 = vector.shape_cast %305 : vector<1x8x8xbf16> to vector<8x8xbf16>
      %cst_258 = arith.constant dense<0.000000e+00> : vector<64x8xf32>
      %307 = tpu.matmul %304, %306, %cst_258 {dimension_numbers = #tpu.dot_dimension_numbers<[1], [0], [0], [1], [0, 0, 1, 1], [], []>} : vector<64x8xbf16>, vector<8x8xbf16>, vector<64x8xf32> -> vector<64x8xf32>
      %308 = arith.addf %300, %307 : vector<64x8xf32>
      %c2_i32_259 = arith.constant 2 : i32
      %309 = arith.addi %294, %c2_i32_259 : i32
      %c0_260 = arith.constant 0 : index
      %310 = arith.index_cast %309 : i32 to index
      %c0_261 = arith.constant 0 : index
      %c0_262 = arith.constant 0 : index
      %311 = vector.load %arg1[%c0_260, %310, %c0_261, %c0_262] : memref<1x71x64x8xbf16, #tpu.memory_space<vmem>>, vector<1x1x64x8xbf16>
      %312 = vector.shape_cast %311 : vector<1x1x64x8xbf16> to vector<64x8xbf16>
      %c2_263 = arith.constant 2 : index
      %c0_264 = arith.constant 0 : index
      %c0_265 = arith.constant 0 : index
      %313 = vector.load %arg3[%c2_263, %c0_264, %c0_265] : memref<8x8x8xbf16, #tpu.memory_space<vmem>>, vector<1x8x8xbf16>
      %314 = vector.shape_cast %313 : vector<1x8x8xbf16> to vector<8x8xbf16>
      %cst_266 = arith.constant dense<0.000000e+00> : vector<64x8xf32>
      %315 = tpu.matmul %312, %314, %cst_266 {dimension_numbers = #tpu.dot_dimension_numbers<[1], [0], [0], [1], [0, 0, 1, 1], [], []>} : vector<64x8xbf16>, vector<8x8xbf16>, vector<64x8xf32> -> vector<64x8xf32>
      %316 = arith.addf %308, %315 : vector<64x8xf32>
      %c3_i32_267 = arith.constant 3 : i32
      %317 = arith.addi %294, %c3_i32_267 : i32
      %c0_268 = arith.constant 0 : index
      %318 = arith.index_cast %317 : i32 to index
      %c0_269 = arith.constant 0 : index
      %c0_270 = arith.constant 0 : index
      %319 = vector.load %arg1[%c0_268, %318, %c0_269, %c0_270] : memref<1x71x64x8xbf16, #tpu.memory_space<vmem>>, vector<1x1x64x8xbf16>
      %320 = vector.shape_cast %319 : vector<1x1x64x8xbf16> to vector<64x8xbf16>
      %c3_271 = arith.constant 3 : index
      %c0_272 = arith.constant 0 : index
      %c0_273 = arith.constant 0 : index
      %321 = vector.load %arg3[%c3_271, %c0_272, %c0_273] : memref<8x8x8xbf16, #tpu.memory_space<vmem>>, vector<1x8x8xbf16>
      %322 = vector.shape_cast %321 : vector<1x8x8xbf16> to vector<8x8xbf16>
      %cst_274 = arith.constant dense<0.000000e+00> : vector<64x8xf32>
      %323 = tpu.matmul %320, %322, %cst_274 {dimension_numbers = #tpu.dot_dimension_numbers<[1], [0], [0], [1], [0, 0, 1, 1], [], []>} : vector<64x8xbf16>, vector<8x8xbf16>, vector<64x8xf32> -> vector<64x8xf32>
      %324 = arith.addf %316, %323 : vector<64x8xf32>
      %c4_i32_275 = arith.constant 4 : i32
      %325 = arith.addi %294, %c4_i32_275 : i32
      %c0_276 = arith.constant 0 : index
      %326 = arith.index_cast %325 : i32 to index
      %c0_277 = arith.constant 0 : index
      %c0_278 = arith.constant 0 : index
      %327 = vector.load %arg1[%c0_276, %326, %c0_277, %c0_278] : memref<1x71x64x8xbf16, #tpu.memory_space<vmem>>, vector<1x1x64x8xbf16>
      %328 = vector.shape_cast %327 : vector<1x1x64x8xbf16> to vector<64x8xbf16>
      %c4_279 = arith.constant 4 : index
      %c0_280 = arith.constant 0 : index
      %c0_281 = arith.constant 0 : index
      %329 = vector.load %arg3[%c4_279, %c0_280, %c0_281] : memref<8x8x8xbf16, #tpu.memory_space<vmem>>, vector<1x8x8xbf16>
      %330 = vector.shape_cast %329 : vector<1x8x8xbf16> to vector<8x8xbf16>
      %cst_282 = arith.constant dense<0.000000e+00> : vector<64x8xf32>
      %331 = tpu.matmul %328, %330, %cst_282 {dimension_numbers = #tpu.dot_dimension_numbers<[1], [0], [0], [1], [0, 0, 1, 1], [], []>} : vector<64x8xbf16>, vector<8x8xbf16>, vector<64x8xf32> -> vector<64x8xf32>
      %332 = arith.addf %324, %331 : vector<64x8xf32>
      %c5_i32_283 = arith.constant 5 : i32
      %333 = arith.addi %294, %c5_i32_283 : i32
      %c0_284 = arith.constant 0 : index
      %334 = arith.index_cast %333 : i32 to index
      %c0_285 = arith.constant 0 : index
      %c0_286 = arith.constant 0 : index
      %335 = vector.load %arg1[%c0_284, %334, %c0_285, %c0_286] : memref<1x71x64x8xbf16, #tpu.memory_space<vmem>>, vector<1x1x64x8xbf16>
      %336 = vector.shape_cast %335 : vector<1x1x64x8xbf16> to vector<64x8xbf16>
      %c5_287 = arith.constant 5 : index
      %c0_288 = arith.constant 0 : index
      %c0_289 = arith.constant 0 : index
      %337 = vector.load %arg3[%c5_287, %c0_288, %c0_289] : memref<8x8x8xbf16, #tpu.memory_space<vmem>>, vector<1x8x8xbf16>
      %338 = vector.shape_cast %337 : vector<1x8x8xbf16> to vector<8x8xbf16>
      %cst_290 = arith.constant dense<0.000000e+00> : vector<64x8xf32>
      %339 = tpu.matmul %336, %338, %cst_290 {dimension_numbers = #tpu.dot_dimension_numbers<[1], [0], [0], [1], [0, 0, 1, 1], [], []>} : vector<64x8xbf16>, vector<8x8xbf16>, vector<64x8xf32> -> vector<64x8xf32>
      %340 = arith.addf %332, %339 : vector<64x8xf32>
      %c6_i32_291 = arith.constant 6 : i32
      %341 = arith.addi %294, %c6_i32_291 : i32
      %c0_292 = arith.constant 0 : index
      %342 = arith.index_cast %341 : i32 to index
      %c0_293 = arith.constant 0 : index
      %c0_294 = arith.constant 0 : index
      %343 = vector.load %arg1[%c0_292, %342, %c0_293, %c0_294] : memref<1x71x64x8xbf16, #tpu.memory_space<vmem>>, vector<1x1x64x8xbf16>
      %344 = vector.shape_cast %343 : vector<1x1x64x8xbf16> to vector<64x8xbf16>
      %c6_295 = arith.constant 6 : index
      %c0_296 = arith.constant 0 : index
      %c0_297 = arith.constant 0 : index
      %345 = vector.load %arg3[%c6_295, %c0_296, %c0_297] : memref<8x8x8xbf16, #tpu.memory_space<vmem>>, vector<1x8x8xbf16>
      %346 = vector.shape_cast %345 : vector<1x8x8xbf16> to vector<8x8xbf16>
      %cst_298 = arith.constant dense<0.000000e+00> : vector<64x8xf32>
      %347 = tpu.matmul %344, %346, %cst_298 {dimension_numbers = #tpu.dot_dimension_numbers<[1], [0], [0], [1], [0, 0, 1, 1], [], []>} : vector<64x8xbf16>, vector<8x8xbf16>, vector<64x8xf32> -> vector<64x8xf32>
      %348 = arith.addf %340, %347 : vector<64x8xf32>
      %c7_i32_299 = arith.constant 7 : i32
      %349 = arith.addi %294, %c7_i32_299 : i32
      %c0_300 = arith.constant 0 : index
      %350 = arith.index_cast %349 : i32 to index
      %c0_301 = arith.constant 0 : index
      %c0_302 = arith.constant 0 : index
      %351 = vector.load %arg1[%c0_300, %350, %c0_301, %c0_302] : memref<1x71x64x8xbf16, #tpu.memory_space<vmem>>, vector<1x1x64x8xbf16>
      %352 = vector.shape_cast %351 : vector<1x1x64x8xbf16> to vector<64x8xbf16>
      %c7_303 = arith.constant 7 : index
      %c0_304 = arith.constant 0 : index
      %c0_305 = arith.constant 0 : index
      %353 = vector.load %arg3[%c7_303, %c0_304, %c0_305] : memref<8x8x8xbf16, #tpu.memory_space<vmem>>, vector<1x8x8xbf16>
      %354 = vector.shape_cast %353 : vector<1x8x8xbf16> to vector<8x8xbf16>
      %cst_306 = arith.constant dense<0.000000e+00> : vector<64x8xf32>
      %355 = tpu.matmul %352, %354, %cst_306 {dimension_numbers = #tpu.dot_dimension_numbers<[1], [0], [0], [1], [0, 0, 1, 1], [], []>} : vector<64x8xbf16>, vector<8x8xbf16>, vector<64x8xf32> -> vector<64x8xf32>
      %356 = arith.addf %348, %355 : vector<64x8xf32>
      %357 = vector.broadcast %0 : vector<1x8xf32> to vector<64x8xf32>
      %358 = arith.addf %356, %357 : vector<64x8xf32>
      %359 = arith.maximumf %292, %358 : vector<64x8xf32>
      %cst_307 = arith.constant dense<0.000000e+00> : vector<32x8xf32>
      %360 = tpu.matmul %10, %359, %cst_307 {dimension_numbers = #tpu.dot_dimension_numbers<[1], [0], [0], [1], [0, 0, 1, 1], [], []>} : vector<32x64xf32>, vector<64x8xf32>, vector<32x8xf32> -> vector<32x8xf32>
      %cst_308 = arith.constant dense<0.000000e+00> : vector<32x8xf32>
      %361 = tpu.matmul %19, %359, %cst_308 {dimension_numbers = #tpu.dot_dimension_numbers<[1], [0], [0], [1], [0, 0, 1, 1], [], []>} : vector<32x64xf32>, vector<64x8xf32>, vector<32x8xf32> -> vector<32x8xf32>
      %362 = arith.maximumf %360, %361 : vector<32x8xf32>
      %363 = arith.truncf %362 : vector<32x8xf32> to vector<32x8xbf16>
      %364 = arith.index_cast %227 : i32 to index
      %c0_309 = arith.constant 0 : index
      %c0_310 = arith.constant 0 : index
      %365 = vector.load %arg23[%364, %c0_309, %c0_310] : memref<32x32x16xbf16, #tpu.memory_space<vmem>>, vector<1x32x8xbf16>
      %366 = vector.shape_cast %365 : vector<1x32x8xbf16> to vector<32x8xbf16>
      %367 = vector.shape_cast %363 : vector<32x8xbf16> to vector<1x32x8xbf16>
      tpu.vector_store %arg23[%364, %c0_309, %c0_310], %367 {strides = array<i32>} : memref<32x32x16xbf16, #tpu.memory_space<vmem>>, vector<1x32x8xbf16>,
      %c2_i32_311 = arith.constant 2 : i32
      %368 = arith.muli %c2_i32_311, %227 : i32
      %c0_312 = arith.constant 0 : index
      %369 = arith.index_cast %368 : i32 to index
      %c0_313 = arith.constant 0 : index
      %c0_314 = arith.constant 0 : index
      %370 = vector.load %arg2[%c0_312, %369, %c0_313, %c0_314] : memref<1x64x71x8xbf16, #tpu.memory_space<vmem>>, vector<1x1x64x8xbf16>
      %371 = vector.shape_cast %370 : vector<1x1x64x8xbf16> to vector<64x8xbf16>
      %c0_315 = arith.constant 0 : index
      %c0_316 = arith.constant 0 : index
      %c0_317 = arith.constant 0 : index
      %372 = vector.load %arg4[%c0_315, %c0_316, %c0_317] : memref<8x8x8xbf16, #tpu.memory_space<vmem>>, vector<1x8x8xbf16>
      %373 = vector.shape_cast %372 : vector<1x8x8xbf16> to vector<8x8xbf16>
      %cst_318 = arith.constant dense<0.000000e+00> : vector<64x8xf32>
      %374 = tpu.matmul %371, %373, %cst_318 {dimension_numbers = #tpu.dot_dimension_numbers<[1], [0], [0], [1], [0, 0, 1, 1], [], []>} : vector<64x8xbf16>, vector<8x8xbf16>, vector<64x8xf32> -> vector<64x8xf32>
      %c0_319 = arith.constant 0 : index
      %375 = arith.index_cast %368 : i32 to index
      %c1_320 = arith.constant 1 : index
      %c0_321 = arith.constant 0 : index
      %376 = vector.load %arg2[%c0_319, %375, %c1_320, %c0_321] : memref<1x64x71x8xbf16, #tpu.memory_space<vmem>>, vector<1x1x64x8xbf16>
      %377 = vector.shape_cast %376 : vector<1x1x64x8xbf16> to vector<64x8xbf16>
      %c1_322 = arith.constant 1 : index
      %c0_323 = arith.constant 0 : index
      %c0_324 = arith.constant 0 : index
      %378 = vector.load %arg4[%c1_322, %c0_323, %c0_324] : memref<8x8x8xbf16, #tpu.memory_space<vmem>>, vector<1x8x8xbf16>
      %379 = vector.shape_cast %378 : vector<1x8x8xbf16> to vector<8x8xbf16>
      %cst_325 = arith.constant dense<0.000000e+00> : vector<64x8xf32>
      %380 = tpu.matmul %377, %379, %cst_325 {dimension_numbers = #tpu.dot_dimension_numbers<[1], [0], [0], [1], [0, 0, 1, 1], [], []>} : vector<64x8xbf16>, vector<8x8xbf16>, vector<64x8xf32> -> vector<64x8xf32>
      %381 = arith.addf %374, %380 : vector<64x8xf32>
      %c0_326 = arith.constant 0 : index
      %382 = arith.index_cast %368 : i32 to index
      %c2_327 = arith.constant 2 : index
      %c0_328 = arith.constant 0 : index
      %383 = vector.load %arg2[%c0_326, %382, %c2_327, %c0_328] : memref<1x64x71x8xbf16, #tpu.memory_space<vmem>>, vector<1x1x64x8xbf16>
      %384 = vector.shape_cast %383 : vector<1x1x64x8xbf16> to vector<64x8xbf16>
      %c2_329 = arith.constant 2 : index
      %c0_330 = arith.constant 0 : index
      %c0_331 = arith.constant 0 : index
      %385 = vector.load %arg4[%c2_329, %c0_330, %c0_331] : memref<8x8x8xbf16, #tpu.memory_space<vmem>>, vector<1x8x8xbf16>
      %386 = vector.shape_cast %385 : vector<1x8x8xbf16> to vector<8x8xbf16>
      %cst_332 = arith.constant dense<0.000000e+00> : vector<64x8xf32>
      %387 = tpu.matmul %384, %386, %cst_332 {dimension_numbers = #tpu.dot_dimension_numbers<[1], [0], [0], [1], [0, 0, 1, 1], [], []>} : vector<64x8xbf16>, vector<8x8xbf16>, vector<64x8xf32> -> vector<64x8xf32>
      %388 = arith.addf %381, %387 : vector<64x8xf32>
      %c0_333 = arith.constant 0 : index
      %389 = arith.index_cast %368 : i32 to index
      %c3_334 = arith.constant 3 : index
      %c0_335 = arith.constant 0 : index
      %390 = vector.load %arg2[%c0_333, %389, %c3_334, %c0_335] : memref<1x64x71x8xbf16, #tpu.memory_space<vmem>>, vector<1x1x64x8xbf16>
      %391 = vector.shape_cast %390 : vector<1x1x64x8xbf16> to vector<64x8xbf16>
      %c3_336 = arith.constant 3 : index
      %c0_337 = arith.constant 0 : index
      %c0_338 = arith.constant 0 : index
      %392 = vector.load %arg4[%c3_336, %c0_337, %c0_338] : memref<8x8x8xbf16, #tpu.memory_space<vmem>>, vector<1x8x8xbf16>
      %393 = vector.shape_cast %392 : vector<1x8x8xbf16> to vector<8x8xbf16>
      %cst_339 = arith.constant dense<0.000000e+00> : vector<64x8xf32>
      %394 = tpu.matmul %391, %393, %cst_339 {dimension_numbers = #tpu.dot_dimension_numbers<[1], [0], [0], [1], [0, 0, 1, 1], [], []>} : vector<64x8xbf16>, vector<8x8xbf16>, vector<64x8xf32> -> vector<64x8xf32>
      %395 = arith.addf %388, %394 : vector<64x8xf32>
      %c0_340 = arith.constant 0 : index
      %396 = arith.index_cast %368 : i32 to index
      %c4_341 = arith.constant 4 : index
      %c0_342 = arith.constant 0 : index
      %397 = vector.load %arg2[%c0_340, %396, %c4_341, %c0_342] : memref<1x64x71x8xbf16, #tpu.memory_space<vmem>>, vector<1x1x64x8xbf16>
      %398 = vector.shape_cast %397 : vector<1x1x64x8xbf16> to vector<64x8xbf16>
      %c4_343 = arith.constant 4 : index
      %c0_344 = arith.constant 0 : index
      %c0_345 = arith.constant 0 : index
      %399 = vector.load %arg4[%c4_343, %c0_344, %c0_345] : memref<8x8x8xbf16, #tpu.memory_space<vmem>>, vector<1x8x8xbf16>
      %400 = vector.shape_cast %399 : vector<1x8x8xbf16> to vector<8x8xbf16>
      %cst_346 = arith.constant dense<0.000000e+00> : vector<64x8xf32>
      %401 = tpu.matmul %398, %400, %cst_346 {dimension_numbers = #tpu.dot_dimension_numbers<[1], [0], [0], [1], [0, 0, 1, 1], [], []>} : vector<64x8xbf16>, vector<8x8xbf16>, vector<64x8xf32> -> vector<64x8xf32>
      %402 = arith.addf %395, %401 : vector<64x8xf32>
      %c0_347 = arith.constant 0 : index
      %403 = arith.index_cast %368 : i32 to index
      %c5_348 = arith.constant 5 : index
      %c0_349 = arith.constant 0 : index
      %404 = vector.load %arg2[%c0_347, %403, %c5_348, %c0_349] : memref<1x64x71x8xbf16, #tpu.memory_space<vmem>>, vector<1x1x64x8xbf16>
      %405 = vector.shape_cast %404 : vector<1x1x64x8xbf16> to vector<64x8xbf16>
      %c5_350 = arith.constant 5 : index
      %c0_351 = arith.constant 0 : index
      %c0_352 = arith.constant 0 : index
      %406 = vector.load %arg4[%c5_350, %c0_351, %c0_352] : memref<8x8x8xbf16, #tpu.memory_space<vmem>>, vector<1x8x8xbf16>
      %407 = vector.shape_cast %406 : vector<1x8x8xbf16> to vector<8x8xbf16>
      %cst_353 = arith.constant dense<0.000000e+00> : vector<64x8xf32>
      %408 = tpu.matmul %405, %407, %cst_353 {dimension_numbers = #tpu.dot_dimension_numbers<[1], [0], [0], [1], [0, 0, 1, 1], [], []>} : vector<64x8xbf16>, vector<8x8xbf16>, vector<64x8xf32> -> vector<64x8xf32>
      %409 = arith.addf %402, %408 : vector<64x8xf32>
      %c0_354 = arith.constant 0 : index
      %410 = arith.index_cast %368 : i32 to index
      %c6_355 = arith.constant 6 : index
      %c0_356 = arith.constant 0 : index
      %411 = vector.load %arg2[%c0_354, %410, %c6_355, %c0_356] : memref<1x64x71x8xbf16, #tpu.memory_space<vmem>>, vector<1x1x64x8xbf16>
      %412 = vector.shape_cast %411 : vector<1x1x64x8xbf16> to vector<64x8xbf16>
      %c6_357 = arith.constant 6 : index
      %c0_358 = arith.constant 0 : index
      %c0_359 = arith.constant 0 : index
      %413 = vector.load %arg4[%c6_357, %c0_358, %c0_359] : memref<8x8x8xbf16, #tpu.memory_space<vmem>>, vector<1x8x8xbf16>
      %414 = vector.shape_cast %413 : vector<1x8x8xbf16> to vector<8x8xbf16>
      %cst_360 = arith.constant dense<0.000000e+00> : vector<64x8xf32>
      %415 = tpu.matmul %412, %414, %cst_360 {dimension_numbers = #tpu.dot_dimension_numbers<[1], [0], [0], [1], [0, 0, 1, 1], [], []>} : vector<64x8xbf16>, vector<8x8xbf16>, vector<64x8xf32> -> vector<64x8xf32>
      %416 = arith.addf %409, %415 : vector<64x8xf32>
      %c0_361 = arith.constant 0 : index
      %417 = arith.index_cast %368 : i32 to index
      %c7_362 = arith.constant 7 : index
      %c0_363 = arith.constant 0 : index
      %418 = vector.load %arg2[%c0_361, %417, %c7_362, %c0_363] : memref<1x64x71x8xbf16, #tpu.memory_space<vmem>>, vector<1x1x64x8xbf16>
      %419 = vector.shape_cast %418 : vector<1x1x64x8xbf16> to vector<64x8xbf16>
      %c7_364 = arith.constant 7 : index
      %c0_365 = arith.constant 0 : index
      %c0_366 = arith.constant 0 : index
      %420 = vector.load %arg4[%c7_364, %c0_365, %c0_366] : memref<8x8x8xbf16, #tpu.memory_space<vmem>>, vector<1x8x8xbf16>
      %421 = vector.shape_cast %420 : vector<1x8x8xbf16> to vector<8x8xbf16>
      %cst_367 = arith.constant dense<0.000000e+00> : vector<64x8xf32>
      %422 = tpu.matmul %419, %421, %cst_367 {dimension_numbers = #tpu.dot_dimension_numbers<[1], [0], [0], [1], [0, 0, 1, 1], [], []>} : vector<64x8xbf16>, vector<8x8xbf16>, vector<64x8xf32> -> vector<64x8xf32>
      %423 = arith.addf %416, %422 : vector<64x8xf32>
      %424 = vector.broadcast %1 : vector<1x8xf32> to vector<64x8xf32>
      %425 = arith.addf %423, %424 : vector<64x8xf32>
      %c2_i32_368 = arith.constant 2 : i32
      %426 = arith.muli %c2_i32_368, %227 : i32
      %c1_i32_369 = arith.constant 1 : i32
      %427 = arith.addi %426, %c1_i32_369 : i32
      %c0_370 = arith.constant 0 : index
      %428 = arith.index_cast %427 : i32 to index
      %c0_371 = arith.constant 0 : index
      %c0_372 = arith.constant 0 : index
      %429 = vector.load %arg2[%c0_370, %428, %c0_371, %c0_372] : memref<1x64x71x8xbf16, #tpu.memory_space<vmem>>, vector<1x1x64x8xbf16>
      %430 = vector.shape_cast %429 : vector<1x1x64x8xbf16> to vector<64x8xbf16>
      %c0_373 = arith.constant 0 : index
      %c0_374 = arith.constant 0 : index
      %c0_375 = arith.constant 0 : index
      %431 = vector.load %arg4[%c0_373, %c0_374, %c0_375] : memref<8x8x8xbf16, #tpu.memory_space<vmem>>, vector<1x8x8xbf16>
      %432 = vector.shape_cast %431 : vector<1x8x8xbf16> to vector<8x8xbf16>
      %cst_376 = arith.constant dense<0.000000e+00> : vector<64x8xf32>
      %433 = tpu.matmul %430, %432, %cst_376 {dimension_numbers = #tpu.dot_dimension_numbers<[1], [0], [0], [1], [0, 0, 1, 1], [], []>} : vector<64x8xbf16>, vector<8x8xbf16>, vector<64x8xf32> -> vector<64x8xf32>
      %c0_377 = arith.constant 0 : index
      %434 = arith.index_cast %427 : i32 to index
      %c1_378 = arith.constant 1 : index
      %c0_379 = arith.constant 0 : index
      %435 = vector.load %arg2[%c0_377, %434, %c1_378, %c0_379] : memref<1x64x71x8xbf16, #tpu.memory_space<vmem>>, vector<1x1x64x8xbf16>
      %436 = vector.shape_cast %435 : vector<1x1x64x8xbf16> to vector<64x8xbf16>
      %c1_380 = arith.constant 1 : index
      %c0_381 = arith.constant 0 : index
      %c0_382 = arith.constant 0 : index
      %437 = vector.load %arg4[%c1_380, %c0_381, %c0_382] : memref<8x8x8xbf16, #tpu.memory_space<vmem>>, vector<1x8x8xbf16>
      %438 = vector.shape_cast %437 : vector<1x8x8xbf16> to vector<8x8xbf16>
      %cst_383 = arith.constant dense<0.000000e+00> : vector<64x8xf32>
      %439 = tpu.matmul %436, %438, %cst_383 {dimension_numbers = #tpu.dot_dimension_numbers<[1], [0], [0], [1], [0, 0, 1, 1], [], []>} : vector<64x8xbf16>, vector<8x8xbf16>, vector<64x8xf32> -> vector<64x8xf32>
      %440 = arith.addf %433, %439 : vector<64x8xf32>
      %c0_384 = arith.constant 0 : index
      %441 = arith.index_cast %427 : i32 to index
      %c2_385 = arith.constant 2 : index
      %c0_386 = arith.constant 0 : index
      %442 = vector.load %arg2[%c0_384, %441, %c2_385, %c0_386] : memref<1x64x71x8xbf16, #tpu.memory_space<vmem>>, vector<1x1x64x8xbf16>
      %443 = vector.shape_cast %442 : vector<1x1x64x8xbf16> to vector<64x8xbf16>
      %c2_387 = arith.constant 2 : index
      %c0_388 = arith.constant 0 : index
      %c0_389 = arith.constant 0 : index
      %444 = vector.load %arg4[%c2_387, %c0_388, %c0_389] : memref<8x8x8xbf16, #tpu.memory_space<vmem>>, vector<1x8x8xbf16>
      %445 = vector.shape_cast %444 : vector<1x8x8xbf16> to vector<8x8xbf16>
      %cst_390 = arith.constant dense<0.000000e+00> : vector<64x8xf32>
      %446 = tpu.matmul %443, %445, %cst_390 {dimension_numbers = #tpu.dot_dimension_numbers<[1], [0], [0], [1], [0, 0, 1, 1], [], []>} : vector<64x8xbf16>, vector<8x8xbf16>, vector<64x8xf32> -> vector<64x8xf32>
      %447 = arith.addf %440, %446 : vector<64x8xf32>
      %c0_391 = arith.constant 0 : index
      %448 = arith.index_cast %427 : i32 to index
      %c3_392 = arith.constant 3 : index
      %c0_393 = arith.constant 0 : index
      %449 = vector.load %arg2[%c0_391, %448, %c3_392, %c0_393] : memref<1x64x71x8xbf16, #tpu.memory_space<vmem>>, vector<1x1x64x8xbf16>
      %450 = vector.shape_cast %449 : vector<1x1x64x8xbf16> to vector<64x8xbf16>
      %c3_394 = arith.constant 3 : index
      %c0_395 = arith.constant 0 : index
      %c0_396 = arith.constant 0 : index
      %451 = vector.load %arg4[%c3_394, %c0_395, %c0_396] : memref<8x8x8xbf16, #tpu.memory_space<vmem>>, vector<1x8x8xbf16>
      %452 = vector.shape_cast %451 : vector<1x8x8xbf16> to vector<8x8xbf16>
      %cst_397 = arith.constant dense<0.000000e+00> : vector<64x8xf32>
      %453 = tpu.matmul %450, %452, %cst_397 {dimension_numbers = #tpu.dot_dimension_numbers<[1], [0], [0], [1], [0, 0, 1, 1], [], []>} : vector<64x8xbf16>, vector<8x8xbf16>, vector<64x8xf32> -> vector<64x8xf32>
      %454 = arith.addf %447, %453 : vector<64x8xf32>
      %c0_398 = arith.constant 0 : index
      %455 = arith.index_cast %427 : i32 to index
      %c4_399 = arith.constant 4 : index
      %c0_400 = arith.constant 0 : index
      %456 = vector.load %arg2[%c0_398, %455, %c4_399, %c0_400] : memref<1x64x71x8xbf16, #tpu.memory_space<vmem>>, vector<1x1x64x8xbf16>
      %457 = vector.shape_cast %456 : vector<1x1x64x8xbf16> to vector<64x8xbf16>
      %c4_401 = arith.constant 4 : index
      %c0_402 = arith.constant 0 : index
      %c0_403 = arith.constant 0 : index
      %458 = vector.load %arg4[%c4_401, %c0_402, %c0_403] : memref<8x8x8xbf16, #tpu.memory_space<vmem>>, vector<1x8x8xbf16>
      %459 = vector.shape_cast %458 : vector<1x8x8xbf16> to vector<8x8xbf16>
      %cst_404 = arith.constant dense<0.000000e+00> : vector<64x8xf32>
      %460 = tpu.matmul %457, %459, %cst_404 {dimension_numbers = #tpu.dot_dimension_numbers<[1], [0], [0], [1], [0, 0, 1, 1], [], []>} : vector<64x8xbf16>, vector<8x8xbf16>, vector<64x8xf32> -> vector<64x8xf32>
      %461 = arith.addf %454, %460 : vector<64x8xf32>
      %c0_405 = arith.constant 0 : index
      %462 = arith.index_cast %427 : i32 to index
      %c5_406 = arith.constant 5 : index
      %c0_407 = arith.constant 0 : index
      %463 = vector.load %arg2[%c0_405, %462, %c5_406, %c0_407] : memref<1x64x71x8xbf16, #tpu.memory_space<vmem>>, vector<1x1x64x8xbf16>
      %464 = vector.shape_cast %463 : vector<1x1x64x8xbf16> to vector<64x8xbf16>
      %c5_408 = arith.constant 5 : index
      %c0_409 = arith.constant 0 : index
      %c0_410 = arith.constant 0 : index
      %465 = vector.load %arg4[%c5_408, %c0_409, %c0_410] : memref<8x8x8xbf16, #tpu.memory_space<vmem>>, vector<1x8x8xbf16>
      %466 = vector.shape_cast %465 : vector<1x8x8xbf16> to vector<8x8xbf16>
      %cst_411 = arith.constant dense<0.000000e+00> : vector<64x8xf32>
      %467 = tpu.matmul %464, %466, %cst_411 {dimension_numbers = #tpu.dot_dimension_numbers<[1], [0], [0], [1], [0, 0, 1, 1], [], []>} : vector<64x8xbf16>, vector<8x8xbf16>, vector<64x8xf32> -> vector<64x8xf32>
      %468 = arith.addf %461, %467 : vector<64x8xf32>
      %c0_412 = arith.constant 0 : index
      %469 = arith.index_cast %427 : i32 to index
      %c6_413 = arith.constant 6 : index
      %c0_414 = arith.constant 0 : index
      %470 = vector.load %arg2[%c0_412, %469, %c6_413, %c0_414] : memref<1x64x71x8xbf16, #tpu.memory_space<vmem>>, vector<1x1x64x8xbf16>
      %471 = vector.shape_cast %470 : vector<1x1x64x8xbf16> to vector<64x8xbf16>
      %c6_415 = arith.constant 6 : index
      %c0_416 = arith.constant 0 : index
      %c0_417 = arith.constant 0 : index
      %472 = vector.load %arg4[%c6_415, %c0_416, %c0_417] : memref<8x8x8xbf16, #tpu.memory_space<vmem>>, vector<1x8x8xbf16>
      %473 = vector.shape_cast %472 : vector<1x8x8xbf16> to vector<8x8xbf16>
      %cst_418 = arith.constant dense<0.000000e+00> : vector<64x8xf32>
      %474 = tpu.matmul %471, %473, %cst_418 {dimension_numbers = #tpu.dot_dimension_numbers<[1], [0], [0], [1], [0, 0, 1, 1], [], []>} : vector<64x8xbf16>, vector<8x8xbf16>, vector<64x8xf32> -> vector<64x8xf32>
      %475 = arith.addf %468, %474 : vector<64x8xf32>
      %c0_419 = arith.constant 0 : index
      %476 = arith.index_cast %427 : i32 to index
      %c7_420 = arith.constant 7 : index
      %c0_421 = arith.constant 0 : index
      %477 = vector.load %arg2[%c0_419, %476, %c7_420, %c0_421] : memref<1x64x71x8xbf16, #tpu.memory_space<vmem>>, vector<1x1x64x8xbf16>
      %478 = vector.shape_cast %477 : vector<1x1x64x8xbf16> to vector<64x8xbf16>
      %c7_422 = arith.constant 7 : index
      %c0_423 = arith.constant 0 : index
      %c0_424 = arith.constant 0 : index
      %479 = vector.load %arg4[%c7_422, %c0_423, %c0_424] : memref<8x8x8xbf16, #tpu.memory_space<vmem>>, vector<1x8x8xbf16>
      %480 = vector.shape_cast %479 : vector<1x8x8xbf16> to vector<8x8xbf16>
      %cst_425 = arith.constant dense<0.000000e+00> : vector<64x8xf32>
      %481 = tpu.matmul %478, %480, %cst_425 {dimension_numbers = #tpu.dot_dimension_numbers<[1], [0], [0], [1], [0, 0, 1, 1], [], []>} : vector<64x8xbf16>, vector<8x8xbf16>, vector<64x8xf32> -> vector<64x8xf32>
      %482 = arith.addf %475, %481 : vector<64x8xf32>
      %483 = vector.broadcast %1 : vector<1x8xf32> to vector<64x8xf32>
      %484 = arith.addf %482, %483 : vector<64x8xf32>
      %485 = arith.maximumf %425, %484 : vector<64x8xf32>
      %cst_426 = arith.constant dense<0.000000e+00> : vector<32x8xf32>
      %486 = tpu.matmul %10, %485, %cst_426 {dimension_numbers = #tpu.dot_dimension_numbers<[1], [0], [0], [1], [0, 0, 1, 1], [], []>} : vector<32x64xf32>, vector<64x8xf32>, vector<32x8xf32> -> vector<32x8xf32>
      %cst_427 = arith.constant dense<0.000000e+00> : vector<32x8xf32>
      %487 = tpu.matmul %19, %485, %cst_427 {dimension_numbers = #tpu.dot_dimension_numbers<[1], [0], [0], [1], [0, 0, 1, 1], [], []>} : vector<32x64xf32>, vector<64x8xf32>, vector<32x8xf32> -> vector<32x8xf32>
      %488 = arith.maximumf %486, %487 : vector<32x8xf32>
      %489 = arith.truncf %488 : vector<32x8xf32> to vector<32x8xbf16>
      %490 = arith.index_cast %227 : i32 to index
      %c0_428 = arith.constant 0 : index
      %c8_429 = arith.constant 8 : index
      %491 = vector.load %arg23[%490, %c0_428, %c8_429] : memref<32x32x16xbf16, #tpu.memory_space<vmem>>, vector<1x32x8xbf16>
      %492 = vector.shape_cast %491 : vector<1x32x8xbf16> to vector<32x8xbf16>
      %493 = vector.shape_cast %489 : vector<32x8xbf16> to vector<1x32x8xbf16>
      tpu.vector_store %arg23[%490, %c0_428, %c8_429], %493 {strides = array<i32>} : memref<32x32x16xbf16, #tpu.memory_space<vmem>>, vector<1x32x8xbf16>,
    }
    %c32_i32_6 = arith.constant 32 : i32
    %c0_7 = arith.constant 0 : index
    %c0_8 = arith.constant 0 : index
    %21 = vector.load %arg8[%c0_7, %c0_8] : memref<1x32xf32, #tpu.memory_space<vmem>>, vector<1x32xf32>
    %c0_9 = arith.constant 0 : index
    %c0_10 = arith.constant 0 : index
    %22 = vector.load %arg9[%c0_9, %c0_10] : memref<1x32xf32, #tpu.memory_space<vmem>>, vector<1x32xf32>
    %23 = tpu.iota {dimensions = array<i32: 0>} : vector<15x30xi32>
    %24 = tpu.iota {dimensions = array<i32: 1>} : vector<15x30xi32>
    %c2_i32_11 = arith.constant 2 : i32
    %25 = vector.broadcast %c2_i32_11 : i32 to vector<15x30xi32>
    %26 = arith.muli %25, %23 : vector<15x30xi32>
    %c0_i32_12 = arith.constant 0 : i32
    %27 = vector.broadcast %c0_i32_12 : i32 to vector<15x30xi32>
    %28 = arith.addi %26, %27 : vector<15x30xi32>
    %29 = arith.cmpi eq, %24, %28 : vector<15x30xi32>
    %30 = arith.extui %29 : vector<15x30xi1> to vector<15x30xi32>
    %31 = arith.sitofp %30 : vector<15x30xi32> to vector<15x30xf32>
    %32 = tpu.iota {dimensions = array<i32: 0>} : vector<15x30xi32>
    %33 = tpu.iota {dimensions = array<i32: 1>} : vector<15x30xi32>
    %c2_i32_13 = arith.constant 2 : i32
    %34 = vector.broadcast %c2_i32_13 : i32 to vector<15x30xi32>
    %35 = arith.muli %34, %32 : vector<15x30xi32>
    %c1_i32_14 = arith.constant 1 : i32
    %36 = vector.broadcast %c1_i32_14 : i32 to vector<15x30xi32>
    %37 = arith.addi %35, %36 : vector<15x30xi32>
    %38 = arith.cmpi eq, %33, %37 : vector<15x30xi32>
    %39 = arith.extui %38 : vector<15x30xi1> to vector<15x30xi32>
    %40 = arith.sitofp %39 : vector<15x30xi32> to vector<15x30xf32>
    %c0_i32_15 = arith.constant 0 : i32
    %c15_i32 = arith.constant 15 : i32
    %41 = arith.addi %c0_i32_15, %c15_i32 : i32
    %c1_i32_16 = arith.constant 1 : i32
    scf.for %arg27 = %c0_i32_15 to %41 step %c1_i32_16  : i32 {
      %c1_i32_179 = arith.constant 1 : i32
      %226 = arith.muli %arg27, %c1_i32_179 : i32
      %c0_i32_180 = arith.constant 0 : i32
      %227 = arith.addi %c0_i32_180, %226 : i32
      %c2_i32_181 = arith.constant 2 : i32
      %228 = arith.muli %c2_i32_181, %227 : i32
      %c0_i32_182 = arith.constant 0 : i32
      %229 = arith.addi %228, %c0_i32_182 : i32
      %230 = arith.index_cast %229 : i32 to index
      %c0_183 = arith.constant 0 : index
      %c0_184 = arith.constant 0 : index
      %231 = vector.load %arg23[%230, %c0_183, %c0_184] : memref<32x32x16xbf16, #tpu.memory_space<vmem>>, vector<1x30x16xbf16>
      %232 = vector.shape_cast %231 : vector<1x30x16xbf16> to vector<30x16xbf16>
      %c0_185 = arith.constant 0 : index
      %c0_186 = arith.constant 0 : index
      %c0_187 = arith.constant 0 : index
      %233 = vector.load %arg7[%c0_185, %c0_186, %c0_187] : memref<9x16x32xbf16, #tpu.memory_space<vmem>>, vector<1x16x32xbf16>
      %234 = vector.shape_cast %233 : vector<1x16x32xbf16> to vector<16x32xbf16>
      %cst_188 = arith.constant dense<0.000000e+00> : vector<30x32xf32>
      %235 = tpu.matmul %232, %234, %cst_188 {dimension_numbers = #tpu.dot_dimension_numbers<[1], [0], [0], [1], [0, 0, 1, 1], [], []>} : vector<30x16xbf16>, vector<16x32xbf16>, vector<30x32xf32> -> vector<30x32xf32>
      %c0_i32_189 = arith.constant 0 : i32
      %236 = arith.addi %228, %c0_i32_189 : i32
      %237 = arith.index_cast %236 : i32 to index
      %c1_190 = arith.constant 1 : index
      %c0_191 = arith.constant 0 : index
      %238 = vector.load %arg23[%237, %c1_190, %c0_191] : memref<32x32x16xbf16, #tpu.memory_space<vmem>>, vector<1x30x16xbf16>
      %239 = vector.shape_cast %238 : vector<1x30x16xbf16> to vector<30x16xbf16>
      %c1_192 = arith.constant 1 : index
      %c0_193 = arith.constant 0 : index
      %c0_194 = arith.constant 0 : index
      %240 = vector.load %arg7[%c1_192, %c0_193, %c0_194] : memref<9x16x32xbf16, #tpu.memory_space<vmem>>, vector<1x16x32xbf16>
      %241 = vector.shape_cast %240 : vector<1x16x32xbf16> to vector<16x32xbf16>
      %cst_195 = arith.constant dense<0.000000e+00> : vector<30x32xf32>
      %242 = tpu.matmul %239, %241, %cst_195 {dimension_numbers = #tpu.dot_dimension_numbers<[1], [0], [0], [1], [0, 0, 1, 1], [], []>} : vector<30x16xbf16>, vector<16x32xbf16>, vector<30x32xf32> -> vector<30x32xf32>
      %243 = arith.addf %235, %242 : vector<30x32xf32>
      %c0_i32_196 = arith.constant 0 : i32
      %244 = arith.addi %228, %c0_i32_196 : i32
      %245 = arith.index_cast %244 : i32 to index
      %c2_197 = arith.constant 2 : index
      %c0_198 = arith.constant 0 : index
      %246 = vector.load %arg23[%245, %c2_197, %c0_198] : memref<32x32x16xbf16, #tpu.memory_space<vmem>>, vector<1x30x16xbf16>
      %247 = vector.shape_cast %246 : vector<1x30x16xbf16> to vector<30x16xbf16>
      %c2_199 = arith.constant 2 : index
      %c0_200 = arith.constant 0 : index
      %c0_201 = arith.constant 0 : index
      %248 = vector.load %arg7[%c2_199, %c0_200, %c0_201] : memref<9x16x32xbf16, #tpu.memory_space<vmem>>, vector<1x16x32xbf16>
      %249 = vector.shape_cast %248 : vector<1x16x32xbf16> to vector<16x32xbf16>
      %cst_202 = arith.constant dense<0.000000e+00> : vector<30x32xf32>
      %250 = tpu.matmul %247, %249, %cst_202 {dimension_numbers = #tpu.dot_dimension_numbers<[1], [0], [0], [1], [0, 0, 1, 1], [], []>} : vector<30x16xbf16>, vector<16x32xbf16>, vector<30x32xf32> -> vector<30x32xf32>
      %251 = arith.addf %243, %250 : vector<30x32xf32>
      %c1_i32_203 = arith.constant 1 : i32
      %252 = arith.addi %228, %c1_i32_203 : i32
      %253 = arith.index_cast %252 : i32 to index
      %c0_204 = arith.constant 0 : index
      %c0_205 = arith.constant 0 : index
      %254 = vector.load %arg23[%253, %c0_204, %c0_205] : memref<32x32x16xbf16, #tpu.memory_space<vmem>>, vector<1x30x16xbf16>
      %255 = vector.shape_cast %254 : vector<1x30x16xbf16> to vector<30x16xbf16>
      %c3_206 = arith.constant 3 : index
      %c0_207 = arith.constant 0 : index
      %c0_208 = arith.constant 0 : index
      %256 = vector.load %arg7[%c3_206, %c0_207, %c0_208] : memref<9x16x32xbf16, #tpu.memory_space<vmem>>, vector<1x16x32xbf16>
      %257 = vector.shape_cast %256 : vector<1x16x32xbf16> to vector<16x32xbf16>
      %cst_209 = arith.constant dense<0.000000e+00> : vector<30x32xf32>
      %258 = tpu.matmul %255, %257, %cst_209 {dimension_numbers = #tpu.dot_dimension_numbers<[1], [0], [0], [1], [0, 0, 1, 1], [], []>} : vector<30x16xbf16>, vector<16x32xbf16>, vector<30x32xf32> -> vector<30x32xf32>
      %259 = arith.addf %251, %258 : vector<30x32xf32>
      %c1_i32_210 = arith.constant 1 : i32
      %260 = arith.addi %228, %c1_i32_210 : i32
      %261 = arith.index_cast %260 : i32 to index
      %c1_211 = arith.constant 1 : index
      %c0_212 = arith.constant 0 : index
      %262 = vector.load %arg23[%261, %c1_211, %c0_212] : memref<32x32x16xbf16, #tpu.memory_space<vmem>>, vector<1x30x16xbf16>
      %263 = vector.shape_cast %262 : vector<1x30x16xbf16> to vector<30x16xbf16>
      %c4_213 = arith.constant 4 : index
      %c0_214 = arith.constant 0 : index
      %c0_215 = arith.constant 0 : index
      %264 = vector.load %arg7[%c4_213, %c0_214, %c0_215] : memref<9x16x32xbf16, #tpu.memory_space<vmem>>, vector<1x16x32xbf16>
      %265 = vector.shape_cast %264 : vector<1x16x32xbf16> to vector<16x32xbf16>
      %cst_216 = arith.constant dense<0.000000e+00> : vector<30x32xf32>
      %266 = tpu.matmul %263, %265, %cst_216 {dimension_numbers = #tpu.dot_dimension_numbers<[1], [0], [0], [1], [0, 0, 1, 1], [], []>} : vector<30x16xbf16>, vector<16x32xbf16>, vector<30x32xf32> -> vector<30x32xf32>
      %267 = arith.addf %259, %266 : vector<30x32xf32>
      %c1_i32_217 = arith.constant 1 : i32
      %268 = arith.addi %228, %c1_i32_217 : i32
      %269 = arith.index_cast %268 : i32 to index
      %c2_218 = arith.constant 2 : index
      %c0_219 = arith.constant 0 : index
      %270 = vector.load %arg23[%269, %c2_218, %c0_219] : memref<32x32x16xbf16, #tpu.memory_space<vmem>>, vector<1x30x16xbf16>
      %271 = vector.shape_cast %270 : vector<1x30x16xbf16> to vector<30x16xbf16>
      %c5_220 = arith.constant 5 : index
      %c0_221 = arith.constant 0 : index
      %c0_222 = arith.constant 0 : index
      %272 = vector.load %arg7[%c5_220, %c0_221, %c0_222] : memref<9x16x32xbf16, #tpu.memory_space<vmem>>, vector<1x16x32xbf16>
      %273 = vector.shape_cast %272 : vector<1x16x32xbf16> to vector<16x32xbf16>
      %cst_223 = arith.constant dense<0.000000e+00> : vector<30x32xf32>
      %274 = tpu.matmul %271, %273, %cst_223 {dimension_numbers = #tpu.dot_dimension_numbers<[1], [0], [0], [1], [0, 0, 1, 1], [], []>} : vector<30x16xbf16>, vector<16x32xbf16>, vector<30x32xf32> -> vector<30x32xf32>
      %275 = arith.addf %267, %274 : vector<30x32xf32>
      %c2_i32_224 = arith.constant 2 : i32
      %276 = arith.addi %228, %c2_i32_224 : i32
      %277 = arith.index_cast %276 : i32 to index
      %c0_225 = arith.constant 0 : index
      %c0_226 = arith.constant 0 : index
      %278 = vector.load %arg23[%277, %c0_225, %c0_226] : memref<32x32x16xbf16, #tpu.memory_space<vmem>>, vector<1x30x16xbf16>
      %279 = vector.shape_cast %278 : vector<1x30x16xbf16> to vector<30x16xbf16>
      %c6_227 = arith.constant 6 : index
      %c0_228 = arith.constant 0 : index
      %c0_229 = arith.constant 0 : index
      %280 = vector.load %arg7[%c6_227, %c0_228, %c0_229] : memref<9x16x32xbf16, #tpu.memory_space<vmem>>, vector<1x16x32xbf16>
      %281 = vector.shape_cast %280 : vector<1x16x32xbf16> to vector<16x32xbf16>
      %cst_230 = arith.constant dense<0.000000e+00> : vector<30x32xf32>
      %282 = tpu.matmul %279, %281, %cst_230 {dimension_numbers = #tpu.dot_dimension_numbers<[1], [0], [0], [1], [0, 0, 1, 1], [], []>} : vector<30x16xbf16>, vector<16x32xbf16>, vector<30x32xf32> -> vector<30x32xf32>
      %283 = arith.addf %275, %282 : vector<30x32xf32>
      %c2_i32_231 = arith.constant 2 : i32
      %284 = arith.addi %228, %c2_i32_231 : i32
      %285 = arith.index_cast %284 : i32 to index
      %c1_232 = arith.constant 1 : index
      %c0_233 = arith.constant 0 : index
      %286 = vector.load %arg23[%285, %c1_232, %c0_233] : memref<32x32x16xbf16, #tpu.memory_space<vmem>>, vector<1x30x16xbf16>
      %287 = vector.shape_cast %286 : vector<1x30x16xbf16> to vector<30x16xbf16>
      %c7_234 = arith.constant 7 : index
      %c0_235 = arith.constant 0 : index
      %c0_236 = arith.constant 0 : index
      %288 = vector.load %arg7[%c7_234, %c0_235, %c0_236] : memref<9x16x32xbf16, #tpu.memory_space<vmem>>, vector<1x16x32xbf16>
      %289 = vector.shape_cast %288 : vector<1x16x32xbf16> to vector<16x32xbf16>
      %cst_237 = arith.constant dense<0.000000e+00> : vector<30x32xf32>
      %290 = tpu.matmul %287, %289, %cst_237 {dimension_numbers = #tpu.dot_dimension_numbers<[1], [0], [0], [1], [0, 0, 1, 1], [], []>} : vector<30x16xbf16>, vector<16x32xbf16>, vector<30x32xf32> -> vector<30x32xf32>
      %291 = arith.addf %283, %290 : vector<30x32xf32>
      %c2_i32_238 = arith.constant 2 : i32
      %292 = arith.addi %228, %c2_i32_238 : i32
      %293 = arith.index_cast %292 : i32 to index
      %c2_239 = arith.constant 2 : index
      %c0_240 = arith.constant 0 : index
      %294 = vector.load %arg23[%293, %c2_239, %c0_240] : memref<32x32x16xbf16, #tpu.memory_space<vmem>>, vector<1x30x16xbf16>
      %295 = vector.shape_cast %294 : vector<1x30x16xbf16> to vector<30x16xbf16>
      %c8_241 = arith.constant 8 : index
      %c0_242 = arith.constant 0 : index
      %c0_243 = arith.constant 0 : index
      %296 = vector.load %arg7[%c8_241, %c0_242, %c0_243] : memref<9x16x32xbf16, #tpu.memory_space<vmem>>, vector<1x16x32xbf16>
      %297 = vector.shape_cast %296 : vector<1x16x32xbf16> to vector<16x32xbf16>
      %cst_244 = arith.constant dense<0.000000e+00> : vector<30x32xf32>
      %298 = tpu.matmul %295, %297, %cst_244 {dimension_numbers = #tpu.dot_dimension_numbers<[1], [0], [0], [1], [0, 0, 1, 1], [], []>} : vector<30x16xbf16>, vector<16x32xbf16>, vector<30x32xf32> -> vector<30x32xf32>
      %299 = arith.addf %291, %298 : vector<30x32xf32>
      %300 = vector.broadcast %21 : vector<1x32xf32> to vector<30x32xf32>
      %301 = arith.mulf %299, %300 : vector<30x32xf32>
      %302 = vector.broadcast %22 : vector<1x32xf32> to vector<30x32xf32>
      %303 = arith.addf %301, %302 : vector<30x32xf32>
      %cst_245 = arith.constant 0.000000e+00 : f32
      %304 = vector.broadcast %cst_245 : f32 to vector<30x32xf32>
      %305 = arith.maximumf %303, %304 : vector<30x32xf32>
      %c2_i32_246 = arith.constant 2 : i32
      %306 = arith.muli %c2_i32_246, %227 : i32
      %c1_i32_247 = arith.constant 1 : i32
      %307 = arith.addi %306, %c1_i32_247 : i32
      %c0_i32_248 = arith.constant 0 : i32
      %308 = arith.addi %307, %c0_i32_248 : i32
      %309 = arith.index_cast %308 : i32 to index
      %c0_249 = arith.constant 0 : index
      %c0_250 = arith.constant 0 : index
      %310 = vector.load %arg23[%309, %c0_249, %c0_250] : memref<32x32x16xbf16, #tpu.memory_space<vmem>>, vector<1x30x16xbf16>
      %311 = vector.shape_cast %310 : vector<1x30x16xbf16> to vector<30x16xbf16>
      %c0_251 = arith.constant 0 : index
      %c0_252 = arith.constant 0 : index
      %c0_253 = arith.constant 0 : index
      %312 = vector.load %arg7[%c0_251, %c0_252, %c0_253] : memref<9x16x32xbf16, #tpu.memory_space<vmem>>, vector<1x16x32xbf16>
      %313 = vector.shape_cast %312 : vector<1x16x32xbf16> to vector<16x32xbf16>
      %cst_254 = arith.constant dense<0.000000e+00> : vector<30x32xf32>
      %314 = tpu.matmul %311, %313, %cst_254 {dimension_numbers = #tpu.dot_dimension_numbers<[1], [0], [0], [1], [0, 0, 1, 1], [], []>} : vector<30x16xbf16>, vector<16x32xbf16>, vector<30x32xf32> -> vector<30x32xf32>
      %c0_i32_255 = arith.constant 0 : i32
      %315 = arith.addi %307, %c0_i32_255 : i32
      %316 = arith.index_cast %315 : i32 to index
      %c1_256 = arith.constant 1 : index
      %c0_257 = arith.constant 0 : index
      %317 = vector.load %arg23[%316, %c1_256, %c0_257] : memref<32x32x16xbf16, #tpu.memory_space<vmem>>, vector<1x30x16xbf16>
      %318 = vector.shape_cast %317 : vector<1x30x16xbf16> to vector<30x16xbf16>
      %c1_258 = arith.constant 1 : index
      %c0_259 = arith.constant 0 : index
      %c0_260 = arith.constant 0 : index
      %319 = vector.load %arg7[%c1_258, %c0_259, %c0_260] : memref<9x16x32xbf16, #tpu.memory_space<vmem>>, vector<1x16x32xbf16>
      %320 = vector.shape_cast %319 : vector<1x16x32xbf16> to vector<16x32xbf16>
      %cst_261 = arith.constant dense<0.000000e+00> : vector<30x32xf32>
      %321 = tpu.matmul %318, %320, %cst_261 {dimension_numbers = #tpu.dot_dimension_numbers<[1], [0], [0], [1], [0, 0, 1, 1], [], []>} : vector<30x16xbf16>, vector<16x32xbf16>, vector<30x32xf32> -> vector<30x32xf32>
      %322 = arith.addf %314, %321 : vector<30x32xf32>
      %c0_i32_262 = arith.constant 0 : i32
      %323 = arith.addi %307, %c0_i32_262 : i32
      %324 = arith.index_cast %323 : i32 to index
      %c2_263 = arith.constant 2 : index
      %c0_264 = arith.constant 0 : index
      %325 = vector.load %arg23[%324, %c2_263, %c0_264] : memref<32x32x16xbf16, #tpu.memory_space<vmem>>, vector<1x30x16xbf16>
      %326 = vector.shape_cast %325 : vector<1x30x16xbf16> to vector<30x16xbf16>
      %c2_265 = arith.constant 2 : index
      %c0_266 = arith.constant 0 : index
      %c0_267 = arith.constant 0 : index
      %327 = vector.load %arg7[%c2_265, %c0_266, %c0_267] : memref<9x16x32xbf16, #tpu.memory_space<vmem>>, vector<1x16x32xbf16>
      %328 = vector.shape_cast %327 : vector<1x16x32xbf16> to vector<16x32xbf16>
      %cst_268 = arith.constant dense<0.000000e+00> : vector<30x32xf32>
      %329 = tpu.matmul %326, %328, %cst_268 {dimension_numbers = #tpu.dot_dimension_numbers<[1], [0], [0], [1], [0, 0, 1, 1], [], []>} : vector<30x16xbf16>, vector<16x32xbf16>, vector<30x32xf32> -> vector<30x32xf32>
      %330 = arith.addf %322, %329 : vector<30x32xf32>
      %c1_i32_269 = arith.constant 1 : i32
      %331 = arith.addi %307, %c1_i32_269 : i32
      %332 = arith.index_cast %331 : i32 to index
      %c0_270 = arith.constant 0 : index
      %c0_271 = arith.constant 0 : index
      %333 = vector.load %arg23[%332, %c0_270, %c0_271] : memref<32x32x16xbf16, #tpu.memory_space<vmem>>, vector<1x30x16xbf16>
      %334 = vector.shape_cast %333 : vector<1x30x16xbf16> to vector<30x16xbf16>
      %c3_272 = arith.constant 3 : index
      %c0_273 = arith.constant 0 : index
      %c0_274 = arith.constant 0 : index
      %335 = vector.load %arg7[%c3_272, %c0_273, %c0_274] : memref<9x16x32xbf16, #tpu.memory_space<vmem>>, vector<1x16x32xbf16>
      %336 = vector.shape_cast %335 : vector<1x16x32xbf16> to vector<16x32xbf16>
      %cst_275 = arith.constant dense<0.000000e+00> : vector<30x32xf32>
      %337 = tpu.matmul %334, %336, %cst_275 {dimension_numbers = #tpu.dot_dimension_numbers<[1], [0], [0], [1], [0, 0, 1, 1], [], []>} : vector<30x16xbf16>, vector<16x32xbf16>, vector<30x32xf32> -> vector<30x32xf32>
      %338 = arith.addf %330, %337 : vector<30x32xf32>
      %c1_i32_276 = arith.constant 1 : i32
      %339 = arith.addi %307, %c1_i32_276 : i32
      %340 = arith.index_cast %339 : i32 to index
      %c1_277 = arith.constant 1 : index
      %c0_278 = arith.constant 0 : index
      %341 = vector.load %arg23[%340, %c1_277, %c0_278] : memref<32x32x16xbf16, #tpu.memory_space<vmem>>, vector<1x30x16xbf16>
      %342 = vector.shape_cast %341 : vector<1x30x16xbf16> to vector<30x16xbf16>
      %c4_279 = arith.constant 4 : index
      %c0_280 = arith.constant 0 : index
      %c0_281 = arith.constant 0 : index
      %343 = vector.load %arg7[%c4_279, %c0_280, %c0_281] : memref<9x16x32xbf16, #tpu.memory_space<vmem>>, vector<1x16x32xbf16>
      %344 = vector.shape_cast %343 : vector<1x16x32xbf16> to vector<16x32xbf16>
      %cst_282 = arith.constant dense<0.000000e+00> : vector<30x32xf32>
      %345 = tpu.matmul %342, %344, %cst_282 {dimension_numbers = #tpu.dot_dimension_numbers<[1], [0], [0], [1], [0, 0, 1, 1], [], []>} : vector<30x16xbf16>, vector<16x32xbf16>, vector<30x32xf32> -> vector<30x32xf32>
      %346 = arith.addf %338, %345 : vector<30x32xf32>
      %c1_i32_283 = arith.constant 1 : i32
      %347 = arith.addi %307, %c1_i32_283 : i32
      %348 = arith.index_cast %347 : i32 to index
      %c2_284 = arith.constant 2 : index
      %c0_285 = arith.constant 0 : index
      %349 = vector.load %arg23[%348, %c2_284, %c0_285] : memref<32x32x16xbf16, #tpu.memory_space<vmem>>, vector<1x30x16xbf16>
      %350 = vector.shape_cast %349 : vector<1x30x16xbf16> to vector<30x16xbf16>
      %c5_286 = arith.constant 5 : index
      %c0_287 = arith.constant 0 : index
      %c0_288 = arith.constant 0 : index
      %351 = vector.load %arg7[%c5_286, %c0_287, %c0_288] : memref<9x16x32xbf16, #tpu.memory_space<vmem>>, vector<1x16x32xbf16>
      %352 = vector.shape_cast %351 : vector<1x16x32xbf16> to vector<16x32xbf16>
      %cst_289 = arith.constant dense<0.000000e+00> : vector<30x32xf32>
      %353 = tpu.matmul %350, %352, %cst_289 {dimension_numbers = #tpu.dot_dimension_numbers<[1], [0], [0], [1], [0, 0, 1, 1], [], []>} : vector<30x16xbf16>, vector<16x32xbf16>, vector<30x32xf32> -> vector<30x32xf32>
      %354 = arith.addf %346, %353 : vector<30x32xf32>
      %c2_i32_290 = arith.constant 2 : i32
      %355 = arith.addi %307, %c2_i32_290 : i32
      %356 = arith.index_cast %355 : i32 to index
      %c0_291 = arith.constant 0 : index
      %c0_292 = arith.constant 0 : index
      %357 = vector.load %arg23[%356, %c0_291, %c0_292] : memref<32x32x16xbf16, #tpu.memory_space<vmem>>, vector<1x30x16xbf16>
      %358 = vector.shape_cast %357 : vector<1x30x16xbf16> to vector<30x16xbf16>
      %c6_293 = arith.constant 6 : index
      %c0_294 = arith.constant 0 : index
      %c0_295 = arith.constant 0 : index
      %359 = vector.load %arg7[%c6_293, %c0_294, %c0_295] : memref<9x16x32xbf16, #tpu.memory_space<vmem>>, vector<1x16x32xbf16>
      %360 = vector.shape_cast %359 : vector<1x16x32xbf16> to vector<16x32xbf16>
      %cst_296 = arith.constant dense<0.000000e+00> : vector<30x32xf32>
      %361 = tpu.matmul %358, %360, %cst_296 {dimension_numbers = #tpu.dot_dimension_numbers<[1], [0], [0], [1], [0, 0, 1, 1], [], []>} : vector<30x16xbf16>, vector<16x32xbf16>, vector<30x32xf32> -> vector<30x32xf32>
      %362 = arith.addf %354, %361 : vector<30x32xf32>
      %c2_i32_297 = arith.constant 2 : i32
      %363 = arith.addi %307, %c2_i32_297 : i32
      %364 = arith.index_cast %363 : i32 to index
      %c1_298 = arith.constant 1 : index
      %c0_299 = arith.constant 0 : index
      %365 = vector.load %arg23[%364, %c1_298, %c0_299] : memref<32x32x16xbf16, #tpu.memory_space<vmem>>, vector<1x30x16xbf16>
      %366 = vector.shape_cast %365 : vector<1x30x16xbf16> to vector<30x16xbf16>
      %c7_300 = arith.constant 7 : index
      %c0_301 = arith.constant 0 : index
      %c0_302 = arith.constant 0 : index
      %367 = vector.load %arg7[%c7_300, %c0_301, %c0_302] : memref<9x16x32xbf16, #tpu.memory_space<vmem>>, vector<1x16x32xbf16>
      %368 = vector.shape_cast %367 : vector<1x16x32xbf16> to vector<16x32xbf16>
      %cst_303 = arith.constant dense<0.000000e+00> : vector<30x32xf32>
      %369 = tpu.matmul %366, %368, %cst_303 {dimension_numbers = #tpu.dot_dimension_numbers<[1], [0], [0], [1], [0, 0, 1, 1], [], []>} : vector<30x16xbf16>, vector<16x32xbf16>, vector<30x32xf32> -> vector<30x32xf32>
      %370 = arith.addf %362, %369 : vector<30x32xf32>
      %c2_i32_304 = arith.constant 2 : i32
      %371 = arith.addi %307, %c2_i32_304 : i32
      %372 = arith.index_cast %371 : i32 to index
      %c2_305 = arith.constant 2 : index
      %c0_306 = arith.constant 0 : index
      %373 = vector.load %arg23[%372, %c2_305, %c0_306] : memref<32x32x16xbf16, #tpu.memory_space<vmem>>, vector<1x30x16xbf16>
      %374 = vector.shape_cast %373 : vector<1x30x16xbf16> to vector<30x16xbf16>
      %c8_307 = arith.constant 8 : index
      %c0_308 = arith.constant 0 : index
      %c0_309 = arith.constant 0 : index
      %375 = vector.load %arg7[%c8_307, %c0_308, %c0_309] : memref<9x16x32xbf16, #tpu.memory_space<vmem>>, vector<1x16x32xbf16>
      %376 = vector.shape_cast %375 : vector<1x16x32xbf16> to vector<16x32xbf16>
      %cst_310 = arith.constant dense<0.000000e+00> : vector<30x32xf32>
      %377 = tpu.matmul %374, %376, %cst_310 {dimension_numbers = #tpu.dot_dimension_numbers<[1], [0], [0], [1], [0, 0, 1, 1], [], []>} : vector<30x16xbf16>, vector<16x32xbf16>, vector<30x32xf32> -> vector<30x32xf32>
      %378 = arith.addf %370, %377 : vector<30x32xf32>
      %379 = vector.broadcast %21 : vector<1x32xf32> to vector<30x32xf32>
      %380 = arith.mulf %378, %379 : vector<30x32xf32>
      %381 = vector.broadcast %22 : vector<1x32xf32> to vector<30x32xf32>
      %382 = arith.addf %380, %381 : vector<30x32xf32>
      %cst_311 = arith.constant 0.000000e+00 : f32
      %383 = vector.broadcast %cst_311 : f32 to vector<30x32xf32>
      %384 = arith.maximumf %382, %383 : vector<30x32xf32>
      %385 = arith.maximumf %305, %384 : vector<30x32xf32>
      %cst_312 = arith.constant dense<0.000000e+00> : vector<15x32xf32>
      %386 = tpu.matmul %31, %385, %cst_312 {dimension_numbers = #tpu.dot_dimension_numbers<[1], [0], [0], [1], [0, 0, 1, 1], [], []>} : vector<15x30xf32>, vector<30x32xf32>, vector<15x32xf32> -> vector<15x32xf32>
      %cst_313 = arith.constant dense<0.000000e+00> : vector<15x32xf32>
      %387 = tpu.matmul %40, %385, %cst_313 {dimension_numbers = #tpu.dot_dimension_numbers<[1], [0], [0], [1], [0, 0, 1, 1], [], []>} : vector<15x30xf32>, vector<30x32xf32>, vector<15x32xf32> -> vector<15x32xf32>
      %388 = arith.maximumf %386, %387 : vector<15x32xf32>
      %389 = arith.truncf %388 : vector<15x32xf32> to vector<15x32xbf16>
      %390 = arith.index_cast %227 : i32 to index
      %c0_314 = arith.constant 0 : index
      %c0_315 = arith.constant 0 : index
      %391 = vector.load %arg24[%390, %c0_314, %c0_315] : memref<15x15x32xbf16, #tpu.memory_space<vmem>>, vector<1x15x32xbf16>
      %392 = vector.shape_cast %391 : vector<1x15x32xbf16> to vector<15x32xbf16>
      %393 = vector.shape_cast %389 : vector<15x32xbf16> to vector<1x15x32xbf16>
      tpu.vector_store %arg24[%390, %c0_314, %c0_315], %393 {strides = array<i32>} : memref<15x15x32xbf16, #tpu.memory_space<vmem>>, vector<1x15x32xbf16>,
    }
    %c15_i32_17 = arith.constant 15 : i32
    %c0_18 = arith.constant 0 : index
    %c0_19 = arith.constant 0 : index
    %42 = vector.load %arg11[%c0_18, %c0_19] : memref<1x48xf32, #tpu.memory_space<vmem>>, vector<1x48xf32>
    %c0_20 = arith.constant 0 : index
    %c0_21 = arith.constant 0 : index
    %43 = vector.load %arg12[%c0_20, %c0_21] : memref<1x48xf32, #tpu.memory_space<vmem>>, vector<1x48xf32>
    %44 = tpu.iota {dimensions = array<i32: 0>} : vector<6x13xi32>
    %45 = tpu.iota {dimensions = array<i32: 1>} : vector<6x13xi32>
    %c2_i32_22 = arith.constant 2 : i32
    %46 = vector.broadcast %c2_i32_22 : i32 to vector<6x13xi32>
    %47 = arith.muli %46, %44 : vector<6x13xi32>
    %c0_i32_23 = arith.constant 0 : i32
    %48 = vector.broadcast %c0_i32_23 : i32 to vector<6x13xi32>
    %49 = arith.addi %47, %48 : vector<6x13xi32>
    %50 = arith.cmpi eq, %45, %49 : vector<6x13xi32>
    %51 = arith.extui %50 : vector<6x13xi1> to vector<6x13xi32>
    %52 = arith.sitofp %51 : vector<6x13xi32> to vector<6x13xf32>
    %53 = tpu.iota {dimensions = array<i32: 0>} : vector<6x13xi32>
    %54 = tpu.iota {dimensions = array<i32: 1>} : vector<6x13xi32>
    %c2_i32_24 = arith.constant 2 : i32
    %55 = vector.broadcast %c2_i32_24 : i32 to vector<6x13xi32>
    %56 = arith.muli %55, %53 : vector<6x13xi32>
    %c1_i32_25 = arith.constant 1 : i32
    %57 = vector.broadcast %c1_i32_25 : i32 to vector<6x13xi32>
    %58 = arith.addi %56, %57 : vector<6x13xi32>
    %59 = arith.cmpi eq, %54, %58 : vector<6x13xi32>
    %60 = arith.extui %59 : vector<6x13xi1> to vector<6x13xi32>
    %61 = arith.sitofp %60 : vector<6x13xi32> to vector<6x13xf32>
    %c0_i32_26 = arith.constant 0 : i32
    %c6_i32 = arith.constant 6 : i32
    %62 = arith.addi %c0_i32_26, %c6_i32 : i32
    %c1_i32_27 = arith.constant 1 : i32
    scf.for %arg27 = %c0_i32_26 to %62 step %c1_i32_27  : i32 {
      %c1_i32_179 = arith.constant 1 : i32
      %226 = arith.muli %arg27, %c1_i32_179 : i32
      %c0_i32_180 = arith.constant 0 : i32
      %227 = arith.addi %c0_i32_180, %226 : i32
      %c2_i32_181 = arith.constant 2 : i32
      %228 = arith.muli %c2_i32_181, %227 : i32
      %c0_i32_182 = arith.constant 0 : i32
      %229 = arith.addi %228, %c0_i32_182 : i32
      %230 = arith.index_cast %229 : i32 to index
      %c0_183 = arith.constant 0 : index
      %c0_184 = arith.constant 0 : index
      %231 = vector.load %arg24[%230, %c0_183, %c0_184] : memref<15x15x32xbf16, #tpu.memory_space<vmem>>, vector<1x13x32xbf16>
      %232 = vector.shape_cast %231 : vector<1x13x32xbf16> to vector<13x32xbf16>
      %c0_185 = arith.constant 0 : index
      %c0_186 = arith.constant 0 : index
      %c0_187 = arith.constant 0 : index
      %233 = vector.load %arg10[%c0_185, %c0_186, %c0_187] : memref<9x32x48xbf16, #tpu.memory_space<vmem>>, vector<1x32x48xbf16>
      %234 = vector.shape_cast %233 : vector<1x32x48xbf16> to vector<32x48xbf16>
      %cst_188 = arith.constant dense<0.000000e+00> : vector<13x48xf32>
      %235 = tpu.matmul %232, %234, %cst_188 {dimension_numbers = #tpu.dot_dimension_numbers<[1], [0], [0], [1], [0, 0, 1, 1], [], []>} : vector<13x32xbf16>, vector<32x48xbf16>, vector<13x48xf32> -> vector<13x48xf32>
      %c0_i32_189 = arith.constant 0 : i32
      %236 = arith.addi %228, %c0_i32_189 : i32
      %237 = arith.index_cast %236 : i32 to index
      %c1_190 = arith.constant 1 : index
      %c0_191 = arith.constant 0 : index
      %238 = vector.load %arg24[%237, %c1_190, %c0_191] : memref<15x15x32xbf16, #tpu.memory_space<vmem>>, vector<1x13x32xbf16>
      %239 = vector.shape_cast %238 : vector<1x13x32xbf16> to vector<13x32xbf16>
      %c1_192 = arith.constant 1 : index
      %c0_193 = arith.constant 0 : index
      %c0_194 = arith.constant 0 : index
      %240 = vector.load %arg10[%c1_192, %c0_193, %c0_194] : memref<9x32x48xbf16, #tpu.memory_space<vmem>>, vector<1x32x48xbf16>
      %241 = vector.shape_cast %240 : vector<1x32x48xbf16> to vector<32x48xbf16>
      %cst_195 = arith.constant dense<0.000000e+00> : vector<13x48xf32>
      %242 = tpu.matmul %239, %241, %cst_195 {dimension_numbers = #tpu.dot_dimension_numbers<[1], [0], [0], [1], [0, 0, 1, 1], [], []>} : vector<13x32xbf16>, vector<32x48xbf16>, vector<13x48xf32> -> vector<13x48xf32>
      %243 = arith.addf %235, %242 : vector<13x48xf32>
      %c0_i32_196 = arith.constant 0 : i32
      %244 = arith.addi %228, %c0_i32_196 : i32
      %245 = arith.index_cast %244 : i32 to index
      %c2_197 = arith.constant 2 : index
      %c0_198 = arith.constant 0 : index
      %246 = vector.load %arg24[%245, %c2_197, %c0_198] : memref<15x15x32xbf16, #tpu.memory_space<vmem>>, vector<1x13x32xbf16>
      %247 = vector.shape_cast %246 : vector<1x13x32xbf16> to vector<13x32xbf16>
      %c2_199 = arith.constant 2 : index
      %c0_200 = arith.constant 0 : index
      %c0_201 = arith.constant 0 : index
      %248 = vector.load %arg10[%c2_199, %c0_200, %c0_201] : memref<9x32x48xbf16, #tpu.memory_space<vmem>>, vector<1x32x48xbf16>
      %249 = vector.shape_cast %248 : vector<1x32x48xbf16> to vector<32x48xbf16>
      %cst_202 = arith.constant dense<0.000000e+00> : vector<13x48xf32>
      %250 = tpu.matmul %247, %249, %cst_202 {dimension_numbers = #tpu.dot_dimension_numbers<[1], [0], [0], [1], [0, 0, 1, 1], [], []>} : vector<13x32xbf16>, vector<32x48xbf16>, vector<13x48xf32> -> vector<13x48xf32>
      %251 = arith.addf %243, %250 : vector<13x48xf32>
      %c1_i32_203 = arith.constant 1 : i32
      %252 = arith.addi %228, %c1_i32_203 : i32
      %253 = arith.index_cast %252 : i32 to index
      %c0_204 = arith.constant 0 : index
      %c0_205 = arith.constant 0 : index
      %254 = vector.load %arg24[%253, %c0_204, %c0_205] : memref<15x15x32xbf16, #tpu.memory_space<vmem>>, vector<1x13x32xbf16>
      %255 = vector.shape_cast %254 : vector<1x13x32xbf16> to vector<13x32xbf16>
      %c3_206 = arith.constant 3 : index
      %c0_207 = arith.constant 0 : index
      %c0_208 = arith.constant 0 : index
      %256 = vector.load %arg10[%c3_206, %c0_207, %c0_208] : memref<9x32x48xbf16, #tpu.memory_space<vmem>>, vector<1x32x48xbf16>
      %257 = vector.shape_cast %256 : vector<1x32x48xbf16> to vector<32x48xbf16>
      %cst_209 = arith.constant dense<0.000000e+00> : vector<13x48xf32>
      %258 = tpu.matmul %255, %257, %cst_209 {dimension_numbers = #tpu.dot_dimension_numbers<[1], [0], [0], [1], [0, 0, 1, 1], [], []>} : vector<13x32xbf16>, vector<32x48xbf16>, vector<13x48xf32> -> vector<13x48xf32>
      %259 = arith.addf %251, %258 : vector<13x48xf32>
      %c1_i32_210 = arith.constant 1 : i32
      %260 = arith.addi %228, %c1_i32_210 : i32
      %261 = arith.index_cast %260 : i32 to index
      %c1_211 = arith.constant 1 : index
      %c0_212 = arith.constant 0 : index
      %262 = vector.load %arg24[%261, %c1_211, %c0_212] : memref<15x15x32xbf16, #tpu.memory_space<vmem>>, vector<1x13x32xbf16>
      %263 = vector.shape_cast %262 : vector<1x13x32xbf16> to vector<13x32xbf16>
      %c4_213 = arith.constant 4 : index
      %c0_214 = arith.constant 0 : index
      %c0_215 = arith.constant 0 : index
      %264 = vector.load %arg10[%c4_213, %c0_214, %c0_215] : memref<9x32x48xbf16, #tpu.memory_space<vmem>>, vector<1x32x48xbf16>
      %265 = vector.shape_cast %264 : vector<1x32x48xbf16> to vector<32x48xbf16>
      %cst_216 = arith.constant dense<0.000000e+00> : vector<13x48xf32>
      %266 = tpu.matmul %263, %265, %cst_216 {dimension_numbers = #tpu.dot_dimension_numbers<[1], [0], [0], [1], [0, 0, 1, 1], [], []>} : vector<13x32xbf16>, vector<32x48xbf16>, vector<13x48xf32> -> vector<13x48xf32>
      %267 = arith.addf %259, %266 : vector<13x48xf32>
      %c1_i32_217 = arith.constant 1 : i32
      %268 = arith.addi %228, %c1_i32_217 : i32
      %269 = arith.index_cast %268 : i32 to index
      %c2_218 = arith.constant 2 : index
      %c0_219 = arith.constant 0 : index
      %270 = vector.load %arg24[%269, %c2_218, %c0_219] : memref<15x15x32xbf16, #tpu.memory_space<vmem>>, vector<1x13x32xbf16>
      %271 = vector.shape_cast %270 : vector<1x13x32xbf16> to vector<13x32xbf16>
      %c5_220 = arith.constant 5 : index
      %c0_221 = arith.constant 0 : index
      %c0_222 = arith.constant 0 : index
      %272 = vector.load %arg10[%c5_220, %c0_221, %c0_222] : memref<9x32x48xbf16, #tpu.memory_space<vmem>>, vector<1x32x48xbf16>
      %273 = vector.shape_cast %272 : vector<1x32x48xbf16> to vector<32x48xbf16>
      %cst_223 = arith.constant dense<0.000000e+00> : vector<13x48xf32>
      %274 = tpu.matmul %271, %273, %cst_223 {dimension_numbers = #tpu.dot_dimension_numbers<[1], [0], [0], [1], [0, 0, 1, 1], [], []>} : vector<13x32xbf16>, vector<32x48xbf16>, vector<13x48xf32> -> vector<13x48xf32>
      %275 = arith.addf %267, %274 : vector<13x48xf32>
      %c2_i32_224 = arith.constant 2 : i32
      %276 = arith.addi %228, %c2_i32_224 : i32
      %277 = arith.index_cast %276 : i32 to index
      %c0_225 = arith.constant 0 : index
      %c0_226 = arith.constant 0 : index
      %278 = vector.load %arg24[%277, %c0_225, %c0_226] : memref<15x15x32xbf16, #tpu.memory_space<vmem>>, vector<1x13x32xbf16>
      %279 = vector.shape_cast %278 : vector<1x13x32xbf16> to vector<13x32xbf16>
      %c6_227 = arith.constant 6 : index
      %c0_228 = arith.constant 0 : index
      %c0_229 = arith.constant 0 : index
      %280 = vector.load %arg10[%c6_227, %c0_228, %c0_229] : memref<9x32x48xbf16, #tpu.memory_space<vmem>>, vector<1x32x48xbf16>
      %281 = vector.shape_cast %280 : vector<1x32x48xbf16> to vector<32x48xbf16>
      %cst_230 = arith.constant dense<0.000000e+00> : vector<13x48xf32>
      %282 = tpu.matmul %279, %281, %cst_230 {dimension_numbers = #tpu.dot_dimension_numbers<[1], [0], [0], [1], [0, 0, 1, 1], [], []>} : vector<13x32xbf16>, vector<32x48xbf16>, vector<13x48xf32> -> vector<13x48xf32>
      %283 = arith.addf %275, %282 : vector<13x48xf32>
      %c2_i32_231 = arith.constant 2 : i32
      %284 = arith.addi %228, %c2_i32_231 : i32
      %285 = arith.index_cast %284 : i32 to index
      %c1_232 = arith.constant 1 : index
      %c0_233 = arith.constant 0 : index
      %286 = vector.load %arg24[%285, %c1_232, %c0_233] : memref<15x15x32xbf16, #tpu.memory_space<vmem>>, vector<1x13x32xbf16>
      %287 = vector.shape_cast %286 : vector<1x13x32xbf16> to vector<13x32xbf16>
      %c7_234 = arith.constant 7 : index
      %c0_235 = arith.constant 0 : index
      %c0_236 = arith.constant 0 : index
      %288 = vector.load %arg10[%c7_234, %c0_235, %c0_236] : memref<9x32x48xbf16, #tpu.memory_space<vmem>>, vector<1x32x48xbf16>
      %289 = vector.shape_cast %288 : vector<1x32x48xbf16> to vector<32x48xbf16>
      %cst_237 = arith.constant dense<0.000000e+00> : vector<13x48xf32>
      %290 = tpu.matmul %287, %289, %cst_237 {dimension_numbers = #tpu.dot_dimension_numbers<[1], [0], [0], [1], [0, 0, 1, 1], [], []>} : vector<13x32xbf16>, vector<32x48xbf16>, vector<13x48xf32> -> vector<13x48xf32>
      %291 = arith.addf %283, %290 : vector<13x48xf32>
      %c2_i32_238 = arith.constant 2 : i32
      %292 = arith.addi %228, %c2_i32_238 : i32
      %293 = arith.index_cast %292 : i32 to index
      %c2_239 = arith.constant 2 : index
      %c0_240 = arith.constant 0 : index
      %294 = vector.load %arg24[%293, %c2_239, %c0_240] : memref<15x15x32xbf16, #tpu.memory_space<vmem>>, vector<1x13x32xbf16>
      %295 = vector.shape_cast %294 : vector<1x13x32xbf16> to vector<13x32xbf16>
      %c8_241 = arith.constant 8 : index
      %c0_242 = arith.constant 0 : index
      %c0_243 = arith.constant 0 : index
      %296 = vector.load %arg10[%c8_241, %c0_242, %c0_243] : memref<9x32x48xbf16, #tpu.memory_space<vmem>>, vector<1x32x48xbf16>
      %297 = vector.shape_cast %296 : vector<1x32x48xbf16> to vector<32x48xbf16>
      %cst_244 = arith.constant dense<0.000000e+00> : vector<13x48xf32>
      %298 = tpu.matmul %295, %297, %cst_244 {dimension_numbers = #tpu.dot_dimension_numbers<[1], [0], [0], [1], [0, 0, 1, 1], [], []>} : vector<13x32xbf16>, vector<32x48xbf16>, vector<13x48xf32> -> vector<13x48xf32>
      %299 = arith.addf %291, %298 : vector<13x48xf32>
      %300 = vector.broadcast %42 : vector<1x48xf32> to vector<13x48xf32>
      %301 = arith.mulf %299, %300 : vector<13x48xf32>
      %302 = vector.broadcast %43 : vector<1x48xf32> to vector<13x48xf32>
      %303 = arith.addf %301, %302 : vector<13x48xf32>
      %cst_245 = arith.constant 0.000000e+00 : f32
      %304 = vector.broadcast %cst_245 : f32 to vector<13x48xf32>
      %305 = arith.maximumf %303, %304 : vector<13x48xf32>
      %c2_i32_246 = arith.constant 2 : i32
      %306 = arith.muli %c2_i32_246, %227 : i32
      %c1_i32_247 = arith.constant 1 : i32
      %307 = arith.addi %306, %c1_i32_247 : i32
      %c0_i32_248 = arith.constant 0 : i32
      %308 = arith.addi %307, %c0_i32_248 : i32
      %309 = arith.index_cast %308 : i32 to index
      %c0_249 = arith.constant 0 : index
      %c0_250 = arith.constant 0 : index
      %310 = vector.load %arg24[%309, %c0_249, %c0_250] : memref<15x15x32xbf16, #tpu.memory_space<vmem>>, vector<1x13x32xbf16>
      %311 = vector.shape_cast %310 : vector<1x13x32xbf16> to vector<13x32xbf16>
      %c0_251 = arith.constant 0 : index
      %c0_252 = arith.constant 0 : index
      %c0_253 = arith.constant 0 : index
      %312 = vector.load %arg10[%c0_251, %c0_252, %c0_253] : memref<9x32x48xbf16, #tpu.memory_space<vmem>>, vector<1x32x48xbf16>
      %313 = vector.shape_cast %312 : vector<1x32x48xbf16> to vector<32x48xbf16>
      %cst_254 = arith.constant dense<0.000000e+00> : vector<13x48xf32>
      %314 = tpu.matmul %311, %313, %cst_254 {dimension_numbers = #tpu.dot_dimension_numbers<[1], [0], [0], [1], [0, 0, 1, 1], [], []>} : vector<13x32xbf16>, vector<32x48xbf16>, vector<13x48xf32> -> vector<13x48xf32>
      %c0_i32_255 = arith.constant 0 : i32
      %315 = arith.addi %307, %c0_i32_255 : i32
      %316 = arith.index_cast %315 : i32 to index
      %c1_256 = arith.constant 1 : index
      %c0_257 = arith.constant 0 : index
      %317 = vector.load %arg24[%316, %c1_256, %c0_257] : memref<15x15x32xbf16, #tpu.memory_space<vmem>>, vector<1x13x32xbf16>
      %318 = vector.shape_cast %317 : vector<1x13x32xbf16> to vector<13x32xbf16>
      %c1_258 = arith.constant 1 : index
      %c0_259 = arith.constant 0 : index
      %c0_260 = arith.constant 0 : index
      %319 = vector.load %arg10[%c1_258, %c0_259, %c0_260] : memref<9x32x48xbf16, #tpu.memory_space<vmem>>, vector<1x32x48xbf16>
      %320 = vector.shape_cast %319 : vector<1x32x48xbf16> to vector<32x48xbf16>
      %cst_261 = arith.constant dense<0.000000e+00> : vector<13x48xf32>
      %321 = tpu.matmul %318, %320, %cst_261 {dimension_numbers = #tpu.dot_dimension_numbers<[1], [0], [0], [1], [0, 0, 1, 1], [], []>} : vector<13x32xbf16>, vector<32x48xbf16>, vector<13x48xf32> -> vector<13x48xf32>
      %322 = arith.addf %314, %321 : vector<13x48xf32>
      %c0_i32_262 = arith.constant 0 : i32
      %323 = arith.addi %307, %c0_i32_262 : i32
      %324 = arith.index_cast %323 : i32 to index
      %c2_263 = arith.constant 2 : index
      %c0_264 = arith.constant 0 : index
      %325 = vector.load %arg24[%324, %c2_263, %c0_264] : memref<15x15x32xbf16, #tpu.memory_space<vmem>>, vector<1x13x32xbf16>
      %326 = vector.shape_cast %325 : vector<1x13x32xbf16> to vector<13x32xbf16>
      %c2_265 = arith.constant 2 : index
      %c0_266 = arith.constant 0 : index
      %c0_267 = arith.constant 0 : index
      %327 = vector.load %arg10[%c2_265, %c0_266, %c0_267] : memref<9x32x48xbf16, #tpu.memory_space<vmem>>, vector<1x32x48xbf16>
      %328 = vector.shape_cast %327 : vector<1x32x48xbf16> to vector<32x48xbf16>
      %cst_268 = arith.constant dense<0.000000e+00> : vector<13x48xf32>
      %329 = tpu.matmul %326, %328, %cst_268 {dimension_numbers = #tpu.dot_dimension_numbers<[1], [0], [0], [1], [0, 0, 1, 1], [], []>} : vector<13x32xbf16>, vector<32x48xbf16>, vector<13x48xf32> -> vector<13x48xf32>
      %330 = arith.addf %322, %329 : vector<13x48xf32>
      %c1_i32_269 = arith.constant 1 : i32
      %331 = arith.addi %307, %c1_i32_269 : i32
      %332 = arith.index_cast %331 : i32 to index
      %c0_270 = arith.constant 0 : index
      %c0_271 = arith.constant 0 : index
      %333 = vector.load %arg24[%332, %c0_270, %c0_271] : memref<15x15x32xbf16, #tpu.memory_space<vmem>>, vector<1x13x32xbf16>
      %334 = vector.shape_cast %333 : vector<1x13x32xbf16> to vector<13x32xbf16>
      %c3_272 = arith.constant 3 : index
      %c0_273 = arith.constant 0 : index
      %c0_274 = arith.constant 0 : index
      %335 = vector.load %arg10[%c3_272, %c0_273, %c0_274] : memref<9x32x48xbf16, #tpu.memory_space<vmem>>, vector<1x32x48xbf16>
      %336 = vector.shape_cast %335 : vector<1x32x48xbf16> to vector<32x48xbf16>
      %cst_275 = arith.constant dense<0.000000e+00> : vector<13x48xf32>
      %337 = tpu.matmul %334, %336, %cst_275 {dimension_numbers = #tpu.dot_dimension_numbers<[1], [0], [0], [1], [0, 0, 1, 1], [], []>} : vector<13x32xbf16>, vector<32x48xbf16>, vector<13x48xf32> -> vector<13x48xf32>
      %338 = arith.addf %330, %337 : vector<13x48xf32>
      %c1_i32_276 = arith.constant 1 : i32
      %339 = arith.addi %307, %c1_i32_276 : i32
      %340 = arith.index_cast %339 : i32 to index
      %c1_277 = arith.constant 1 : index
      %c0_278 = arith.constant 0 : index
      %341 = vector.load %arg24[%340, %c1_277, %c0_278] : memref<15x15x32xbf16, #tpu.memory_space<vmem>>, vector<1x13x32xbf16>
      %342 = vector.shape_cast %341 : vector<1x13x32xbf16> to vector<13x32xbf16>
      %c4_279 = arith.constant 4 : index
      %c0_280 = arith.constant 0 : index
      %c0_281 = arith.constant 0 : index
      %343 = vector.load %arg10[%c4_279, %c0_280, %c0_281] : memref<9x32x48xbf16, #tpu.memory_space<vmem>>, vector<1x32x48xbf16>
      %344 = vector.shape_cast %343 : vector<1x32x48xbf16> to vector<32x48xbf16>
      %cst_282 = arith.constant dense<0.000000e+00> : vector<13x48xf32>
      %345 = tpu.matmul %342, %344, %cst_282 {dimension_numbers = #tpu.dot_dimension_numbers<[1], [0], [0], [1], [0, 0, 1, 1], [], []>} : vector<13x32xbf16>, vector<32x48xbf16>, vector<13x48xf32> -> vector<13x48xf32>
      %346 = arith.addf %338, %345 : vector<13x48xf32>
      %c1_i32_283 = arith.constant 1 : i32
      %347 = arith.addi %307, %c1_i32_283 : i32
      %348 = arith.index_cast %347 : i32 to index
      %c2_284 = arith.constant 2 : index
      %c0_285 = arith.constant 0 : index
      %349 = vector.load %arg24[%348, %c2_284, %c0_285] : memref<15x15x32xbf16, #tpu.memory_space<vmem>>, vector<1x13x32xbf16>
      %350 = vector.shape_cast %349 : vector<1x13x32xbf16> to vector<13x32xbf16>
      %c5_286 = arith.constant 5 : index
      %c0_287 = arith.constant 0 : index
      %c0_288 = arith.constant 0 : index
      %351 = vector.load %arg10[%c5_286, %c0_287, %c0_288] : memref<9x32x48xbf16, #tpu.memory_space<vmem>>, vector<1x32x48xbf16>
      %352 = vector.shape_cast %351 : vector<1x32x48xbf16> to vector<32x48xbf16>
      %cst_289 = arith.constant dense<0.000000e+00> : vector<13x48xf32>
      %353 = tpu.matmul %350, %352, %cst_289 {dimension_numbers = #tpu.dot_dimension_numbers<[1], [0], [0], [1], [0, 0, 1, 1], [], []>} : vector<13x32xbf16>, vector<32x48xbf16>, vector<13x48xf32> -> vector<13x48xf32>
      %354 = arith.addf %346, %353 : vector<13x48xf32>
      %c2_i32_290 = arith.constant 2 : i32
      %355 = arith.addi %307, %c2_i32_290 : i32
      %356 = arith.index_cast %355 : i32 to index
      %c0_291 = arith.constant 0 : index
      %c0_292 = arith.constant 0 : index
      %357 = vector.load %arg24[%356, %c0_291, %c0_292] : memref<15x15x32xbf16, #tpu.memory_space<vmem>>, vector<1x13x32xbf16>
      %358 = vector.shape_cast %357 : vector<1x13x32xbf16> to vector<13x32xbf16>
      %c6_293 = arith.constant 6 : index
      %c0_294 = arith.constant 0 : index
      %c0_295 = arith.constant 0 : index
      %359 = vector.load %arg10[%c6_293, %c0_294, %c0_295] : memref<9x32x48xbf16, #tpu.memory_space<vmem>>, vector<1x32x48xbf16>
      %360 = vector.shape_cast %359 : vector<1x32x48xbf16> to vector<32x48xbf16>
      %cst_296 = arith.constant dense<0.000000e+00> : vector<13x48xf32>
      %361 = tpu.matmul %358, %360, %cst_296 {dimension_numbers = #tpu.dot_dimension_numbers<[1], [0], [0], [1], [0, 0, 1, 1], [], []>} : vector<13x32xbf16>, vector<32x48xbf16>, vector<13x48xf32> -> vector<13x48xf32>
      %362 = arith.addf %354, %361 : vector<13x48xf32>
      %c2_i32_297 = arith.constant 2 : i32
      %363 = arith.addi %307, %c2_i32_297 : i32
      %364 = arith.index_cast %363 : i32 to index
      %c1_298 = arith.constant 1 : index
      %c0_299 = arith.constant 0 : index
      %365 = vector.load %arg24[%364, %c1_298, %c0_299] : memref<15x15x32xbf16, #tpu.memory_space<vmem>>, vector<1x13x32xbf16>
      %366 = vector.shape_cast %365 : vector<1x13x32xbf16> to vector<13x32xbf16>
      %c7_300 = arith.constant 7 : index
      %c0_301 = arith.constant 0 : index
      %c0_302 = arith.constant 0 : index
      %367 = vector.load %arg10[%c7_300, %c0_301, %c0_302] : memref<9x32x48xbf16, #tpu.memory_space<vmem>>, vector<1x32x48xbf16>
      %368 = vector.shape_cast %367 : vector<1x32x48xbf16> to vector<32x48xbf16>
      %cst_303 = arith.constant dense<0.000000e+00> : vector<13x48xf32>
      %369 = tpu.matmul %366, %368, %cst_303 {dimension_numbers = #tpu.dot_dimension_numbers<[1], [0], [0], [1], [0, 0, 1, 1], [], []>} : vector<13x32xbf16>, vector<32x48xbf16>, vector<13x48xf32> -> vector<13x48xf32>
      %370 = arith.addf %362, %369 : vector<13x48xf32>
      %c2_i32_304 = arith.constant 2 : i32
      %371 = arith.addi %307, %c2_i32_304 : i32
      %372 = arith.index_cast %371 : i32 to index
      %c2_305 = arith.constant 2 : index
      %c0_306 = arith.constant 0 : index
      %373 = vector.load %arg24[%372, %c2_305, %c0_306] : memref<15x15x32xbf16, #tpu.memory_space<vmem>>, vector<1x13x32xbf16>
      %374 = vector.shape_cast %373 : vector<1x13x32xbf16> to vector<13x32xbf16>
      %c8_307 = arith.constant 8 : index
      %c0_308 = arith.constant 0 : index
      %c0_309 = arith.constant 0 : index
      %375 = vector.load %arg10[%c8_307, %c0_308, %c0_309] : memref<9x32x48xbf16, #tpu.memory_space<vmem>>, vector<1x32x48xbf16>
      %376 = vector.shape_cast %375 : vector<1x32x48xbf16> to vector<32x48xbf16>
      %cst_310 = arith.constant dense<0.000000e+00> : vector<13x48xf32>
      %377 = tpu.matmul %374, %376, %cst_310 {dimension_numbers = #tpu.dot_dimension_numbers<[1], [0], [0], [1], [0, 0, 1, 1], [], []>} : vector<13x32xbf16>, vector<32x48xbf16>, vector<13x48xf32> -> vector<13x48xf32>
      %378 = arith.addf %370, %377 : vector<13x48xf32>
      %379 = vector.broadcast %42 : vector<1x48xf32> to vector<13x48xf32>
      %380 = arith.mulf %378, %379 : vector<13x48xf32>
      %381 = vector.broadcast %43 : vector<1x48xf32> to vector<13x48xf32>
      %382 = arith.addf %380, %381 : vector<13x48xf32>
      %cst_311 = arith.constant 0.000000e+00 : f32
      %383 = vector.broadcast %cst_311 : f32 to vector<13x48xf32>
      %384 = arith.maximumf %382, %383 : vector<13x48xf32>
      %385 = arith.maximumf %305, %384 : vector<13x48xf32>
      %cst_312 = arith.constant dense<0.000000e+00> : vector<6x48xf32>
      %386 = tpu.matmul %52, %385, %cst_312 {dimension_numbers = #tpu.dot_dimension_numbers<[1], [0], [0], [1], [0, 0, 1, 1], [], []>} : vector<6x13xf32>, vector<13x48xf32>, vector<6x48xf32> -> vector<6x48xf32>
      %cst_313 = arith.constant dense<0.000000e+00> : vector<6x48xf32>
      %387 = tpu.matmul %61, %385, %cst_313 {dimension_numbers = #tpu.dot_dimension_numbers<[1], [0], [0], [1], [0, 0, 1, 1], [], []>} : vector<6x13xf32>, vector<13x48xf32>, vector<6x48xf32> -> vector<6x48xf32>
      %388 = arith.maximumf %386, %387 : vector<6x48xf32>
      %389 = arith.truncf %388 : vector<6x48xf32> to vector<6x48xbf16>
      %390 = arith.index_cast %227 : i32 to index
      %c0_314 = arith.constant 0 : index
      %c0_315 = arith.constant 0 : index
      %391 = vector.load %arg25[%390, %c0_314, %c0_315] : memref<6x6x48xbf16, #tpu.memory_space<vmem>>, vector<1x6x48xbf16>
      %392 = vector.shape_cast %391 : vector<1x6x48xbf16> to vector<6x48xbf16>
      %393 = vector.shape_cast %389 : vector<6x48xbf16> to vector<1x6x48xbf16>
      tpu.vector_store %arg25[%390, %c0_314, %c0_315], %393 {strides = array<i32>} : memref<6x6x48xbf16, #tpu.memory_space<vmem>>, vector<1x6x48xbf16>,
    }
    %c6_i32_28 = arith.constant 6 : i32
    %c0_29 = arith.constant 0 : index
    %c0_30 = arith.constant 0 : index
    %63 = vector.load %arg14[%c0_29, %c0_30] : memref<1x64xf32, #tpu.memory_space<vmem>>, vector<1x64xf32>
    %c0_31 = arith.constant 0 : index
    %c0_32 = arith.constant 0 : index
    %64 = vector.load %arg15[%c0_31, %c0_32] : memref<1x64xf32, #tpu.memory_space<vmem>>, vector<1x64xf32>
    %c0_i32_33 = arith.constant 0 : i32
    %c4_i32 = arith.constant 4 : i32
    %65 = arith.addi %c0_i32_33, %c4_i32 : i32
    %c1_i32_34 = arith.constant 1 : i32
    scf.for %arg27 = %c0_i32_33 to %65 step %c1_i32_34  : i32 {
      %c1_i32_179 = arith.constant 1 : i32
      %226 = arith.muli %arg27, %c1_i32_179 : i32
      %c0_i32_180 = arith.constant 0 : i32
      %227 = arith.addi %c0_i32_180, %226 : i32
      %c0_i32_181 = arith.constant 0 : i32
      %228 = arith.addi %227, %c0_i32_181 : i32
      %229 = arith.index_cast %228 : i32 to index
      %c0_182 = arith.constant 0 : index
      %c0_183 = arith.constant 0 : index
      %230 = vector.load %arg25[%229, %c0_182, %c0_183] : memref<6x6x48xbf16, #tpu.memory_space<vmem>>, vector<1x4x48xbf16>
      %231 = vector.shape_cast %230 : vector<1x4x48xbf16> to vector<4x48xbf16>
      %c0_184 = arith.constant 0 : index
      %c0_185 = arith.constant 0 : index
      %c0_186 = arith.constant 0 : index
      %232 = vector.load %arg13[%c0_184, %c0_185, %c0_186] : memref<9x48x64xbf16, #tpu.memory_space<vmem>>, vector<1x48x64xbf16>
      %233 = vector.shape_cast %232 : vector<1x48x64xbf16> to vector<48x64xbf16>
      %cst_187 = arith.constant dense<0.000000e+00> : vector<4x64xf32>
      %234 = tpu.matmul %231, %233, %cst_187 {dimension_numbers = #tpu.dot_dimension_numbers<[1], [0], [0], [1], [0, 0, 1, 1], [], []>} : vector<4x48xbf16>, vector<48x64xbf16>, vector<4x64xf32> -> vector<4x64xf32>
      %c0_i32_188 = arith.constant 0 : i32
      %235 = arith.addi %227, %c0_i32_188 : i32
      %236 = arith.index_cast %235 : i32 to index
      %c1_189 = arith.constant 1 : index
      %c0_190 = arith.constant 0 : index
      %237 = vector.load %arg25[%236, %c1_189, %c0_190] : memref<6x6x48xbf16, #tpu.memory_space<vmem>>, vector<1x4x48xbf16>
      %238 = vector.shape_cast %237 : vector<1x4x48xbf16> to vector<4x48xbf16>
      %c1_191 = arith.constant 1 : index
      %c0_192 = arith.constant 0 : index
      %c0_193 = arith.constant 0 : index
      %239 = vector.load %arg13[%c1_191, %c0_192, %c0_193] : memref<9x48x64xbf16, #tpu.memory_space<vmem>>, vector<1x48x64xbf16>
      %240 = vector.shape_cast %239 : vector<1x48x64xbf16> to vector<48x64xbf16>
      %cst_194 = arith.constant dense<0.000000e+00> : vector<4x64xf32>
      %241 = tpu.matmul %238, %240, %cst_194 {dimension_numbers = #tpu.dot_dimension_numbers<[1], [0], [0], [1], [0, 0, 1, 1], [], []>} : vector<4x48xbf16>, vector<48x64xbf16>, vector<4x64xf32> -> vector<4x64xf32>
      %242 = arith.addf %234, %241 : vector<4x64xf32>
      %c0_i32_195 = arith.constant 0 : i32
      %243 = arith.addi %227, %c0_i32_195 : i32
      %244 = arith.index_cast %243 : i32 to index
      %c2_196 = arith.constant 2 : index
      %c0_197 = arith.constant 0 : index
      %245 = vector.load %arg25[%244, %c2_196, %c0_197] : memref<6x6x48xbf16, #tpu.memory_space<vmem>>, vector<1x4x48xbf16>
      %246 = vector.shape_cast %245 : vector<1x4x48xbf16> to vector<4x48xbf16>
      %c2_198 = arith.constant 2 : index
      %c0_199 = arith.constant 0 : index
      %c0_200 = arith.constant 0 : index
      %247 = vector.load %arg13[%c2_198, %c0_199, %c0_200] : memref<9x48x64xbf16, #tpu.memory_space<vmem>>, vector<1x48x64xbf16>
      %248 = vector.shape_cast %247 : vector<1x48x64xbf16> to vector<48x64xbf16>
      %cst_201 = arith.constant dense<0.000000e+00> : vector<4x64xf32>
      %249 = tpu.matmul %246, %248, %cst_201 {dimension_numbers = #tpu.dot_dimension_numbers<[1], [0], [0], [1], [0, 0, 1, 1], [], []>} : vector<4x48xbf16>, vector<48x64xbf16>, vector<4x64xf32> -> vector<4x64xf32>
      %250 = arith.addf %242, %249 : vector<4x64xf32>
      %c1_i32_202 = arith.constant 1 : i32
      %251 = arith.addi %227, %c1_i32_202 : i32
      %252 = arith.index_cast %251 : i32 to index
      %c0_203 = arith.constant 0 : index
      %c0_204 = arith.constant 0 : index
      %253 = vector.load %arg25[%252, %c0_203, %c0_204] : memref<6x6x48xbf16, #tpu.memory_space<vmem>>, vector<1x4x48xbf16>
      %254 = vector.shape_cast %253 : vector<1x4x48xbf16> to vector<4x48xbf16>
      %c3_205 = arith.constant 3 : index
      %c0_206 = arith.constant 0 : index
      %c0_207 = arith.constant 0 : index
      %255 = vector.load %arg13[%c3_205, %c0_206, %c0_207] : memref<9x48x64xbf16, #tpu.memory_space<vmem>>, vector<1x48x64xbf16>
      %256 = vector.shape_cast %255 : vector<1x48x64xbf16> to vector<48x64xbf16>
      %cst_208 = arith.constant dense<0.000000e+00> : vector<4x64xf32>
      %257 = tpu.matmul %254, %256, %cst_208 {dimension_numbers = #tpu.dot_dimension_numbers<[1], [0], [0], [1], [0, 0, 1, 1], [], []>} : vector<4x48xbf16>, vector<48x64xbf16>, vector<4x64xf32> -> vector<4x64xf32>
      %258 = arith.addf %250, %257 : vector<4x64xf32>
      %c1_i32_209 = arith.constant 1 : i32
      %259 = arith.addi %227, %c1_i32_209 : i32
      %260 = arith.index_cast %259 : i32 to index
      %c1_210 = arith.constant 1 : index
      %c0_211 = arith.constant 0 : index
      %261 = vector.load %arg25[%260, %c1_210, %c0_211] : memref<6x6x48xbf16, #tpu.memory_space<vmem>>, vector<1x4x48xbf16>
      %262 = vector.shape_cast %261 : vector<1x4x48xbf16> to vector<4x48xbf16>
      %c4_212 = arith.constant 4 : index
      %c0_213 = arith.constant 0 : index
      %c0_214 = arith.constant 0 : index
      %263 = vector.load %arg13[%c4_212, %c0_213, %c0_214] : memref<9x48x64xbf16, #tpu.memory_space<vmem>>, vector<1x48x64xbf16>
      %264 = vector.shape_cast %263 : vector<1x48x64xbf16> to vector<48x64xbf16>
      %cst_215 = arith.constant dense<0.000000e+00> : vector<4x64xf32>
      %265 = tpu.matmul %262, %264, %cst_215 {dimension_numbers = #tpu.dot_dimension_numbers<[1], [0], [0], [1], [0, 0, 1, 1], [], []>} : vector<4x48xbf16>, vector<48x64xbf16>, vector<4x64xf32> -> vector<4x64xf32>
      %266 = arith.addf %258, %265 : vector<4x64xf32>
      %c1_i32_216 = arith.constant 1 : i32
      %267 = arith.addi %227, %c1_i32_216 : i32
      %268 = arith.index_cast %267 : i32 to index
      %c2_217 = arith.constant 2 : index
      %c0_218 = arith.constant 0 : index
      %269 = vector.load %arg25[%268, %c2_217, %c0_218] : memref<6x6x48xbf16, #tpu.memory_space<vmem>>, vector<1x4x48xbf16>
      %270 = vector.shape_cast %269 : vector<1x4x48xbf16> to vector<4x48xbf16>
      %c5_219 = arith.constant 5 : index
      %c0_220 = arith.constant 0 : index
      %c0_221 = arith.constant 0 : index
      %271 = vector.load %arg13[%c5_219, %c0_220, %c0_221] : memref<9x48x64xbf16, #tpu.memory_space<vmem>>, vector<1x48x64xbf16>
      %272 = vector.shape_cast %271 : vector<1x48x64xbf16> to vector<48x64xbf16>
      %cst_222 = arith.constant dense<0.000000e+00> : vector<4x64xf32>
      %273 = tpu.matmul %270, %272, %cst_222 {dimension_numbers = #tpu.dot_dimension_numbers<[1], [0], [0], [1], [0, 0, 1, 1], [], []>} : vector<4x48xbf16>, vector<48x64xbf16>, vector<4x64xf32> -> vector<4x64xf32>
      %274 = arith.addf %266, %273 : vector<4x64xf32>
      %c2_i32_223 = arith.constant 2 : i32
      %275 = arith.addi %227, %c2_i32_223 : i32
      %276 = arith.index_cast %275 : i32 to index
      %c0_224 = arith.constant 0 : index
      %c0_225 = arith.constant 0 : index
      %277 = vector.load %arg25[%276, %c0_224, %c0_225] : memref<6x6x48xbf16, #tpu.memory_space<vmem>>, vector<1x4x48xbf16>
      %278 = vector.shape_cast %277 : vector<1x4x48xbf16> to vector<4x48xbf16>
      %c6_226 = arith.constant 6 : index
      %c0_227 = arith.constant 0 : index
      %c0_228 = arith.constant 0 : index
      %279 = vector.load %arg13[%c6_226, %c0_227, %c0_228] : memref<9x48x64xbf16, #tpu.memory_space<vmem>>, vector<1x48x64xbf16>
      %280 = vector.shape_cast %279 : vector<1x48x64xbf16> to vector<48x64xbf16>
      %cst_229 = arith.constant dense<0.000000e+00> : vector<4x64xf32>
      %281 = tpu.matmul %278, %280, %cst_229 {dimension_numbers = #tpu.dot_dimension_numbers<[1], [0], [0], [1], [0, 0, 1, 1], [], []>} : vector<4x48xbf16>, vector<48x64xbf16>, vector<4x64xf32> -> vector<4x64xf32>
      %282 = arith.addf %274, %281 : vector<4x64xf32>
      %c2_i32_230 = arith.constant 2 : i32
      %283 = arith.addi %227, %c2_i32_230 : i32
      %284 = arith.index_cast %283 : i32 to index
      %c1_231 = arith.constant 1 : index
      %c0_232 = arith.constant 0 : index
      %285 = vector.load %arg25[%284, %c1_231, %c0_232] : memref<6x6x48xbf16, #tpu.memory_space<vmem>>, vector<1x4x48xbf16>
      %286 = vector.shape_cast %285 : vector<1x4x48xbf16> to vector<4x48xbf16>
      %c7_233 = arith.constant 7 : index
      %c0_234 = arith.constant 0 : index
      %c0_235 = arith.constant 0 : index
      %287 = vector.load %arg13[%c7_233, %c0_234, %c0_235] : memref<9x48x64xbf16, #tpu.memory_space<vmem>>, vector<1x48x64xbf16>
      %288 = vector.shape_cast %287 : vector<1x48x64xbf16> to vector<48x64xbf16>
      %cst_236 = arith.constant dense<0.000000e+00> : vector<4x64xf32>
      %289 = tpu.matmul %286, %288, %cst_236 {dimension_numbers = #tpu.dot_dimension_numbers<[1], [0], [0], [1], [0, 0, 1, 1], [], []>} : vector<4x48xbf16>, vector<48x64xbf16>, vector<4x64xf32> -> vector<4x64xf32>
      %290 = arith.addf %282, %289 : vector<4x64xf32>
      %c2_i32_237 = arith.constant 2 : i32
      %291 = arith.addi %227, %c2_i32_237 : i32
      %292 = arith.index_cast %291 : i32 to index
      %c2_238 = arith.constant 2 : index
      %c0_239 = arith.constant 0 : index
      %293 = vector.load %arg25[%292, %c2_238, %c0_239] : memref<6x6x48xbf16, #tpu.memory_space<vmem>>, vector<1x4x48xbf16>
      %294 = vector.shape_cast %293 : vector<1x4x48xbf16> to vector<4x48xbf16>
      %c8_240 = arith.constant 8 : index
      %c0_241 = arith.constant 0 : index
      %c0_242 = arith.constant 0 : index
      %295 = vector.load %arg13[%c8_240, %c0_241, %c0_242] : memref<9x48x64xbf16, #tpu.memory_space<vmem>>, vector<1x48x64xbf16>
      %296 = vector.shape_cast %295 : vector<1x48x64xbf16> to vector<48x64xbf16>
      %cst_243 = arith.constant dense<0.000000e+00> : vector<4x64xf32>
      %297 = tpu.matmul %294, %296, %cst_243 {dimension_numbers = #tpu.dot_dimension_numbers<[1], [0], [0], [1], [0, 0, 1, 1], [], []>} : vector<4x48xbf16>, vector<48x64xbf16>, vector<4x64xf32> -> vector<4x64xf32>
      %298 = arith.addf %290, %297 : vector<4x64xf32>
      %299 = vector.broadcast %63 : vector<1x64xf32> to vector<4x64xf32>
      %300 = arith.mulf %298, %299 : vector<4x64xf32>
      %301 = vector.broadcast %64 : vector<1x64xf32> to vector<4x64xf32>
      %302 = arith.addf %300, %301 : vector<4x64xf32>
      %cst_244 = arith.constant 0.000000e+00 : f32
      %303 = vector.broadcast %cst_244 : f32 to vector<4x64xf32>
      %304 = arith.maximumf %302, %303 : vector<4x64xf32>
      %305 = arith.truncf %304 : vector<4x64xf32> to vector<4x64xbf16>
      %306 = arith.index_cast %227 : i32 to index
      %c0_245 = arith.constant 0 : index
      %c0_246 = arith.constant 0 : index
      %307 = vector.load %arg26[%306, %c0_245, %c0_246] : memref<4x4x64xbf16, #tpu.memory_space<vmem>>, vector<1x4x64xbf16>
      %308 = vector.shape_cast %307 : vector<1x4x64xbf16> to vector<4x64xbf16>
      %309 = vector.shape_cast %305 : vector<4x64xbf16> to vector<1x4x64xbf16>
      tpu.vector_store %arg26[%306, %c0_245, %c0_246], %309 {strides = array<i32>} : memref<4x4x64xbf16, #tpu.memory_space<vmem>>, vector<1x4x64xbf16>,
    }
    %c4_i32_35 = arith.constant 4 : i32
    %c0_36 = arith.constant 0 : index
    %c0_37 = arith.constant 0 : index
    %66 = vector.load %arg17[%c0_36, %c0_37] : memref<1x80xf32, #tpu.memory_space<vmem>>, vector<1x80xf32>
    %c0_38 = arith.constant 0 : index
    %c0_39 = arith.constant 0 : index
    %67 = vector.load %arg18[%c0_38, %c0_39] : memref<1x80xf32, #tpu.memory_space<vmem>>, vector<1x80xf32>
    %c0_40 = arith.constant 0 : index
    %c0_41 = arith.constant 0 : index
    %68 = vector.load %arg19[%c0_40, %c0_41] : memref<1x80xf32, #tpu.memory_space<vmem>>, vector<1x80xf32>
    %c0_42 = arith.constant 0 : index
    %c0_43 = arith.constant 0 : index
    %69 = vector.load %arg20[%c0_42, %c0_43] : memref<80x5xf32, #tpu.memory_space<vmem>>, vector<80x5xf32>
    %cst = arith.constant 0.000000e+00 : f32
    %70 = vector.broadcast %cst : f32 to vector<1x5xf32>
    %c0_44 = arith.constant 0 : index
    %c0_45 = arith.constant 0 : index
    %c0_46 = arith.constant 0 : index
    %71 = vector.load %arg26[%c0_44, %c0_45, %c0_46] : memref<4x4x64xbf16, #tpu.memory_space<vmem>>, vector<1x2x64xbf16>
    %72 = vector.shape_cast %71 : vector<1x2x64xbf16> to vector<2x64xbf16>
    %c0_47 = arith.constant 0 : index
    %c0_48 = arith.constant 0 : index
    %c0_49 = arith.constant 0 : index
    %73 = vector.load %arg16[%c0_47, %c0_48, %c0_49] : memref<9x64x80xbf16, #tpu.memory_space<vmem>>, vector<1x64x80xbf16>
    %74 = vector.shape_cast %73 : vector<1x64x80xbf16> to vector<64x80xbf16>
    %cst_50 = arith.constant dense<0.000000e+00> : vector<2x80xf32>
    %75 = tpu.matmul %72, %74, %cst_50 {dimension_numbers = #tpu.dot_dimension_numbers<[1], [0], [0], [1], [0, 0, 1, 1], [], []>} : vector<2x64xbf16>, vector<64x80xbf16>, vector<2x80xf32> -> vector<2x80xf32>
    %c0_51 = arith.constant 0 : index
    %c1 = arith.constant 1 : index
    %c0_52 = arith.constant 0 : index
    %76 = vector.load %arg26[%c0_51, %c1, %c0_52] : memref<4x4x64xbf16, #tpu.memory_space<vmem>>, vector<1x2x64xbf16>
    %77 = vector.shape_cast %76 : vector<1x2x64xbf16> to vector<2x64xbf16>
    %c1_53 = arith.constant 1 : index
    %c0_54 = arith.constant 0 : index
    %c0_55 = arith.constant 0 : index
    %78 = vector.load %arg16[%c1_53, %c0_54, %c0_55] : memref<9x64x80xbf16, #tpu.memory_space<vmem>>, vector<1x64x80xbf16>
    %79 = vector.shape_cast %78 : vector<1x64x80xbf16> to vector<64x80xbf16>
    %cst_56 = arith.constant dense<0.000000e+00> : vector<2x80xf32>
    %80 = tpu.matmul %77, %79, %cst_56 {dimension_numbers = #tpu.dot_dimension_numbers<[1], [0], [0], [1], [0, 0, 1, 1], [], []>} : vector<2x64xbf16>, vector<64x80xbf16>, vector<2x80xf32> -> vector<2x80xf32>
    %81 = arith.addf %75, %80 : vector<2x80xf32>
    %c0_57 = arith.constant 0 : index
    %c2 = arith.constant 2 : index
    %c0_58 = arith.constant 0 : index
    %82 = vector.load %arg26[%c0_57, %c2, %c0_58] : memref<4x4x64xbf16, #tpu.memory_space<vmem>>, vector<1x2x64xbf16>
    %83 = vector.shape_cast %82 : vector<1x2x64xbf16> to vector<2x64xbf16>
    %c2_59 = arith.constant 2 : index
    %c0_60 = arith.constant 0 : index
    %c0_61 = arith.constant 0 : index
    %84 = vector.load %arg16[%c2_59, %c0_60, %c0_61] : memref<9x64x80xbf16, #tpu.memory_space<vmem>>, vector<1x64x80xbf16>
    %85 = vector.shape_cast %84 : vector<1x64x80xbf16> to vector<64x80xbf16>
    %cst_62 = arith.constant dense<0.000000e+00> : vector<2x80xf32>
    %86 = tpu.matmul %83, %85, %cst_62 {dimension_numbers = #tpu.dot_dimension_numbers<[1], [0], [0], [1], [0, 0, 1, 1], [], []>} : vector<2x64xbf16>, vector<64x80xbf16>, vector<2x80xf32> -> vector<2x80xf32>
    %87 = arith.addf %81, %86 : vector<2x80xf32>
    %c1_63 = arith.constant 1 : index
    %c0_64 = arith.constant 0 : index
    %c0_65 = arith.constant 0 : index
    %88 = vector.load %arg26[%c1_63, %c0_64, %c0_65] : memref<4x4x64xbf16, #tpu.memory_space<vmem>>, vector<1x2x64xbf16>
    %89 = vector.shape_cast %88 : vector<1x2x64xbf16> to vector<2x64xbf16>
    %c3 = arith.constant 3 : index
    %c0_66 = arith.constant 0 : index
    %c0_67 = arith.constant 0 : index
    %90 = vector.load %arg16[%c3, %c0_66, %c0_67] : memref<9x64x80xbf16, #tpu.memory_space<vmem>>, vector<1x64x80xbf16>
    %91 = vector.shape_cast %90 : vector<1x64x80xbf16> to vector<64x80xbf16>
    %cst_68 = arith.constant dense<0.000000e+00> : vector<2x80xf32>
    %92 = tpu.matmul %89, %91, %cst_68 {dimension_numbers = #tpu.dot_dimension_numbers<[1], [0], [0], [1], [0, 0, 1, 1], [], []>} : vector<2x64xbf16>, vector<64x80xbf16>, vector<2x80xf32> -> vector<2x80xf32>
    %93 = arith.addf %87, %92 : vector<2x80xf32>
    %c1_69 = arith.constant 1 : index
    %c1_70 = arith.constant 1 : index
    %c0_71 = arith.constant 0 : index
    %94 = vector.load %arg26[%c1_69, %c1_70, %c0_71] : memref<4x4x64xbf16, #tpu.memory_space<vmem>>, vector<1x2x64xbf16>
    %95 = vector.shape_cast %94 : vector<1x2x64xbf16> to vector<2x64xbf16>
    %c4 = arith.constant 4 : index
    %c0_72 = arith.constant 0 : index
    %c0_73 = arith.constant 0 : index
    %96 = vector.load %arg16[%c4, %c0_72, %c0_73] : memref<9x64x80xbf16, #tpu.memory_space<vmem>>, vector<1x64x80xbf16>
    %97 = vector.shape_cast %96 : vector<1x64x80xbf16> to vector<64x80xbf16>
    %cst_74 = arith.constant dense<0.000000e+00> : vector<2x80xf32>
    %98 = tpu.matmul %95, %97, %cst_74 {dimension_numbers = #tpu.dot_dimension_numbers<[1], [0], [0], [1], [0, 0, 1, 1], [], []>} : vector<2x64xbf16>, vector<64x80xbf16>, vector<2x80xf32> -> vector<2x80xf32>
    %99 = arith.addf %93, %98 : vector<2x80xf32>
    %c1_75 = arith.constant 1 : index
    %c2_76 = arith.constant 2 : index
    %c0_77 = arith.constant 0 : index
    %100 = vector.load %arg26[%c1_75, %c2_76, %c0_77] : memref<4x4x64xbf16, #tpu.memory_space<vmem>>, vector<1x2x64xbf16>
    %101 = vector.shape_cast %100 : vector<1x2x64xbf16> to vector<2x64xbf16>
    %c5 = arith.constant 5 : index
    %c0_78 = arith.constant 0 : index
    %c0_79 = arith.constant 0 : index
    %102 = vector.load %arg16[%c5, %c0_78, %c0_79] : memref<9x64x80xbf16, #tpu.memory_space<vmem>>, vector<1x64x80xbf16>
    %103 = vector.shape_cast %102 : vector<1x64x80xbf16> to vector<64x80xbf16>
    %cst_80 = arith.constant dense<0.000000e+00> : vector<2x80xf32>
    %104 = tpu.matmul %101, %103, %cst_80 {dimension_numbers = #tpu.dot_dimension_numbers<[1], [0], [0], [1], [0, 0, 1, 1], [], []>} : vector<2x64xbf16>, vector<64x80xbf16>, vector<2x80xf32> -> vector<2x80xf32>
    %105 = arith.addf %99, %104 : vector<2x80xf32>
    %c2_81 = arith.constant 2 : index
    %c0_82 = arith.constant 0 : index
    %c0_83 = arith.constant 0 : index
    %106 = vector.load %arg26[%c2_81, %c0_82, %c0_83] : memref<4x4x64xbf16, #tpu.memory_space<vmem>>, vector<1x2x64xbf16>
    %107 = vector.shape_cast %106 : vector<1x2x64xbf16> to vector<2x64xbf16>
    %c6 = arith.constant 6 : index
    %c0_84 = arith.constant 0 : index
    %c0_85 = arith.constant 0 : index
    %108 = vector.load %arg16[%c6, %c0_84, %c0_85] : memref<9x64x80xbf16, #tpu.memory_space<vmem>>, vector<1x64x80xbf16>
    %109 = vector.shape_cast %108 : vector<1x64x80xbf16> to vector<64x80xbf16>
    %cst_86 = arith.constant dense<0.000000e+00> : vector<2x80xf32>
    %110 = tpu.matmul %107, %109, %cst_86 {dimension_numbers = #tpu.dot_dimension_numbers<[1], [0], [0], [1], [0, 0, 1, 1], [], []>} : vector<2x64xbf16>, vector<64x80xbf16>, vector<2x80xf32> -> vector<2x80xf32>
    %111 = arith.addf %105, %110 : vector<2x80xf32>
    %c2_87 = arith.constant 2 : index
    %c1_88 = arith.constant 1 : index
    %c0_89 = arith.constant 0 : index
    %112 = vector.load %arg26[%c2_87, %c1_88, %c0_89] : memref<4x4x64xbf16, #tpu.memory_space<vmem>>, vector<1x2x64xbf16>
    %113 = vector.shape_cast %112 : vector<1x2x64xbf16> to vector<2x64xbf16>
    %c7 = arith.constant 7 : index
    %c0_90 = arith.constant 0 : index
    %c0_91 = arith.constant 0 : index
    %114 = vector.load %arg16[%c7, %c0_90, %c0_91] : memref<9x64x80xbf16, #tpu.memory_space<vmem>>, vector<1x64x80xbf16>
    %115 = vector.shape_cast %114 : vector<1x64x80xbf16> to vector<64x80xbf16>
    %cst_92 = arith.constant dense<0.000000e+00> : vector<2x80xf32>
    %116 = tpu.matmul %113, %115, %cst_92 {dimension_numbers = #tpu.dot_dimension_numbers<[1], [0], [0], [1], [0, 0, 1, 1], [], []>} : vector<2x64xbf16>, vector<64x80xbf16>, vector<2x80xf32> -> vector<2x80xf32>
    %117 = arith.addf %111, %116 : vector<2x80xf32>
    %c2_93 = arith.constant 2 : index
    %c2_94 = arith.constant 2 : index
    %c0_95 = arith.constant 0 : index
    %118 = vector.load %arg26[%c2_93, %c2_94, %c0_95] : memref<4x4x64xbf16, #tpu.memory_space<vmem>>, vector<1x2x64xbf16>
    %119 = vector.shape_cast %118 : vector<1x2x64xbf16> to vector<2x64xbf16>
    %c8 = arith.constant 8 : index
    %c0_96 = arith.constant 0 : index
    %c0_97 = arith.constant 0 : index
    %120 = vector.load %arg16[%c8, %c0_96, %c0_97] : memref<9x64x80xbf16, #tpu.memory_space<vmem>>, vector<1x64x80xbf16>
    %121 = vector.shape_cast %120 : vector<1x64x80xbf16> to vector<64x80xbf16>
    %cst_98 = arith.constant dense<0.000000e+00> : vector<2x80xf32>
    %122 = tpu.matmul %119, %121, %cst_98 {dimension_numbers = #tpu.dot_dimension_numbers<[1], [0], [0], [1], [0, 0, 1, 1], [], []>} : vector<2x64xbf16>, vector<64x80xbf16>, vector<2x80xf32> -> vector<2x80xf32>
    %123 = arith.addf %117, %122 : vector<2x80xf32>
    %124 = vector.broadcast %66 : vector<1x80xf32> to vector<2x80xf32>
    %125 = arith.mulf %123, %124 : vector<2x80xf32>
    %126 = vector.broadcast %67 : vector<1x80xf32> to vector<2x80xf32>
    %127 = arith.addf %125, %126 : vector<2x80xf32>
    %cst_99 = arith.constant 0.000000e+00 : f32
    %128 = vector.broadcast %cst_99 : f32 to vector<2x80xf32>
    %129 = arith.maximumf %127, %128 : vector<2x80xf32>
    %130 = vector.broadcast %68 : vector<1x80xf32> to vector<2x80xf32>
    %131 = arith.mulf %129, %130 : vector<2x80xf32>
    %cst_100 = arith.constant dense<0.000000e+00> : vector<2xf32>
    %132 = vector.multi_reduction <add>, %131, %cst_100 [1] : vector<2x80xf32> to vector<2xf32>
    %133 = vector.shape_cast %132 : vector<2xf32> to vector<2x1xf32>
    %cst_101 = arith.constant dense<0.000000e+00> : vector<2x5xf32>
    %134 = tpu.matmul %129, %69, %cst_101 {dimension_numbers = #tpu.dot_dimension_numbers<[1], [0], [0], [1], [0, 0, 1, 1], [], []>} : vector<2x80xf32>, vector<80x5xf32>, vector<2x5xf32> -> vector<2x5xf32>
    %135 = vector.broadcast %133 : vector<2x1xf32> to vector<2x5xf32>
    %136 = arith.mulf %135, %134 : vector<2x5xf32>
    %cst_102 = arith.constant dense<0.000000e+00> : vector<5xf32>
    %137 = vector.multi_reduction <add>, %136, %cst_102 [0] : vector<2x5xf32> to vector<5xf32>
    %138 = vector.shape_cast %137 : vector<5xf32> to vector<1x5xf32>
    %139 = arith.addf %70, %138 : vector<1x5xf32>
    %c1_103 = arith.constant 1 : index
    %c0_104 = arith.constant 0 : index
    %c0_105 = arith.constant 0 : index
    %140 = vector.load %arg26[%c1_103, %c0_104, %c0_105] : memref<4x4x64xbf16, #tpu.memory_space<vmem>>, vector<1x2x64xbf16>
    %141 = vector.shape_cast %140 : vector<1x2x64xbf16> to vector<2x64xbf16>
    %c0_106 = arith.constant 0 : index
    %c0_107 = arith.constant 0 : index
    %c0_108 = arith.constant 0 : index
    %142 = vector.load %arg16[%c0_106, %c0_107, %c0_108] : memref<9x64x80xbf16, #tpu.memory_space<vmem>>, vector<1x64x80xbf16>
    %143 = vector.shape_cast %142 : vector<1x64x80xbf16> to vector<64x80xbf16>
    %cst_109 = arith.constant dense<0.000000e+00> : vector<2x80xf32>
    %144 = tpu.matmul %141, %143, %cst_109 {dimension_numbers = #tpu.dot_dimension_numbers<[1], [0], [0], [1], [0, 0, 1, 1], [], []>} : vector<2x64xbf16>, vector<64x80xbf16>, vector<2x80xf32> -> vector<2x80xf32>
    %c1_110 = arith.constant 1 : index
    %c1_111 = arith.constant 1 : index
    %c0_112 = arith.constant 0 : index
    %145 = vector.load %arg26[%c1_110, %c1_111, %c0_112] : memref<4x4x64xbf16, #tpu.memory_space<vmem>>, vector<1x2x64xbf16>
    %146 = vector.shape_cast %145 : vector<1x2x64xbf16> to vector<2x64xbf16>
    %c1_113 = arith.constant 1 : index
    %c0_114 = arith.constant 0 : index
    %c0_115 = arith.constant 0 : index
    %147 = vector.load %arg16[%c1_113, %c0_114, %c0_115] : memref<9x64x80xbf16, #tpu.memory_space<vmem>>, vector<1x64x80xbf16>
    %148 = vector.shape_cast %147 : vector<1x64x80xbf16> to vector<64x80xbf16>
    %cst_116 = arith.constant dense<0.000000e+00> : vector<2x80xf32>
    %149 = tpu.matmul %146, %148, %cst_116 {dimension_numbers = #tpu.dot_dimension_numbers<[1], [0], [0], [1], [0, 0, 1, 1], [], []>} : vector<2x64xbf16>, vector<64x80xbf16>, vector<2x80xf32> -> vector<2x80xf32>
    %150 = arith.addf %144, %149 : vector<2x80xf32>
    %c1_117 = arith.constant 1 : index
    %c2_118 = arith.constant 2 : index
    %c0_119 = arith.constant 0 : index
    %151 = vector.load %arg26[%c1_117, %c2_118, %c0_119] : memref<4x4x64xbf16, #tpu.memory_space<vmem>>, vector<1x2x64xbf16>
    %152 = vector.shape_cast %151 : vector<1x2x64xbf16> to vector<2x64xbf16>
    %c2_120 = arith.constant 2 : index
    %c0_121 = arith.constant 0 : index
    %c0_122 = arith.constant 0 : index
    %153 = vector.load %arg16[%c2_120, %c0_121, %c0_122] : memref<9x64x80xbf16, #tpu.memory_space<vmem>>, vector<1x64x80xbf16>
    %154 = vector.shape_cast %153 : vector<1x64x80xbf16> to vector<64x80xbf16>
    %cst_123 = arith.constant dense<0.000000e+00> : vector<2x80xf32>
    %155 = tpu.matmul %152, %154, %cst_123 {dimension_numbers = #tpu.dot_dimension_numbers<[1], [0], [0], [1], [0, 0, 1, 1], [], []>} : vector<2x64xbf16>, vector<64x80xbf16>, vector<2x80xf32> -> vector<2x80xf32>
    %156 = arith.addf %150, %155 : vector<2x80xf32>
    %c2_124 = arith.constant 2 : index
    %c0_125 = arith.constant 0 : index
    %c0_126 = arith.constant 0 : index
    %157 = vector.load %arg26[%c2_124, %c0_125, %c0_126] : memref<4x4x64xbf16, #tpu.memory_space<vmem>>, vector<1x2x64xbf16>
    %158 = vector.shape_cast %157 : vector<1x2x64xbf16> to vector<2x64xbf16>
    %c3_127 = arith.constant 3 : index
    %c0_128 = arith.constant 0 : index
    %c0_129 = arith.constant 0 : index
    %159 = vector.load %arg16[%c3_127, %c0_128, %c0_129] : memref<9x64x80xbf16, #tpu.memory_space<vmem>>, vector<1x64x80xbf16>
    %160 = vector.shape_cast %159 : vector<1x64x80xbf16> to vector<64x80xbf16>
    %cst_130 = arith.constant dense<0.000000e+00> : vector<2x80xf32>
    %161 = tpu.matmul %158, %160, %cst_130 {dimension_numbers = #tpu.dot_dimension_numbers<[1], [0], [0], [1], [0, 0, 1, 1], [], []>} : vector<2x64xbf16>, vector<64x80xbf16>, vector<2x80xf32> -> vector<2x80xf32>
    %162 = arith.addf %156, %161 : vector<2x80xf32>
    %c2_131 = arith.constant 2 : index
    %c1_132 = arith.constant 1 : index
    %c0_133 = arith.constant 0 : index
    %163 = vector.load %arg26[%c2_131, %c1_132, %c0_133] : memref<4x4x64xbf16, #tpu.memory_space<vmem>>, vector<1x2x64xbf16>
    %164 = vector.shape_cast %163 : vector<1x2x64xbf16> to vector<2x64xbf16>
    %c4_134 = arith.constant 4 : index
    %c0_135 = arith.constant 0 : index
    %c0_136 = arith.constant 0 : index
    %165 = vector.load %arg16[%c4_134, %c0_135, %c0_136] : memref<9x64x80xbf16, #tpu.memory_space<vmem>>, vector<1x64x80xbf16>
    %166 = vector.shape_cast %165 : vector<1x64x80xbf16> to vector<64x80xbf16>
    %cst_137 = arith.constant dense<0.000000e+00> : vector<2x80xf32>
    %167 = tpu.matmul %164, %166, %cst_137 {dimension_numbers = #tpu.dot_dimension_numbers<[1], [0], [0], [1], [0, 0, 1, 1], [], []>} : vector<2x64xbf16>, vector<64x80xbf16>, vector<2x80xf32> -> vector<2x80xf32>
    %168 = arith.addf %162, %167 : vector<2x80xf32>
    %c2_138 = arith.constant 2 : index
    %c2_139 = arith.constant 2 : index
    %c0_140 = arith.constant 0 : index
    %169 = vector.load %arg26[%c2_138, %c2_139, %c0_140] : memref<4x4x64xbf16, #tpu.memory_space<vmem>>, vector<1x2x64xbf16>
    %170 = vector.shape_cast %169 : vector<1x2x64xbf16> to vector<2x64xbf16>
    %c5_141 = arith.constant 5 : index
    %c0_142 = arith.constant 0 : index
    %c0_143 = arith.constant 0 : index
    %171 = vector.load %arg16[%c5_141, %c0_142, %c0_143] : memref<9x64x80xbf16, #tpu.memory_space<vmem>>, vector<1x64x80xbf16>
    %172 = vector.shape_cast %171 : vector<1x64x80xbf16> to vector<64x80xbf16>
    %cst_144 = arith.constant dense<0.000000e+00> : vector<2x80xf32>
    %173 = tpu.matmul %170, %172, %cst_144 {dimension_numbers = #tpu.dot_dimension_numbers<[1], [0], [0], [1], [0, 0, 1, 1], [], []>} : vector<2x64xbf16>, vector<64x80xbf16>, vector<2x80xf32> -> vector<2x80xf32>
    %174 = arith.addf %168, %173 : vector<2x80xf32>
    %c3_145 = arith.constant 3 : index
    %c0_146 = arith.constant 0 : index
    %c0_147 = arith.constant 0 : index
    %175 = vector.load %arg26[%c3_145, %c0_146, %c0_147] : memref<4x4x64xbf16, #tpu.memory_space<vmem>>, vector<1x2x64xbf16>
    %176 = vector.shape_cast %175 : vector<1x2x64xbf16> to vector<2x64xbf16>
    %c6_148 = arith.constant 6 : index
    %c0_149 = arith.constant 0 : index
    %c0_150 = arith.constant 0 : index
    %177 = vector.load %arg16[%c6_148, %c0_149, %c0_150] : memref<9x64x80xbf16, #tpu.memory_space<vmem>>, vector<1x64x80xbf16>
    %178 = vector.shape_cast %177 : vector<1x64x80xbf16> to vector<64x80xbf16>
    %cst_151 = arith.constant dense<0.000000e+00> : vector<2x80xf32>
    %179 = tpu.matmul %176, %178, %cst_151 {dimension_numbers = #tpu.dot_dimension_numbers<[1], [0], [0], [1], [0, 0, 1, 1], [], []>} : vector<2x64xbf16>, vector<64x80xbf16>, vector<2x80xf32> -> vector<2x80xf32>
    %180 = arith.addf %174, %179 : vector<2x80xf32>
    %c3_152 = arith.constant 3 : index
    %c1_153 = arith.constant 1 : index
    %c0_154 = arith.constant 0 : index
    %181 = vector.load %arg26[%c3_152, %c1_153, %c0_154] : memref<4x4x64xbf16, #tpu.memory_space<vmem>>, vector<1x2x64xbf16>
    %182 = vector.shape_cast %181 : vector<1x2x64xbf16> to vector<2x64xbf16>
    %c7_155 = arith.constant 7 : index
    %c0_156 = arith.constant 0 : index
    %c0_157 = arith.constant 0 : index
    %183 = vector.load %arg16[%c7_155, %c0_156, %c0_157] : memref<9x64x80xbf16, #tpu.memory_space<vmem>>, vector<1x64x80xbf16>
    %184 = vector.shape_cast %183 : vector<1x64x80xbf16> to vector<64x80xbf16>
    %cst_158 = arith.constant dense<0.000000e+00> : vector<2x80xf32>
    %185 = tpu.matmul %182, %184, %cst_158 {dimension_numbers = #tpu.dot_dimension_numbers<[1], [0], [0], [1], [0, 0, 1, 1], [], []>} : vector<2x64xbf16>, vector<64x80xbf16>, vector<2x80xf32> -> vector<2x80xf32>
    %186 = arith.addf %180, %185 : vector<2x80xf32>
    %c3_159 = arith.constant 3 : index
    %c2_160 = arith.constant 2 : index
    %c0_161 = arith.constant 0 : index
    %187 = vector.load %arg26[%c3_159, %c2_160, %c0_161] : memref<4x4x64xbf16, #tpu.memory_space<vmem>>, vector<1x2x64xbf16>
    %188 = vector.shape_cast %187 : vector<1x2x64xbf16> to vector<2x64xbf16>
    %c8_162 = arith.constant 8 : index
    %c0_163 = arith.constant 0 : index
    %c0_164 = arith.constant 0 : index
    %189 = vector.load %arg16[%c8_162, %c0_163, %c0_164] : memref<9x64x80xbf16, #tpu.memory_space<vmem>>, vector<1x64x80xbf16>
    %190 = vector.shape_cast %189 : vector<1x64x80xbf16> to vector<64x80xbf16>
    %cst_165 = arith.constant dense<0.000000e+00> : vector<2x80xf32>
    %191 = tpu.matmul %188, %190, %cst_165 {dimension_numbers = #tpu.dot_dimension_numbers<[1], [0], [0], [1], [0, 0, 1, 1], [], []>} : vector<2x64xbf16>, vector<64x80xbf16>, vector<2x80xf32> -> vector<2x80xf32>
    %192 = arith.addf %186, %191 : vector<2x80xf32>
    %193 = vector.broadcast %66 : vector<1x80xf32> to vector<2x80xf32>
    %194 = arith.mulf %192, %193 : vector<2x80xf32>
    %195 = vector.broadcast %67 : vector<1x80xf32> to vector<2x80xf32>
    %196 = arith.addf %194, %195 : vector<2x80xf32>
    %cst_166 = arith.constant 0.000000e+00 : f32
    %197 = vector.broadcast %cst_166 : f32 to vector<2x80xf32>
    %198 = arith.maximumf %196, %197 : vector<2x80xf32>
    %199 = vector.broadcast %68 : vector<1x80xf32> to vector<2x80xf32>
    %200 = arith.mulf %198, %199 : vector<2x80xf32>
    %cst_167 = arith.constant dense<0.000000e+00> : vector<2xf32>
    %201 = vector.multi_reduction <add>, %200, %cst_167 [1] : vector<2x80xf32> to vector<2xf32>
    %202 = vector.shape_cast %201 : vector<2xf32> to vector<2x1xf32>
    %cst_168 = arith.constant dense<0.000000e+00> : vector<2x5xf32>
    %203 = tpu.matmul %198, %69, %cst_168 {dimension_numbers = #tpu.dot_dimension_numbers<[1], [0], [0], [1], [0, 0, 1, 1], [], []>} : vector<2x80xf32>, vector<80x5xf32>, vector<2x5xf32> -> vector<2x5xf32>
    %204 = vector.broadcast %202 : vector<2x1xf32> to vector<2x5xf32>
    %205 = arith.mulf %204, %203 : vector<2x5xf32>
    %cst_169 = arith.constant dense<0.000000e+00> : vector<5xf32>
    %206 = vector.multi_reduction <add>, %205, %cst_169 [0] : vector<2x5xf32> to vector<5xf32>
    %207 = vector.shape_cast %206 : vector<5xf32> to vector<1x5xf32>
    %208 = arith.addf %139, %207 : vector<1x5xf32>
    %cst_170 = arith.constant 2.500000e-01 : f32
    %209 = vector.broadcast %cst_170 : f32 to vector<1x5xf32>
    %210 = arith.mulf %208, %209 : vector<1x5xf32>
    %c0_171 = arith.constant 0 : index
    %c0_172 = arith.constant 0 : index
    %c0_173 = arith.constant 0 : index
    %211 = vector.load %arg21[%c0_171, %c0_172, %c0_173] : memref<1x1x5xf32, #tpu.memory_space<vmem>>, vector<1x1x5xf32>
    %212 = vector.shape_cast %211 : vector<1x1x5xf32> to vector<1x5xf32>
    %213 = vector.shape_cast %210 : vector<1x5xf32> to vector<1x1x5xf32>
    tpu.vector_store %arg21[%c0_171, %c0_172, %c0_173], %213 {strides = array<i32>} : memref<1x1x5xf32, #tpu.memory_space<vmem>>, vector<1x1x5xf32>,
    %cst_174 = arith.constant dense<0xFF800000> : vector<1xf32>
    %214 = vector.multi_reduction <maximumf>, %210, %cst_174 [1] : vector<1x5xf32> to vector<1xf32>
    %215 = vector.shape_cast %214 : vector<1xf32> to vector<1x1xf32>
    %216 = vector.broadcast %215 : vector<1x1xf32> to vector<1x5xf32>
    %217 = arith.subf %210, %216 : vector<1x5xf32>
    %218 = math.exp %217 : vector<1x5xf32>
    %cst_175 = arith.constant dense<0.000000e+00> : vector<1xf32>
    %219 = vector.multi_reduction <add>, %218, %cst_175 [1] : vector<1x5xf32> to vector<1xf32>
    %220 = vector.shape_cast %219 : vector<1xf32> to vector<1x1xf32>
    %221 = vector.broadcast %220 : vector<1x1xf32> to vector<1x5xf32>
    %222 = arith.divf %218, %221 : vector<1x5xf32>
    %c0_176 = arith.constant 0 : index
    %c0_177 = arith.constant 0 : index
    %c0_178 = arith.constant 0 : index
    %223 = vector.load %arg22[%c0_176, %c0_177, %c0_178] : memref<1x1x5xf32, #tpu.memory_space<vmem>>, vector<1x1x5xf32>
    %224 = vector.shape_cast %223 : vector<1x1x5xf32> to vector<1x5xf32>
    %225 = vector.shape_cast %222 : vector<1x5xf32> to vector<1x1x5xf32>
    tpu.vector_store %arg22[%c0_176, %c0_177, %c0_178], %225 {strides = array<i32>} : memref<1x1x5xf32, #tpu.memory_space<vmem>>, vector<1x1x5xf32>,
    return
  }
  func.func @transform_0(%arg0: i32) -> (i32, i32, i32, i32) {
    %c0_i32 = arith.constant 0 : i32
    %c0_i32_0 = arith.constant 0 : i32
    %c0_i32_1 = arith.constant 0 : i32
    %c0_i32_2 = arith.constant 0 : i32
    return %arg0, %c0_i32, %c0_i32_0, %c0_i32_1 : i32, i32, i32, i32
  }
  func.func @transform_1(%arg0: i32) -> (i32, i32, i32, i32) {
    %c0_i32 = arith.constant 0 : i32
    %c0_i32_0 = arith.constant 0 : i32
    %c0_i32_1 = arith.constant 0 : i32
    %c0_i32_2 = arith.constant 0 : i32
    return %arg0, %c0_i32, %c0_i32_0, %c0_i32_1 : i32, i32, i32, i32
  }
  func.func @transform_2(%arg0: i32) -> (i32, i32, i32) {
    %c0_i32 = arith.constant 0 : i32
    %c0_i32_0 = arith.constant 0 : i32
    %c0_i32_1 = arith.constant 0 : i32
    %c0_i32_2 = arith.constant 0 : i32
    return %c0_i32, %c0_i32_0, %c0_i32_1 : i32, i32, i32
  }
  func.func @transform_3(%arg0: i32) -> (i32, i32, i32) {
    %c0_i32 = arith.constant 0 : i32
    %c0_i32_0 = arith.constant 0 : i32
    %c0_i32_1 = arith.constant 0 : i32
    %c0_i32_2 = arith.constant 0 : i32
    return %c0_i32, %c0_i32_0, %c0_i32_1 : i32, i32, i32
  }
  func.func @transform_4(%arg0: i32) -> (i32, i32) {
    %c0_i32 = arith.constant 0 : i32
    %c0_i32_0 = arith.constant 0 : i32
    %c0_i32_1 = arith.constant 0 : i32
    return %c0_i32, %c0_i32_0 : i32, i32
  }
  func.func @transform_5(%arg0: i32) -> (i32, i32) {
    %c0_i32 = arith.constant 0 : i32
    %c0_i32_0 = arith.constant 0 : i32
    %c0_i32_1 = arith.constant 0 : i32
    return %c0_i32, %c0_i32_0 : i32, i32
  }
  func.func @transform_6(%arg0: i32) -> (i32, i32, i32) {
    %c0_i32 = arith.constant 0 : i32
    %c0_i32_0 = arith.constant 0 : i32
    %c0_i32_1 = arith.constant 0 : i32
    %c0_i32_2 = arith.constant 0 : i32
    return %c0_i32, %c0_i32_0, %c0_i32_1 : i32, i32, i32
  }
  func.func @transform_7(%arg0: i32) -> (i32, i32) {
    %c0_i32 = arith.constant 0 : i32
    %c0_i32_0 = arith.constant 0 : i32
    %c0_i32_1 = arith.constant 0 : i32
    return %c0_i32, %c0_i32_0 : i32, i32
  }
  func.func @transform_8(%arg0: i32) -> (i32, i32) {
    %c0_i32 = arith.constant 0 : i32
    %c0_i32_0 = arith.constant 0 : i32
    %c0_i32_1 = arith.constant 0 : i32
    return %c0_i32, %c0_i32_0 : i32, i32
  }
  func.func @transform_9(%arg0: i32) -> (i32, i32, i32) {
    %c0_i32 = arith.constant 0 : i32
    %c0_i32_0 = arith.constant 0 : i32
    %c0_i32_1 = arith.constant 0 : i32
    %c0_i32_2 = arith.constant 0 : i32
    return %c0_i32, %c0_i32_0, %c0_i32_1 : i32, i32, i32
  }
  func.func @transform_10(%arg0: i32) -> (i32, i32) {
    %c0_i32 = arith.constant 0 : i32
    %c0_i32_0 = arith.constant 0 : i32
    %c0_i32_1 = arith.constant 0 : i32
    return %c0_i32, %c0_i32_0 : i32, i32
  }
  func.func @transform_11(%arg0: i32) -> (i32, i32) {
    %c0_i32 = arith.constant 0 : i32
    %c0_i32_0 = arith.constant 0 : i32
    %c0_i32_1 = arith.constant 0 : i32
    return %c0_i32, %c0_i32_0 : i32, i32
  }
  func.func @transform_12(%arg0: i32) -> (i32, i32, i32) {
    %c0_i32 = arith.constant 0 : i32
    %c0_i32_0 = arith.constant 0 : i32
    %c0_i32_1 = arith.constant 0 : i32
    %c0_i32_2 = arith.constant 0 : i32
    return %c0_i32, %c0_i32_0, %c0_i32_1 : i32, i32, i32
  }
  func.func @transform_13(%arg0: i32) -> (i32, i32) {
    %c0_i32 = arith.constant 0 : i32
    %c0_i32_0 = arith.constant 0 : i32
    %c0_i32_1 = arith.constant 0 : i32
    return %c0_i32, %c0_i32_0 : i32, i32
  }
  func.func @transform_14(%arg0: i32) -> (i32, i32) {
    %c0_i32 = arith.constant 0 : i32
    %c0_i32_0 = arith.constant 0 : i32
    %c0_i32_1 = arith.constant 0 : i32
    return %c0_i32, %c0_i32_0 : i32, i32
  }
  func.func @transform_15(%arg0: i32) -> (i32, i32, i32) {
    %c0_i32 = arith.constant 0 : i32
    %c0_i32_0 = arith.constant 0 : i32
    %c0_i32_1 = arith.constant 0 : i32
    %c0_i32_2 = arith.constant 0 : i32
    return %c0_i32, %c0_i32_0, %c0_i32_1 : i32, i32, i32
  }
  func.func @transform_16(%arg0: i32) -> (i32, i32) {
    %c0_i32 = arith.constant 0 : i32
    %c0_i32_0 = arith.constant 0 : i32
    %c0_i32_1 = arith.constant 0 : i32
    return %c0_i32, %c0_i32_0 : i32, i32
  }
  func.func @transform_17(%arg0: i32) -> (i32, i32) {
    %c0_i32 = arith.constant 0 : i32
    %c0_i32_0 = arith.constant 0 : i32
    %c0_i32_1 = arith.constant 0 : i32
    return %c0_i32, %c0_i32_0 : i32, i32
  }
  func.func @transform_18(%arg0: i32) -> (i32, i32) {
    %c0_i32 = arith.constant 0 : i32
    %c0_i32_0 = arith.constant 0 : i32
    %c0_i32_1 = arith.constant 0 : i32
    return %c0_i32, %c0_i32_0 : i32, i32
  }
  func.func @transform_19(%arg0: i32) -> (i32, i32) {
    %c0_i32 = arith.constant 0 : i32
    %c0_i32_0 = arith.constant 0 : i32
    %c0_i32_1 = arith.constant 0 : i32
    return %c0_i32, %c0_i32_0 : i32, i32
  }
  func.func @transform_20(%arg0: i32) -> (i32, i32, i32) {
    %c0_i32 = arith.constant 0 : i32
    %c0_i32_0 = arith.constant 0 : i32
    %c0_i32_1 = arith.constant 0 : i32
    return %arg0, %c0_i32, %c0_i32_0 : i32, i32, i32
  }
  func.func @transform_21(%arg0: i32) -> (i32, i32, i32) {
    %c0_i32 = arith.constant 0 : i32
    %c0_i32_0 = arith.constant 0 : i32
    %c0_i32_1 = arith.constant 0 : i32
    return %arg0, %c0_i32, %c0_i32_0 : i32, i32, i32
  }
}

</mosaic_0001>

<bundles_post_ra>
// kernel: net_forward.1
= control target key start
LH: loop header
LB: loop body
LE: loop exit
PB: predicated region body
PF: predicated region fallthrough
CT: control target
= control target key end

     0   :  { %s9809_s0 = inlined_call_operand.vmem [shape: bf16[2,71,64,8], index: 0, kind: input, shape index: {}]   ;;  %s9810_s1 = inlined_call_operand.vmem [shape: bf16[2,64,71,8], index: 1, kind: input, shape index: {}]   ;;  %s9811_s2 = inlined_call_operand.vmem [shape: bf16[8,8,8], index: 2, kind: input, shape index: {}]   ;;  %s9812_s3 = inlined_call_operand.vmem [shape: bf16[8,8,8], index: 3, kind: input, shape index: {}]   ;;  %s9813_s4 = inlined_call_operand.vmem [shape: f32[1,8], index: 4, kind: input, shape index: {}]   ;;  %s9814_s5 = inlined_call_operand.vmem [shape: f32[1,8], index: 5, kind: input, shape index: {}]   ;;  %s9815_s6 = inlined_call_operand.vmem [shape: bf16[9,16,32], index: 6, kind: input, shape index: {}]   ;;  %s9816_s7 = inlined_call_operand.vmem [shape: f32[1,32], index: 7, kind: input, shape index: {}]   ;;  %s9817_s8 = inlined_call_operand.vmem [shape: f32[1,32], index: 8, kind: input, shape index: {}]   ;;  %s9818_s9 = inlined_call_operand.vmem [shape: bf16[9,32,48], index: 9, kind: input, shape index: {}]   ;;  %s9819_s10 = inlined_call_operand.vmem [shape: f32[1,48], index: 10, kind: input, shape index: {}]   ;;  %s9820_s11 = inlined_call_operand.vmem [shape: f32[1,48], index: 11, kind: input, shape index: {}]   ;;  %s9821_s12 = inlined_call_operand.vmem [shape: bf16[9,48,64], index: 12, kind: input, shape index: {}]   ;;  %s9822_s13 = inlined_call_operand.vmem [shape: f32[1,64], index: 13, kind: input, shape index: {}]   ;;  %s9823_s14 = inlined_call_operand.vmem [shape: f32[1,64], index: 14, kind: input, shape index: {}]   ;;  %s9824_s15 = inlined_call_operand.vmem [shape: bf16[9,64,80], index: 15, kind: input, shape index: {}]   ;;  %s9825_s16 = inlined_call_operand.vmem [shape: f32[1,80], index: 16, kind: input, shape index: {}]   ;;  %s9826_s17 = inlined_call_operand.vmem [shape: f32[1,80], index: 17, kind: input, shape index: {}]   ;;  %s9827_s18 = inlined_call_operand.vmem [shape: f32[1,80], index: 18, kind: input, shape index: {}]   ;;  %s9828_s19 = inlined_call_operand.vmem [shape: f32[80,5], index: 19, kind: input, shape index: {}]   ;;  %s9829_s20 = inlined_call_operand.hbm [shape: f32[2,1,5], index: 20, kind: output, shape index: {0}]   ;;  %s9830_s21 = inlined_call_operand.hbm [shape: f32[2,1,5], index: 21, kind: output, shape index: {1}]  }
   0x1   :  { %9860 = sst [smem:[#allocation40_spill]] %s9809_s0 }
   0x2   :  { %9861 = sst [smem:[#allocation41_spill]] %s9810_s1 }
   0x3   :  { %9862 = sst [smem:[#allocation42_spill]] %s9811_s2 }
   0x4   :  { %9863 = sst [smem:[#allocation43_spill]] %s9812_s3 }
   0x5   :  { %9864 = sst [smem:[#allocation44_spill]] %s9813_s4 }
   0x6   :  { %9865 = sst [smem:[#allocation45_spill]] %s9814_s5 }
   0x7   :  { %9866 = sst [smem:[#allocation46_spill]] %s9815_s6 }
   0x8   :  { %9867 = sst [smem:[#allocation47_spill]] %s9816_s7 }
   0x9   :  { %27 = vsyncpa [#allocation7], 0 }
   0xa   :  { %29 = vsyncpa [#allocation7 + $0x1], 0 }
   0xb   :  { %30 = vsyncpa [#allocation9], 0 }
   0xc   :  { %32 = vsyncpa [#allocation9 + $0x1], 0  ;;  %s7882_s2 = smov 0   ;;  %s7884_s25 = smov 0  }
   0xd   :  { %s7886_s26 = smov 0   ;;  %s7888_s27 = smov 0  }
   0xe LB: > { %9868 = sst [smem:[#allocation12_spill]] %s7740_s2  ;;  %s7903_s3 = sadd.s32 4294967295, %s7752_s27   ;;  %s7752_s27 = sphi %s7888_s27, %s9941_s27   ;;  %s7748_s26 = sphi %s7886_s26, %s9944_s26   ;;  %s7744_s25 = sphi %s7884_s25, %s9943_s25   ;;  %s7740_s2 = sphi %s7882_s2, %s9942_s2  }
   0xf   : > { %9869 = sst [smem:[#allocation13_spill]] %s7744_s25  ;;  %s6181_s28 = sadd.s32 4294967294, %s7752_s27  }
  0x10   : > { %9870 = sst [smem:[#allocation14_spill]] %s7748_s26  ;;  %s7907_s29 = sadd.s32 1, %s7752_s27  }
  0x11   : > { %9871 = sst [smem:[#allocation15_spill]] %s7752_s27  ;;  %s475_s0 = sadd.s32 1, %s7748_s26 }
  0x12   : > { %9872 = sst [smem:[#allocation16_spill]] %s7907_s29  ;;  %s472_s4 = ssub.s32 %s7752_s27, %s7907_s29 }
  0x13   : > { %p485_p0 = scmp.ne.s32.totalorder %s7748_s26, %s7744_s25  ;;  %p473_p1 = scmp.eq.s32.totalorder %s472_s4, 0 }
  0x14   : > { %p486_p2 = scmp.eq.s32.totalorder %s7903_s3, 1  ;;  %p491_p3 = scmp.ne.s32.totalorder %s7744_s25, %s7740_s2 }
  0x15   : > { %p492_p4 = scmp.eq.s32.totalorder %s6181_s28, 1  ;;  %p6184_p7 = scmp.ge.s32.totalorder %s7752_s27, 1 }
  0x16   : > { %s7918_s30 = scalar_select %p473_p1, %s7748_s26, %s475_s0  }
  0x17   : > { %p7920_p5 = por %p486_p2, %p485_p0  ;;  %p7924_p6 = por %p492_p4, %p491_p3 }
  0x18   : > { %9873 = sst [smem:[#allocation17_spill]] %s7918_s30  ;;  %p606_p8 = scmp.lt.s32.totalorder %s7752_s27, 3 }
  0x19   : > { %s9875_s22 = scalar_select %p7924_p6, 1, 0 }
  0x1a   : > { %p607_p9 = pnand %p6184_p7, %p606_p8 }
  0x1b   : > { %9876 = sst [smem:[#allocation18_spill]] %s9875_s22 }
  0x1c   : > { %610 = sbr.rel (%p607_p9) target bundleno = 2937 (0xb79), region = 100 }
  0x21   : > { %s7931_s23 = sand.u32 1, %s7744_s25   ;;  %p674_p10 = scmp.lt.s32.totalorder %s7903_s3, 1  ;;  %v687_v2 = vlaneseq  ;;  %v7770_v12 = vmov 0.0  }
  0x22   : > { %s9877_s28 = sld [smem:[#allocation44_spill]] }
  0x23   : > { %s9879_s30 = sld [smem:[#allocation45_spill]]  ;;  %v688_v3 = vshrl.u32 %v687_v2, 7  ;;  %v693_v4 = vand.u32 127, %v687_v2 }
  0x24   : > { %s675_s26 = scalar_select %p674_p10, %s7903_s3, 1 }
  0x25   : > { %v689_v5 = vadd.s32 8, %v688_v3  ;;  %v690_v6 = vadd.s32 16, %v688_v3  ;;  %v691_v7 = vadd.s32 24, %v688_v3  ;;  %v694_v8 = vmul.u32 2, %v688_v3  ;;  %s9881_s1 = sld [smem:[#allocation40_spill]] }
  0x26   : > { %s7540_s29 = smul.u32 2272, %s675_s26  ;;  %s9882_s0 = sld [smem:[#allocation41_spill]] }
  0x27   : > { %s7541_s25 = smul.u32 2304, %s675_s26  ;;  %v695_v9 = vmul.u32 2, %v689_v5  ;;  %v696_v10 = vmul.u32 2, %v690_v6  ;;  %v697_v11 = vmul.u32 2, %v691_v7  ;;  %vm698_vm0 = vcmp.eq.s32.totalorder %v693_v4, %v694_v8  ;;  %s7973_s26 = smov 0  }
  0x28   : > { %v7937_v0 = vld [vmem:[%s9877_s28] sm:$0x1]  ;;  %v7955_v13 = vsel %vm698_vm0, 1.0, %v7770_v12  ;;  %v710_v14 = vadd.s32 1, %v694_v8 }
  0x29   : > { %9878 = vst [vmem:[#allocation19_spill] sm:$0xff] %v7937_v0  ;;  %v7942_v1 = vld [vmem:[%s9879_s30] sm:$0x1]  ;;  %vm699_vm1 = vcmp.eq.s32.totalorder %v693_v4, %v695_v9  ;;  %vm700_vm2 = vcmp.eq.s32.totalorder %v693_v4, %v696_v10  ;;  %vm701_vm3 = vcmp.eq.s32.totalorder %v693_v4, %v697_v11  ;;  %v711_v15 = vadd.s32 1, %v695_v9 }
  0x2a   : > { %9880 = vst [vmem:[#allocation20_spill] sm:$0xff] %v7942_v1  ;;  %v7957_v16 = vsel %vm699_vm1, 1.0, %v7770_v12  ;;  %v7959_v17 = vsel %vm700_vm2, 1.0, %v7770_v12  ;;  %v7961_v18 = vsel %vm701_vm3, 1.0, %v7770_v12  ;;  %v712_v19 = vadd.s32 1, %v696_v10 }
  0x2b   : > { %s7948_s24 = scalar_lea.vmem %s9881_s1, %s7540_s29  ;;  %9883 = vst [vmem:[#allocation21_spill] sm:$0xff] %v7955_v13  ;;  %v713_v20 = vadd.s32 1, %v697_v11  ;;  %vm714_vm4 = vcmp.eq.s32.totalorder %v693_v4, %v710_v14  ;;  %vm715_vm5 = vcmp.eq.s32.totalorder %v693_v4, %v711_v15 }
  0x2c   : > { %s7953_s4 = scalar_lea.vmem %s9882_s0, %s7541_s25  ;;  %9884 = vst [vmem:[#allocation22_spill] sm:$0xff] %v7957_v16  ;;  %vm716_vm6 = vcmp.eq.s32.totalorder %v693_v4, %v712_v19  ;;  %v7963_v21 = vsel %vm714_vm4, 1.0, %v7770_v12  ;;  %v7965_v22 = vsel %vm715_vm5, 1.0, %v7770_v12 }
  0x2d   : > { %9885 = vst [vmem:[#allocation23_spill] sm:$0xff] %v7959_v17  ;;  %vm717_vm7 = vcmp.eq.s32.totalorder %v693_v4, %v713_v20  ;;  %v7967_v23 = vsel %vm716_vm6, 1.0, %v7770_v12 }
  0x2e   : > { %9886 = vst [vmem:[#allocation24_spill] sm:$0xff] %v7961_v18  ;;  %v7969_v24 = vsel %vm717_vm7, 1.0, %v7770_v12 }
  0x2f   : > { %9887 = vst [vmem:[#allocation25_spill] sm:$0xff] %v7963_v21 }
  0x30   : > { %9888 = vst [vmem:[#allocation26_spill] sm:$0xff] %v7965_v22 }
  0x31   : > { %9889 = vst [vmem:[#allocation27_spill] sm:$0xff] %v7967_v23 }
  0x32   : > { %9890 = vst [vmem:[#allocation28_spill] sm:$0xff] %v7969_v24 }
  0x33 LB: >> { %s9891_s1 = sld [smem:[#allocation42_spill]]  ;;  %vm792_vm8 = vcmask 1043456   ;;  %s7333_s29 = sshll.u32 %s7756_s26, 6  ;;  %vm779_vm9 = vcmask 64512   ;;  %v9894_v0 = vld [vmem:[#allocation19_spill] sm:$0xff]  ;;  %vm2176_vm11 = vcmask 1045504   ;;  %s7756_s26 = sphi %s7973_s26, %s731_s26  }
  0x34   : >> { %s7996_s22 = scalar_lea.vmem %s7948_s24, %s7333_s29  ;;  %s9898_s28 = sld [smem:[#allocation43_spill]]  ;;  %vm1893_vm10 = vsmask.f32 7424  ;;  %vm1756_vm12 = vcmask 523264   ;;  %vm2244_vm13 = vsmask.f32 5376 }
  0x35   : >> { %v7999_v33 = vld [vmem:[%s7996_s22 + $0x20] sm:$0xff]  ;;  %v8016_v37 = vld [vmem:[%s7996_s22 + $0x28] sm:$0xff]  ;;  %v8049_v49 = vld [vmem:[%s7996_s22 + $0x30] sm:$0xff]  ;;  %vm2020_vm14 = vcmask 1046528   ;;  %vm2088_vm15 = vsmask.f32 6400 }
  0x36   : >> { %v7334_v34 = vld [vmem:[%s7996_s22] sm:$0xff]  ;;  %v7335_v38 = vld [vmem:[%s7996_s22 + $0x8] sm:$0xff]  ;;  %v7336_v50 = vld [vmem:[%s7996_s22 + $0x10] sm:$0xff]  ;;  %vm2332_vm0 = vcmask 1044480   ;;  %vm2400_vm1 = vsmask.f32 4352 }
  0x37   : >> { %v8003_v35 = vld [vmem:[%s7996_s22 + $0x40] sm:$0xff]  ;;  %v8020_v39 = vld [vmem:[%s7996_s22 + $0x48] sm:$0xff]  ;;  %v8053_v51 = vld [vmem:[%s7996_s22 + $0x50] sm:$0xff]  ;;  %s7378_s27 = sshll.u32 %s7756_s26, 4  ;;  %vm1850_vm2 = vcmask 60416   ;;  %vm3172_vm3 = vcmask 126016  }
  0x38   : >> { %v8006_v36 = vld [vmem:[%s7996_s22 + $0x60] sm:$0xff]  ;;  %v8023_v40 = vld [vmem:[%s7996_s22 + $0x68] sm:$0xff]  ;;  %v8056_v52 = vld [vmem:[%s7996_s22 + $0x70] sm:$0xff] }
  0x39   : >> { %v6208_v25 = vld [vmem:[%s9891_s1 + $0x4] sm:$0xf]  ;;  %v744_v26 = vld [vmem:[%s9891_s1] sm:$0xf]  ;;  %v6259_v29 = vld [vmem:[%s9891_s1 + $0x8] sm:$0xf] }
  0x3a   : >> { %v794_v27 = vsel %vm792_vm8, %v6208_v25, 0  ;;  %v858_v28 = vsel %vm792_vm8, %v744_v26, 0  ;;  %v6290_v30 = vld [vmem:[%s9891_s1 + $0xc] sm:$0xf]  ;;  %v936_v31 = vsel %vm792_vm8, %v6259_v29, 0  ;;  %v8066_v53 = vld [vmem:[%s7996_s22 + $0x38] sm:$0xff] }
  0x3b   : >> { %803 = vmatpush.bf16.msra.mxu0 %v794_v27  ;;  %867 = vmatpush.bf16.msra.mxu1 %v858_v28  ;;  %v1022_v32 = vsel %vm792_vm8, %v6290_v30, 0  ;;  %v6383_v41 = vld [vmem:[%s9891_s1 + $0x18] sm:$0xf]  ;;  %v6321_v42 = vld [vmem:[%s9891_s1 + $0x10] sm:$0xf]  ;;  %v7354_v57 = vld [vmem:[%s7996_s22 + $0x80] sm:$0xff] }
  0x3c   : >> { %945 = vmatpush.bf16.msra.mxu2 %v936_v31  ;;  %1031 = vmatpush.bf16.msra.mxu3 %v1022_v32  ;;  %v6414_v43 = vld [vmem:[%s9891_s1 + $0x1c] sm:$0xf]  ;;  %v1280_v44 = vsel %vm792_vm8, %v6383_v41, 0  ;;  %v1108_v45 = vsel %vm792_vm8, %v6321_v42, 0  ;;  %v6352_v47 = vld [vmem:[%s9891_s1 + $0x14] sm:$0xf] }
  0x3d   : >> { %v1366_v46 = vsel %vm792_vm8, %v6414_v43, 0  ;;  %v1194_v48 = vsel %vm792_vm8, %v6352_v47, 0  ;;  %v7337_v54 = vld [vmem:[%s7996_s22 + $0x18] sm:$0xff]  ;;  %v8084_v58 = vld [vmem:[%s7996_s22 + $0xa0] sm:$0xff]  ;;  %v7355_v61 = vld [vmem:[%s7996_s22 + $0x88] sm:$0xff] }
  0x3e   : >> { %6225 = vmatmul.msk.bf16.vlgmr.msra.gmra.mxu0 %vm779_vm9, %v7999_v33  ;;  %6245 = vmatmul.msk.bf16.vlgmr.msra.gmra.mxu1 %vm779_vm9, %v7334_v34  ;;  %v8070_v55 = vld [vmem:[%s7996_s22 + $0x58] sm:$0xff]  ;;  %v8087_v59 = vld [vmem:[%s7996_s22 + $0xc0] sm:$0xff]  ;;  %v8101_v62 = vld [vmem:[%s7996_s22 + $0xa8] sm:$0xff] }
  0x3f   : >> { %6276 = vmatmul.msk.bf16.vlgmr.msra.gmra.mxu2 %vm779_vm9, %v8003_v35  ;;  %6307 = vmatmul.msk.bf16.vlgmr.msra.gmra.mxu3 %vm779_vm9, %v8006_v36  ;;  %v8073_v56 = vld [vmem:[%s7996_s22 + $0x78] sm:$0xff]  ;;  %v8090_v60 = vld [vmem:[%s7996_s22 + $0xe0] sm:$0xff]  ;;  %v8104_v63 = vld [vmem:[%s7996_s22 + $0xc8] sm:$0xff] }
  0x40   : >> { %1289 = vmatpush.bf16.msrb.mxu2 %v1280_v44  ;;  %1117 = vmatpush.bf16.msrb.mxu0 %v1108_v45  ;;  %v8107_v2 = vld [vmem:[%s7996_s22 + $0xe8] sm:$0xff]  ;;  %v7356_v3 = vld [vmem:[%s7996_s22 + $0x90] sm:$0xff]  ;;  %v8134_v7 = vld [vmem:[%s7996_s22 + $0x98] sm:$0xff] }
  0x41   : >> { %1375 = vmatpush.bf16.msrb.mxu3 %v1366_v46  ;;  %1203 = vmatpush.bf16.msrb.mxu1 %v1194_v48  ;;  %v8118_v4 = vld [vmem:[%s7996_s22 + $0xb0] sm:$0xff]  ;;  %v8137_v8 = vld [vmem:[%s7996_s22 + $0xb8] sm:$0xff] }
  0x42   : >> { %v8121_v5 = vld [vmem:[%s7996_s22 + $0xd0] sm:$0xff]  ;;  %v8140_v9 = vld [vmem:[%s7996_s22 + $0xd8] sm:$0xff] }
  0x43   : >> { %v8124_v6 = vld [vmem:[%s7996_s22 + $0xf0] sm:$0xff]  ;;  %v8143_v10 = vld [vmem:[%s7996_s22 + $0xf8] sm:$0xff] }
  0x44   : >> { %1481 = vmatpush.bf16.msra.mxu2 %v936_v31  ;;  %1423 = vmatpush.bf16.msra.mxu0 %v794_v27 }
  0x45   : >> { %1518 = vmatpush.bf16.msra.mxu3 %v1022_v32  ;;  %1452 = vmatpush.bf16.msra.mxu1 %v858_v28 }
  0x4e   : >> { %6226 = vmatmul.msk.bf16.gmra.mxu0 %vm779_vm9, %v8016_v37  ;;  %6246 = vmatmul.msk.bf16.gmra.mxu1 %vm779_vm9, %v7335_v38 }
  0x4f   : >> { %6277 = vmatmul.msk.bf16.gmra.mxu2 %vm779_vm9, %v8020_v39  ;;  %6308 = vmatmul.msk.bf16.gmra.mxu3 %vm779_vm9, %v8023_v40 }
  0x5e   : >> { %6227 = vmatmul.msk.bf16.gmra.mxu0 %vm779_vm9, %v8049_v49  ;;  %6247 = vmatmul.msk.bf16.gmra.mxu1 %vm779_vm9, %v7336_v50 }
  0x5f   : >> { %6278 = vmatmul.msk.bf16.gmra.mxu2 %vm779_vm9, %v8053_v51  ;;  %6309 = vmatmul.msk.bf16.gmra.mxu3 %vm779_vm9, %v8056_v52 }
  0x6e   : >> { %6228 = vmatmul.msk.bf16.gmra.mxu0 %vm779_vm9, %v8066_v53  ;;  %6248 = vmatmul.msk.bf16.gmra.mxu1 %vm779_vm9, %v7337_v54 }
  0x6f   : >> { %6279 = vmatmul.msk.bf16.gmra.mxu2 %vm779_vm9, %v8070_v55  ;;  %6310 = vmatmul.msk.bf16.gmra.mxu3 %vm779_vm9, %v8073_v56 }
  0x7e   : >> { %6338 = vmatmul.msk.bf16.vlgmr.msrb.gmra.mxu0 %vm779_vm9, %v7354_v57  ;;  %6369 = vmatmul.msk.bf16.vlgmr.msrb.gmra.mxu1 %vm779_vm9, %v8084_v58 }
  0x7f   : >> { %6400 = vmatmul.msk.bf16.vlgmr.msrb.gmra.mxu2 %vm779_vm9, %v8087_v59  ;;  %6431 = vmatmul.msk.bf16.vlgmr.msrb.gmra.mxu3 %vm779_vm9, %v8090_v60 }
  0x80   : >> { %1629 = vmatpush.bf16.msrb.mxu2 %v1280_v44  ;;  %1555 = vmatpush.bf16.msrb.mxu0 %v1108_v45 }
  0x81   : >> { %1710 = vmatpush.bf16.msrb.mxu3 %v1366_v46  ;;  %1592 = vmatpush.bf16.msrb.mxu1 %v1194_v48 }
  0x8e   : >> { %6339 = vmatmul.msk.bf16.gmra.mxu0 %vm779_vm9, %v7355_v61  ;;  %6370 = vmatmul.msk.bf16.gmra.mxu1 %vm779_vm9, %v8101_v62 }
  0x8f   : >> { %6401 = vmatmul.msk.bf16.gmra.mxu2 %vm779_vm9, %v8104_v63  ;;  %6432 = vmatmul.msk.bf16.gmra.mxu3 %vm779_vm9, %v8107_v2 }
  0x9e   : >> { %6340 = vmatmul.msk.bf16.gmra.mxu0 %vm779_vm9, %v7356_v3  ;;  %6371 = vmatmul.msk.bf16.gmra.mxu1 %vm779_vm9, %v8118_v4 }
  0x9f   : >> { %6402 = vmatmul.msk.bf16.gmra.mxu2 %vm779_vm9, %v8121_v5  ;;  %6433 = vmatmul.msk.bf16.gmra.mxu3 %vm779_vm9, %v8124_v6 }
  0xae   : >> { %6341 = vmatmul.msk.bf16.gmra.mxu0 %vm779_vm9, %v8134_v7  ;;  %6372 = vmatmul.msk.bf16.gmra.mxu1 %vm779_vm9, %v8137_v8 }
  0xaf   : >> { %6403 = vmatmul.msk.bf16.gmra.mxu2 %vm779_vm9, %v8140_v9  ;;  %6434 = vmatmul.msk.bf16.gmra.mxu3 %vm779_vm9, %v8143_v10 }
  0xbb   : >> { %v805_v11 = vpop.f32.mrf.mxu0  ;;  %v869_v12 = vpop.f32.mrf.mxu1 }
  0xbc   : >> { %v870_v14 = vadd.f32 %v869_v12, %v805_v11 }
  0xbe   : >> { %6435 = vmatmul.msk.bf16.vlgmr.msra.gmra.mxu0 %vm779_vm9, %v8003_v35  ;;  %6439 = vmatmul.msk.bf16.vlgmr.msra.gmra.mxu1 %vm779_vm9, %v7999_v33 }
  0xbf   : >> { %6443 = vmatmul.msk.bf16.vlgmr.msra.gmra.mxu2 %vm779_vm9, %v8006_v36  ;;  %6447 = vmatmul.msk.bf16.vlgmr.msra.gmra.mxu3 %vm779_vm9, %v7354_v57 }
  0xc2   : >> { %v947_v15 = vpop.f32.mrf.mxu2  ;;  %v1033_v19 = vpop.f32.mrf.mxu3 }
  0xc3   : >> { %v967_v20 = vadd.f32 %v947_v15, %v870_v14  ;;  %v807_v25 = vpop.f32.mrf.mxu0  ;;  %v871_v26 = vpop.f32.mrf.mxu1 }
  0xc4   : >> { %v872_v27 = vadd.f32 %v871_v26, %v807_v25 }
  0xc5   : >> { %v1053_v28 = vadd.f32 %v1033_v19, %v967_v20 }
  0xca   : >> { %v949_v29 = vpop.f32.mrf.mxu2  ;;  %v1035_v30 = vpop.f32.mrf.mxu3 }
  0xcb   : >> { %v968_v31 = vadd.f32 %v949_v29, %v872_v27  ;;  %v810_v32 = vpop.f32.mrf.mxu0  ;;  %v874_v34 = vpop.f32.mrf.mxu1 }
  0xcc   : >> { %v875_v35 = vadd.f32 %v874_v34, %v810_v32 }
  0xcd   : >> { %v8160_v38 = vadd.f32 %v1035_v30, %v968_v31 }
  0xce   : >> { %6436 = vmatmul.msk.bf16.gmra.mxu0 %vm779_vm9, %v8020_v39  ;;  %6440 = vmatmul.msk.bf16.gmra.mxu1 %vm779_vm9, %v8016_v37 }
  0xcf   : >> { %6444 = vmatmul.msk.bf16.gmra.mxu2 %vm779_vm9, %v8023_v40  ;;  %6448 = vmatmul.msk.bf16.gmra.mxu3 %vm779_vm9, %v7355_v61 }
  0xd2   : >> { %v952_v33 = vpop.f32.mrf.mxu2  ;;  %v1038_v36 = vpop.f32.mrf.mxu3 }
  0xd3   : >> { %v969_v41 = vadd.f32 %v952_v33, %v875_v35  ;;  %v812_v42 = vpop.f32.mrf.mxu0  ;;  %v876_v43 = vpop.f32.mrf.mxu1 }
  0xd4   : >> { %v877_v44 = vadd.f32 %v876_v43, %v812_v42  ;;  %v7374_v42 = vld [vmem:[%s7996_s22 + $0x100] sm:$0xff] }
  0xd5   : >> { %v1055_v45 = vadd.f32 %v1038_v36, %v969_v41 }
  0xda   : >> { %v954_v46 = vpop.f32.mrf.mxu2  ;;  %v1040_v47 = vpop.f32.mrf.mxu3 }
  0xdb   : >> { %v970_v48 = vadd.f32 %v954_v46, %v877_v44  ;;  %v815_v50 = vpop.f32.mrf.mxu0  ;;  %v879_v39 = vpop.f32.mrf.mxu1 }
  0xdc   : >> { %v880_v54 = vadd.f32 %v879_v39, %v815_v50 }
  0xdd   : >> { %v8169_v57 = vadd.f32 %v1040_v47, %v970_v48 }
  0xde   : >> { %6437 = vmatmul.msk.bf16.gmra.mxu0 %vm779_vm9, %v8053_v51  ;;  %6441 = vmatmul.msk.bf16.gmra.mxu1 %vm779_vm9, %v8049_v49 }
  0xdf   : >> { %6445 = vmatmul.msk.bf16.gmra.mxu2 %vm779_vm9, %v8056_v52  ;;  %6449 = vmatmul.msk.bf16.gmra.mxu3 %vm779_vm9, %v7356_v3 }
  0xe2   : >> { %v957_v37 = vpop.f32.mrf.mxu2  ;;  %v1043_v40 = vpop.f32.mrf.mxu3 }
  0xe3   : >> { %v971_v61 = vadd.f32 %v957_v37, %v880_v54  ;;  %v817_v11 = vpop.f32.mrf.mxu0  ;;  %v881_v12 = vpop.f32.mrf.mxu1  ;;  %v7375_v54 = vld [vmem:[%s7996_s22 + $0x108] sm:$0xff] }
  0xe4   : >> { %v882_v14 = vadd.f32 %v881_v12, %v817_v11 }
  0xe5   : >> { %v1057_v15 = vadd.f32 %v1043_v40, %v971_v61 }
  0xea   : >> { %v959_v19 = vpop.f32.mrf.mxu2  ;;  %v1045_v20 = vpop.f32.mrf.mxu3 }
  0xeb   : >> { %v972_v25 = vadd.f32 %v959_v19, %v882_v14  ;;  %v820_v26 = vpop.f32.mrf.mxu0  ;;  %v884_v51 = vpop.f32.mrf.mxu1 }
  0xec   : >> { %v885_v27 = vadd.f32 %v884_v51, %v820_v26 }
  0xed   : >> { %v8178_v29 = vadd.f32 %v1045_v20, %v972_v25  ;;  %v7376_v25 = vld [vmem:[%s7996_s22 + $0x110] sm:$0xff] }
  0xee   : >> { %6438 = vmatmul.msk.bf16.gmra.mxu0 %vm779_vm9, %v8070_v55  ;;  %6442 = vmatmul.msk.bf16.gmra.mxu1 %vm779_vm9, %v8066_v53 }
  0xef   : >> { %6446 = vmatmul.msk.bf16.gmra.mxu2 %vm779_vm9, %v8073_v56  ;;  %6450 = vmatmul.msk.bf16.gmra.mxu3 %vm779_vm9, %v8134_v7 }
  0xf2   : >> { %v962_v49 = vpop.f32.mrf.mxu2  ;;  %v1048_v52 = vpop.f32.mrf.mxu3 }
  0xf3   : >> { %v973_v3 = vadd.f32 %v962_v49, %v885_v27  ;;  %v822_v30 = vpop.f32.mrf.mxu0  ;;  %v886_v31 = vpop.f32.mrf.mxu1 }
  0xf4   : >> { %v887_v32 = vadd.f32 %v886_v31, %v822_v30 }
  0xf5   : >> { %v1059_v34 = vadd.f32 %v1048_v52, %v973_v3 }
  0xfa   : >> { %v964_v35 = vpop.f32.mrf.mxu2  ;;  %v1050_v33 = vpop.f32.mrf.mxu3 }
  0xfb   : >> { %v974_v55 = vadd.f32 %v964_v35, %v887_v32  ;;  %v1119_v36 = vpop.f32.mrf.mxu0  ;;  %v1205_v41 = vpop.f32.mrf.mxu1  ;;  %v7377_v32 = vld [vmem:[%s7996_s22 + $0x118] sm:$0xff]  ;;  %s7379_s22 = smul.u32 72, %s7756_s26  ;;  %s731_s26 = sadd.s32 1, %s7756_s26  }
  0xfc   : >> { %v1139_v43 = vadd.f32 %v1119_v36, %v1053_v28  ;;  %p728_p11 = scmp.ge.s32.totalorder %s731_s26, 32  }
  0xfd   : >> { %v8189_v53 = vadd.f32 %v1050_v33, %v974_v55  ;;  %s8307_s2 = scalar_lea.vmem %s7953_s4, %s7379_s22  ;;  %s8698_s22 = scalar_lea.vmem [#allocation2], %s7378_s27 }
  0xfe   : >> { %6451 = vmatmul.msk.bf16.vlgmr.msrb.gmra.mxu0 %vm779_vm9, %v8084_v58  ;;  %6455 = vmatmul.msk.bf16.vlgmr.msrb.gmra.mxu1 %vm779_vm9, %v8087_v59  ;;  %v1225_v56 = vadd.f32 %v1205_v41, %v1139_v43  ;;  %s9926_s7 = sld [smem:[#allocation47_spill]] (%p728_p11)  ;;  %s8974_s27 = smov (%p728_p11), 0  }
  0xff   : >> { %6459 = vmatmul.msk.bf16.vlgmr.msrb.gmra.mxu2 %vm779_vm9, %v8090_v60  ;;  %6489 = vmatmul.msk.bf16.vlgmr.msrb.gmra.mxu3 %vm779_vm9, %v7374_v42 }
 0x102   : >> { %v1291_v7 = vpop.f32.mrf.mxu2  ;;  %v1377_v44 = vpop.f32.mrf.mxu3 }
 0x103   : >> { %v1311_v46 = vadd.f32 %v1291_v7, %v1225_v56  ;;  %v8198_v47 = vpop.f32.mrf.mxu0  ;;  %v8200_v48 = vpop.f32.mrf.mxu1 }
 0x105   : >> { %v8202_v28 = vadd.f32 %v1377_v44, %v1311_v46 }
 0x10a   : >> { %v8204_v50 = vpop.f32.mrf.mxu2  ;;  %v8206_v58 = vpop.f32.mrf.mxu3 }
 0x10b   : >> { %9892 = vst [vmem:[#allocation29_spill] sm:$0xff] %v8206_v58  ;;  %v1124_v59 = vpop.f32.mrf.mxu0  ;;  %v1210_v39 = vpop.f32.mrf.mxu1 }
 0x10c   : >> { %v1141_v60 = vadd.f32 %v1124_v59, %v1055_v45 }
 0x10e   : >> { %6452 = vmatmul.msk.bf16.gmra.mxu0 %vm779_vm9, %v8101_v62  ;;  %6456 = vmatmul.msk.bf16.gmra.mxu1 %vm779_vm9, %v8104_v63  ;;  %v1227_v37 = vadd.f32 %v1210_v39, %v1141_v60 }
 0x10f   : >> { %6460 = vmatmul.msk.bf16.gmra.mxu2 %vm779_vm9, %v8107_v2  ;;  %6490 = vmatmul.msk.bf16.gmra.mxu3 %vm779_vm9, %v7375_v54 }
 0x112   : >> { %v1296_v40 = vpop.f32.mrf.mxu2  ;;  %v1382_v61 = vpop.f32.mrf.mxu3 }
 0x113   : >> { %v1313_v11 = vadd.f32 %v1296_v40, %v1227_v37  ;;  %v8216_v12 = vpop.f32.mrf.mxu0  ;;  %v8218_v14 = vpop.f32.mrf.mxu1 }
 0x115   : >> { %v8220_v45 = vadd.f32 %v1382_v61, %v1313_v11 }
 0x11a   : >> { %v8222_v19 = vpop.f32.mrf.mxu2  ;;  %v8224_v62 = vpop.f32.mrf.mxu3 }
 0x11b   : >> { %9893 = vst [vmem:[#allocation30_spill] sm:$0xff] %v8224_v62  ;;  %v1129_v63 = vpop.f32.mrf.mxu0  ;;  %v1215_v20 = vpop.f32.mrf.mxu1 }
 0x11c   : >> { %v1143_v2 = vadd.f32 %v1129_v63, %v1057_v15 }
 0x11e   : >> { %v1229_v26 = vadd.f32 %v1215_v20, %v1143_v2  ;;  %6453 = vmatmul.msk.bf16.gmra.mxu0 %vm779_vm9, %v8118_v4  ;;  %6457 = vmatmul.msk.bf16.gmra.mxu1 %vm779_vm9, %v8121_v5 }
 0x11f   : >> { %6461 = vmatmul.msk.bf16.gmra.mxu2 %vm779_vm9, %v8124_v6  ;;  %6491 = vmatmul.msk.bf16.gmra.mxu3 %vm779_vm9, %v7376_v25 }
 0x122   : >> { %v1301_v51 = vpop.f32.mrf.mxu2  ;;  %v1387_v27 = vpop.f32.mrf.mxu3 }
 0x123   : >> { %v1315_v49 = vadd.f32 %v1301_v51, %v1229_v26  ;;  %v8234_v52 = vpop.f32.mrf.mxu0  ;;  %v8236_v3 = vpop.f32.mrf.mxu1 }
 0x125   : >> { %v8238_v15 = vadd.f32 %v1387_v27, %v1315_v49 }
 0x12a   : >> { %v8240_v30 = vpop.f32.mrf.mxu2  ;;  %v8242_v4 = vpop.f32.mrf.mxu3 }
 0x12b   : >> { %v1134_v31 = vpop.f32.mrf.mxu0  ;;  %v1220_v5 = vpop.f32.mrf.mxu1 }
 0x12c   : >> { %v1145_v35 = vadd.f32 %v1134_v31, %v1059_v34 }
 0x12e   : >> { %v1231_v6 = vadd.f32 %v1220_v5, %v1145_v35  ;;  %6454 = vmatmul.msk.bf16.gmra.mxu0 %vm779_vm9, %v8137_v8  ;;  %6458 = vmatmul.msk.bf16.gmra.mxu1 %vm779_vm9, %v8140_v9 }
 0x12f   : >> { %6462 = vmatmul.msk.bf16.gmra.mxu2 %vm779_vm9, %v8143_v10  ;;  %6492 = vmatmul.msk.bf16.gmra.mxu3 %vm779_vm9, %v7377_v32 }
 0x132   : >> { %v1306_v33 = vpop.f32.mrf.mxu2  ;;  %v1392_v55 = vpop.f32.mrf.mxu3 }
 0x133   : >> { %v1317_v36 = vadd.f32 %v1306_v33, %v1231_v6  ;;  %v8252_v41 = vpop.f32.mrf.mxu0  ;;  %v8254_v42 = vpop.f32.mrf.mxu1 }
 0x135   : >> { %v8256_v34 = vadd.f32 %v1392_v55, %v1317_v36 }
 0x13a   : >> { %v8258_v43 = vpop.f32.mrf.mxu2  ;;  %v8260_v8 = vpop.f32.mrf.mxu3 }
 0x13b   : >> { %v1425_v56 = vpop.f32.mrf.mxu0  ;;  %v1454_v9 = vpop.f32.mrf.mxu1 }
 0x13c   : >> { %v1455_v7 = vadd.f32 %v1454_v9, %v1425_v56 }
 0x142   : >> { %v1483_v44 = vpop.f32.mrf.mxu2  ;;  %v1520_v10 = vpop.f32.mrf.mxu3 }
 0x143   : >> { %v1503_v46 = vadd.f32 %v1483_v44, %v1455_v7  ;;  %v8262_v59 = vpop.f32.mrf.mxu0  ;;  %v8264_v39 = vpop.f32.mrf.mxu1 }
 0x145   : >> { %v1540_v54 = vadd.f32 %v1520_v10, %v1503_v46 }
 0x14a   : >> { %v8266_v60 = vpop.f32.mrf.mxu2  ;;  %v8268_v37 = vpop.f32.mrf.mxu3 }
 0x14b   : >> { %v1430_v40 = vpop.f32.mrf.mxu0  ;;  %v1459_v61 = vpop.f32.mrf.mxu1 }
 0x14c   : >> { %v1460_v11 = vadd.f32 %v1459_v61, %v1430_v40 }
 0x152   : >> { %v1488_v63 = vpop.f32.mrf.mxu2  ;;  %v1525_v20 = vpop.f32.mrf.mxu3 }
 0x153   : >> { %v1505_v25 = vadd.f32 %v1488_v63, %v1460_v11  ;;  %v8270_v2 = vpop.f32.mrf.mxu0  ;;  %v8272_v26 = vpop.f32.mrf.mxu1 }
 0x155   : >> { %v1542_v51 = vadd.f32 %v1525_v20, %v1505_v25 }
 0x15a   : >> { %v8274_v27 = vpop.f32.mrf.mxu2  ;;  %v8276_v49 = vpop.f32.mrf.mxu3 }
 0x15b   : >> { %v1435_v31 = vpop.f32.mrf.mxu0  ;;  %v1464_v5 = vpop.f32.mrf.mxu1 }
 0x15c   : >> { %v1465_v32 = vadd.f32 %v1464_v5, %v1435_v31 }
 0x162   : >> { %v1493_v35 = vpop.f32.mrf.mxu2  ;;  %v1530_v6 = vpop.f32.mrf.mxu3 }
 0x163   : >> { %v1507_v33 = vadd.f32 %v1493_v35, %v1465_v32  ;;  %v8278_v55 = vpop.f32.mrf.mxu0  ;;  %v8280_v36 = vpop.f32.mrf.mxu1 }
 0x165   : >> { %v8282_v56 = vadd.f32 %v1530_v6, %v1507_v33 }
 0x16a   : >> { %v8284_v9 = vpop.f32.mrf.mxu2  ;;  %v8286_v7 = vpop.f32.mrf.mxu3 }
 0x16b   : >> { %v1440_v44 = vpop.f32.mrf.mxu0  ;;  %v1469_v10 = vpop.f32.mrf.mxu1 }
 0x16c   : >> { %v1470_v46 = vadd.f32 %v1469_v10, %v1440_v44 }
 0x172   : >> { %v1498_v40 = vpop.f32.mrf.mxu2  ;;  %v1535_v61 = vpop.f32.mrf.mxu3 }
 0x173   : >> { %v1509_v11 = vadd.f32 %v1498_v40, %v1470_v46  ;;  %v8288_v63 = vpop.f32.mrf.mxu0  ;;  %v8290_v20 = vpop.f32.mrf.mxu1  ;;  %v8300_v46 = vperm.slane %v9894_v0, 0 }
 0x175   : >> { %v8292_v25 = vadd.f32 %v1535_v61, %v1509_v11 }
 0x17a   : >> { %v8294_v31 = vpop.f32.mrf.mxu2  ;;  %v8296_v5 = vpop.f32.mrf.mxu3 }
 0x17b   : >> { %v1557_v32 = vpop.f32.mrf.mxu0  ;;  %v1594_v35 = vpop.f32.mrf.mxu1 }
 0x17c   : >> { %v1577_v6 = vadd.f32 %v1557_v32, %v1540_v54  ;;  %v1408_v54 = vadd.f32 %v8300_v46, %v8202_v28  ;;  %v8313_v32 = vld [vmem:[%s8307_s2] sm:$0xff]  }
 0x17d   : >> { %9895 = vst [vmem:[#allocation31_spill] sm:$0xff] %v8313_v32  ;;  %v6505_v28 = vld [vmem:[%s9898_s28 + $0x4] sm:$0xf] }
 0x17e   : >> { %v1614_v33 = vadd.f32 %v1594_v35, %v1577_v6  ;;  %v8316_v35 = vld [vmem:[%s8307_s2 + $0x8] sm:$0xff]  ;;  %v1897_v6 = vshll.u32 %v8313_v32, 16  ;;  %v8333_v17 = vsel %vm792_vm8, %v6505_v28, 0 }
 0x17f   : >> { %v8330_v23 = vshll.u32 %v8316_v35, 16  ;;  %9900 = vst [vmem:[#allocation35_spill] sm:$0xff] %v8333_v17  ;;  %1952 = vmatpush.bf16.msra.mxu2 %v8333_v17 }
 0x180   : >> { %v1899_v18 = vrot.slane %v1897_v6, 1 }
 0x181   : >> { %9899 = vst [vmem:[#allocation34_spill] sm:$0xff] %v8330_v23  ;;  %v1904_v16 = vrot.slane %v8330_v23, 1  ;;  %v1410_v23 = vadd.f32 %v8300_v46, %v8220_v45 }
 0x182   : >> { %v1631_v44 = vpop.f32.mrf.mxu2  ;;  %v1712_v10 = vpop.f32.mrf.mxu3 }
 0x183   : >> { %v1651_v40 = vadd.f32 %v1631_v44, %v1614_v33  ;;  %v8302_v1 = vpop.f32.mrf.mxu0  ;;  %v8304_v24 = vpop.f32.mrf.mxu1 }
 0x185   : >> { %v1732_v61 = vadd.f32 %v1712_v10, %v1651_v40 }
 0x187   : >> { %v1740_v11 = vadd.f32 %v1732_v61, %v8300_v46  ;;  %v1895_v61 = vshrl.u32 %v8313_v32, 16 }
 0x189   : >> { %v8319_v33 = vmax.f32 %v1408_v54, %v1740_v11  ;;  %v1866_v11 = vld [vmem:[%s9898_s28] sm:$0xf]  ;;  %v1900_v22 = vor.u32 %v1899_v18, %v1895_v61 }
 0x18a   : >> { %v8321_v44 = vpop.f32.mrf.mxu2  ;;  %v8323_v10 = vpop.f32.mrf.mxu3  ;;  %v8341_v21 = vsel %vm792_vm8, %v1866_v11, 0 }
 0x18b   : >> { %9896 = vst [vmem:[#allocation32_spill] sm:$0xff] %v8319_v33  ;;  %v1562_v40 = vpop.f32.mrf.mxu0  ;;  %v1599_v0 = vpop.f32.mrf.mxu1  ;;  %1992 = vmatpush.bf16.msra.mxu3 %v8341_v21  ;;  %v1905_v6 = vsel %vm1893_vm10, %v1900_v22, %v1904_v16  ;;  %v8356_v22 = vld [vmem:[%s8307_s2 + $0x10] sm:$0xff] }
 0x18c   : >> { %9897 = vst [vmem:[#allocation33_spill] sm:$0xff] %v8323_v10  ;;  %v1579_v54 = vadd.f32 %v1562_v40, %v1542_v51  ;;  %6518 = vmatmul.msk.bf16.vlgmr.msra.gmra.mxu2 %vm779_vm9, %v1905_v6 }
 0x18d   : >> { %9901 = vst [vmem:[#allocation36_spill] sm:$0xff] %v8341_v21 }
 0x18e   : >> { %v1616_v51 = vadd.f32 %v1599_v0, %v1579_v54  ;;  %6522 = vmatmul.msk.bf16.vlgmr.msra.gmra.mxu3 %vm779_vm9, %v8313_v32 }
 0x192   : >> { %v1636_v40 = vpop.f32.mrf.mxu2  ;;  %v1717_v28 = vpop.f32.mrf.mxu3 }
 0x193   : >> { %v1653_v18 = vadd.f32 %v1636_v40, %v1616_v51  ;;  %v8348_v61 = vpop.f32.mrf.mxu0  ;;  %v8350_v13 = vpop.f32.mrf.mxu1  ;;  %v8365_v40 = vshrl.u32 %v8316_v35, 16 }
 0x195   : >> { %v1734_v11 = vadd.f32 %v1717_v28, %v1653_v18  ;;  %9903 = vst [vmem:[#allocation38_spill] sm:$0xff] %v8365_v40  ;;  %v8368_v28 = vshll.u32 %v8356_v22, 16  ;;  %v1908_v18 = vor.u32 %v8365_v40, %v1904_v16 }
 0x197   : >> { %v1742_v33 = vadd.f32 %v1734_v11, %v8300_v46  ;;  %9904 = vst [vmem:[#allocation39_spill] sm:$0xff] %v8368_v28 }
 0x199   : >> { %v8358_v6 = vmax.f32 %v1410_v23, %v1742_v33  ;;  %v1912_v23 = vrot.slane %v8368_v28, 1 }
 0x19a   : >> { %v8360_v0 = vpop.f32.mrf.mxu2  ;;  %v8362_v54 = vpop.f32.mrf.mxu3 }
 0x19b   : >> { %9902 = vst [vmem:[#allocation37_spill] sm:$0xff] %v8358_v6  ;;  %v1567_v21 = vpop.f32.mrf.mxu0  ;;  %v1604_v51 = vpop.f32.mrf.mxu1  ;;  %v1913_v33 = vsel %vm1893_vm10, %v1908_v18, %v1912_v23  ;;  %v8383_v18 = vld [vmem:[%s8307_s2 + $0x18] sm:$0xff] }
 0x19c   : >> { %v1581_v45 = vadd.f32 %v1567_v21, %v8282_v56  ;;  %6519 = vmatmul.msk.bf16.gmra.mxu2 %vm779_vm9, %v1913_v33  ;;  %v1412_v21 = vadd.f32 %v8300_v46, %v8238_v15 }
 0x19e   : >> { %v1618_v11 = vadd.f32 %v1604_v51, %v1581_v45  ;;  %6523 = vmatmul.msk.bf16.gmra.mxu3 %vm779_vm9, %v8316_v35  ;;  %v1467_v51 = vadd.f32 %v8280_v36, %v8278_v55 }
 0x1a0   : >> { %v1508_v15 = vadd.f32 %v8284_v9, %v1467_v51  ;;  %v1146_v9 = vadd.f32 %v8252_v41, %v8189_v53 }
 0x1a2   : >> { %v1641_v17 = vpop.f32.mrf.mxu2  ;;  %v1722_v6 = vpop.f32.mrf.mxu3 }
 0x1a3   : >> { %v1655_v32 = vadd.f32 %v1641_v17, %v1618_v11  ;;  %v1569_v58 = vpop.f32.mrf.mxu0  ;;  %v1606_v10 = vpop.f32.mrf.mxu1  ;;  %v8388_v17 = vshrl.u32 %v8356_v22, 16 }
 0x1a5   : >> { %v1736_v62 = vadd.f32 %v1722_v6, %v1655_v32  ;;  %v8391_v32 = vshll.u32 %v8383_v18, 16  ;;  %v1916_v11 = vor.u32 %v8388_v17, %v1912_v23 }
 0x1a7   : >> { %v1744_v16 = vadd.f32 %v1736_v62, %v8300_v46  ;;  %v1472_v62 = vadd.f32 %v8290_v20, %v8288_v63  ;;  %v1920_v55 = vrot.slane %v8391_v32, 1  ;;  %v1545_v20 = vadd.f32 %v8286_v7, %v1508_v15 }
 0x1a8   : >> { %v1232_v7 = vadd.f32 %v8254_v42, %v1146_v9  ;;  %v1414_v15 = vadd.f32 %v8300_v46, %v8256_v34  ;;  %v8433_v9 = vshrl.u32 %v8383_v18, 16 }
 0x1a9   : >> { %v8380_v56 = vmax.f32 %v1412_v21, %v1744_v16  ;;  %v1462_v21 = vadd.f32 %v8272_v26, %v8270_v2  ;;  %v1510_v16 = vadd.f32 %v8294_v31, %v1472_v62  ;;  %v1921_v40 = vsel %vm1893_vm10, %v1916_v11, %v1920_v55 }
 0x1aa   : >> { %v1643_v45 = vpop.f32.mrf.mxu2  ;;  %v1724_v33 = vpop.f32.mrf.mxu3  ;;  %v1582_v31 = vadd.f32 %v1569_v58, %v1545_v20  ;;  %v1318_v62 = vadd.f32 %v8258_v43, %v1232_v7  ;;  %v9907_v7 = vld [vmem:[#allocation29_spill] sm:$0xff] }
 0x1ab   : >> { %v1572_v28 = vpop.f32.mrf.mxu0  ;;  %v1609_v36 = vpop.f32.mrf.mxu1  ;;  %v1506_v63 = vadd.f32 %v8274_v27, %v1462_v21  ;;  %v1547_v26 = vadd.f32 %v8296_v5, %v1510_v16  ;;  %v1144_v27 = vadd.f32 %v8234_v52, %v8178_v29  ;;  %v1867_v5 = vld [vmem:[%s8307_s2 + $0x20] sm:$0x1]  ;;  %v1142_v52 = vadd.f32 %v8216_v12, %v8169_v57 }
 0x1ac   : >> { %v1583_v6 = vadd.f32 %v1572_v28, %v8292_v25  ;;  %6520 = vmatmul.msk.bf16.gmra.mxu2 %vm779_vm9, %v1921_v40  ;;  %v1457_v28 = vadd.f32 %v8264_v39, %v8262_v59  ;;  %v1887_v29 = vunpack.c.l.b16 %v1867_v5  ;;  %v6536_v5 = vld [vmem:[%s9898_s28 + $0x10] sm:$0xf] }
 0x1ad   : >> { %v1543_v59 = vadd.f32 %v8276_v49, %v1506_v63  ;;  %v1230_v42 = vadd.f32 %v8236_v3, %v1144_v27  ;;  %v1228_v63 = vadd.f32 %v8218_v14, %v1142_v52  ;;  %v2170_v27 = vld [vmem:[%s8307_s2] sm:$0xc] }
 0x1ae   : >> { %v1620_v25 = vadd.f32 %v1609_v36, %v1583_v6  ;;  %6524 = vmatmul.msk.bf16.gmra.mxu3 %vm779_vm9, %v8356_v22  ;;  %v1504_v40 = vadd.f32 %v8266_v60, %v1457_v28  ;;  %v1619_v6 = vadd.f32 %v1606_v10, %v1582_v31  ;;  %v8428_v16 = vpack.c.b16 %v1887_v29, %v1887_v29  ;;  %v6541_v29 = vld [vmem:[%s9898_s28 + $0x14] sm:$0xf] }
 0x1af   : >> { %v1580_v58 = vadd.f32 %v8348_v61, %v1543_v59  ;;  %v1316_v43 = vadd.f32 %v8240_v30, %v1230_v42  ;;  %v1404_v10 = vadd.f32 %v8260_v8, %v1318_v62  ;;  %v1924_v30 = vor.u32 %v8433_v9, %v1920_v55  ;;  %v9905_v55 = vld [vmem:[#allocation30_spill] sm:$0xff] }
 0x1b0   : >> { %v1541_v60 = vadd.f32 %v8268_v37, %v1504_v40  ;;  %v1656_v36 = vadd.f32 %v1643_v45, %v1619_v6  ;;  %v1926_v37 = vshll.u32 %v8428_v16, 16  ;;  %v1140_v45 = vadd.f32 %v8198_v47, %v8160_v38 }
 0x1b1   : >> { %v1617_v12 = vadd.f32 %v8350_v13, %v1580_v58  ;;  %v1402_v13 = vadd.f32 %v8242_v4, %v1316_v43  ;;  %v2178_v42 = vrot.slane %v8316_v35, 2  ;;  %v9910_v43 = vld [vmem:[#allocation35_spill] sm:$0xff] }
 0x1b2   : >> { %v1646_v23 = vpop.f32.mrf.mxu2  ;;  %v1727_v2 = vpop.f32.mrf.mxu3  ;;  %v1578_v57 = vadd.f32 %v8302_v1, %v1541_v60  ;;  %v1314_v1 = vadd.f32 %v8222_v19, %v1228_v63  ;;  %v1226_v14 = vadd.f32 %v8200_v48, %v1140_v45  ;;  %v9906_v48 = vld [vmem:[#allocation33_spill] sm:$0xff]  ;;  %v9913_v63 = vld [vmem:[#allocation38_spill] sm:$0xff] }
 0x1b3   : >> { %v1657_v53 = vadd.f32 %v1646_v23, %v1620_v25  ;;  %v1574_v41 = vpop.f32.mrf.mxu0  ;;  %v1611_v49 = vpop.f32.mrf.mxu1  ;;  %v1654_v8 = vadd.f32 %v8360_v0, %v1617_v12  ;;  %v1737_v25 = vadd.f32 %v1724_v33, %v1656_v36  ;;  %v1928_v23 = vrot.slane %v1926_v37, 1  ;;  %v9909_v60 = vld [vmem:[#allocation37_spill] sm:$0xff]  ;;  %v6531_v36 = vld [vmem:[%s9898_s28 + $0xc] sm:$0xf] }
 0x1b4   : >> { %v1584_v51 = vadd.f32 %v1574_v41, %v1547_v26  ;;  %v1615_v26 = vadd.f32 %v8304_v24, %v1578_v57  ;;  %v1312_v24 = vadd.f32 %v8204_v50, %v1226_v14  ;;  %v1400_v31 = vadd.f32 %v9905_v55, %v1314_v1  ;;  %v9908_v50 = vld [vmem:[#allocation31_spill] sm:$0xff]  ;;  %v9912_v37 = vld [vmem:[#allocation32_spill] sm:$0xff] }
 0x1b5   : >> { %v1738_v39 = vadd.f32 %v1727_v2, %v1657_v53  ;;  %v1415_v2 = vadd.f32 %v8300_v46, %v1404_v10  ;;  %v1929_v47 = vsel %vm1893_vm10, %v1924_v30, %v1928_v23  ;;  %v1735_v33 = vadd.f32 %v8362_v54, %v1654_v8  ;;  %v9914_v30 = vld [vmem:[#allocation34_spill] sm:$0xff] }
 0x1b6   : >> { %v1621_v21 = vadd.f32 %v1611_v49, %v1584_v51  ;;  %v1652_v0 = vadd.f32 %v8321_v44, %v1615_v26  ;;  %v1745_v19 = vadd.f32 %v1737_v25, %v8300_v46  ;;  %v1413_v53 = vadd.f32 %v8300_v46, %v1402_v13  ;;  %v6526_v49 = vld [vmem:[%s9898_s28 + $0x8] sm:$0xf]  ;;  %v9915_v25 = vld [vmem:[#allocation21_spill] sm:$0xff] }
 0x1b7   : >> { %v1746_v11 = vadd.f32 %v1738_v39, %v8300_v46  ;;  %v1743_v44 = vadd.f32 %v1735_v33, %v8300_v46  ;;  %v1398_v40 = vadd.f32 %v9907_v7, %v1312_v24  ;;  %v1411_v59 = vadd.f32 %v8300_v46, %v1400_v31  ;;  %v9920_v31 = vld [vmem:[#allocation23_spill] sm:$0xff] }
 0x1b8   : >> { %v1733_v41 = vadd.f32 %v9906_v48, %v1652_v0  ;;  %v1753_v54 = vmax.f32 %v1413_v53, %v1745_v19  ;;  %v8465_v39 = vunpack.c.h.b16 %v9908_v50  ;;  %v2174_v51 = vunpack.c.l.b16 %v2170_v27  ;;  %v9919_v19 = vld [vmem:[#allocation39_spill] sm:$0xff]  ;;  %v9922_v50 = vld [vmem:[#allocation24_spill] sm:$0xff] }
 0x1b9   : >> { %v1754_v34 = vmax.f32 %v1414_v15, %v1746_v11  ;;  %v1751_v62 = vmax.f32 %v1411_v59, %v1743_v44  ;;  %v1409_v6 = vadd.f32 %v8300_v46, %v1398_v40  ;;  %v2199_v11 = vsel %vm792_vm8, %v6536_v5, 0  ;;  %v9921_v53 = vld [vmem:[#allocation27_spill] sm:$0xff] }
 0x1ba   : >> { %v1648_v61 = vpop.f32.mrf.mxu2  ;;  %v1729_v20 = vpop.f32.mrf.mxu3  ;;  %v1741_v15 = vadd.f32 %v1733_v41, %v8300_v46  ;;  %v2175_v58 = vpack.c.b16 %v8465_v39, %v2174_v51  ;;  %2208 = vmatpush.bf16.msrb.mxu2 %v2199_v11  ;;  %v8495_v57 = vsel %vm792_vm8, %v6531_v36, 0  ;;  %v2254_v8 = vrot.slane %v9914_v30, 3  ;;  %v9923_v51 = vld [vmem:[#allocation28_spill] sm:$0xff]  ;;  %v2238_v36 = vld [vmem:[%s8307_s2 + $0x20] sm:$0x7] }
 0x1bb   : >> { %v1658_v3 = vadd.f32 %v1648_v61, %v1621_v21  ;;  %v8492_v61 = vsel %vm792_vm8, %v6526_v49, 0  ;;  %v2180_v26 = vrot.slane %v8356_v22, 2  ;;  %v2257_v33 = vrot.slane %v8388_v17, 2 }
 0x1bc   : >> { %6521 = vmatmul.msk.bf16.gmra.mxu2 %vm779_vm9, %v1929_v47  ;;  %v2177_v52 = vrot.slane %v2175_v58, 2  ;;  %v2249_v10 = vshll.u32 %v2175_v58, 16  ;;  %v9918_v47 = vld [vmem:[#allocation26_spill] sm:$0xff]  ;;  %v2097_v7 = vrot.slane %v9913_v63, 1  ;;  %v2098_v40 = vrot.slane %v9914_v30, 2 }
 0x1bd   : >> { %v1739_v28 = vadd.f32 %v1729_v20, %v1658_v3  ;;  %v9911_v3 = vld [vmem:[#allocation36_spill] sm:$0xff]  ;;  %v2253_v20 = vrot.slane %v9913_v63, 2  ;;  %v2181_v0 = vsel %vm2176_vm11, %v2178_v42, %v2180_v26  ;;  %v2182_v59 = vrot.slane %v8383_v18, 2 }
 0x1be   : >> { %6525 = vmatmul.msk.bf16.gmra.mxu3 %vm779_vm9, %v8383_v18  ;;  %v2179_v21 = vsel %vm2176_vm11, %v2177_v52, %v2178_v42  ;;  %2583 = vmatpush.bf16.msra.mxu2 %v9910_v43  ;;  %v2251_v45 = vrot.slane %v2249_v10, 3  ;;  %v2242_v10 = vunpack.c.l.b16 %v2238_v36 }
 0x1bf   : >> { %v1747_v38 = vadd.f32 %v1739_v28, %v8300_v46  ;;  %v1749_v46 = vmax.f32 %v1409_v6, %v1741_v15  ;;  %v9916_v28 = vld [vmem:[#allocation25_spill] sm:$0xff]  ;;  %v2255_v1 = vor.u32 %v2254_v8, %v2253_v20  ;;  %v2183_v6 = vsel %vm2176_vm11, %v2180_v26, %v2182_v59 }
 0x1c1   : >> { %v1755_v4 = vmax.f32 %v1415_v2, %v1747_v38  ;;  %v2014_v2 = vld [vmem:[%s8307_s2] sm:$0xe] }
 0x1c2   : >> { %v9917_v38 = vld [vmem:[#allocation22_spill] sm:$0xff]  ;;  %v2018_v14 = vunpack.c.l.b16 %v2014_v2 }
 0x1c3   : >> { %1777 = vmatpush.msra.mxu0 %v1755_v4  ;;  %1818 = vmatpush.msra.mxu1 %v1755_v4  ;;  %v2258_v4 = vrot.slane %v9919_v19, 3 }
 0x1c4   : >> { %v2019_v24 = vpack.c.b16 %v8465_v39, %v2018_v14 }
 0x1c5   : >> { %1778 = vmatpush.msra.mxu0 %v1754_v34  ;;  %1819 = vmatpush.msra.mxu1 %v1754_v34  ;;  %v2246_v34 = vshrl.u32 %v2175_v58, 16  ;;  %v2259_v55 = vor.u32 %v2258_v4, %v2257_v33  ;;  %v2099_v58 = vor.u32 %v2098_v40, %v2097_v7  ;;  %v6546_v33 = vld [vmem:[%s9898_s28 + $0x18] sm:$0xf]  ;;  %v6551_v4 = vld [vmem:[%s9898_s28 + $0x1c] sm:$0xf]  ;;  %v2106_v7 = vrot.slane %v8391_v32, 2 }
 0x1c6   : >> { %v2090_v48 = vshrl.u32 %v2019_v24, 16  ;;  %v2093_v41 = vshll.u32 %v2019_v24, 16  ;;  %v2021_v15 = vrot.slane %v2019_v24, 1  ;;  %v6558_v24 = vld [vmem:[%s8307_s2 + $0x24] sm:$0xff]  }
 0x1c7   : >> { %1779 = vmatpush.msra.mxu0 %v1753_v54  ;;  %1820 = vmatpush.msra.mxu1 %v1753_v54  ;;  %v2248_v12 = vrot.slane %v2246_v34, 2  ;;  %v2260_v44 = vsel %vm2244_vm13, %v2255_v1, %v2259_v55  ;;  %v2102_v34 = vrot.slane %v9919_v19, 2  ;;  %v2529_v40 = vshrl.u32 %v6558_v24, 16 }
 0x1c8   : >> { %v2092_v54 = vrot.slane %v2090_v48, 1  ;;  %v2095_v27 = vrot.slane %v2093_v41, 2  ;;  %v8573_v48 = vsel %vm792_vm8, %v6551_v4, 0  ;;  %v8576_v41 = vld [vmem:[%s8307_s2 + $0x2c] sm:$0xff] }
 0x1c9   : >> { %1780 = vmatpush.msra.mxu0 %v8380_v56  ;;  %1821 = vmatpush.msra.mxu1 %v8380_v56  ;;  %v2287_v56 = vsel %vm792_vm8, %v6541_v29, 0  ;;  %v2252_v23 = vor.u32 %v2251_v45, %v2248_v12  ;;  %v2262_v29 = vrot.slane %v8391_v32, 3 }
 0x1ca   : >> { %2296 = vmatpush.bf16.msrb.mxu3 %v2287_v56  ;;  %v2096_v5 = vor.u32 %v2095_v27, %v2092_v54  ;;  %v8583_v54 = vshll.u32 %v8576_v41, 16  ;;  %v2105_v27 = vrot.slane %v8433_v9, 1 }
 0x1cb   : >> { %1781 = vmatpush.msra.mxu0 %v1751_v62  ;;  %1822 = vmatpush.msra.mxu1 %v1751_v62  ;;  %v2256_v13 = vsel %vm2244_vm13, %v2252_v23, %v2255_v1  ;;  %v2022_v62 = vrot.slane %v8316_v35, 1 }
 0x1cc   : >> { %6537 = vmatmul.msk.bf16.vlgmr.msrb.gmra.mxu2 %vm779_vm9, %v2179_v21  ;;  %v2100_v52 = vsel %vm2088_vm15, %v2096_v5, %v2099_v58  ;;  %v2101_v21 = vrot.slane %v8388_v17, 1  ;;  %v2026_v5 = vrot.slane %v8383_v18, 1 }
 0x1cd   : >> { %1782 = vmatpush.msra.mxu0 %v9909_v60  ;;  %1823 = vmatpush.msra.mxu1 %v9909_v60  ;;  %v2082_v60 = vld [vmem:[%s8307_s2 + $0x20] sm:$0x3] }
 0x1ce   : >> { %2620 = vmatpush.bf16.msra.mxu3 %v9911_v3  ;;  %2818 = vmatpush.bf16.msrb.mxu2 %v2199_v11  ;;  %v2261_v11 = vrot.slane %v8433_v9, 2  ;;  %v2086_v49 = vunpack.c.l.b16 %v2082_v60  ;;  %v8550_v3 = vpack.c.b16 %v2242_v10, %v2242_v10  ;;  %v2103_v45 = vor.u32 %v2102_v34, %v2101_v21  ;;  %v2326_v10 = vld [vmem:[%s8307_s2] sm:$0x8] }
 0x1cf   : >> { %1783 = vmatpush.msra.mxu0 %v1749_v46  ;;  %1824 = vmatpush.msra.mxu1 %v1749_v46 }
 0x1d0   : >> { %6542 = vmatmul.msk.bf16.vlgmr.msrb.gmra.mxu3 %vm779_vm9, %v2256_v13  ;;  %v2263_v42 = vor.u32 %v2262_v29, %v2261_v11  ;;  %v2087_v43 = vpack.c.b16 %v2086_v49, %v2086_v49  ;;  %v2266_v20 = vshrl.u32 %v8550_v3, 16  ;;  %v2269_v8 = vshll.u32 %v8550_v3, 16  ;;  %v8599_v29 = vld [vmem:[%s8307_s2 + $0x34] sm:$0xff] }
 0x1d1   : >> { %1784 = vmatpush.msra.mxu0 %v9912_v37  ;;  %1825 = vmatpush.msra.mxu1 %v9912_v37  ;;  %v2024_v37 = vrot.slane %v8356_v22, 1  ;;  %v2104_v26 = vsel %vm2088_vm15, %v2099_v58, %v2103_v45  ;;  %v2107_v58 = vor.u32 %v2106_v7, %v2105_v27  ;;  %v8605_v49 = vshll.u32 %v8599_v29, 16 }
 0x1d2   : >> { %6493 = vmatmul.msk.f32.vlgmr.msra.gmra.mxu0 %vm1756_vm12, %v9915_v25  ;;  %6497 = vmatmul.msk.f32.vlgmr.msra.gmra.mxu1 %vm1756_vm12, %v9916_v28  ;;  %v2264_v46 = vsel %vm2244_vm13, %v2259_v55, %v2263_v42  ;;  %v2184_v12 = vrot.slane %v2087_v43, 2  ;;  %v2268_v1 = vrot.slane %v2266_v20, 2  ;;  %v2271_v13 = vrot.slane %v2269_v8, 3 }
 0x1d3   : >> { %2052 = vmatpush.bf16.msrb.mxu0 %v8492_v61  ;;  %2140 = vmatpush.bf16.msrb.mxu1 %v8495_v57  ;;  %v2025_v2 = vsel %vm2020_vm14, %v2022_v62, %v2024_v37  ;;  %v8570_v55 = vsel %vm792_vm8, %v6546_v33, 0  ;;  %v2108_v11 = vsel %vm2088_vm15, %v2103_v45, %v2107_v58  ;;  %v2330_v20 = vunpack.c.l.b16 %v2326_v10  ;;  %v6566_v10 = vld [vmem:[%s8307_s2 + $0x44] sm:$0x1] }
 0x1d4   : >> { %2900 = vmatpush.bf16.msrb.mxu3 %v2287_v56  ;;  %v2023_v56 = vsel %vm2020_vm14, %v2021_v15, %v2022_v62  ;;  %v2185_v23 = vsel %vm2176_vm11, %v2182_v59, %v2184_v12  ;;  %v2272_v14 = vor.u32 %v2271_v13, %v2268_v1  ;;  %v2531_v59 = vshll.u32 %v6558_v24, 16 }
 0x1d5   : >> { %v2538_v62 = vrot.slane %v8583_v54, 1 }
 0x1d6   : >> { %v2533_v15 = vrot.slane %v2531_v59, 1  ;;  %v8630_v59 = vld [vmem:[%s8307_s2 + $0x3c] sm:$0xff] }
 0x1d7   : >> { %2364 = vmatpush.bf16.msra.mxu0 %v8570_v55  ;;  %2452 = vmatpush.bf16.msra.mxu1 %v8573_v48 }
 0x1da   : >> { %6494 = vmatmul.msk.f32.gmra.mxu0 %vm1756_vm12, %v9917_v38  ;;  %6498 = vmatmul.msk.f32.gmra.mxu1 %vm1756_vm12, %v9918_v47 }
 0x1dc   : >> { %6538 = vmatmul.msk.bf16.gmra.mxu2 %vm779_vm9, %v2181_v0  ;;  %v2273_v0 = vsel %vm2244_vm13, %v2263_v42, %v2272_v14  ;;  %v2331_v14 = vpack.c.b16 %v8465_v39, %v2330_v20  ;;  %v2410_v39 = vrot.slane %v9914_v30, 4  ;;  %v2336_v20 = vrot.slane %v8356_v22, 3 }
 0x1e0   : >> { %6543 = vmatmul.msk.bf16.gmra.mxu3 %vm779_vm9, %v2260_v44  ;;  %v8578_v44 = vunpack.c.h.b16 %v6558_v24 }
 0x1e2   : >> { %6495 = vmatmul.msk.f32.gmra.mxu0 %vm1756_vm12, %v9920_v31  ;;  %6499 = vmatmul.msk.f32.gmra.mxu1 %vm1756_vm12, %v9921_v53 }
 0x1ea   : >> { %6496 = vmatmul.msk.f32.gmra.mxu0 %vm1756_vm12, %v9922_v50  ;;  %6500 = vmatmul.msk.f32.gmra.mxu1 %vm1756_vm12, %v9923_v51 }
 0x1ec   : >> { %6539 = vmatmul.msk.bf16.gmra.mxu2 %vm779_vm9, %v2183_v6  ;;  %v2534_v6 = vor.u32 %v2533_v15, %v2529_v40  ;;  %v2409_v40 = vrot.slane %v9913_v63, 3  ;;  %v2333_v15 = vrot.slane %v2331_v14, 3 }
 0x1f0   : >> { %6544 = vmatmul.msk.bf16.gmra.mxu3 %vm779_vm9, %v2264_v46  ;;  %v8602_v46 = vshrl.u32 %v8576_v41, 16 }
 0x1f2   : >> { %6527 = vmatmul.msk.bf16.vlgmr.msrb.gmra.mxu0 %vm779_vm9, %v2023_v56  ;;  %6532 = vmatmul.msk.bf16.vlgmr.msrb.gmra.mxu1 %vm779_vm9, %v2100_v52  ;;  %v2110_v56 = vshrl.u32 %v2087_v43, 16  ;;  %v2113_v52 = vshll.u32 %v2087_v43, 16  ;;  %v2542_v12 = vor.u32 %v8602_v46, %v2538_v62  ;;  %v2028_v43 = vrot.slane %v8428_v16, 1 }
 0x1f3   : >> { %2674 = vmatpush.bf16.msrb.mxu0 %v8492_v61  ;;  %2756 = vmatpush.bf16.msrb.mxu1 %v8495_v57  ;;  %v2539_v61 = vsel %vm1893_vm10, %v2534_v6, %v2538_v62  ;;  %v2027_v57 = vsel %vm2020_vm14, %v2024_v37, %v2026_v5  ;;  %v2546_v37 = vrot.slane %v8605_v49, 1  ;;  %v2402_v16 = vshrl.u32 %v2331_v14, 16 }
 0x1f4   : >> { %v2112_v21 = vrot.slane %v2110_v56, 1  ;;  %v2115_v34 = vrot.slane %v2113_v52, 2  ;;  %v2334_v62 = vrot.slane %v8316_v35, 3 }
 0x1f5   : >> { %v2547_v1 = vsel %vm1893_vm10, %v2542_v12, %v2546_v37  ;;  %v2404_v27 = vrot.slane %v2402_v16, 3  ;;  %v2413_v12 = vrot.slane %v8388_v17, 3 }
 0x1f6   : >> { %v2116_v45 = vor.u32 %v2115_v34, %v2112_v21  ;;  %v2335_v35 = vsel %vm2332_vm0, %v2333_v15, %v2334_v62 }
 0x1fc   : >> { %6540 = vmatmul.msk.bf16.gmra.mxu2 %vm779_vm9, %v2185_v23 }
 0x200   : >> { %6545 = vmatmul.msk.bf16.gmra.mxu3 %vm779_vm9, %v2273_v0  ;;  %v2405_v0 = vshll.u32 %v2331_v14, 16 }
 0x202   : >> { %6528 = vmatmul.msk.bf16.gmra.mxu0 %vm779_vm9, %v2025_v2  ;;  %6533 = vmatmul.msk.bf16.gmra.mxu1 %vm779_vm9, %v2104_v26  ;;  %v2029_v2 = vsel %vm2020_vm14, %v2026_v5, %v2028_v43  ;;  %v2117_v26 = vsel %vm2088_vm15, %v2107_v58, %v2116_v45  ;;  %v2407_v7 = vrot.slane %v2405_v0, 4  ;;  %v2411_v58 = vor.u32 %v2410_v39, %v2409_v40  ;;  %v2394_v39 = vld [vmem:[%s8307_s2 + $0x20] sm:$0xf] }
 0x203   : >> { %v2522_v43 = vunpack.c.l.b16 %v6566_v10 }
 0x204   : >> { %v2408_v5 = vor.u32 %v2407_v7, %v2404_v27  ;;  %v2417_v27 = vrot.slane %v8433_v9, 3  ;;  %v2418_v7 = vrot.slane %v8391_v32, 4 }
 0x205   : >> { %v8658_v45 = vpack.c.b16 %v2522_v43, %v2522_v43 }
 0x206   : >> { %v2412_v52 = vsel %vm2400_vm1, %v2408_v5, %v2411_v58  ;;  %v2419_v5 = vor.u32 %v2418_v7, %v2417_v27  ;;  %v6587_v7 = vld [vmem:[%s8307_s2 + $0x24] sm:$0xe] }
 0x20c   : >> { %6579 = vmatmul.msk.bf16.vlgmr.msra.gmra.mxu2 %vm779_vm9, %v2539_v61  ;;  %v8634_v61 = vshrl.u32 %v8599_v29, 16 }
 0x20e   : >> { %v2550_v63 = vor.u32 %v8634_v61, %v2546_v37  ;;  %v2414_v37 = vrot.slane %v9919_v19, 4  ;;  %v2337_v19 = vsel %vm2332_vm0, %v2334_v62, %v2336_v20  ;;  %v2338_v62 = vrot.slane %v8383_v18, 3 }
 0x20f   : >> { %v1954_v42 = vpop.f32.mrf.mxu2 }
 0x210   : >> { %6583 = vmatmul.msk.bf16.vlgmr.msra.gmra.mxu3 %vm779_vm9, %v6558_v24 }
 0x211   : >> { %v1994_v60 = vpop.f32.mrf.mxu3 }
 0x212   : >> { %6529 = vmatmul.msk.bf16.gmra.mxu0 %vm779_vm9, %v2027_v57  ;;  %6534 = vmatmul.msk.bf16.gmra.mxu1 %vm779_vm9, %v2108_v11  ;;  %v8608_v36 = vadd.f32 %v1994_v60, %v1954_v42  ;;  %v8637_v57 = vshll.u32 %v8630_v59, 16 }
 0x214   : >> { %v2554_v30 = vrot.slane %v8637_v57, 1 }
 0x216   : >> { %v2555_v42 = vsel %vm1893_vm10, %v2550_v63, %v2554_v30 }
 0x217   : >> { %v1956_v8 = vpop.f32.mrf.mxu2 }
 0x219   : >> { %v1996_v23 = vpop.f32.mrf.mxu3 }
 0x21a   : >> { %v8615_v13 = vadd.f32 %v1996_v23, %v1956_v8  ;;  %v2415_v8 = vor.u32 %v2414_v37, %v2413_v12  ;;  %v2560_v23 = vshll.u32 %v8658_v45, 16 }
 0x21c   : >> { %6580 = vmatmul.msk.bf16.gmra.mxu2 %vm779_vm9, %v2547_v1  ;;  %v2416_v14 = vsel %vm2400_vm1, %v2411_v58, %v2415_v8  ;;  %v2398_v58 = vunpack.c.l.b16 %v2394_v39  ;;  %v2420_v10 = vsel %vm2400_vm1, %v2415_v8, %v2419_v5 }
 0x21e   : >> { %v2399_v18 = vpack.c.b16 %v2398_v58, %v2398_v58 }
 0x21f   : >> { %v1959_v33 = vpop.f32.mrf.mxu2 }
 0x220   : >> { %6584 = vmatmul.msk.bf16.gmra.mxu3 %vm779_vm9, %v8576_v41  ;;  %v2422_v8 = vshrl.u32 %v2399_v18, 16 }
 0x221   : >> { %v1999_v4 = vpop.f32.mrf.mxu3 }
 0x222   : >> { %6530 = vmatmul.msk.bf16.gmra.mxu0 %vm779_vm9, %v2029_v2  ;;  %6535 = vmatmul.msk.bf16.gmra.mxu1 %vm779_vm9, %v2117_v26  ;;  %v8625_v24 = vadd.f32 %v1999_v4, %v1959_v33  ;;  %v2562_v26 = vrot.slane %v2560_v23, 1  ;;  %v6597_v4 = vld [vmem:[%s8307_s2 + $0x24] sm:$0xc]  ;;  %v2861_v23 = vrot.slane %v8583_v54, 3 }
 0x223   : >> { %v2788_v40 = vunpack.c.l.b16 %v6597_v4 }
 0x225   : >> { %v2789_v15 = vpack.c.b16 %v8578_v44, %v2788_v40 }
 0x227   : >> { %v1961_v6 = vpop.f32.mrf.mxu2  ;;  %v2856_v63 = vshll.u32 %v2789_v15, 16 }
 0x229   : >> { %v2001_v11 = vpop.f32.mrf.mxu3  ;;  %v2858_v43 = vrot.slane %v2856_v63, 3  ;;  %v2793_v63 = vrot.slane %v8599_v29, 2 }
 0x22a   : >> { %v8641_v56 = vadd.f32 %v2001_v11, %v1961_v6  ;;  %v2853_v11 = vshrl.u32 %v2789_v15, 16 }
 0x22c   : >> { %6581 = vmatmul.msk.bf16.gmra.mxu2 %vm779_vm9, %v2555_v42  ;;  %v2855_v9 = vrot.slane %v2853_v11, 2 }
 0x22f   : >> { %v1964_v60 = vpop.f32.mrf.mxu2 }
 0x230   : >> { %6585 = vmatmul.msk.bf16.gmra.mxu3 %vm779_vm9, %v8599_v29 }
 0x231   : >> { %v2004_v21 = vpop.f32.mrf.mxu3 }
 0x232   : >> { %6547 = vmatmul.msk.bf16.vlgmr.msra.gmra.mxu0 %vm779_vm9, %v2335_v35  ;;  %6552 = vmatmul.msk.bf16.vlgmr.msra.gmra.mxu1 %vm779_vm9, %v2412_v52  ;;  %v8653_v34 = vadd.f32 %v2004_v21, %v1964_v60  ;;  %v2790_v35 = vrot.slane %v2789_v15, 2  ;;  %v2791_v52 = vrot.slane %v8576_v41, 2  ;;  %v2339_v21 = vsel %vm2332_vm0, %v2336_v20, %v2338_v62 }
 0x233   : >> { %2962 = vmatpush.bf16.msra.mxu0 %v8570_v55  ;;  %3044 = vmatpush.bf16.msra.mxu1 %v8573_v48  ;;  %v8662_v48 = vshrl.u32 %v8630_v59, 16  ;;  %v2859_v20 = vor.u32 %v2858_v43, %v2855_v9  ;;  %v2340_v15 = vrot.slane %v8550_v3, 3 }
 0x234   : >> { %v2792_v12 = vsel %vm2176_vm11, %v2790_v35, %v2791_v52  ;;  %v2865_v35 = vrot.slane %v8605_v49, 3 }
 0x235   : >> { %v2558_v2 = vor.u32 %v8662_v48, %v2554_v30 }
 0x237   : >> { %v1966_v55 = vpop.f32.mrf.mxu2  ;;  %v2563_v22 = vsel %vm1893_vm10, %v2558_v2, %v2562_v26  ;;  %v2425_v2 = vshll.u32 %v2399_v18, 16 }
 0x239   : >> { %v2006_v1 = vpop.f32.mrf.mxu3  ;;  %v2427_v4 = vrot.slane %v2425_v2, 4  ;;  %v2716_v2 = vrot.slane %v8602_v46, 1 }
 0x23a   : >> { %v8666_v17 = vadd.f32 %v2006_v1, %v1966_v55  ;;  %v2860_v55 = vrot.slane %v8602_v46, 2 }
 0x23c   : >> { %6582 = vmatmul.msk.bf16.gmra.mxu2 %vm779_vm9, %v2563_v22  ;;  %v2862_v26 = vor.u32 %v2861_v23, %v2860_v55 }
 0x23f   : >> { %v1969_v16 = vpop.f32.mrf.mxu2 }
 0x240   : >> { %6586 = vmatmul.msk.bf16.gmra.mxu3 %vm779_vm9, %v8630_v59 }
 0x241   : >> { %v2009_v0 = vpop.f32.mrf.mxu3 }
 0x242   : >> { %6548 = vmatmul.msk.bf16.gmra.mxu0 %vm779_vm9, %v2337_v19  ;;  %6553 = vmatmul.msk.bf16.gmra.mxu1 %vm779_vm9, %v2416_v14  ;;  %v8676_v33 = vadd.f32 %v2009_v0, %v1969_v16  ;;  %v2863_v14 = vsel %vm2244_vm13, %v2859_v20, %v2862_v26  ;;  %v2424_v0 = vrot.slane %v2422_v8, 3 }
 0x244   : >> { %v2428_v58 = vor.u32 %v2427_v4, %v2424_v0  ;;  %v2647_v4 = vrot.slane %v8576_v41, 1 }
 0x247   : >> { %v1971_v6 = vpop.f32.mrf.mxu2 }
 0x249   : >> { %v2011_v30 = vpop.f32.mrf.mxu3 }
 0x24a   : >> { %v8686_v42 = vadd.f32 %v2011_v30, %v1971_v6  ;;  %v2644_v6 = vunpack.c.l.b16 %v6587_v7  ;;  %v2864_v30 = vrot.slane %v8634_v61, 2 }
 0x24c   : >> { %6598 = vmatmul.msk.bf16.vlgmr.msrb.gmra.mxu2 %vm779_vm9, %v2792_v12  ;;  %v2645_v3 = vpack.c.b16 %v8578_v44, %v2644_v6  ;;  %v2866_v12 = vor.u32 %v2865_v35, %v2864_v30  ;;  %v2869_v6 = vrot.slane %v8637_v57, 3 }
 0x24e   : >> { %v2709_v55 = vshrl.u32 %v2645_v3, 16  ;;  %v2712_v23 = vshll.u32 %v2645_v3, 16 }
 0x24f   : >> { %v1786_v32 = vpop.f32.mrf.mxu0  ;;  %v1827_v60 = vpop.f32.mrf.mxu1 }
 0x250   : >> { %v1839_v37 = vmax.f32 %v1786_v32, %v1827_v60  ;;  %v8696_v19 = vpop.f32.mrf.mxu2  ;;  %6603 = vmatmul.msk.bf16.vlgmr.msrb.gmra.mxu3 %vm779_vm9, %v2863_v14  ;;  %v2341_v60 = vsel %vm2332_vm0, %v2338_v62, %v2340_v15  ;;  %v2867_v62 = vsel %vm2244_vm13, %v2862_v26, %v2866_v12  ;;  %v2711_v20 = vrot.slane %v2709_v55, 1 }
 0x251   : >> { %v2714_v8 = vrot.slane %v2712_v23, 2  ;;  %v2717_v14 = vrot.slane %v8583_v54, 2  ;;  %v2646_v26 = vrot.slane %v2645_v3, 1  ;;  %v2795_v15 = vrot.slane %v8630_v59, 2  ;;  %v6592_v23 = vld [vmem:[%s8307_s2 + $0x44] sm:$0x3] }
 0x252   : >> { %v1843_v1 = vpack.c.bf16 %v1839_v37, %v1839_v37  ;;  %6549 = vmatmul.msk.bf16.gmra.mxu0 %vm779_vm9, %v2339_v21  ;;  %6554 = vmatmul.msk.bf16.gmra.mxu1 %vm779_vm9, %v2420_v10  ;;  %v2429_v21 = vsel %vm2400_vm1, %v2419_v5, %v2428_v58  ;;  %v2794_v10 = vsel %vm2176_vm11, %v2791_v52, %v2793_v63  ;;  %v2868_v58 = vrot.slane %v8662_v48, 2 }
 0x253   : >> { %v8705_v40 = vpop.f32.mrf.mxu3  ;;  %v2718_v7 = vor.u32 %v2717_v14, %v2716_v2 }
 0x254   : >> { %1851 = vst.msk [vmem:[%s8698_s22] sm:$0xf] %vm1850_vm2, %v1843_v1  ;;  %v2870_v3 = vor.u32 %v2869_v6, %v2868_v58 }
 0x257   : >> { %v1789_v22 = vpop.f32.mrf.mxu0  ;;  %v1830_v16 = vpop.f32.mrf.mxu1 }
 0x258   : >> { %v1840_v27 = vmax.f32 %v1789_v22, %v1830_v16  ;;  %v8708_v11 = vpop.f32.mrf.mxu2 }
 0x25a   : >> { %v1844_v39 = vpack.c.bf16 %v1840_v27, %v1840_v27  ;;  %v2715_v27 = vor.u32 %v2714_v8, %v2711_v20  ;;  %v2706_v20 = vunpack.c.l.b16 %v6592_v23 }
 0x25b   : >> { %v8720_v37 = vpop.f32.mrf.mxu3 }
 0x25c   : >> { %1852 = vst.msk [vmem:[%s8698_s22 + $0x4] sm:$0xf] %vm1850_vm2, %v1844_v39  ;;  %6599 = vmatmul.msk.bf16.gmra.mxu2 %vm779_vm9, %v2794_v10  ;;  %v2707_v58 = vpack.c.b16 %v2706_v20, %v2706_v20 }
 0x25f   : >> { %v1792_v9 = vpop.f32.mrf.mxu0  ;;  %v1833_v32 = vpop.f32.mrf.mxu1 }
 0x260   : >> { %v1841_v18 = vmax.f32 %v1792_v9, %v1833_v32  ;;  %v8725_v5 = vpop.f32.mrf.mxu2  ;;  %6604 = vmatmul.msk.bf16.gmra.mxu3 %vm779_vm9, %v2867_v62  ;;  %v2648_v9 = vsel %vm2020_vm14, %v2646_v26, %v2647_v4  ;;  %v2719_v32 = vsel %vm2088_vm15, %v2715_v27, %v2718_v7 }
 0x262   : >> { %v1845_v43 = vpack.c.bf16 %v1841_v18, %v1841_v18  ;;  %6550 = vmatmul.msk.bf16.gmra.mxu0 %vm779_vm9, %v2341_v60  ;;  %6555 = vmatmul.msk.bf16.gmra.mxu1 %vm779_vm9, %v2429_v21  ;;  %v2796_v60 = vsel %vm2176_vm11, %v2793_v63, %v2795_v15  ;;  %v6602_v63 = vld [vmem:[%s8307_s2 + $0x44] sm:$0x7] }
 0x263   : >> { %v8732_v16 = vpop.f32.mrf.mxu3  ;;  %v2850_v8 = vunpack.c.l.b16 %v6602_v63 }
 0x264   : >> { %1853 = vst.msk [vmem:[%s8698_s22 + $0x8] sm:$0xf] %vm1850_vm2, %v1845_v43  ;;  %v2871_v43 = vsel %vm2244_vm13, %v2866_v12, %v2870_v3  ;;  %v2649_v12 = vrot.slane %v8599_v29, 1 }
 0x267   : >> { %v1795_v52 = vpop.f32.mrf.mxu0  ;;  %v1836_v1 = vpop.f32.mrf.mxu1 }
 0x268   : >> { %v1842_v22 = vmax.f32 %v1795_v52, %v1836_v1  ;;  %v8735_v39 = vpop.f32.mrf.mxu2  ;;  %v2720_v52 = vrot.slane %v8634_v61, 1  ;;  %v2721_v1 = vrot.slane %v8605_v49, 2 }
 0x26a   : >> { %v1846_v0 = vpack.c.bf16 %v1842_v22, %v1842_v22  ;;  %v8760_v22 = vpack.c.b16 %v2850_v8, %v2850_v8  ;;  %v2722_v26 = vor.u32 %v2721_v1, %v2720_v52 }
 0x26b   : >> { %v8747_v10 = vpop.f32.mrf.mxu3 }
 0x26c   : >> { %1854 = vst.msk [vmem:[%s8698_s22 + $0xc] sm:$0xf] %vm1850_vm2, %v1846_v0  ;;  %6600 = vmatmul.msk.bf16.gmra.mxu2 %vm779_vm9, %v2796_v60  ;;  %v2873_v6 = vshrl.u32 %v8760_v22, 16 }
 0x26f   : >> { %v2054_v30 = vpop.f32.mrf.mxu0  ;;  %v2142_v35 = vpop.f32.mrf.mxu1 }
 0x270   : >> { %v2074_v21 = vadd.f32 %v2054_v30, %v8608_v36  ;;  %v2220_v55 = vpop.f32.mrf.mxu2  ;;  %6605 = vmatmul.msk.bf16.gmra.mxu3 %vm779_vm9, %v2871_v43  ;;  %v2876_v30 = vshll.u32 %v8760_v22, 16  ;;  %v2723_v43 = vsel %vm2088_vm15, %v2718_v7, %v2722_v26 }
 0x272   : >> { %v8749_v18 = vadd.f32 %v2142_v35, %v2074_v21  ;;  %6588 = vmatmul.msk.bf16.vlgmr.msrb.gmra.mxu0 %vm779_vm9, %v2648_v9  ;;  %6593 = vmatmul.msk.bf16.vlgmr.msrb.gmra.mxu1 %vm779_vm9, %v2719_v32  ;;  %v2797_v35 = vrot.slane %v2707_v58, 2  ;;  %v2875_v9 = vrot.slane %v2873_v6, 2  ;;  %v2878_v32 = vrot.slane %v2876_v30, 3 }
 0x273   : >> { %v2308_v14 = vpop.f32.mrf.mxu3  ;;  %v2651_v30 = vrot.slane %v8630_v59, 1 }
 0x274   : >> { %v2798_v23 = vsel %vm2176_vm11, %v2795_v15, %v2797_v35  ;;  %v2724_v15 = vrot.slane %v8662_v48, 1 }
 0x277   : >> { %v2056_v62 = vpop.f32.mrf.mxu0  ;;  %v2144_v36 = vpop.f32.mrf.mxu1 }
 0x278   : >> { %v2075_v2 = vadd.f32 %v2056_v62, %v8615_v13  ;;  %v2222_v27 = vpop.f32.mrf.mxu2  ;;  %v2650_v13 = vsel %vm2020_vm14, %v2647_v4, %v2649_v12  ;;  %v2879_v62 = vor.u32 %v2878_v32, %v2875_v9 }
 0x27a   : >> { %v8762_v0 = vadd.f32 %v2144_v36, %v2075_v2  ;;  %v2880_v1 = vsel %vm2244_vm13, %v2870_v3, %v2879_v62 }
 0x27b   : >> { %v2310_v36 = vpop.f32.mrf.mxu3 }
 0x27c   : >> { %6601 = vmatmul.msk.bf16.gmra.mxu2 %vm779_vm9, %v2798_v23 }
 0x27f   : >> { %v2059_v60 = vpop.f32.mrf.mxu0  ;;  %v2147_v21 = vpop.f32.mrf.mxu1 }
 0x280   : >> { %v2076_v63 = vadd.f32 %v2059_v60, %v8625_v24  ;;  %v2225_v20 = vpop.f32.mrf.mxu2  ;;  %6606 = vmatmul.msk.bf16.gmra.mxu3 %vm779_vm9, %v2880_v1  ;;  %v2725_v24 = vrot.slane %v8637_v57, 2  ;;  %v2652_v60 = vsel %vm2020_vm14, %v2649_v12, %v2651_v30 }
 0x282   : >> { %v8772_v52 = vadd.f32 %v2147_v21, %v2076_v63  ;;  %6589 = vmatmul.msk.bf16.gmra.mxu0 %vm779_vm9, %v2650_v13  ;;  %6594 = vmatmul.msk.bf16.gmra.mxu1 %vm779_vm9, %v2723_v43  ;;  %v2726_v35 = vor.u32 %v2725_v24, %v2724_v15  ;;  %v2732_v63 = vshll.u32 %v2707_v58, 16 }
 0x283   : >> { %v2313_v2 = vpop.f32.mrf.mxu3 }
 0x284   : >> { %v2727_v21 = vsel %vm2088_vm15, %v2722_v26, %v2726_v35  ;;  %v2734_v24 = vrot.slane %v2732_v63, 2 }
 0x287   : >> { %v2061_v4 = vpop.f32.mrf.mxu0  ;;  %v2149_v7 = vpop.f32.mrf.mxu1 }
 0x288   : >> { %v2077_v8 = vadd.f32 %v2061_v4, %v8641_v56  ;;  %v2227_v9 = vpop.f32.mrf.mxu2  ;;  %v2729_v56 = vshrl.u32 %v2707_v58, 16 }
 0x28a   : >> { %v8781_v6 = vadd.f32 %v2149_v7, %v2077_v8  ;;  %v2731_v12 = vrot.slane %v2729_v56, 1  ;;  %v6607_v8 = vld [vmem:[%s8307_s2 + $0x24] sm:$0x8] }
 0x28b   : >> { %v2315_v43 = vpop.f32.mrf.mxu3 }
 0x28f   : >> { %v2064_v32 = vpop.f32.mrf.mxu0  ;;  %v2152_v3 = vpop.f32.mrf.mxu1 }
 0x290   : >> { %v2078_v13 = vadd.f32 %v2064_v32, %v8653_v34  ;;  %v2585_v62 = vpop.f32.mrf.mxu2 }
 0x292   : >> { %v2166_v23 = vadd.f32 %v2152_v3, %v2078_v13  ;;  %6590 = vmatmul.msk.bf16.gmra.mxu0 %vm779_vm9, %v2652_v60  ;;  %6595 = vmatmul.msk.bf16.gmra.mxu1 %vm779_vm9, %v2727_v21  ;;  %v2653_v60 = vrot.slane %v8658_v45, 1  ;;  %v2735_v21 = vor.u32 %v2734_v24, %v2731_v12  ;;  %v2932_v13 = vunpack.c.l.b16 %v6607_v8 }
 0x293   : >> { %v2622_v34 = vpop.f32.mrf.mxu3 }
 0x294   : >> { %v2234_v1 = vadd.f32 %v2220_v55, %v2166_v23  ;;  %v8793_v3 = vadd.f32 %v2622_v34, %v2585_v62  ;;  %v2654_v56 = vsel %vm2020_vm14, %v2651_v30, %v2653_v60  ;;  %v2736_v63 = vsel %vm2088_vm15, %v2726_v35, %v2735_v21 }
 0x296   : >> { %v8789_v4 = vadd.f32 %v2308_v14, %v2234_v1 }
 0x297   : >> { %v2066_v7 = vpop.f32.mrf.mxu0  ;;  %v2154_v15 = vpop.f32.mrf.mxu1 }
 0x298   : >> { %v2079_v26 = vadd.f32 %v2066_v7, %v8666_v17  ;;  %v2587_v58 = vpop.f32.mrf.mxu2  ;;  %v2933_v17 = vpack.c.b16 %v8578_v44, %v2932_v13 }
 0x29a   : >> { %v2167_v32 = vadd.f32 %v2154_v15, %v2079_v26  ;;  %v3005_v26 = vrot.slane %v8583_v54, 4 }
 0x29b   : >> { %v2624_v62 = vpop.f32.mrf.mxu3 }
 0x29c   : >> { %v2235_v51 = vadd.f32 %v2222_v27, %v2167_v32  ;;  %v8804_v45 = vadd.f32 %v2624_v62, %v2587_v58  ;;  %v3000_v27 = vshll.u32 %v2933_v17, 16  ;;  %v2230_v32 = vadd.f32 %v8696_v19, %v8749_v18 }
 0x29e   : >> { %v8796_v55 = vadd.f32 %v2310_v36, %v2235_v51  ;;  %v2997_v51 = vshrl.u32 %v2933_v17, 16  ;;  %v3002_v44 = vrot.slane %v3000_v27, 4  ;;  %v3009_v27 = vrot.slane %v8605_v49, 4 }
 0x29f   : >> { %v2069_v14 = vpop.f32.mrf.mxu0  ;;  %v2157_v23 = vpop.f32.mrf.mxu1 }
 0x2a0   : >> { %v2080_v1 = vadd.f32 %v2069_v14, %v8676_v33  ;;  %v2590_v36 = vpop.f32.mrf.mxu2  ;;  %v2999_v24 = vrot.slane %v2997_v51, 3  ;;  %v3004_v33 = vrot.slane %v8602_v46, 3  ;;  %v2318_v46 = vadd.f32 %v8705_v40, %v2230_v32 }
 0x2a1   : >> { %v3008_v51 = vrot.slane %v8634_v61, 3 }
 0x2a2   : >> { %v2168_v7 = vadd.f32 %v2157_v23, %v2080_v1  ;;  %6591 = vmatmul.msk.bf16.gmra.mxu0 %vm779_vm9, %v2654_v56  ;;  %6596 = vmatmul.msk.bf16.gmra.mxu1 %vm779_vm9, %v2736_v63  ;;  %v3003_v13 = vor.u32 %v3002_v44, %v2999_v24  ;;  %v3006_v58 = vor.u32 %v3005_v26, %v3004_v33 }
 0x2a3   : >> { %v2627_v34 = vpop.f32.mrf.mxu3  ;;  %v3010_v24 = vor.u32 %v3009_v27, %v3008_v51 }
 0x2a4   : >> { %v2236_v15 = vadd.f32 %v2225_v20, %v2168_v7  ;;  %v8813_v21 = vadd.f32 %v2627_v34, %v2590_v36  ;;  %v2934_v20 = vrot.slane %v2933_v17, 3  ;;  %v3007_v19 = vsel %vm2400_vm1, %v3003_v13, %v3006_v58 }
 0x2a5   : >> { %v2231_v17 = vadd.f32 %v8708_v11, %v8762_v0  ;;  %v2232_v11 = vadd.f32 %v8725_v5, %v8772_v52  ;;  %v3011_v61 = vsel %vm2400_vm1, %v3006_v58, %v3010_v24  ;;  %v2233_v5 = vadd.f32 %v8735_v39, %v8781_v6  ;;  %v6612_v58 = vld [vmem:[%s8307_s2 + $0x44] sm:$0xf]  ;;  %s7771_s2 = smov 8  }
 0x2a6   : >> { %v8806_v12 = vadd.f32 %v2313_v2, %v2236_v15  ;;  %v2935_v2 = vrot.slane %v8576_v41, 3 }
 0x2a7   : >> { %v2071_v30 = vpop.f32.mrf.mxu0  ;;  %v2159_v35 = vpop.f32.mrf.mxu1 }
 0x2a8   : >> { %v2081_v8 = vadd.f32 %v2071_v30, %v8686_v42  ;;  %v2592_v14 = vpop.f32.mrf.mxu2  ;;  %v2936_v63 = vsel %vm2332_vm0, %v2934_v20, %v2935_v2  ;;  %v3012_v20 = vrot.slane %v8662_v48, 3 }
 0x2aa   : >> { %v2169_v60 = vadd.f32 %v2159_v35, %v2081_v8  ;;  %v2937_v35 = vrot.slane %v8599_v29, 3 }
 0x2ab   : >> { %v2629_v1 = vpop.f32.mrf.mxu3 }
 0x2ac   : >> { %v2237_v23 = vadd.f32 %v2227_v9, %v2169_v60  ;;  %v8827_v40 = vadd.f32 %v2629_v1, %v2592_v14  ;;  %v2938_v49 = vsel %vm2332_vm0, %v2935_v2, %v2937_v35  ;;  %v3013_v2 = vrot.slane %v8637_v57, 4 }
 0x2ae   : >> { %v8817_v56 = vadd.f32 %v2315_v43, %v2237_v23  ;;  %v2319_v43 = vadd.f32 %v8720_v37, %v2231_v17  ;;  %v2320_v37 = vadd.f32 %v8732_v16, %v2232_v11  ;;  %v2321_v16 = vadd.f32 %v8747_v10, %v2233_v5 }
 0x2af   : >> { %v2366_v54 = vpop.f32.mrf.mxu0  ;;  %v2454_v42 = vpop.f32.mrf.mxu1 }
 0x2b0   : >> { %v2386_v18 = vadd.f32 %v2366_v54, %v2318_v46  ;;  %v2595_v9 = vpop.f32.mrf.mxu2  ;;  %v2939_v46 = vrot.slane %v8630_v59, 3  ;;  %v3014_v54 = vor.u32 %v3013_v2, %v3012_v20 }
 0x2b2   : >> { %v8823_v41 = vadd.f32 %v2454_v42, %v2386_v18  ;;  %6608 = vmatmul.msk.bf16.vlgmr.msra.gmra.mxu0 %vm779_vm9, %v2936_v63  ;;  %6613 = vmatmul.msk.bf16.vlgmr.msra.gmra.mxu1 %vm779_vm9, %v3007_v19  ;;  %v2994_v42 = vunpack.c.l.b16 %v6612_v58  ;;  %v2940_v19 = vsel %vm2332_vm0, %v2937_v35, %v2939_v46  ;;  %v3015_v48 = vsel %vm2400_vm1, %v3010_v24, %v3014_v54 }
 0x2b3   : >> { %v2632_v15 = vpop.f32.mrf.mxu3 }
 0x2b4   : >> { %v8836_v30 = vadd.f32 %v2632_v15, %v2595_v9  ;;  %v2995_v18 = vpack.c.b16 %v2994_v42, %v2994_v42 }
 0x2b6   : >> { %v3017_v17 = vshrl.u32 %v2995_v18, 16  ;;  %v3020_v9 = vshll.u32 %v2995_v18, 16 }
 0x2b7   : >> { %v2368_v62 = vpop.f32.mrf.mxu0  ;;  %v2456_v7 = vpop.f32.mrf.mxu1 }
 0x2b8   : >> { %v2387_v36 = vadd.f32 %v2368_v62, %v2319_v43  ;;  %v2597_v44 = vpop.f32.mrf.mxu2  ;;  %v3019_v62 = vrot.slane %v3017_v17, 3 }
 0x2ba   : >> { %v8834_v0 = vadd.f32 %v2456_v7, %v2387_v36  ;;  %v3022_v7 = vrot.slane %v3020_v9, 4  ;;  %v2941_v36 = vrot.slane %v8760_v22, 3 }
 0x2bb   : >> { %v2634_v34 = vpop.f32.mrf.mxu3 }
 0x2bc   : >> { %v8848_v29 = vadd.f32 %v2634_v34, %v2597_v44  ;;  %v3023_v15 = vor.u32 %v3022_v7, %v3019_v62  ;;  %v2942_v35 = vsel %vm2332_vm0, %v2939_v46, %v2941_v36 }
 0x2be   : >> { %v3024_v24 = vsel %vm2400_vm1, %v3014_v54, %v3023_v15 }
 0x2bf   : >> { %v2371_v33 = vpop.f32.mrf.mxu0  ;;  %v2459_v26 = vpop.f32.mrf.mxu1 }
 0x2c0   : >> { %v2388_v8 = vadd.f32 %v2371_v33, %v2320_v37  ;;  %v2600_v14 = vpop.f32.mrf.mxu2 }
 0x2c2   : >> { %v8844_v52 = vadd.f32 %v2459_v26, %v2388_v8  ;;  %6609 = vmatmul.msk.bf16.gmra.mxu0 %vm779_vm9, %v2938_v49  ;;  %6614 = vmatmul.msk.bf16.gmra.mxu1 %vm779_vm9, %v3011_v61 }
 0x2c3   : >> { %v2637_v39 = vpop.f32.mrf.mxu3 }
 0x2c4   : >> { %v8856_v23 = vadd.f32 %v2637_v39, %v2600_v14 }
 0x2c7   : >> { %v2373_v32 = vpop.f32.mrf.mxu0  ;;  %v2461_v60 = vpop.f32.mrf.mxu1 }
 0x2c8   : >> { %v2389_v13 = vadd.f32 %v2373_v32, %v2321_v16 }
 0x2ca   : >> { %v8854_v6 = vadd.f32 %v2461_v60, %v2389_v13 }
 0x2cb   : >> { %v8880_v49 = vpop.f32.mrf.mxu3 }
 0x2cf   : >> { %v2376_v63 = vpop.f32.mrf.mxu0  ;;  %v2464_v10 = vpop.f32.mrf.mxu1 }
 0x2d0   : >> { %v2390_v57 = vadd.f32 %v2376_v63, %v8789_v4 }
 0x2d2   : >> { %v8862_v1 = vadd.f32 %v2464_v10, %v2390_v57  ;;  %6610 = vmatmul.msk.bf16.gmra.mxu0 %vm779_vm9, %v2940_v19  ;;  %6615 = vmatmul.msk.bf16.gmra.mxu1 %vm779_vm9, %v3015_v48 }
 0x2d3   : >> { %v2902_v32 = vpop.f32.mrf.mxu3 }
 0x2d7   : >> { %v2378_v59 = vpop.f32.mrf.mxu0  ;;  %v2466_v43 = vpop.f32.mrf.mxu1 }
 0x2d8   : >> { %v2391_v51 = vadd.f32 %v2378_v59, %v8796_v55  ;;  %v8877_v55 = vpop.f32.mrf.mxu2 }
 0x2da   : >> { %v8867_v27 = vadd.f32 %v2466_v43, %v2391_v51 }
 0x2db   : >> { %v2904_v36 = vpop.f32.mrf.mxu3 }
 0x2df   : >> { %v2381_v4 = vpop.f32.mrf.mxu0  ;;  %v2469_v11 = vpop.f32.mrf.mxu1 }
 0x2e0   : >> { %v2392_v37 = vadd.f32 %v2381_v4, %v8806_v12  ;;  %v2820_v5 = vpop.f32.mrf.mxu2 }
 0x2e2   : >> { %v8873_v44 = vadd.f32 %v2469_v11, %v2392_v37  ;;  %6611 = vmatmul.msk.bf16.gmra.mxu0 %vm779_vm9, %v2942_v35  ;;  %6616 = vmatmul.msk.bf16.gmra.mxu1 %vm779_vm9, %v3024_v24  ;;  %v9924_v35 = vld [vmem:[#allocation20_spill] sm:$0xff] }
 0x2e3   : >> { %v8898_v24 = vperm.slane %v9924_v35, 0 }
 0x2e7   : >> { %v2383_v33 = vpop.f32.mrf.mxu0  ;;  %v2471_v26 = vpop.f32.mrf.mxu1 }
 0x2e8   : >> { %v2393_v22 = vadd.f32 %v2383_v33, %v8817_v56  ;;  %v2822_v7 = vpop.f32.mrf.mxu2 }
 0x2ea   : >> { %v8882_v61 = vadd.f32 %v2471_v26, %v2393_v22 }
 0x2ef   : >> { %v2676_v8 = vpop.f32.mrf.mxu0  ;;  %v2758_v34 = vpop.f32.mrf.mxu1 }
 0x2f0   : >> { %v2696_v12 = vadd.f32 %v2676_v8, %v8793_v3  ;;  %v2825_v4 = vpop.f32.mrf.mxu2 }
 0x2f2   : >> { %v2778_v16 = vadd.f32 %v2758_v34, %v2696_v12 }
 0x2f4   : >> { %v2840_v60 = vadd.f32 %v2820_v5, %v2778_v16 }
 0x2f6   : >> { %v2922_v20 = vadd.f32 %v2902_v32, %v2840_v60 }
 0x2f7   : >> { %v2678_v2 = vpop.f32.mrf.mxu0  ;;  %v2760_v13 = vpop.f32.mrf.mxu1 }
 0x2f8   : >> { %v2697_v58 = vadd.f32 %v2678_v2, %v8804_v45  ;;  %v2827_v34 = vpop.f32.mrf.mxu2 }
 0x2fa   : >> { %v2779_v14 = vadd.f32 %v2760_v13, %v2697_v58 }
 0x2fc   : >> { %v2841_v33 = vadd.f32 %v2822_v7, %v2779_v14  ;;  %v2488_v7 = vadd.f32 %v8898_v24, %v8854_v6 }
 0x2fe   : >> { %v2923_v8 = vadd.f32 %v2904_v36, %v2841_v33  ;;  %v2489_v33 = vadd.f32 %v8898_v24, %v8862_v1  ;;  %v2490_v1 = vadd.f32 %v8898_v24, %v8867_v27 }
 0x2ff   : >> { %v2681_v39 = vpop.f32.mrf.mxu0  ;;  %v2763_v56 = vpop.f32.mrf.mxu1 }
 0x300   : >> { %v2698_v46 = vadd.f32 %v2681_v39, %v8813_v21 }
 0x302   : >> { %v2780_v54 = vadd.f32 %v2763_v56, %v2698_v46  ;;  %v2830_v46 = vpop.f32.mrf.mxu2 }
 0x304   : >> { %v2842_v60 = vadd.f32 %v2825_v4, %v2780_v54 }
 0x307   : >> { %v2683_v42 = vpop.f32.mrf.mxu0  ;;  %v2765_v63 = vpop.f32.mrf.mxu1 }
 0x308   : >> { %v2699_v10 = vadd.f32 %v2683_v42, %v8827_v40 }
 0x30a   : >> { %v2781_v3 = vadd.f32 %v2765_v63, %v2699_v10 }
 0x30c   : >> { %v2843_v63 = vadd.f32 %v2827_v34, %v2781_v3  ;;  %v2640_v34 = vadd.f32 %v8880_v49, %v8877_v55 }
 0x30f   : >> { %v2686_v19 = vpop.f32.mrf.mxu0  ;;  %v2768_v48 = vpop.f32.mrf.mxu1 }
 0x310   : >> { %v2700_v18 = vadd.f32 %v2686_v19, %v8836_v30  ;;  %v2487_v19 = vadd.f32 %v8898_v24, %v8844_v52 }
 0x312   : >> { %v2782_v57 = vadd.f32 %v2768_v48, %v2700_v18 }
 0x317   : >> { %v2688_v17 = vpop.f32.mrf.mxu0  ;;  %v2770_v9 = vpop.f32.mrf.mxu1 }
 0x318   : >> { %v2701_v45 = vadd.f32 %v2688_v17, %v8848_v29  ;;  %v2907_v29 = vpop.f32.mrf.mxu3 }
 0x319   : >> { %v2924_v14 = vadd.f32 %v2907_v29, %v2842_v60 }
 0x31a   : >> { %v2783_v59 = vadd.f32 %v2770_v9, %v2701_v45 }
 0x31f   : >> { %v2691_v43 = vpop.f32.mrf.mxu0  ;;  %v2773_v62 = vpop.f32.mrf.mxu1 }
 0x320   : >> { %v2702_v21 = vadd.f32 %v2691_v43, %v8856_v23  ;;  %v2485_v23 = vadd.f32 %v8898_v24, %v8823_v41  ;;  %v2909_v2 = vpop.f32.mrf.mxu3  ;;  %v2844_v43 = vadd.f32 %v2830_v46, %v2782_v57 }
 0x321   : >> { %v2925_v18 = vadd.f32 %v2909_v2, %v2843_v63 }
 0x322   : >> { %v8891_v51 = vadd.f32 %v2773_v62, %v2702_v21  ;;  %v2832_v62 = vpop.f32.mrf.mxu2 }
 0x323   : >> { %v2845_v29 = vadd.f32 %v2832_v62, %v2783_v59 }
 0x327   : >> { %v8893_v40 = vpop.f32.mrf.mxu0  ;;  %v8895_v15 = vpop.f32.mrf.mxu1 }
 0x328   : >> { %v2912_v54 = vpop.f32.mrf.mxu3  ;;  %v2703_v59 = vadd.f32 %v8893_v40, %v2640_v34 }
 0x329   : >> { %v2926_v36 = vadd.f32 %v2912_v54, %v2844_v43 }
 0x32f   : >> { %v2964_v30 = vpop.f32.mrf.mxu0  ;;  %v3046_v11 = vpop.f32.mrf.mxu1 }
 0x330   : >> { %v2984_v37 = vadd.f32 %v2964_v30, %v2922_v20  ;;  %v2486_v20 = vadd.f32 %v8898_v24, %v8834_v0  ;;  %v2914_v4 = vpop.f32.mrf.mxu3 }
 0x332   : >> { %v3066_v26 = vadd.f32 %v3046_v11, %v2984_v37 }
 0x334   : >> { %v3074_v22 = vadd.f32 %v3066_v26, %v8898_v24  ;;  %v2835_v26 = vpop.f32.mrf.mxu2 }
 0x336   : >> { %v8903_v12 = vmax.f32 %v2485_v23, %v3074_v22  ;;  %v2927_v23 = vadd.f32 %v2914_v4, %v2845_v29 }
 0x337   : >> { %v2966_v5 = vpop.f32.mrf.mxu0  ;;  %v3048_v16 = vpop.f32.mrf.mxu1 }
 0x338   : >> { %v2985_v32 = vadd.f32 %v2966_v5, %v2923_v8 }
 0x33a   : >> { %v3067_v13 = vadd.f32 %v3048_v16, %v2985_v32  ;;  %v2917_v16 = vpop.f32.mrf.mxu3  ;;  %v2846_v32 = vadd.f32 %v2835_v26, %v8891_v51  ;;  %v2491_v51 = vadd.f32 %v8898_v24, %v8873_v44  ;;  %v9925_v44 = vld [vmem:[#allocation28_spill] sm:$0xff] }
 0x33c   : >> { %v3075_v58 = vadd.f32 %v3067_v13, %v8898_v24  ;;  %v2928_v13 = vadd.f32 %v2917_v16, %v2846_v32 }
 0x33e   : >> { %v8908_v39 = vmax.f32 %v2486_v20, %v3075_v58  ;;  %v2785_v20 = vadd.f32 %v8895_v15, %v2703_v59  ;;  %v2837_v58 = vpop.f32.mrf.mxu2  ;;  %v2492_v15 = vadd.f32 %v8898_v24, %v8882_v61 }
 0x33f   : >> { %v2969_v41 = vpop.f32.mrf.mxu0  ;;  %v3051_v56 = vpop.f32.mrf.mxu1 }
 0x340   : >> { %v2986_v42 = vadd.f32 %v2969_v41, %v2924_v14  ;;  %v2847_v49 = vadd.f32 %v2837_v58, %v2785_v20 }
 0x342   : >> { %v3068_v10 = vadd.f32 %v3051_v56, %v2986_v42  ;;  %v2919_v42 = vpop.f32.mrf.mxu3 }
 0x343   : >> { %v2929_v63 = vadd.f32 %v2919_v42, %v2847_v49 }
 0x344   : >> { %v3076_v48 = vadd.f32 %v3068_v10, %v8898_v24 }
 0x346   : >> { %v8913_v17 = vmax.f32 %v2487_v19, %v3076_v48 }
 0x347   : >> { %v2971_v0 = vpop.f32.mrf.mxu0  ;;  %v3053_v9 = vpop.f32.mrf.mxu1 }
 0x348   : >> { %v2987_v45 = vadd.f32 %v2971_v0, %v2925_v18 }
 0x34a   : >> { %v3069_v21 = vadd.f32 %v3053_v9, %v2987_v45 }
 0x34c   : >> { %v3077_v3 = vadd.f32 %v3069_v21, %v8898_v24 }
 0x34e   : >> { %v3085_v52 = vmax.f32 %v2488_v7, %v3077_v3 }
 0x34f   : >> { %v2974_v30 = vpop.f32.mrf.mxu0  ;;  %v3056_v11 = vpop.f32.mrf.mxu1 }
 0x350   : >> { %v2988_v35 = vadd.f32 %v2974_v30, %v2926_v36 }
 0x352   : >> { %v3070_v37 = vadd.f32 %v3056_v11, %v2988_v35  ;;  %v8967_v11 = vld [vmem:[%s9926_s7] sm:$0x1] (%p728_p11) }
 0x353   : > { %v8972_v35 = vld [vmem:[%s9817_s8] sm:$0x1] (%p728_p11) }
 0x354   : >> { %v3078_v57 = vadd.f32 %v3070_v37, %v8898_v24 }
 0x356   : >> { %v3086_v22 = vmax.f32 %v2489_v33, %v3078_v57 }
 0x357   : >> { %v2976_v8 = vpop.f32.mrf.mxu0  ;;  %v3058_v6 = vpop.f32.mrf.mxu1 }
 0x358   : >> { %v2989_v5 = vadd.f32 %v2976_v8, %v2927_v23 }
 0x35a   : >> { %v3071_v60 = vadd.f32 %v3058_v6, %v2989_v5 }
 0x35c   : >> { %v3079_v2 = vadd.f32 %v3071_v60, %v8898_v24 }
 0x35e   : >> { %v3087_v14 = vmax.f32 %v2490_v1, %v3079_v2 }
 0x35f   : >> { %v2979_v41 = vpop.f32.mrf.mxu0  ;;  %v3061_v56 = vpop.f32.mrf.mxu1 }
 0x360   : >> { %v2990_v55 = vadd.f32 %v2979_v41, %v2928_v13 }
 0x362   : >> { %v3072_v46 = vadd.f32 %v3061_v56, %v2990_v55 }
 0x364   : >> { %v3080_v40 = vadd.f32 %v3072_v46, %v8898_v24 }
 0x366   : >> { %v3088_v27 = vmax.f32 %v2491_v51, %v3080_v40 }
 0x367   : >> { %v2981_v10 = vpop.f32.mrf.mxu0  ;;  %v3063_v54 = vpop.f32.mrf.mxu1 }
 0x368   : >> { %v2991_v19 = vadd.f32 %v2981_v10, %v2929_v63 }
 0x36a   : >> { %v3073_v48 = vadd.f32 %v3063_v54, %v2991_v19 }
 0x36c   : >> { %v3081_v18 = vadd.f32 %v3073_v48, %v8898_v24 }
 0x36e   : >> { %v3089_v0 = vmax.f32 %v2492_v15, %v3081_v18 }
 0x370   : >> { %3098 = vmatpush.msra.mxu2 %v3089_v0  ;;  %3127 = vmatpush.msra.mxu3 %v3089_v0 }
 0x372   : >> { %3099 = vmatpush.msra.mxu2 %v3088_v27  ;;  %3128 = vmatpush.msra.mxu3 %v3088_v27 }
 0x374   : >> { %3100 = vmatpush.msra.mxu2 %v3087_v14  ;;  %3129 = vmatpush.msra.mxu3 %v3087_v14 }
 0x376   : >> { %3101 = vmatpush.msra.mxu2 %v3086_v22  ;;  %3130 = vmatpush.msra.mxu3 %v3086_v22 }
 0x378   : >> { %3102 = vmatpush.msra.mxu2 %v3085_v52  ;;  %3131 = vmatpush.msra.mxu3 %v3085_v52 }
 0x37a   : >> { %3103 = vmatpush.msra.mxu2 %v8913_v17  ;;  %3132 = vmatpush.msra.mxu3 %v8913_v17 }
 0x37c   : >> { %3104 = vmatpush.msra.mxu2 %v8908_v39  ;;  %3133 = vmatpush.msra.mxu3 %v8908_v39 }
 0x37e   : >> { %3105 = vmatpush.msra.mxu2 %v8903_v12  ;;  %3134 = vmatpush.msra.mxu3 %v8903_v12 }
 0x37f   : >> { %6617 = vmatmul.msk.f32.vlgmr.msra.gmra.mxu2 %vm1756_vm12, %v9915_v25  ;;  %6621 = vmatmul.msk.f32.vlgmr.msra.gmra.mxu3 %vm1756_vm12, %v9916_v28 }
 0x387   : >> { %6618 = vmatmul.msk.f32.gmra.mxu2 %vm1756_vm12, %v9917_v38  ;;  %6622 = vmatmul.msk.f32.gmra.mxu3 %vm1756_vm12, %v9918_v47 }
 0x38f   : >> { %6619 = vmatmul.msk.f32.gmra.mxu2 %vm1756_vm12, %v9920_v31  ;;  %6623 = vmatmul.msk.f32.gmra.mxu3 %vm1756_vm12, %v9921_v53 }
 0x397   : >> { %6620 = vmatmul.msk.f32.gmra.mxu2 %vm1756_vm12, %v9922_v50  ;;  %6624 = vmatmul.msk.f32.gmra.mxu3 %vm1756_vm12, %v9925_v44 }
 0x402   : >> { %v3107_v25 = vpop.f32.mrf.mxu2  ;;  %v3136_v28 = vpop.f32.mrf.mxu3 }
 0x403   : >> { %v3148_v61 = vmax.f32 %v3107_v25, %v3136_v28 }
 0x405   : >> { %v3152_v24 = vpack.c.bf16 %v3148_v61, %v3148_v61 }
 0x407   : >> { %3160 = vrot.lane.b32.xlu0 %v3152_v24, %s7771_s2 }
 0x40a   : >> { %v3110_v38 = vpop.f32.mrf.mxu2  ;;  %v3139_v47 = vpop.f32.mrf.mxu3 }
 0x40b   : >> { %v3149_v12 = vmax.f32 %v3110_v38, %v3139_v47 }
 0x40d   : >> { %v3153_v39 = vpack.c.bf16 %v3149_v12, %v3149_v12 }
 0x40f   : >> { %3162 = vrot.lane.b32.xlu0 %v3153_v39, %s7771_s2 }
 0x412   : >> { %v3113_v17 = vpop.f32.mrf.mxu2  ;;  %v3142_v9 = vpop.f32.mrf.mxu3 }
 0x413   : >> { %v3150_v45 = vmax.f32 %v3113_v17, %v3142_v9 }
 0x415   : >> { %v3154_v43 = vpack.c.bf16 %v3150_v45, %v3150_v45 }
 0x417   : >> { %3164 = vrot.lane.b32.xlu1 %v3154_v43, %s7771_s2 }
 0x41a   : >> { %v3116_v62 = vpop.f32.mrf.mxu2  ;;  %v3145_v21 = vpop.f32.mrf.mxu3 }
 0x41b   : >> { %v3151_v7 = vmax.f32 %v3116_v62, %v3145_v21 }
 0x41d   : >> { %v3155_v3 = vpack.c.bf16 %v3151_v7, %v3151_v7 }
 0x41f   : >> { %3166 = vrot.lane.b32.xlu1 %v3155_v3, %s7771_s2 }
 0x479   : >> { %v3161_v36 = vpop.permute.xlu0 %3160 }
 0x47a   : >> { %3173 = vst.msk [vmem:[%s8698_s22] sm:$0xf] %vm3172_vm3, %v3161_v36 }
 0x481   : >> { %v3163_v4 = vpop.permute.xlu0 %3162 }
 0x482   : >> { %3174 = vst.msk [vmem:[%s8698_s22 + $0x4] sm:$0xf] %vm3172_vm3, %v3163_v4 }
 0x489   : >> { %v3165_v52 = vpop.permute.xlu1 %3164 }
 0x48a   : >> { %3175 = vst.msk [vmem:[%s8698_s22 + $0x8] sm:$0xf] %vm3172_vm3, %v3165_v52 }
 0x48e   : > { %730 = sbr.rel (!%p728_p11) target bundleno = 51 (0x33), region = 258 }
 0x491   : >> { %v3167_v30 = vpop.permute.xlu1 %3166 }
 0x492   : >> { %3176 = vst.msk [vmem:[%s8698_s22 + $0xc] sm:$0xf] %vm3172_vm3, %v3167_v30 }
 0x493 LB: >> { %s9927_s6 = sld [smem:[#allocation46_spill]]  ;;  %s7387_s24 = sshll.u32 %s7760_s27, 5  ;;  %vm3231_vm4 = vcmask 130048   ;;  %vm3944_vm5 = vcmask 244736   ;;  %vm4013_vm6 = vcmask 257024   ;;  %s7760_s27 = sphi %s8974_s27, %s3184_s27  }
 0x494   : >> { %s9005_s4 = scalar_lea.vmem [#allocation2], %s7387_s24  ;;  %s7400_s22 = sshll.u32 %s7760_s27, 3  ;;  %vm4016_vm7 = vsmask.f32 3328 }
 0x495   : >> { %s4012_s26 = scalar_lea.vmem [#allocation3], %s7400_s22  ;;  %vm4017_vm8 = vmand %vm4013_vm6, %vm4016_vm7  ;;  %s3184_s27 = sadd.s32 1, %s7760_s27  }
 0x496   : >> { %p3181_p12 = scmp.ge.s32.totalorder %s3184_s27, 15  }
 0x497   : > { %s9133_s25 = smov (%p3181_p12), 0  }
 0x499   : >> { %v7388_v31 = vld [vmem:[%s9927_s6] sm:$0xff]  ;;  %v7390_v53 = vld [vmem:[%s9927_s6 + $0x10] sm:$0xff]  ;;  %v7389_v50 = vld [vmem:[%s9927_s6 + $0x8] sm:$0xff] }
 0x49a   : >> { %v8991_v29 = vld [vmem:[%s9927_s6 + $0x18] sm:$0xff]  ;;  %v8996_v37 = vld [vmem:[%s9927_s6 + $0x28] sm:$0xff]  ;;  %v9001_v33 = vld [vmem:[%s9927_s6 + $0x20] sm:$0xff]  ;;  %3278 = vmatpush.bf16.msra.mxu1 %v7388_v31  ;;  %3320 = vmatpush.bf16.msra.mxu2 %v7390_v53 }
 0x49b   : >> { %3245 = vmatpush.bf16.msra.mxu0 %v7389_v50  ;;  %3376 = vmatpush.bf16.msra.mxu3 %v8991_v29  ;;  %v7500_v26 = vld [vmem:[%s9005_s4] sm:$0xff]   ;;  %v7519_v23 = vld [vmem:[%s9005_s4 + $0x8] sm:$0xff]   ;;  %v9015_v32 = vld [vmem:[%s9005_s4 + $0x10] sm:$0xff]  }
 0x49c   : >> { %v7524_v57 = vld [vmem:[%s9005_s4] sm:$0xf0]  ;;  %v3211_v22 = vshrl.u32 %v7500_v26, 16  ;;  %v3213_v8 = vshll.u32 %v7500_v26, 16  ;;  %v7525_v6 = vld [vmem:[%s9005_s4] sm:$0xe] }
 0x49d   : >> { %6640 = vmatmul.msk.bf16.vlgmr.msra.gmra.mxu1 %vm3231_vm4, %v7500_v26  ;;  %v3218_v34 = vshll.u32 %v7519_v23, 16  ;;  %v7526_v5 = vor.u32 %v7525_v6, %v7524_v57  ;;  %v3299_v16 = vrot.slane %v7519_v23, 1  ;;  %v7396_v2 = vld [vmem:[%s9927_s6 + $0x30] sm:$0xff]  ;;  %v9025_v20 = vld [vmem:[%s9927_s6 + $0x38] sm:$0xff]  ;;  %v7522_v49 = vld [vmem:[%s9005_s4 + $0x8] sm:$0xf]  }
 0x49e   : >> { %3477 = vmatpush.bf16.msrb.mxu1 %v8996_v37  ;;  %v3215_v59 = vrot.slane %v3213_v8, 1  ;;  %6662 = vmatmul.msk.bf16.vlgmr.msra.gmra.mxu3 %vm3231_vm4, %v9015_v32  ;;  %v6654_v41 = vld [vmem:[%s9005_s4 + $0x18] sm:$0xff]   ;;  %v7539_v46 = vld [vmem:[%s9005_s4 + $0x8] sm:$0x70]  ;;  %v7629_v40 = vld [vmem:[%s9005_s4 + $0x28] sm:$0xf]  }
 0x49f   : >> { %3432 = vmatpush.bf16.msrb.mxu0 %v9001_v33  ;;  %v3220_v60 = vrot.slane %v3218_v34, 1  ;;  %v3298_v1 = vrot.slane %v7526_v5, 1  ;;  %3533 = vmatpush.bf16.msrb.mxu2 %v7396_v2  ;;  %v7729_v56 = vld [vmem:[%s9005_s4 + $0x18] sm:$0xf]   ;;  %v7736_v55 = vld [vmem:[%s9005_s4 + $0x18] sm:$0x70]  ;;  %v7523_v42 = vor.u32 %v7539_v46, %v7522_v49 }
 0x4a0   : >> { %v3216_v13 = vor.u32 %v3215_v59, %v3211_v22  ;;  %3589 = vmatpush.bf16.msrb.mxu3 %v9025_v20  ;;  %v6686_v51 = vld [vmem:[%s9005_s4 + $0x28] sm:$0xff]   ;;  %v7730_v63 = vor.u32 %v7736_v55, %v7729_v56  ;;  %v3222_v27 = vshrl.u32 %v7519_v23, 16  ;;  %v9041_v10 = vld [vmem:[%s9005_s4 + $0x20] sm:$0xff]   ;;  %v7528_v19 = vld [vmem:[%s9005_s4 + $0x10] sm:$0xf0]  ;;  %v3401_v61 = vshll.u32 %v9015_v32, 16 }
 0x4a1   : >> { %v3300_v58 = vsel %vm2020_vm14, %v3298_v1, %v3299_v16  ;;  %v7529_v54 = vld [vmem:[%s9005_s4 + $0x10] sm:$0xe]  ;;  %v3558_v15 = vshll.u32 %v9041_v10, 16  ;;  %v3556_v0 = vshrl.u32 %v9041_v10, 16  ;;  %v3563_v25 = vshll.u32 %v6686_v51, 16  ;;  %v7398_v28 = vld [vmem:[%s9927_s6 + $0x40] sm:$0xff] }
 0x4a2   : >> { %3675 = vmatpush.bf16.msra.mxu1 %v7389_v50  ;;  %6648 = vmatmul.msk.bf16.vlgmr.msra.gmra.mxu2 %vm3231_vm4, %v3300_v58  ;;  %v3221_v14 = vsel %vm1893_vm10, %v3216_v13, %v3220_v60  ;;  %v3224_v48 = vor.u32 %v3222_v27, %v3220_v60  ;;  %v7530_v18 = vor.u32 %v7529_v54, %v7528_v19  ;;  %v3456_v38 = vrot.slane %v6654_v41, 1  ;;  %v7731_v36 = vld [vmem:[%s9005_s4 + $0x28] sm:$0x70]  ;;  %v7533_v50 = vld [vmem:[%s9005_s4 + $0x20] sm:$0xe]  ;;  %v7535_v57 = vld [vmem:[%s9005_s4 + $0x30] sm:$0xff]  }
 0x4a3   : >> { %6634 = vmatmul.msk.bf16.vlgmr.msra.gmra.mxu0 %vm3231_vm4, %v3221_v14  ;;  %3694 = vmatpush.bf16.msra.mxu2 %v7388_v31  ;;  %v3560_v44 = vrot.slane %v3558_v15, 1  ;;  %v3565_v12 = vrot.slane %v3563_v25, 1  ;;  %v3399_v39 = vshrl.u32 %v9015_v32, 16  ;;  %v3403_v17 = vrot.slane %v3401_v61, 1  ;;  %v6730_v23 = vld [vmem:[%s9005_s4 + $0x38] sm:$0xff]  }
 0x4a4   : >> { %3713 = vmatpush.bf16.msra.mxu3 %v7390_v53  ;;  %v3455_v24 = vrot.slane %v7530_v18, 1  ;;  %3634 = vmatpush.bf16.msra.mxu0 %v7398_v28  ;;  %v3406_v9 = vshll.u32 %v6654_v41, 16  ;;  %v3567_v3 = vshrl.u32 %v6686_v51, 16  ;;  %v3410_v52 = vshrl.u32 %v6654_v41, 16  ;;  %v7532_v53 = vld [vmem:[%s9005_s4 + $0x20] sm:$0xf0] }
 0x4a5   : >> { %v3561_v47 = vor.u32 %v3560_v44, %v3556_v0  ;;  %v3404_v62 = vor.u32 %v3403_v17, %v3399_v39  ;;  %v7630_v30 = vor.u32 %v7731_v36, %v7629_v40  ;;  %v7734_v22 = vld [vmem:[%s9005_s4 + $0x38] sm:$0xf]   ;;  %v7737_v8 = vld [vmem:[%s9005_s4 + $0x38] sm:$0x70]  ;;  %v7536_v34 = vld [vmem:[%s9005_s4 + $0x30] sm:$0xf0] }
 0x4a6   : >> { %v3457_v45 = vsel %vm2020_vm14, %v3455_v24, %v3456_v38  ;;  %v3408_v21 = vrot.slane %v3406_v9, 1  ;;  %v3569_v4 = vor.u32 %v3567_v3, %v3565_v12  ;;  %v7735_v6 = vor.u32 %v7737_v8, %v7734_v22  ;;  %v7537_v5 = vld [vmem:[%s9005_s4 + $0x30] sm:$0xe] }
 0x4a7   : >> { %v3566_v43 = vsel %vm1893_vm10, %v3561_v47, %v3565_v12  ;;  %v3897_v60 = vrot.slane %v6730_v23, 1  ;;  %v3849_v1 = vshrl.u32 %v7535_v57, 16  ;;  %v3856_v13 = vshll.u32 %v6730_v23, 16 }
 0x4a8   : >> { %v3409_v7 = vsel %vm1893_vm10, %v3404_v62, %v3408_v21  ;;  %v3412_v31 = vor.u32 %v3410_v52, %v3408_v21 }
 0x4a9   : >> { %v3858_v41 = vrot.slane %v3856_v13, 1 }
 0x4ad   : >> { %6641 = vmatmul.msk.bf16.gmra.mxu1 %vm3231_vm4, %v7523_v42 }
 0x4ae   : >> { %6663 = vmatmul.msk.bf16.gmra.mxu3 %vm3231_vm4, %v7730_v63 }
 0x4b2   : >> { %6649 = vmatmul.msk.bf16.gmra.mxu2 %vm3231_vm4, %v3299_v16  ;;  %v7538_v16 = vor.u32 %v7537_v5, %v7536_v34 }
 0x4b3   : >> { %6635 = vmatmul.msk.bf16.gmra.mxu0 %vm3231_vm4, %v3224_v48  ;;  %v3860_v48 = vshrl.u32 %v6730_v23, 16 }
 0x4b4   : >> { %v3896_v59 = vrot.slane %v7538_v16, 1 }
 0x4b5   : >> { %v3862_v0 = vor.u32 %v3860_v48, %v3858_v41 }
 0x4b6   : >> { %v3898_v58 = vsel %vm2020_vm14, %v3896_v59, %v3897_v60 }
 0x4bd   : >> { %6680 = vmatmul.msk.bf16.vlgmr.msrb.gmra.mxu1 %vm3231_vm4, %v3457_v45 }
 0x4be   : >> { %3759 = vmatpush.bf16.msrb.mxu1 %v9001_v33  ;;  %6703 = vmatmul.msk.bf16.vlgmr.msrb.gmra.mxu3 %vm3231_vm4, %v3566_v43  ;;  %v3613_v33 = vrot.slane %v6686_v51, 1 }
 0x4bf   : >> { %3829 = vmatpush.bf16.msrb.mxu3 %v7396_v2 }
 0x4c2   : >> { %6694 = vmatmul.msk.bf16.vlgmr.msrb.gmra.mxu2 %vm3231_vm4, %v9041_v10 }
 0x4c3   : >> { %6671 = vmatmul.msk.bf16.vlgmr.msrb.gmra.mxu0 %vm3231_vm4, %v3409_v7  ;;  %3782 = vmatpush.bf16.msrb.mxu2 %v8996_v37  ;;  %v7534_v37 = vor.u32 %v7533_v50, %v7532_v53 }
 0x4c4   : >> { %3736 = vmatpush.bf16.msrb.mxu0 %v8991_v29 }
 0x4c5   : >> { %v3612_v29 = vrot.slane %v7534_v37, 1 }
 0x4c7   : >> { %v3614_v26 = vsel %vm2020_vm14, %v3612_v29, %v3613_v33 }
 0x4cd   : >> { %6681 = vmatmul.msk.bf16.gmra.mxu1 %vm3231_vm4, %v3456_v38 }
 0x4ce   : >> { %6704 = vmatmul.msk.bf16.gmra.mxu3 %vm3231_vm4, %v3569_v4 }
 0x4d2   : >> { %6695 = vmatmul.msk.bf16.gmra.mxu2 %vm3231_vm4, %v7630_v30 }
 0x4d3   : >> { %6672 = vmatmul.msk.bf16.gmra.mxu0 %vm3231_vm4, %v3412_v31 }
 0x4dd   : >> { %6714 = vmatmul.msk.bf16.vlgmr.msra.gmra.mxu1 %vm3231_vm4, %v3409_v7 }
 0x4de   : >> { %3912 = vmatpush.bf16.msra.mxu1 %v7398_v28  ;;  %6718 = vmatmul.msk.bf16.vlgmr.msra.gmra.mxu3 %vm3231_vm4, %v3457_v45 }
 0x4e2   : >> { %6716 = vmatmul.msk.bf16.vlgmr.msra.gmra.mxu2 %vm3231_vm4, %v9015_v32  ;;  %v3851_v32 = vshll.u32 %v7535_v57, 16 }
 0x4e3   : >> { %6712 = vmatmul.msk.bf16.vlgmr.msra.gmra.mxu0 %vm3231_vm4, %v3614_v26 }
 0x4e4   : >> { %3876 = vmatpush.bf16.msra.mxu0 %v9025_v20  ;;  %v3853_v2 = vrot.slane %v3851_v32, 1 }
 0x4e6   : >> { %v3854_v14 = vor.u32 %v3853_v2, %v3849_v1 }
 0x4e8   : >> { %v3859_v55 = vsel %vm1893_vm10, %v3854_v14, %v3858_v41 }
 0x4ed   : >> { %6715 = vmatmul.msk.bf16.gmra.mxu1 %vm3231_vm4, %v3412_v31 }
 0x4ee   : >> { %6719 = vmatmul.msk.bf16.gmra.mxu3 %vm3231_vm4, %v3456_v38 }
 0x4f2   : >> { %6717 = vmatmul.msk.bf16.gmra.mxu2 %vm3231_vm4, %v7730_v63 }
 0x4f3   : >> { %6713 = vmatmul.msk.bf16.gmra.mxu0 %vm3231_vm4, %v3613_v33 }
 0x4fd   : >> { %6722 = vmatmul.msk.bf16.vlgmr.msrb.gmra.mxu1 %vm3231_vm4, %v3566_v43 }
 0x4fe   : >> { %6732 = vmatmul.msk.bf16.vlgmr.msrb.gmra.mxu3 %vm3231_vm4, %v7535_v57 }
 0x502   : >> { %6724 = vmatmul.msk.bf16.vlgmr.msrb.gmra.mxu2 %vm3231_vm4, %v3614_v26 }
 0x503   : >> { %6720 = vmatmul.msk.bf16.vlgmr.msrb.gmra.mxu0 %vm3231_vm4, %v9041_v10 }
 0x50d   : >> { %6723 = vmatmul.msk.bf16.gmra.mxu1 %vm3231_vm4, %v3569_v4 }
 0x50e   : >> { %6733 = vmatmul.msk.bf16.gmra.mxu3 %vm3231_vm4, %v7735_v6 }
 0x512   : >> { %6725 = vmatmul.msk.bf16.gmra.mxu2 %vm3231_vm4, %v3613_v33 }
 0x513   : >> { %6721 = vmatmul.msk.bf16.gmra.mxu0 %vm3231_vm4, %v7630_v30 }
 0x51a   : >> { %v3280_v20 = vpop.f32.mrf.mxu1 }
 0x51d   : >> { %6738 = vmatmul.msk.bf16.vlgmr.msra.gmra.mxu1 %vm3231_vm4, %v3898_v58 }
 0x520   : >> { %v3247_v56 = vpop.f32.mrf.mxu0 }
 0x521   : >> { %v3281_v49 = vadd.f32 %v3280_v20, %v3247_v56  ;;  %v3378_v42 = vpop.f32.mrf.mxu3 }
 0x522   : >> { %v3282_v46 = vpop.f32.mrf.mxu1 }
 0x523   : >> { %6735 = vmatmul.msk.bf16.vlgmr.msra.gmra.mxu0 %vm3231_vm4, %v3859_v55 }
 0x525   : >> { %v3322_v51 = vpop.f32.mrf.mxu2 }
 0x526   : >> { %v3332_v40 = vadd.f32 %v3322_v51, %v3281_v49 }
 0x528   : >> { %v3388_v63 = vadd.f32 %v3378_v42, %v3332_v40  ;;  %v3249_v27 = vpop.f32.mrf.mxu0 }
 0x529   : >> { %v3283_v10 = vadd.f32 %v3282_v46, %v3249_v27  ;;  %v3380_v54 = vpop.f32.mrf.mxu3 }
 0x52a   : >> { %v3285_v19 = vpop.f32.mrf.mxu1 }
 0x52d   : >> { %6739 = vmatmul.msk.bf16.gmra.mxu1 %vm3231_vm4, %v3897_v60  ;;  %v3324_v15 = vpop.f32.mrf.mxu2 }
 0x52e   : >> { %v3333_v18 = vadd.f32 %v3324_v15, %v3283_v10 }
 0x530   : >> { %v3389_v44 = vadd.f32 %v3380_v54, %v3333_v18  ;;  %v3252_v25 = vpop.f32.mrf.mxu0 }
 0x531   : >> { %v3286_v28 = vadd.f32 %v3285_v19, %v3252_v25  ;;  %v3383_v24 = vpop.f32.mrf.mxu3 }
 0x532   : >> { %v3287_v61 = vpop.f32.mrf.mxu1 }
 0x533   : >> { %6736 = vmatmul.msk.bf16.gmra.mxu0 %vm3231_vm4, %v3862_v0 }
 0x535   : >> { %v3327_v38 = vpop.f32.mrf.mxu2 }
 0x536   : >> { %v3334_v47 = vadd.f32 %v3327_v38, %v3286_v28 }
 0x538   : >> { %v3390_v12 = vadd.f32 %v3383_v24, %v3334_v47  ;;  %v3254_v39 = vpop.f32.mrf.mxu0 }
 0x539   : >> { %v3288_v17 = vadd.f32 %v3287_v61, %v3254_v39  ;;  %v3385_v45 = vpop.f32.mrf.mxu3 }
 0x53a   : >> { %v3479_v9 = vpop.f32.mrf.mxu1 }
 0x53d   : >> { %v3329_v43 = vpop.f32.mrf.mxu2 }
 0x53e   : >> { %v3335_v62 = vadd.f32 %v3329_v43, %v3288_v17 }
 0x540   : >> { %v3391_v21 = vadd.f32 %v3385_v45, %v3335_v62  ;;  %v3434_v7 = vpop.f32.mrf.mxu0 }
 0x541   : >> { %v3444_v3 = vadd.f32 %v3434_v7, %v3388_v63  ;;  %v3591_v4 = vpop.f32.mrf.mxu3 }
 0x542   : >> { %v3481_v36 = vpop.f32.mrf.mxu1 }
 0x543   : >> { %v3489_v52 = vadd.f32 %v3479_v9, %v3444_v3 }
 0x545   : >> { %v3535_v30 = vpop.f32.mrf.mxu2 }
 0x546   : >> { %v3545_v31 = vadd.f32 %v3535_v30, %v3489_v52 }
 0x548   : >> { %v3601_v53 = vadd.f32 %v3591_v4, %v3545_v31  ;;  %v3436_v50 = vpop.f32.mrf.mxu0 }
 0x549   : >> { %v3445_v37 = vadd.f32 %v3436_v50, %v3389_v44  ;;  %v3593_v33 = vpop.f32.mrf.mxu3  ;;  %v3651_v50 = vperm.slane %v8967_v11, 0 }
 0x54a   : >> { %v3484_v29 = vpop.f32.mrf.mxu1 }
 0x54b   : >> { %v3490_v26 = vadd.f32 %v3481_v36, %v3445_v37 }
 0x54d   : >> { %v3537_v57 = vpop.f32.mrf.mxu2 }
 0x54e   : >> { %v3546_v23 = vadd.f32 %v3537_v57, %v3490_v26 }
 0x550   : >> { %v3602_v22 = vadd.f32 %v3593_v33, %v3546_v23  ;;  %v3439_v8 = vpop.f32.mrf.mxu0  ;;  %v3658_v23 = vperm.slane %v8972_v35, 0 }
 0x551   : >> { %v3446_v6 = vadd.f32 %v3439_v8, %v3390_v12  ;;  %v3596_v16 = vpop.f32.mrf.mxu3 }
 0x552   : >> { %v3486_v34 = vpop.f32.mrf.mxu1 }
 0x553   : >> { %v3491_v5 = vadd.f32 %v3484_v29, %v3446_v6 }
 0x555   : >> { %v3540_v32 = vpop.f32.mrf.mxu2 }
 0x556   : >> { %v3547_v59 = vadd.f32 %v3540_v32, %v3491_v5 }
 0x558   : >> { %v3603_v60 = vadd.f32 %v3596_v16, %v3547_v59  ;;  %v3441_v1 = vpop.f32.mrf.mxu0 }
 0x559   : >> { %v3447_v2 = vadd.f32 %v3441_v1, %v3391_v21  ;;  %v3598_v14 = vpop.f32.mrf.mxu3 }
 0x55a   : >> { %v3677_v13 = vpop.f32.mrf.mxu1 }
 0x55b   : >> { %v3492_v20 = vadd.f32 %v3486_v34, %v3447_v2 }
 0x55d   : >> { %v3542_v58 = vpop.f32.mrf.mxu2 }
 0x55e   : >> { %v3548_v41 = vadd.f32 %v3542_v58, %v3492_v20 }
 0x560   : >> { %v3604_v56 = vadd.f32 %v3598_v14, %v3548_v41  ;;  %v3636_v55 = vpop.f32.mrf.mxu0 }
 0x561   : >> { %v3646_v49 = vadd.f32 %v3636_v55, %v3601_v53  ;;  %v3715_v27 = vpop.f32.mrf.mxu3 }
 0x562   : >> { %v3679_v46 = vpop.f32.mrf.mxu1 }
 0x563   : >> { %v3653_v57 = vmul.f32 %v3651_v50, %v3646_v49 }
 0x565   : >> { %v3696_v51 = vpop.f32.mrf.mxu2  ;;  %v3660_v59 = vadd.f32 %v3658_v23, %v3653_v57 }
 0x566   : >> { %v3697_v17 = vadd.f32 %v3696_v51, %v3677_v13 }
 0x567   : >> { %v3664_v41 = vmax.f32 %v3660_v59, 0.0 }
 0x568   : >> { %v3638_v42 = vpop.f32.mrf.mxu0  ;;  %v3725_v45 = vadd.f32 %v3715_v27, %v3697_v17 }
 0x569   : >> { %v3647_v40 = vadd.f32 %v3638_v42, %v3602_v22  ;;  %v3717_v15 = vpop.f32.mrf.mxu3 }
 0x56a   : >> { %v3682_v63 = vpop.f32.mrf.mxu1 }
 0x56b   : >> { %v3654_v55 = vmul.f32 %v3651_v50, %v3647_v40 }
 0x56d   : >> { %v3698_v48 = vpop.f32.mrf.mxu2 }
 0x56e   : >> { %v3699_v7 = vadd.f32 %v3698_v48, %v3679_v46 }
 0x570   : >> { %v3641_v10 = vpop.f32.mrf.mxu0  ;;  %v3726_v52 = vadd.f32 %v3717_v15, %v3699_v7  ;;  %v3661_v15 = vadd.f32 %v3658_v23, %v3654_v55 }
 0x571   : >> { %v9105_v19 = vadd.f32 %v3641_v10, %v3603_v60  ;;  %v3720_v24 = vpop.f32.mrf.mxu3 }
 0x572   : >> { %v3684_v54 = vpop.f32.mrf.mxu1 }
 0x575   : >> { %v3701_v25 = vpop.f32.mrf.mxu2 }
 0x576   : >> { %v3702_v29 = vadd.f32 %v3701_v25, %v3682_v63 }
 0x578   : >> { %v3643_v18 = vpop.f32.mrf.mxu0  ;;  %v3727_v6 = vadd.f32 %v3720_v24, %v3702_v29 }
 0x579   : >> { %v9107_v0 = vadd.f32 %v3643_v18, %v3604_v56  ;;  %v3722_v39 = vpop.f32.mrf.mxu3 }
 0x57a   : >> { %v3761_v44 = vpop.f32.mrf.mxu1 }
 0x57d   : >> { %v3703_v38 = vpop.f32.mrf.mxu2 }
 0x57e   : >> { %v3704_v60 = vadd.f32 %v3703_v38, %v3684_v54  ;;  %v3665_v38 = vmax.f32 %v3661_v15, 0.0 }
 0x580   : >> { %v3738_v28 = vpop.f32.mrf.mxu0  ;;  %v3728_v49 = vadd.f32 %v3722_v39, %v3704_v60 }
 0x581   : >> { %v3748_v21 = vadd.f32 %v3738_v28, %v3725_v45  ;;  %v3831_v3 = vpop.f32.mrf.mxu3 }
 0x582   : >> { %v3763_v61 = vpop.f32.mrf.mxu1 }
 0x583   : >> { %v3771_v36 = vadd.f32 %v3761_v44, %v3748_v21  ;;  %v3656_v21 = vmul.f32 %v3651_v50, %v9107_v0 }
 0x585   : >> { %v3784_v43 = vpop.f32.mrf.mxu2 }
 0x586   : >> { %v3794_v30 = vadd.f32 %v3784_v43, %v3771_v36 }
 0x588   : >> { %v3740_v47 = vpop.f32.mrf.mxu0  ;;  %v3841_v33 = vadd.f32 %v3831_v3, %v3794_v30 }
 0x589   : >> { %v3749_v31 = vadd.f32 %v3740_v47, %v3726_v52  ;;  %v3833_v22 = vpop.f32.mrf.mxu3  ;;  %v3663_v52 = vadd.f32 %v3658_v23, %v3656_v21 }
 0x58a   : >> { %v3766_v12 = vpop.f32.mrf.mxu1 }
 0x58b   : >> { %v3772_v26 = vadd.f32 %v3763_v61, %v3749_v31  ;;  %v3667_v29 = vmax.f32 %v3663_v52, 0.0 }
 0x58d   : >> { %v3786_v53 = vpop.f32.mrf.mxu2 }
 0x58e   : >> { %v3795_v5 = vadd.f32 %v3786_v53, %v3772_v26 }
 0x590   : >> { %v3743_v9 = vpop.f32.mrf.mxu0  ;;  %v3842_v20 = vadd.f32 %v3833_v22, %v3795_v5 }
 0x591   : >> { %v3750_v16 = vadd.f32 %v3743_v9, %v3727_v6  ;;  %v3836_v51 = vpop.f32.mrf.mxu3 }
 0x592   : >> { %v3768_v62 = vpop.f32.mrf.mxu1 }
 0x593   : >> { %v3773_v58 = vadd.f32 %v3766_v12, %v3750_v16 }
 0x595   : >> { %v3789_v1 = vpop.f32.mrf.mxu2 }
 0x596   : >> { %v3796_v63 = vadd.f32 %v3789_v1, %v3773_v58  ;;  %v4018_v1 = vld [vmem:[%s4012_s26 + $0x4] sm:$0xf]  ;;  %v9131_v58 = vld [vmem:[%s9820_s11] sm:$0x1] (%p3181_p12) }
 0x598   : >> { %v3745_v4 = vpop.f32.mrf.mxu0  ;;  %v3843_v54 = vadd.f32 %v3836_v51, %v3796_v63 }
 0x599   : >> { %v3751_v27 = vadd.f32 %v3745_v4, %v3728_v49  ;;  %v3838_v17 = vpop.f32.mrf.mxu3 }
 0x59a   : >> { %v3914_v37 = vpop.f32.mrf.mxu1 }
 0x59b   : >> { %v3774_v44 = vadd.f32 %v3768_v62, %v3751_v27  ;;  %v3655_v62 = vmul.f32 %v3651_v50, %v9105_v19  ;;  %v9928_v19 = vld [vmem:[#allocation21_spill] sm:$0xff] }
 0x59d   : >> { %v3791_v25 = vpop.f32.mrf.mxu2  ;;  %v3662_v53 = vadd.f32 %v3658_v23, %v3655_v62 }
 0x59e   : >> { %v3797_v40 = vadd.f32 %v3791_v25, %v3774_v44 }
 0x59f   : >> { %v3666_v57 = vmax.f32 %v3662_v53, 0.0 }
 0x5a0   : >> { %v3878_v8 = vpop.f32.mrf.mxu0  ;;  %v3844_v45 = vadd.f32 %v3838_v17, %v3797_v40 }
 0x5a1   : >> { %v3888_v34 = vadd.f32 %v3878_v8, %v3841_v33  ;;  %v9931_v8 = vld [vmem:[#allocation26_spill] sm:$0xff] }
 0x5a2   : >> { %v3916_v13 = vpop.f32.mrf.mxu1 }
 0x5a3   : >> { %v3924_v32 = vadd.f32 %v3914_v37, %v3888_v34 }
 0x5a5   : >> { %v3928_v2 = vmul.f32 %v3924_v32, %v3651_v50 }
 0x5a7   : >> { %v3932_v14 = vadd.f32 %v3928_v2, %v3658_v23 }
 0x5a8   : >> { %v3880_v56 = vpop.f32.mrf.mxu0 }
 0x5a9   : >> { %v3889_v46 = vadd.f32 %v3880_v56, %v3842_v20  ;;  %v3936_v42 = vmax.f32 %v3932_v14, 0.0  ;;  %v9126_v20 = vld [vmem:[%s9819_s10] sm:$0x1] (%p3181_p12) }
 0x5aa   : >> { %v3919_v61 = vpop.f32.mrf.mxu1 }
 0x5ab   : >> { %v3925_v10 = vadd.f32 %v3916_v13, %v3889_v46  ;;  %v3940_v48 = vmax.f32 %v3664_v41, %v3936_v42 }
 0x5ad   : >> { %v3929_v18 = vmul.f32 %v3925_v10, %v3651_v50 }
 0x5af   : >> { %v3933_v28 = vadd.f32 %v3929_v18, %v3658_v23 }
 0x5b0   : >> { %v3883_v24 = vpop.f32.mrf.mxu0 }
 0x5b1   : >> { %v3890_v47 = vadd.f32 %v3883_v24, %v3843_v54  ;;  %v3937_v12 = vmax.f32 %v3933_v28, 0.0 }
 0x5b2   : >> { %v3921_v36 = vpop.f32.mrf.mxu1 }
 0x5b3   : >> { %v3941_v39 = vmax.f32 %v3665_v38, %v3937_v12  ;;  %v3926_v9 = vadd.f32 %v3919_v61, %v3890_v47 }
 0x5b5   : >> { %v3930_v7 = vmul.f32 %v3926_v9, %v3651_v50 }
 0x5b7   : >> { %v3934_v31 = vadd.f32 %v3930_v7, %v3658_v23 }
 0x5b8   : >> { %v3885_v43 = vpop.f32.mrf.mxu0 }
 0x5b9   : >> { %v3891_v3 = vadd.f32 %v3885_v43, %v3844_v45  ;;  %v3938_v26 = vmax.f32 %v3934_v31, 0.0 }
 0x5bb   : >> { %v3927_v4 = vadd.f32 %v3921_v36, %v3891_v3  ;;  %v3942_v0 = vmax.f32 %v3666_v57, %v3938_v26 }
 0x5bd   : >> { %v3931_v30 = vmul.f32 %v3927_v4, %v3651_v50  ;;  %v9929_v50 = vld [vmem:[#allocation25_spill] sm:$0xff] }
 0x5bf   : >> { %v3935_v37 = vadd.f32 %v3931_v30, %v3658_v23  ;;  %v9930_v23 = vld [vmem:[#allocation22_spill] sm:$0xff] }
 0x5c1   : >> { %v3939_v33 = vmax.f32 %v3935_v37, 0.0 }
 0x5c3   : >> { %v3943_v22 = vmax.f32 %v3667_v29, %v3939_v33 }
 0x5c5   : >> { %6740 = vmatpush.msk.msra.mxu2 %vm2176_vm11, %v3943_v22  ;;  %6743 = vmatpush.msk.msra.mxu3 %vm2176_vm11, %v3943_v22 }
 0x5c7   : >> { %3968 = vmatpush.msra.mxu2 %v3942_v0  ;;  %3997 = vmatpush.msra.mxu3 %v3942_v0 }
 0x5c9   : >> { %3969 = vmatpush.msra.mxu2 %v3941_v39  ;;  %3998 = vmatpush.msra.mxu3 %v3941_v39 }
 0x5cb   : >> { %3970 = vmatpush.msra.mxu2 %v3940_v48  ;;  %3999 = vmatpush.msra.mxu3 %v3940_v48 }
 0x5cc   : >> { %6741 = vmatmul.msk.f32.vlgmr.msra.gmra.mxu2 %vm3944_vm5, %v9928_v19  ;;  %6744 = vmatmul.msk.f32.vlgmr.msra.gmra.mxu3 %vm3944_vm5, %v9929_v50 }
 0x5d4   : >> { %6742 = vmatmul.msk.f32.gmra.mxu2 %vm3944_vm5, %v9930_v23  ;;  %6745 = vmatmul.msk.f32.gmra.mxu3 %vm3944_vm5, %v9931_v8 }
 0x64f   : >> { %v3972_v6 = vpop.f32.mrf.mxu2  ;;  %v4001_v34 = vpop.f32.mrf.mxu3 }
 0x650   : >> { %v4007_v5 = vmax.f32 %v3972_v6, %v4001_v34 }
 0x652   : >> { %v4009_v16 = vpack.c.bf16 %v4007_v5, %v4007_v5 }
 0x654   : >> { %4014 = vst.msk [vmem:[%s4012_s26] sm:$0xf] %vm4013_vm6, %v4009_v16 }
 0x657   : >> { %v3975_v32 = vpop.f32.mrf.mxu2  ;;  %v4004_v59 = vpop.f32.mrf.mxu3 }
 0x658   : >> { %v4008_v60 = vmax.f32 %v3975_v32, %v4004_v59 }
 0x659   : > { %3183 = sbr.rel (!%p3181_p12) target bundleno = 1171 (0x493), region = 269 }
 0x65a   : >> { %v4010_v2 = vpack.c.bf16 %v4008_v60, %v4008_v60 }
 0x65c   : >> { %v4019_v13 = vsel %vm4017_vm8, %v4010_v2, %v4018_v1 }
 0x65d   : >> { %4020 = vst [vmem:[%s4012_s26 + $0x4] sm:$0xf] %v4019_v13 }
 0x65e LB: >> { %v7405_v11 = vld [vmem:[%s9818_s9 + $0x8] sm:$0xff]  ;;  %v9147_v14 = vld [vmem:[%s9818_s9 + $0x38] sm:$0xff]  ;;  %v9155_v56 = vld [vmem:[%s9818_s9] sm:$0xff]  ;;  %s7402_s24 = sshll.u32 %s7764_s25, 4  ;;  %vm4068_vm9 = vcmask 261120   ;;  %vm4618_vm10 = vcmask 105472   ;;  %s7764_s25 = sphi %s9133_s25, %s4028_s25  }
 0x65f   : >> { %v7410_v35 = vld [vmem:[%s9818_s9 + $0x28] sm:$0xff]  ;;  %v7407_v41 = vld [vmem:[%s9818_s9 + $0x18] sm:$0xff]  ;;  %4106 = vmatpush.bf16.msra.mxu1 %v7405_v11  ;;  %v9160_v55 = vld [vmem:[%s9818_s9 + $0x20] sm:$0xff]  ;;  %4195 = vmatpush.bf16.msra.mxu3 %v9147_v14  ;;  %s9187_s29 = scalar_lea.vmem [#allocation3], %s7402_s24  ;;  %vm4673_vm11 = vcmask 387072  }
 0x660   : >> { %4148 = vmatpush.bf16.msra.mxu2 %v7410_v35  ;;  %v9165_v49 = vld [vmem:[%s9818_s9 + $0x30] sm:$0xff]  ;;  %4078 = vmatpush.bf16.msra.mxu0 %v7407_v41  ;;  %v9175_v42 = vld [vmem:[%s9818_s9 + $0x58] sm:$0xff]  ;;  %v9180_v51 = vld [vmem:[%s9818_s9 + $0x68] sm:$0xff] }
 0x661   : >> { %v7406_v46 = vld [vmem:[%s9818_s9 + $0x10] sm:$0xff]  ;;  %v9185_v63 = vld [vmem:[%s9818_s9 + $0x78] sm:$0xff]  ;;  %v7416_v38 = vld [vmem:[%s9818_s9 + $0x48] sm:$0xff] }
 0x662   : >> { %v7418_v12 = vld [vmem:[%s9818_s9 + $0x50] sm:$0xff]  ;;  %v7422_v40 = vld [vmem:[%s9818_s9 + $0x60] sm:$0xff]  ;;  %v7428_v3 = vld [vmem:[%s9818_s9 + $0x88] sm:$0xff] }
 0x663   : >> { %4107 = vmatpush.bf16.msra.mxu1 %v9155_v56  ;;  %4196 = vmatpush.bf16.msra.mxu3 %v9165_v49  ;;  %v7424_v9 = vld [vmem:[%s9818_s9 + $0x70] sm:$0xff]  ;;  %v7415_v7 = vld [vmem:[%s9818_s9 + $0x40] sm:$0xff] }
 0x664   : >> { %v6756_v27 = vld [vmem:[%s9187_s29] sm:$0xf]  ;;  %v7403_v10 = vld [vmem:[%s9187_s29] sm:$0x70]  ;;  %v6803_v54 = vld [vmem:[%s9187_s29 + $0x8] sm:$0xf]  ;;  %4149 = vmatpush.bf16.msra.mxu2 %v9160_v55  ;;  %4079 = vmatpush.bf16.msra.mxu0 %v7406_v46 }
 0x665   : >> { %v6782_v48 = vld [vmem:[%s9187_s29] sm:$0xe]  ;;  %v6757_v15 = vor.u32 %v7403_v10, %v6756_v27  ;;  %v7408_v18 = vld [vmem:[%s9187_s29] sm:$0xf0]  ;;  %v7412_v44 = vld [vmem:[%s9187_s29 + $0x8] sm:$0x70] }
 0x666   : >> { %v6783_v25 = vor.u32 %v7408_v18, %v6782_v48  ;;  %v9197_v28 = vor.u32 %v7412_v44, %v6803_v54  ;;  %v6856_v39 = vld [vmem:[%s9187_s29 + $0x10] sm:$0xf]  ;;  %v7421_v45 = vld [vmem:[%s9187_s29 + $0x10] sm:$0x70]  ;;  %v6835_v36 = vld [vmem:[%s9187_s29 + $0x8] sm:$0xe] }
 0x667   : >> { %v4050_v61 = vshrl.u32 %v6757_v15, 16  ;;  %v4052_v24 = vshll.u32 %v6757_v15, 16  ;;  %4281 = vmatpush.bf16.msrb.mxu1 %v9175_v42  ;;  %4370 = vmatpush.bf16.msrb.mxu3 %v9185_v63  ;;  %v6857_v43 = vor.u32 %v7421_v45, %v6856_v39  ;;  %v7417_v62 = vld [vmem:[%s9187_s29 + $0x8] sm:$0xf0]  ;;  %v7427_v52 = vld [vmem:[%s9818_s9 + $0x80] sm:$0xff] }
 0x668   : >> { %v4126_v47 = vrot.slane %v6783_v25, 1  ;;  %4328 = vmatpush.bf16.msrb.mxu2 %v9180_v51  ;;  %6775 = vmatmul.msk.bf16.vlgmr.msra.gmra.mxu1 %vm4068_vm9, %v6757_v15  ;;  %v6836_v30 = vor.u32 %v7417_v62, %v6835_v36  ;;  %v4212_v31 = vshll.u32 %v9197_v28, 16  ;;  %v4210_v33 = vshrl.u32 %v9197_v28, 16  ;;  %v6888_v0 = vld [vmem:[%s9187_s29 + $0x10] sm:$0xe] }
 0x669   : >> { %v4054_v17 = vrot.slane %v4052_v24, 1  ;;  %6813 = vmatmul.msk.bf16.vlgmr.msra.gmra.mxu3 %vm4068_vm9, %v9197_v28  ;;  %4237 = vmatpush.bf16.msrb.mxu0 %v7416_v38  ;;  %v4345_v4 = vshll.u32 %v6857_v43, 16  ;;  %v4343_v53 = vshrl.u32 %v6857_v43, 16  ;;  %v7426_v19 = vld [vmem:[%s9187_s29 + $0x10] sm:$0xf0] }
 0x66a   : >> { %6792 = vmatmul.msk.bf16.vlgmr.msra.gmra.mxu2 %vm4068_vm9, %v4126_v47  ;;  %v4259_v29 = vrot.slane %v6836_v30, 1  ;;  %v4214_v26 = vrot.slane %v4212_v31, 1  ;;  %v6889_v50 = vor.u32 %v7426_v19, %v6888_v0  ;;  %v6911_v8 = vld [vmem:[%s9187_s29 + $0x18] sm:$0xf]  ;;  %v7430_v6 = vld [vmem:[%s9187_s29 + $0x18] sm:$0x70] }
 0x66b   : >> { %v4055_v21 = vor.u32 %v4054_v17, %v4050_v61  ;;  %4282 = vmatpush.bf16.msrb.mxu1 %v7418_v12  ;;  %4371 = vmatpush.bf16.msrb.mxu3 %v7424_v9  ;;  %v4347_v37 = vrot.slane %v4345_v4, 1  ;;  %v6912_v34 = vor.u32 %v7430_v6, %v6911_v8  ;;  %v6919_v5 = vld [vmem:[%s9187_s29 + $0x18] sm:$0xe]  ;;  %v7431_v16 = vld [vmem:[%s9187_s29 + $0x18] sm:$0xf0]  ;;  %s6926_s29 = sshll.u32 %s7764_s25, 2 }
 0x66c   : >> { %4329 = vmatpush.bf16.msrb.mxu2 %v7422_v40  ;;  %v4215_v22 = vor.u32 %v4214_v26, %v4210_v33  ;;  %v4392_v23 = vrot.slane %v6889_v50, 1  ;;  %v6920_v32 = vor.u32 %v7431_v16, %v6919_v5  ;;  %s4672_s2 = scalar_lea.vmem [#allocation4], %s6926_s29  ;;  %s4028_s25 = sadd.s32 1, %s7764_s25  }
 0x66d   : >> { %6766 = vmatmul.msk.bf16.vlgmr.msra.gmra.mxu0 %vm4068_vm9, %v4055_v21  ;;  %v4348_v57 = vor.u32 %v4347_v37, %v4343_v53  ;;  %v4560_v59 = vshll.u32 %v6912_v34, 16  ;;  %v4558_v1 = vshrl.u32 %v6912_v34, 16  ;;  %p4025_p13 = scmp.ge.s32.totalorder %s4028_s25, 6  }
 0x66e   : >> { %4238 = vmatpush.bf16.msrb.mxu0 %v7415_v7  ;;  %v4590_v60 = vrot.slane %v6920_v32, 1  ;;  %s9283_s26 = smov (%p4025_p13), 0  }
 0x66f   : >> { %4442 = vmatpush.bf16.msra.mxu1 %v7407_v41  ;;  %4470 = vmatpush.bf16.msra.mxu3 %v7410_v35  ;;  %v4562_v2 = vrot.slane %v4560_v59, 1 }
 0x670   : >> { %4456 = vmatpush.bf16.msra.mxu2 %v7405_v11 }
 0x671   : >> { %v4563_v13 = vor.u32 %v4562_v2, %v4558_v1 }
 0x672   : >> { %4414 = vmatpush.bf16.msra.mxu0 %v7428_v3 }
 0x673   : >> { %4443 = vmatpush.bf16.msra.mxu1 %v7406_v46  ;;  %4471 = vmatpush.bf16.msra.mxu3 %v9160_v55 }
 0x674   : >> { %4457 = vmatpush.bf16.msra.mxu2 %v9155_v56 }
 0x676   : >> { %4415 = vmatpush.bf16.msra.mxu0 %v7427_v52 }
 0x678   : >> { %6845 = vmatmul.msk.bf16.vlgmr.msrb.gmra.mxu1 %vm4068_vm9, %v4259_v29 }
 0x679   : >> { %6879 = vmatmul.msk.bf16.vlgmr.msrb.gmra.mxu3 %vm4068_vm9, %v4348_v57  ;;  %4502 = vmatpush.bf16.msrb.mxu1 %v7416_v38 }
 0x67a   : >> { %6866 = vmatmul.msk.bf16.vlgmr.msrb.gmra.mxu2 %vm4068_vm9, %v6857_v43  ;;  %4548 = vmatpush.bf16.msrb.mxu3 %v9180_v51 }
 0x67b   : >> { %4518 = vmatpush.bf16.msrb.mxu2 %v9175_v42 }
 0x67d   : >> { %6826 = vmatmul.msk.bf16.vlgmr.msrb.gmra.mxu0 %vm4068_vm9, %v4215_v22  ;;  %4503 = vmatpush.bf16.msrb.mxu1 %v7415_v7 }
 0x67e   : >> { %4486 = vmatpush.bf16.msrb.mxu0 %v9147_v14  ;;  %4549 = vmatpush.bf16.msrb.mxu3 %v7422_v40 }
 0x67f   : >> { %4519 = vmatpush.bf16.msrb.mxu2 %v7418_v12 }
 0x682   : >> { %4487 = vmatpush.bf16.msrb.mxu0 %v9165_v49 }
 0x688   : >> { %6899 = vmatmul.msk.bf16.vlgmr.msra.gmra.mxu1 %vm4068_vm9, %v4215_v22 }
 0x689   : >> { %6901 = vmatmul.msk.bf16.vlgmr.msra.gmra.mxu3 %vm4068_vm9, %v4259_v29  ;;  %4600 = vmatpush.bf16.msra.mxu1 %v7428_v3 }
 0x68a   : >> { %6900 = vmatmul.msk.bf16.vlgmr.msra.gmra.mxu2 %vm4068_vm9, %v9197_v28 }
 0x68d   : >> { %6898 = vmatmul.msk.bf16.vlgmr.msra.gmra.mxu0 %vm4068_vm9, %v4392_v23  ;;  %4601 = vmatpush.bf16.msra.mxu1 %v7427_v52 }
 0x68e   : >> { %4573 = vmatpush.bf16.msra.mxu0 %v9185_v63 }
 0x692   : >> { %4574 = vmatpush.bf16.msra.mxu0 %v7424_v9 }
 0x698   : >> { %6903 = vmatmul.msk.bf16.vlgmr.msrb.gmra.mxu1 %vm4068_vm9, %v4348_v57 }
 0x699   : >> { %6913 = vmatmul.msk.bf16.vlgmr.msrb.gmra.mxu3 %vm4068_vm9, %v6912_v34 }
 0x69a   : >> { %6904 = vmatmul.msk.bf16.vlgmr.msrb.gmra.mxu2 %vm4068_vm9, %v4392_v23 }
 0x69d   : >> { %6902 = vmatmul.msk.bf16.vlgmr.msrb.gmra.mxu0 %vm4068_vm9, %v6857_v43 }
 0x6a8   : >> { %6921 = vmatmul.msk.bf16.vlgmr.msra.gmra.mxu1 %vm4068_vm9, %v4590_v60 }
 0x6ad   : >> { %6914 = vmatmul.msk.bf16.vlgmr.msra.gmra.mxu0 %vm4068_vm9, %v4563_v13 }
 0x6e5   : >> { %v4109_v11 = vpop.f32.mrf.mxu1 }
 0x6ea   : >> { %v4081_v35 = vpop.f32.mrf.mxu0 }
 0x6eb   : >> { %v4110_v39 = vadd.f32 %v4109_v11, %v4081_v35  ;;  %v4425_v35 = vperm.slane %v9126_v20, 0 }
 0x6ec   : >> { %v4198_v41 = vpop.f32.mrf.mxu3 }
 0x6ed   : >> { %v4151_v14 = vpop.f32.mrf.mxu2  ;;  %v4111_v56 = vpop.f32.mrf.mxu1 }
 0x6ee   : >> { %v4156_v21 = vadd.f32 %v4151_v14, %v4110_v39 }
 0x6f0   : >> { %v4203_v52 = vadd.f32 %v4198_v41, %v4156_v21 }
 0x6f2   : >> { %v4083_v55 = vpop.f32.mrf.mxu0 }
 0x6f3   : >> { %v4112_v47 = vadd.f32 %v4111_v56, %v4083_v55 }
 0x6f4   : >> { %v4200_v46 = vpop.f32.mrf.mxu3 }
 0x6f5   : >> { %v4153_v49 = vpop.f32.mrf.mxu2  ;;  %v4284_v42 = vpop.f32.mrf.mxu1 }
 0x6f6   : >> { %v4157_v9 = vadd.f32 %v4153_v49, %v4112_v47  ;;  %v9933_v47 = vld [vmem:[#allocation25_spill] sm:$0xff] }
 0x6f8   : >> { %v4204_v3 = vadd.f32 %v4200_v46, %v4157_v9  ;;  %v9276_v9 = vld [vmem:[%s9822_s13] sm:$0x1] (%p4025_p13) }
 0x6fa   : >> { %v4240_v51 = vpop.f32.mrf.mxu0 }
 0x6fb   : >> { %v4245_v37 = vadd.f32 %v4240_v51, %v4203_v52  ;;  %v4430_v51 = vperm.slane %v9131_v58, 0 }
 0x6fc   : >> { %v4373_v10 = vpop.f32.mrf.mxu3 }
 0x6fd   : >> { %v4331_v63 = vpop.f32.mrf.mxu2  ;;  %v4286_v27 = vpop.f32.mrf.mxu1  ;;  %v4289_v0 = vadd.f32 %v4284_v42, %v4245_v37 }
 0x6ff   : >> { %v4336_v5 = vadd.f32 %v4331_v63, %v4289_v0 }
 0x701   : >> { %v4378_v1 = vadd.f32 %v4373_v10, %v4336_v5 }
 0x702   : >> { %v4242_v48 = vpop.f32.mrf.mxu0 }
 0x703   : >> { %v4246_v30 = vadd.f32 %v4242_v48, %v4204_v3 }
 0x704   : >> { %v4375_v54 = vpop.f32.mrf.mxu3 }
 0x705   : >> { %v4333_v15 = vpop.f32.mrf.mxu2  ;;  %v4445_v18 = vpop.f32.mrf.mxu1  ;;  %v4290_v26 = vadd.f32 %v4286_v27, %v4246_v30 }
 0x707   : >> { %v4337_v19 = vadd.f32 %v4333_v15, %v4290_v26 }
 0x709   : >> { %v4379_v32 = vadd.f32 %v4375_v54, %v4337_v19 }
 0x70a   : >> { %v4417_v44 = vpop.f32.mrf.mxu0 }
 0x70b   : >> { %v4422_v11 = vadd.f32 %v4417_v44, %v4378_v1 }
 0x70c   : >> { %v4473_v61 = vpop.f32.mrf.mxu3 }
 0x70d   : >> { %v4459_v25 = vpop.f32.mrf.mxu2  ;;  %v4447_v28 = vpop.f32.mrf.mxu1  ;;  %v4427_v42 = vmul.f32 %v4425_v35, %v4422_v11 }
 0x70e   : >> { %v4460_v12 = vadd.f32 %v4459_v25, %v4445_v18 }
 0x70f   : >> { %v4432_v10 = vadd.f32 %v4430_v51, %v4427_v42 }
 0x710   : >> { %v4478_v45 = vadd.f32 %v4473_v61, %v4460_v12 }
 0x712   : >> { %v4419_v24 = vpop.f32.mrf.mxu0 }
 0x713   : >> { %v4423_v2 = vadd.f32 %v4419_v24, %v4379_v32 }
 0x714   : >> { %v4475_v43 = vpop.f32.mrf.mxu3 }
 0x715   : >> { %v4505_v38 = vpop.f32.mrf.mxu1  ;;  %v4461_v40 = vpop.f32.mrf.mxu2  ;;  %v4428_v56 = vmul.f32 %v4425_v35, %v4423_v2 }
 0x716   : >> { %v4462_v36 = vadd.f32 %v4461_v40, %v4447_v28  ;;  %v4434_v28 = vmax.f32 %v4432_v10, 0.0 }
 0x717   : >> { %v4433_v27 = vadd.f32 %v4430_v51, %v4428_v56 }
 0x718   : >> { %v4479_v29 = vadd.f32 %v4475_v43, %v4462_v36 }
 0x719   : >> { %v4435_v54 = vmax.f32 %v4433_v27, 0.0 }
 0x71a   : >> { %v4489_v17 = vpop.f32.mrf.mxu0 }
 0x71b   : >> { %v4494_v7 = vadd.f32 %v4489_v17, %v4478_v45  ;;  %v9281_v45 = vld [vmem:[%s9823_s14] sm:$0x1] (%p4025_p13) }
 0x71c   : >> { %v4551_v33 = vpop.f32.mrf.mxu3 }
 0x71d   : >> { %v4521_v62 = vpop.f32.mrf.mxu2  ;;  %v4507_v4 = vpop.f32.mrf.mxu1  ;;  %v4510_v31 = vadd.f32 %v4505_v38, %v4494_v7  ;;  %v9932_v38 = vld [vmem:[#allocation21_spill] sm:$0xff] }
 0x71f   : >> { %v4526_v57 = vadd.f32 %v4521_v62, %v4510_v31 }
 0x721   : >> { %v4556_v50 = vadd.f32 %v4551_v33, %v4526_v57 }
 0x722   : >> { %v4491_v53 = vpop.f32.mrf.mxu0 }
 0x723   : >> { %v4495_v22 = vadd.f32 %v4491_v53, %v4479_v29 }
 0x724   : >> { %v4553_v60 = vpop.f32.mrf.mxu3 }
 0x725   : >> { %v4511_v23 = vadd.f32 %v4507_v4, %v4495_v22  ;;  %v4523_v8 = vpop.f32.mrf.mxu2  ;;  %v4603_v6 = vpop.f32.mrf.mxu1 }
 0x727   : >> { %v4527_v59 = vadd.f32 %v4523_v8, %v4511_v23 }
 0x729   : >> { %v4557_v14 = vadd.f32 %v4553_v60, %v4527_v59 }
 0x72a   : >> { %v4576_v34 = vpop.f32.mrf.mxu0 }
 0x72b   : >> { %v4581_v16 = vadd.f32 %v4576_v34, %v4556_v50 }
 0x72d   : >> { %v4608_v13 = vadd.f32 %v4603_v6, %v4581_v16  ;;  %v4605_v46 = vpop.f32.mrf.mxu1 }
 0x72f   : >> { %v4610_v55 = vmul.f32 %v4608_v13, %v4425_v35 }
 0x731   : >> { %v4612_v15 = vadd.f32 %v4610_v55, %v4430_v51 }
 0x732   : >> { %v4578_v41 = vpop.f32.mrf.mxu0 }
 0x733   : >> { %v4582_v49 = vadd.f32 %v4578_v41, %v4557_v14  ;;  %v4614_v25 = vmax.f32 %v4612_v15, 0.0 }
 0x735   : >> { %v4609_v63 = vadd.f32 %v4605_v46, %v4582_v49  ;;  %v4616_v24 = vmax.f32 %v4434_v28, %v4614_v25 }
 0x737   : >> { %v4611_v48 = vmul.f32 %v4609_v63, %v4425_v35 }
 0x739   : >> { %v4613_v18 = vadd.f32 %v4611_v48, %v4430_v51 }
 0x73b   : >> { %v4615_v44 = vmax.f32 %v4613_v18, 0.0 }
 0x73d   : >> { %v4617_v61 = vmax.f32 %v4435_v54, %v4615_v44 }
 0x73f   : >> { %6922 = vmatpush.msk.msra.mxu2 %vm2332_vm0, %v4617_v61  ;;  %6924 = vmatpush.msk.msra.mxu3 %vm2332_vm0, %v4617_v61 }
 0x741   : >> { %4641 = vmatpush.msra.mxu2 %v4616_v24  ;;  %4664 = vmatpush.msra.mxu3 %v4616_v24 }
 0x742   : >> { %6923 = vmatmul.msk.f32.vlgmr.msra.gmra.mxu2 %vm4618_vm10, %v9932_v38  ;;  %6925 = vmatmul.msk.f32.vlgmr.msra.gmra.mxu3 %vm4618_vm10, %v9933_v47 }
 0x7c5   : >> { %v4643_v12 = vpop.f32.mrf.mxu2  ;;  %v4666_v40 = vpop.f32.mrf.mxu3 }
 0x7c6   : >> { %v4669_v39 = vmax.f32 %v4643_v12, %v4666_v40  ;;  %4027 = sbr.rel (!%p4025_p13) target bundleno = 1630 (0x65e), region = 280 }
 0x7c8   : >> { %v4670_v17 = vpack.c.bf16 %v4669_v39, %v4669_v39 }
 0x7ca   : >> { %4674 = vst.msk [vmem:[%s4672_s2] sm:$0x7] %vm4673_vm11, %v4670_v17 }
 0x7cb LB: >> { %v7440_v20 = vld [vmem:[%s9821_s12 + $0x40] sm:$0xff]  ;;  %v7437_v58 = vld [vmem:[%s9821_s12 + $0x28] sm:$0xff]  ;;  %v7434_v43 = vld [vmem:[%s9821_s12 + $0x10] sm:$0xff]  ;;  %s6927_s4 = sshll.u32 %s7768_s26, 2  ;;  %vm4728_vm13 = vcmask 392192   ;;  %vm5130_vm14 = vcmask 517120   ;;  %s7768_s26 = sphi %s9283_s26, %s4682_s26  }
 0x7cc   : >> { %v7443_v21 = vld [vmem:[%s9821_s12 + $0x58] sm:$0xff]  ;;  %4817 = vmatpush.bf16.msra.mxu2 %v7440_v20  ;;  %4737 = vmatpush.bf16.msra.mxu0 %v7437_v58  ;;  %v7436_v3 = vld [vmem:[%s9821_s12 + $0x20] sm:$0xff]  ;;  %v7433_v36 = vld [vmem:[%s9821_s12 + $0x8] sm:$0xff]  ;;  %s9313_s27 = scalar_lea.vmem [#allocation4], %s6927_s4 }
 0x7cd   : >> { %v7439_v7 = vld [vmem:[%s9821_s12 + $0x38] sm:$0xff]  ;;  %4771 = vmatpush.bf16.msra.mxu1 %v7434_v43  ;;  %4863 = vmatpush.bf16.msra.mxu3 %v7443_v21  ;;  %v7442_v62 = vld [vmem:[%s9821_s12 + $0x50] sm:$0xff]  ;;  %v7432_v29 = vld [vmem:[%s9821_s12] sm:$0xff] }
 0x7ce   : >> { %v7438_v53 = vld [vmem:[%s9821_s12 + $0x30] sm:$0xff]  ;;  %v7435_v37 = vld [vmem:[%s9821_s12 + $0x18] sm:$0xff]  ;;  %v7441_v33 = vld [vmem:[%s9821_s12 + $0x48] sm:$0xff] }
 0x7cf   : >> { %v7446_v22 = vld [vmem:[%s9821_s12 + $0x70] sm:$0xff]  ;;  %v7452_v0 = vld [vmem:[%s9821_s12 + $0xa0] sm:$0xff]  ;;  %v7455_v8 = vld [vmem:[%s9821_s12 + $0xb8] sm:$0xff] }
 0x7d0   : >> { %4818 = vmatpush.bf16.msra.mxu2 %v7439_v7  ;;  %4738 = vmatpush.bf16.msra.mxu0 %v7436_v3  ;;  %v7449_v59 = vld [vmem:[%s9821_s12 + $0x88] sm:$0xff]  ;;  %v7451_v13 = vld [vmem:[%s9821_s12 + $0x98] sm:$0xff]  ;;  %v7454_v35 = vld [vmem:[%s9821_s12 + $0xb0] sm:$0xff] }
 0x7d1   : >> { %v4779_v4 = vld [vmem:[%s9313_s27] sm:$0x6]  ;;  %4772 = vmatpush.bf16.msra.mxu1 %v7433_v36  ;;  %4864 = vmatpush.bf16.msra.mxu3 %v7442_v62  ;;  %v7000_v6 = vld [vmem:[%s9313_s27 + $0x4] sm:$0x7]  ;;  %v7061_v34 = vld [vmem:[%s9313_s27 + $0x8] sm:$0x7] }
 0x7d2   : >> { %v4692_v52 = vld [vmem:[%s9313_s27] sm:$0x7]  ;;  %v4788_v30 = vunpack.c.l.b16 %v4779_v4  ;;  %v6980_v32 = vld [vmem:[%s9313_s27 + $0x4] sm:$0x3]  ;;  %v4881_v60 = vunpack.c.l.b16 %v7000_v6  ;;  %v5027_v1 = vunpack.c.l.b16 %v7061_v34  ;;  %v7445_v2 = vld [vmem:[%s9821_s12 + $0x68] sm:$0xff]  ;;  %v5119_v6 = vperm.slane %v9276_v9, 0 }
 0x7d3   : >> { %v4701_v31 = vunpack.c.l.b16 %v4692_v52  ;;  %v4685_v16 = vld [vmem:[%s9313_s27] sm:$0x3]  ;;  %v7020_v55 = vld [vmem:[%s9313_s27 + $0x4] sm:$0x6]  ;;  %v7450_v46 = vld [vmem:[%s9821_s12 + $0x90] sm:$0xff] }
 0x7d4   : >> { %v4789_v26 = vpack.c.b16 %v4788_v30, %v4788_v30  ;;  %4819 = vmatpush.bf16.msra.mxu2 %v7438_v53  ;;  %4739 = vmatpush.bf16.msra.mxu0 %v7435_v37  ;;  %v5028_v14 = vpack.c.b16 %v5027_v1, %v5027_v1  ;;  %v7448_v41 = vld [vmem:[%s9821_s12 + $0x80] sm:$0xff]  ;;  %v4882_v56 = vpack.c.b16 %v4881_v60, %v4881_v60  ;;  %v7453_v42 = vld [vmem:[%s9821_s12 + $0xa8] sm:$0xff]  ;;  %v7458_v51 = vld [vmem:[%s9821_s12 + $0xd0] sm:$0xff]  ;;  %v4934_v27 = vunpack.c.l.b16 %v7020_v55 }
 0x7d5   : >> { %v4702_v57 = vpack.c.b16 %v4701_v31, %v4701_v31  ;;  %4773 = vmatpush.bf16.msra.mxu1 %v7432_v29  ;;  %4865 = vmatpush.bf16.msra.mxu3 %v7441_v33  ;;  %v7444_v49 = vld [vmem:[%s9821_s12 + $0x60] sm:$0xff]  ;;  %v7447_v48 = vld [vmem:[%s9821_s12 + $0x78] sm:$0xff]  ;;  %v7457_v10 = vld [vmem:[%s9821_s12 + $0xc8] sm:$0xff] }
 0x7d6   : >> { %v4790_v19 = vrot.slane %v4789_v26, 1  ;;  %v5032_v63 = vshll.u32 %v5028_v14, 16  ;;  %v4886_v15 = vshll.u32 %v4882_v56, 16  ;;  %v5030_v18 = vshrl.u32 %v5028_v14, 16  ;;  %v7456_v61 = vld [vmem:[%s9821_s12 + $0xc0] sm:$0xff] }
 0x7d7   : >> { %v4704_v50 = vshrl.u32 %v4702_v57, 16  ;;  %v4706_v23 = vshll.u32 %v4702_v57, 16  ;;  %v4935_v44 = vpack.c.b16 %v4934_v27, %v4934_v27  ;;  %v4884_v25 = vshrl.u32 %v4882_v56, 16  ;;  %v7041_v24 = vld [vmem:[%s9313_s27 + $0x8] sm:$0x3] }
 0x7d8   : >> { %4916 = vmatpush.bf16.msrb.mxu0 %v7446_v22  ;;  %5009 = vmatpush.bf16.msrb.mxu2 %v7452_v0  ;;  %v5034_v54 = vrot.slane %v5032_v63, 1  ;;  %v4888_v28 = vrot.slane %v4886_v15, 1  ;;  %v7081_v40 = vld [vmem:[%s9313_s27 + $0x8] sm:$0x6]  ;;  %s7101_s27 = sshll.u32 %s7768_s26, 1  ;;  %s4682_s26 = sadd.s32 1, %s7768_s26  }
 0x7d9   : >> { %v4708_v5 = vrot.slane %v4706_v23, 1  ;;  %6978 = vmatmul.msk.bf16.vlgmr.msra.gmra.mxu2 %vm4728_vm13, %v4790_v19  ;;  %5062 = vmatpush.bf16.msrb.mxu3 %v7455_v8  ;;  %v4936_v47 = vrot.slane %v4935_v44, 1  ;;  %v5080_v39 = vunpack.c.l.b16 %v7081_v40  ;;  %s5129_s0 = scalar_lea.vmem [#allocation5], %s7101_s27  ;;  %p4679_p0 = scmp.ge.s32.totalorder %s4682_s26, 4  }
 0x7da   : >> { %6959 = vmatmul.msk.bf16.vlgmr.msra.gmra.mxu1 %vm4728_vm13, %v4685_v16  ;;  %6999 = vmatmul.msk.bf16.vlgmr.msra.gmra.mxu3 %vm4728_vm13, %v6980_v32  ;;  %v5035_v38 = vor.u32 %v5034_v54, %v5030_v18  ;;  %v4889_v12 = vor.u32 %v4888_v28, %v4884_v25  ;;  %v5123_v16 = vperm.slane %v9281_v45, 0  ;;  %v9414_v14 = vld [vmem:[%s9824_s15 + $0x78] sm:$0xff] (%p4679_p0)  ;;  %v9421_v9 = vld [vmem:[%s9824_s15 + $0x30] sm:$0xff] (%p4679_p0)  ;;  %v9469_v63 = vld [vmem:[%s9824_s15 + $0x20] sm:$0xff] (%p4679_p0)  ;;  %vm5663_vm15 = vcmask (%p4679_p0), 654336   ;;  %s9934_s25 = scalar_lea.vmem (%p4679_p0), [#allocation6], %s7931_s23  ;;  %s5965_s29 = scalar_lea.hbm (%p4679_p0), %s9829_s20, %s7903_s3 }
 0x7db   : >> { %v4709_v11 = vor.u32 %v4708_v5, %v4704_v50  ;;  %4963 = vmatpush.bf16.msrb.mxu1 %v7449_v59  ;;  %v5081_v17 = vpack.c.b16 %v5080_v39, %v5080_v39  ;;  %v9426_v45 = vld [vmem:[%s9824_s15 + $0x50] sm:$0xff] (%p4679_p0)  ;;  %v9474_v27 = vld [vmem:[%s9824_s15 + $0x40] sm:$0xff] (%p4679_p0)  ;;  %v9491_v18 = vld [vmem:[%s9824_s15 + $0x98] sm:$0xff] (%p4679_p0)  ;;  %vm5659_vm0 = vcmask (%p4679_p0), 648192   ;;  %vm5926_vm1 = vcmask (%p4679_p0), 39936   ;;  %s9935_s2 = smov (%p4679_p0), %s9934_s25  ;;  %s5969_s26 = sshll.u32 (%p4679_p0), %s5965_s29, 4  ;;  %s5970_s26 = int_to_ptr.hbm [resolvable:$true] %s5969_s26 }
 0x7dc   : >> { %4917 = vmatpush.bf16.msrb.mxu0 %v7445_v2  ;;  %5010 = vmatpush.bf16.msrb.mxu2 %v7451_v13  ;;  %v9399_v13 = vld [vmem:[%s9824_s15 + $0x38] sm:$0xff] (%p4679_p0)  ;;  %v9438_v56 = vld [vmem:[%s9824_s15 + $0x70] sm:$0xff] (%p4679_p0)  ;;  %v9486_v15 = vld [vmem:[%s9824_s15 + $0x60] sm:$0xff] (%p4679_p0)  ;;  %vm5924_vm2 = vcmask (%p4679_p0), 32768   ;;  %s5967_s6 = sshll.u32 (%p4679_p0), %s9935_s2, 4  ;;  %s5953_s30 = scalar_lea.sflag (%p4679_p0), [#allocation7], %s7931_s23  ;;  %s5968_s6 = int_to_ptr.vmem [resolvable:$true] %s5967_s6 }
 0x7dd   : >> { %6946 = vmatmul.msk.bf16.vlgmr.msra.gmra.mxu0 %vm4728_vm13, %v4709_v11  ;;  %5063 = vmatpush.bf16.msrb.mxu3 %v7454_v35  ;;  %v5082_v20 = vrot.slane %v5081_v17, 1  ;;  %v9404_v11 = vld [vmem:[%s9824_s15 + $0x58] sm:$0xff] (%p4679_p0)  ;;  %v9519_v40 = vld [vmem:[%s9824_s15 + $0xd0] sm:$0xff] (%p4679_p0)  ;;  %s7645_s27 = sshra.s32 (%p4679_p0), %s5970_s26, 4  ;;  %s7646_s27 = int_to_ptr.hbm [resolvable:$true] %s7645_s27 }
 0x7de   : > { %v9409_v35 = vld [vmem:[%s9824_s15 + $0x18] sm:$0xff] (%p4679_p0)  ;;  %v9525_v39 = vld [vmem:[%s9824_s15 + $0x90] sm:$0xff] (%p4679_p0)  ;;  %p7652_p4 = scmp.lt.s32.totalorder (%p4679_p0), %s7646_s27, %s9829_s20 }
 0x7df   : >> { %4964 = vmatpush.bf16.msrb.mxu1 %v7448_v41  ;;  %v9433_v41 = vld [vmem:[%s9824_s15 + $0x10] sm:$0xff] (%p4679_p0)  ;;  %v9496_v54 = vld [vmem:[%s9824_s15 + $0xd8] sm:$0xff] (%p4679_p0) }
 0x7e0   : >> { %4918 = vmatpush.bf16.msrb.mxu0 %v7444_v49  ;;  %5011 = vmatpush.bf16.msrb.mxu2 %v7450_v46  ;;  %v9445_v49 = vld [vmem:[%s9824_s15 + $0x28] sm:$0xff] (%p4679_p0)  ;;  %v9501_v25 = vld [vmem:[%s9824_s15 + $0xb8] sm:$0xff] (%p4679_p0)  ;;  %v9530_v17 = vld [vmem:[%s9824_s15 + $0xb0] sm:$0xff] (%p4679_p0) }
 0x7e1   : >> { %5064 = vmatpush.bf16.msrb.mxu3 %v7453_v42  ;;  %v9450_v46 = vld [vmem:[%s9824_s15 + $0x48] sm:$0xff] (%p4679_p0)  ;;  %v9506_v28 = vld [vmem:[%s9824_s15 + $0xf8] sm:$0xff] (%p4679_p0) }
 0x7e2   : > { %v9457_v42 = vld [vmem:[%s9824_s15 + $0x8] sm:$0xff] (%p4679_p0) }
 0x7e3   : >> { %4965 = vmatpush.bf16.msrb.mxu1 %v7447_v48  ;;  %v9481_v48 = vld [vmem:[%s9824_s15] sm:$0xff] (%p4679_p0) }
 0x7e4   : >> { %5109 = vmatpush.bf16.msra.mxu0 %v7458_v51  ;;  %5300 = vmatpush.bf16.msra.mxu2 (%p4679_p0), %v9404_v11  ;;  %v9462_v51 = vld [vmem:[%s9824_s15 + $0x68] sm:$0xff] (%p4679_p0) }
 0x7e5   : > { %5352 = vmatpush.bf16.msra.mxu3 (%p4679_p0), %v9414_v14 }
 0x7e7   : > { %5245 = vmatpush.bf16.msra.mxu1 (%p4679_p0), %v9409_v35 }
 0x7e8   : >> { %5110 = vmatpush.bf16.msra.mxu0 %v7457_v10  ;;  %5301 = vmatpush.bf16.msra.mxu2 (%p4679_p0), %v9426_v45 }
 0x7e9   : >> { %7060 = vmatmul.msk.bf16.vlgmr.msrb.gmra.mxu2 %vm4728_vm13, %v7041_v24  ;;  %5353 = vmatpush.bf16.msra.mxu3 (%p4679_p0), %v9438_v56 }
 0x7ea   : >> { %7080 = vmatmul.msk.bf16.vlgmr.msrb.gmra.mxu3 %vm4728_vm13, %v5035_v38  ;;  %7039 = vmatmul.msk.bf16.vlgmr.msrb.gmra.mxu1 %vm4728_vm13, %v4936_v47 }
 0x7eb   : > { %5246 = vmatpush.bf16.msra.mxu1 (%p4679_p0), %v9433_v41 }
 0x7ec   : >> { %5111 = vmatpush.bf16.msra.mxu0 %v7456_v61  ;;  %5302 = vmatpush.bf16.msra.mxu2 (%p4679_p0), %v9450_v46 }
 0x7ed   : >> { %7019 = vmatmul.msk.bf16.vlgmr.msrb.gmra.mxu0 %vm4728_vm13, %v4889_v12  ;;  %5354 = vmatpush.bf16.msra.mxu3 (%p4679_p0), %v9462_v51 }
 0x7ef   : > { %5247 = vmatpush.bf16.msra.mxu1 (%p4679_p0), %v9457_v42 }
 0x7f0   : > { %5303 = vmatpush.bf16.msra.mxu2 (%p4679_p0), %v9474_v27 }
 0x7f1   : > { %5355 = vmatpush.bf16.msra.mxu3 (%p4679_p0), %v9486_v15 }
 0x7f3   : > { %5248 = vmatpush.bf16.msra.mxu1 (%p4679_p0), %v9481_v48 }
 0x7f4   : > { %5520 = vmatpush.bf16.msrb.mxu2 (%p4679_p0), %v9496_v54 }
 0x7f5   : > { %5580 = vmatpush.bf16.msrb.mxu3 (%p4679_p0), %v9506_v28 }
 0x7f7   : > { %5468 = vmatpush.bf16.msrb.mxu1 (%p4679_p0), %v9501_v25 }
 0x7f8   : > { %5521 = vmatpush.bf16.msrb.mxu2 (%p4679_p0), %v9519_v40 }
 0x7fb   : > { %5469 = vmatpush.bf16.msrb.mxu1 (%p4679_p0), %v9530_v17 }
 0x7fd   : >> { %7100 = vmatmul.msk.bf16.vlgmr.msra.gmra.mxu0 %vm4728_vm13, %v5082_v20 }
 0x7fe   : > { %5205 = vmatpush.bf16.msra.mxu0 (%p4679_p0), %v9399_v13 }
 0x802   : > { %5206 = vmatpush.bf16.msra.mxu0 (%p4679_p0), %v9421_v9 }
 0x806   : > { %5207 = vmatpush.bf16.msra.mxu0 (%p4679_p0), %v9445_v49 }
 0x80a   : > { %5208 = vmatpush.bf16.msra.mxu0 (%p4679_p0), %v9469_v63 }
 0x80e   : > { %5412 = vmatpush.bf16.msrb.mxu0 (%p4679_p0), %v9491_v18 }
 0x812   : > { %5413 = vmatpush.bf16.msrb.mxu0 (%p4679_p0), %v9525_v39 }
 0x857   : >> { %v4775_v58 = vpop.f32.mrf.mxu1 }
 0x85a   : >> { %v4741_v43 = vpop.f32.mrf.mxu0 }
 0x85b   : >> { %v4776_v62 = vadd.f32 %v4775_v58, %v4741_v43  ;;  %v9539_v58 = vld [vmem:[%s9824_s15 + $0xf0] sm:$0xff] (%p4679_p0) }
 0x85c   : >> { %v4821_v21 = vpop.f32.mrf.mxu2  ;;  %5581 = vmatpush.bf16.msrb.mxu3 (%p4679_p0), %v9539_v58 }
 0x85d   : >> { %v4867_v7 = vpop.f32.mrf.mxu3  ;;  %v4825_v52 = vadd.f32 %v4821_v21, %v4776_v62  ;;  %v9561_v62 = vld [vmem:[%s9824_s15 + $0xa8] sm:$0xff] (%p4679_p0) }
 0x85e   : > { %5470 = vmatpush.bf16.msrb.mxu1 (%p4679_p0), %v9561_v62 }
 0x85f   : >> { %v4777_v3 = vpop.f32.mrf.mxu1  ;;  %v4871_v37 = vadd.f32 %v4867_v7, %v4825_v52  ;;  %v9550_v7 = vld [vmem:[%s9824_s15 + $0x88] sm:$0xff] (%p4679_p0)  ;;  %v9575_v52 = vld [vmem:[%s9824_s15 + $0x80] sm:$0xff] (%p4679_p0) }
 0x860   : > { %v9555_v3 = vld [vmem:[%s9824_s15 + $0xc8] sm:$0xff] (%p4679_p0)  ;;  %5414 = vmatpush.bf16.msrb.mxu0 (%p4679_p0), %v9550_v7 }
 0x861   : > { %5522 = vmatpush.bf16.msrb.mxu2 (%p4679_p0), %v9555_v3 }
 0x862   : >> { %v4743_v36 = vpop.f32.mrf.mxu0 }
 0x864   : >> { %v4823_v4 = vpop.f32.mrf.mxu2  ;;  %5415 = vmatpush.bf16.msrb.mxu0 (%p4679_p0), %v9575_v52 }
 0x865   : >> { %v4869_v30 = vpop.f32.mrf.mxu3  ;;  %v9567_v4 = vld [vmem:[%s9824_s15 + $0xe8] sm:$0xff] (%p4679_p0) }
 0x866   : > { %v9580_v30 = vld [vmem:[%s9824_s15 + $0xc0] sm:$0xff] (%p4679_p0)  ;;  %5582 = vmatpush.bf16.msrb.mxu3 (%p4679_p0), %v9567_v4 }
 0x867   : >> { %v4967_v31 = vpop.f32.mrf.mxu1  ;;  %5523 = vmatpush.bf16.msrb.mxu2 (%p4679_p0), %v9580_v30 }
 0x86a   : >> { %v4920_v53 = vpop.f32.mrf.mxu0 }
 0x86b   : >> { %v4924_v29 = vadd.f32 %v4920_v53, %v4871_v37  ;;  %v9591_v53 = vld [vmem:[%s9824_s15 + $0x118] sm:$0xff] (%p4679_p0) }
 0x86c   : >> { %v5013_v33 = vpop.f32.mrf.mxu2 }
 0x86d   : >> { %v5066_v26 = vpop.f32.mrf.mxu3  ;;  %v4971_v57 = vadd.f32 %v4967_v31, %v4924_v29  ;;  %v9586_v31 = vld [vmem:[%s9824_s15 + $0xa0] sm:$0xff] (%p4679_p0) }
 0x86e   : > { %v9599_v29 = vld [vmem:[%s9824_s15 + $0xe0] sm:$0xff] (%p4679_p0)  ;;  %5471 = vmatpush.bf16.msrb.mxu1 (%p4679_p0), %v9586_v31 }
 0x86f   : >> { %v4969_v22 = vpop.f32.mrf.mxu1  ;;  %v5017_v19 = vadd.f32 %v5013_v33, %v4971_v57  ;;  %5583 = vmatpush.bf16.msrb.mxu3 (%p4679_p0), %v9599_v29 }
 0x870   : > { %v7493_v22 = vld [vmem:[%s9824_s15 + $0x110] sm:$0xff] (%p4679_p0) }
 0x871   : >> { %v5070_v8 = vadd.f32 %v5066_v26, %v5017_v19 }
 0x872   : >> { %v4922_v0 = vpop.f32.mrf.mxu0 }
 0x874   : >> { %v5015_v50 = vpop.f32.mrf.mxu2 }
 0x875   : >> { %v5068_v23 = vpop.f32.mrf.mxu3  ;;  %v7492_v50 = vld [vmem:[%s9824_s15 + $0x108] sm:$0xff] (%p4679_p0) }
 0x87a   : >> { %v5113_v34 = vpop.f32.mrf.mxu0 }
 0x87b   : >> { %v5117_v5 = vadd.f32 %v5113_v34, %v5070_v8 }
 0x87d   : >> { %v5121_v32 = vmul.f32 %v5119_v6, %v5117_v5  ;;  %v7491_v5 = vld [vmem:[%s9824_s15 + $0x100] sm:$0xff] (%p4679_p0) }
 0x87f   : >> { %v5125_v59 = vadd.f32 %v5123_v16, %v5121_v32 }
 0x881   : >> { %v5126_v60 = vmax.f32 %v5125_v59, 0.0  ;;  %4681 = sbr.rel (!%p4679_p0) target bundleno = 1995 (0x7cb), region = 291 }
 0x882   : >> { %v5115_v1 = vpop.f32.mrf.mxu0 }
 0x883   : >> { %v5127_v2 = vpack.c.bf16 %v5126_v60, %v5126_v60 }
 0x885   : >> { %5131 = vst.msk [vmem:[%s5129_s0] sm:$0x3] %vm5130_vm14, %v5127_v2  ;;  %s7647_s0 = scalar_lea.hbm (%p4679_p0), %s7646_s27, 1 }
 0x886   : > { %p7648_p1 = scmp.ne.s32.totalorder %s7646_s27, %s7647_s0 }
 0x888   : > { %p7649_p2 = pnand %p7648_p1, %p7920_p5 }
 0x88a   : > { %p7650_p3 = pneg %p7649_p2 }
 0x88c   : > { %v5154_v55 = vld [vmem:[#allocation5] sm:$0x3]  ;;  %v9512_v47 = vld [vmem:[#allocation5 + $0x2] sm:$0x1]  ;;  %v9594_v37 = vld [vmem:[#allocation5 + $0x2] sm:$0x2] }
 0x88d   : > { %5165 = vst [vmem:[#allocation1] ss:$4 sm:$0xff] %v5154_v55  ;;  %v5254_v10 = vld [vmem:[#allocation5] sm:$0x2]  ;;  %v5145_v38 = vld [vmem:[#allocation5] sm:$0x1]  ;;  %7193 = vmatmul.msk.bf16.vlgmr.msra.gmra.mxu3 %vm1756_vm12, %v9512_v47 }
 0x88e   : > { %7143 = vmatmul.msk.bf16.vlgmr.msra.gmra.mxu1 %vm1756_vm12, %v5145_v38  ;;  %v9541_v43 = vld [vmem:[#allocation5 + $0x2] sm:$0x3]  ;;  %5725 = vmatpush.bf16.msra.mxu3 %v9409_v35  ;;  %v5530_v23 = vld [vmem:[#allocation5 + $0x4] sm:$0x3]  ;;  %v9660_v55 = vld [vmem:[%s9828_s19 + $0x48] sm:$0xff] }
 0x88f   : > { %v9618_v8 = vld [vmem:[#allocation5 + $0x4] sm:$0x1]  ;;  %v5590_v16 = vld [vmem:[#allocation5 + $0x4] sm:$0x2]  ;;  %5673 = vmatpush.msra.mxu1 %v9660_v55 }
 0x890   : > { %v9702_v38 = vld [vmem:[%s9828_s19 + $0x18] sm:$0xff] }
 0x892   : > { %5726 = vmatpush.bf16.msra.mxu3 %v9433_v41 }
 0x894   : > { %v5166_v44 = vld.sshfl [vmem:[#allocation1] sm:$0xff pattern:$0x73625140] }
 0x895   : > { %v5167_v61 = vshrl.u32 %v5166_v44, 16  ;;  %v5169_v24 = vshll.u32 %v5166_v44, 16  ;;  %5265 = vst [vmem:[#allocation1] ss:$4 sm:$0xff] %v5254_v10 }
 0x896   : > { %5727 = vmatpush.bf16.msra.mxu3 %v9457_v42 }
 0x897   : > { %v5171_v12 = vrot.slane %v5169_v24, 1 }
 0x899   : > { %v5172_v20 = vor.u32 %v5171_v12, %v5167_v61  ;;  %v5834_v61 = vld [vmem:[#allocation5 + $0x6] sm:$0x3]  ;;  %v9709_v12 = vld [vmem:[%s9828_s19 + $0x10] sm:$0xff] }
 0x89a   : > { %5728 = vmatpush.bf16.msra.mxu3 %v9481_v48  ;;  %v9681_v48 = vld [vmem:[%s9828_s19 + $0x30] sm:$0xff] }
 0x89b   : > { %7126 = vmatmul.msk.bf16.vlgmr.msra.gmra.mxu0 %vm1756_vm12, %v5172_v20 }
 0x89c   : > { %v5266_v21 = vld.sshfl [vmem:[#allocation1] sm:$0xff pattern:$0x73625140]  ;;  %5636 = vmatpush.bf16.msra.mxu0 %v9591_v53 }
 0x89d   : > { %v5268_v36 = vrot.slane %v5266_v21, 1  ;;  %5373 = vst [vmem:[#allocation1] ss:$4 sm:$0xff] %v9541_v43  ;;  %v5135_v21 = vld [vmem:[%s9828_s19] sm:$0xff] }
 0x89f   : > { %7168 = vmatmul.msk.bf16.vlgmr.msra.gmra.mxu2 %vm1756_vm12, %v5268_v36 }
 0x8a0   : > { %5712 = vmatpush.bf16.msra.mxu2 %v9399_v13  ;;  %5637 = vmatpush.bf16.msra.mxu0 %v7493_v22 }
 0x8a4   : > { %v5374_v33 = vld.sshfl [vmem:[#allocation1] sm:$0xff pattern:$0x73625140]  ;;  %5713 = vmatpush.bf16.msra.mxu2 %v9421_v9  ;;  %5638 = vmatpush.bf16.msra.mxu0 %v7492_v50 }
 0x8a5   : > { %v5375_v26 = vshrl.u32 %v5374_v33, 16  ;;  %v5377_v57 = vshll.u32 %v5374_v33, 16  ;;  %5433 = vst [vmem:[#allocation1] ss:$4 sm:$0xff] %v9594_v37  ;;  %v5816_v33 = vld [vmem:[#allocation5 + $0x6] sm:$0x1] }
 0x8a7   : > { %v5379_v0 = vrot.slane %v5377_v57, 1 }
 0x8a8   : > { %5714 = vmatpush.bf16.msra.mxu2 %v9445_v49  ;;  %5639 = vmatpush.bf16.msra.mxu0 %v7491_v5  ;;  %v9665_v49 = vld [vmem:[%s9828_s19 + $0x40] sm:$0xff] }
 0x8a9   : > { %v5380_v19 = vor.u32 %v5379_v0, %v5375_v26  ;;  %5674 = vmatpush.msra.mxu1 %v9665_v49 }
 0x8ab   : > { %7218 = vmatmul.msk.bf16.vlgmr.msrb.gmra.mxu0 %vm1756_vm12, %v5380_v19 }
 0x8ac   : > { %v5434_v6 = vld.sshfl [vmem:[#allocation1] sm:$0xff pattern:$0x73625140]  ;;  %5715 = vmatpush.bf16.msra.mxu2 %v9469_v63  ;;  %5745 = vmatpush.bf16.msrb.mxu0 %v9404_v11 }
 0x8ad   : > { %v5436_v34 = vrot.slane %v5434_v6, 1  ;;  %5541 = vst [vmem:[#allocation1] ss:$4 sm:$0xff] %v5530_v23 }
 0x8af   : > { %7268 = vmatmul.msk.bf16.vlgmr.msrb.gmra.mxu2 %vm1756_vm12, %v9618_v8  ;;  %7243 = vmatmul.msk.bf16.vlgmr.msrb.gmra.mxu1 %vm1756_vm12, %v5436_v34 }
 0x8b0   : > { %5759 = vmatpush.bf16.msrb.mxu2 %v9414_v14  ;;  %5746 = vmatpush.bf16.msrb.mxu0 %v9426_v45 }
 0x8b4   : > { %v5542_v32 = vld.sshfl [vmem:[#allocation1] sm:$0xff pattern:$0x73625140]  ;;  %5760 = vmatpush.bf16.msrb.mxu2 %v9438_v56  ;;  %5747 = vmatpush.bf16.msrb.mxu0 %v9450_v46 }
 0x8b5   : > { %v5543_v59 = vshrl.u32 %v5542_v32, 16  ;;  %v5545_v60 = vshll.u32 %v5542_v32, 16  ;;  %5601 = vst [vmem:[#allocation1] ss:$4 sm:$0xff] %v5590_v16 }
 0x8b7   : > { %v5547_v1 = vrot.slane %v5545_v60, 1 }
 0x8b8   : > { %5761 = vmatpush.bf16.msrb.mxu2 %v9462_v51  ;;  %5748 = vmatpush.bf16.msrb.mxu0 %v9474_v27  ;;  %v9673_v27 = vld [vmem:[%s9828_s19 + $0x38] sm:$0xff] }
 0x8b9   : > { %v5548_v2 = vor.u32 %v5547_v1, %v5543_v59  ;;  %5675 = vmatpush.msra.mxu1 %v9673_v27 }
 0x8bb   : > { %7293 = vmatmul.msk.bf16.vlgmr.msrb.gmra.mxu3 %vm1756_vm12, %v5548_v2  ;;  %5676 = vmatpush.msra.mxu1 %v9681_v48 }
 0x8bc   : > { %v5602_v13 = vld.sshfl [vmem:[#allocation1] sm:$0xff pattern:$0x73625140]  ;;  %5784 = vmatpush.bf16.msrb.mxu3 %v9491_v18  ;;  %5762 = vmatpush.bf16.msrb.mxu2 %v9486_v15  ;;  %v9686_v18 = vld [vmem:[%s9828_s19 + $0x28] sm:$0xff] }
 0x8bd   : > { %v5604_v11 = vrot.slane %v5602_v13, 1  ;;  %5697 = vst [vmem:[#allocation1] ss:$4 sm:$0xff] %v9541_v43  ;;  %5677 = vmatpush.msra.mxu1 %v9686_v18  ;;  %v7622_v13 = vld [vmem:[%s9827_s18] ss:$0 sm:$0xff] }
 0x8bf   : > { %7318 = vmatmul.msk.bf16.vlgmr.msra.gmra.mxu0 %vm1756_vm12, %v5604_v11 }
 0x8c0   : > { %5785 = vmatpush.bf16.msrb.mxu3 %v9525_v39  ;;  %5824 = vmatpush.bf16.msra.mxu0 %v9496_v54  ;;  %v9715_v39 = vld [vmem:[%s9828_s19 + $0x8] sm:$0xff] }
 0x8c4   : > { %5786 = vmatpush.bf16.msrb.mxu3 %v9550_v7  ;;  %5825 = vmatpush.bf16.msra.mxu0 %v9519_v40  ;;  %v5698_v35 = vld.sshfl [vmem:[#allocation1] sm:$0xff pattern:$0x73625140] }
 0x8c5   : > { %v5701_v14 = vshll.u32 %v5698_v35, 16  ;;  %5734 = vst [vmem:[#allocation1] ss:$4 sm:$0xff] %v9594_v37  ;;  %v5699_v9 = vshrl.u32 %v5698_v35, 16 }
 0x8c7   : > { %v5703_v45 = vrot.slane %v5701_v14, 1 }
 0x8c8   : > { %5787 = vmatpush.bf16.msrb.mxu3 %v9575_v52  ;;  %5826 = vmatpush.bf16.msra.mxu0 %v9555_v3 }
 0x8c9   : > { %v5704_v41 = vor.u32 %v5703_v45, %v5699_v9 }
 0x8cb   : > { %7321 = vmatmul.msk.bf16.vlgmr.msra.gmra.mxu3 %vm1756_vm12, %v9512_v47  ;;  %7320 = vmatmul.msk.bf16.vlgmr.msra.gmra.mxu2 %vm1756_vm12, %v5704_v41 }
 0x8cc   : > { %5874 = vmatpush.bf16.msra.mxu3 %v9591_v53  ;;  %5827 = vmatpush.bf16.msra.mxu0 %v9580_v30  ;;  %v5735_v56 = vld.sshfl [vmem:[#allocation1] sm:$0xff pattern:$0x73625140] }
 0x8cd   : > { %5851 = vmatpush.bf16.msra.mxu2 %v9506_v28  ;;  %5769 = vst [vmem:[#allocation1] ss:$4 sm:$0xff] %v5530_v23  ;;  %v5737_v10 = vrot.slane %v5735_v56, 1  ;;  %v9696_v28 = vld [vmem:[%s9828_s19 + $0x20] sm:$0xff] }
 0x8ce   : > { %5678 = vmatpush.msra.mxu1 %v9696_v28 }
 0x8cf   : > { %7322 = vmatmul.msk.bf16.vlgmr.msrb.gmra.mxu0 %vm1756_vm12, %v5737_v10 }
 0x8d0   : > { %5875 = vmatpush.bf16.msra.mxu3 %v7493_v22  ;;  %5679 = vmatpush.msra.mxu1 %v9702_v38 }
 0x8d1   : > { %5852 = vmatpush.bf16.msra.mxu2 %v9539_v58  ;;  %v5861_v58 = vld [vmem:[#allocation5 + $0x6] sm:$0x2] }
 0x8d2   : > { %5680 = vmatpush.msra.mxu1 %v9709_v12 }
 0x8d4   : > { %5876 = vmatpush.bf16.msra.mxu3 %v7492_v50  ;;  %v5770_v46 = vld.sshfl [vmem:[#allocation1] sm:$0xff pattern:$0x73625140]  ;;  %5681 = vmatpush.msra.mxu1 %v9715_v39 }
 0x8d5   : > { %5853 = vmatpush.bf16.msra.mxu2 %v9567_v4  ;;  %v5773_v42 = vshll.u32 %v5770_v46, 16  ;;  %5794 = vst [vmem:[#allocation1] ss:$4 sm:$0xff] %v5590_v16  ;;  %v5771_v51 = vshrl.u32 %v5770_v46, 16 }
 0x8d6   : > { %5682 = vmatpush.msra.mxu1 %v5135_v21 }
 0x8d7   : > { %v5775_v63 = vrot.slane %v5773_v42, 1 }
 0x8d8   : > { %5877 = vmatpush.bf16.msra.mxu3 %v7491_v5  ;;  %5805 = vmatpush.bf16.msrb.mxu1 %v9501_v25 }
 0x8d9   : > { %5854 = vmatpush.bf16.msra.mxu2 %v9599_v29  ;;  %v5776_v15 = vor.u32 %v5775_v63, %v5771_v51 }
 0x8db   : > { %7323 = vmatmul.msk.bf16.vlgmr.msrb.gmra.mxu2 %vm1756_vm12, %v9618_v8  ;;  %7324 = vmatmul.msk.bf16.vlgmr.msrb.gmra.mxu3 %vm1756_vm12, %v5776_v15 }
 0x8dc   : > { %v9690_v44 = vld.sshfl [vmem:[#allocation1] sm:$0xff pattern:$0x73625140]  ;;  %5806 = vmatpush.bf16.msrb.mxu1 %v9530_v17 }
 0x8dd   : > { %5836 = vst [vmem:[#allocation1] ss:$4 sm:$0xff] %v5834_v61  ;;  %v5797_v45 = vrot.slane %v9690_v44, 1 }
 0x8df   : > { %7326 = vmatmul.msk.bf16.vlgmr.msra.gmra.mxu0 %vm1756_vm12, %v5816_v33 }
 0x8e0   : > { %5807 = vmatpush.bf16.msrb.mxu1 %v9561_v62  ;;  %v7620_v62 = vld [vmem:[%s9825_s16] ss:$0 sm:$0xff] }
 0x8e4   : > { %v5837_v20 = vld.sshfl [vmem:[#allocation1] sm:$0xff pattern:$0x73625140]  ;;  %5808 = vmatpush.bf16.msrb.mxu1 %v9586_v31 }
 0x8e5   : > { %5863 = vst [vmem:[#allocation1] ss:$4 sm:$0xff] %v5861_v58  ;;  %v5840_v7 = vshll.u32 %v5837_v20, 16  ;;  %v5838_v36 = vshrl.u32 %v5837_v20, 16  ;;  %v7621_v31 = vld [vmem:[%s9826_s17] ss:$0 sm:$0xff] }
 0x8e7   : > { %v5842_v4 = vrot.slane %v5840_v7, 1 }
 0x8e9   : > { %v5843_v30 = vor.u32 %v5842_v4, %v5838_v36 }
 0x8eb   : > { %7327 = vmatmul.msk.bf16.vlgmr.msra.gmra.mxu2 %vm1756_vm12, %v5843_v30 }
 0x8ec   : > { %v5864_v53 = vld.sshfl [vmem:[#allocation1] sm:$0xff pattern:$0x73625140] }
 0x8ed   : > { %v5866_v37 = vrot.slane %v5864_v53, 1 }
 0x8ef   : > { %7328 = vmatmul.msk.bf16.vlgmr.msra.gmra.mxu3 %vm1756_vm12, %v5866_v37 }
 0x90b   : > { %v5250_v54 = vpop.f32.mrf.mxu1 }
 0x910   : > { %v5357_v47 = vpop.f32.mrf.mxu3 }
 0x913   : > { %v5252_v40 = vpop.f32.mrf.mxu1 }
 0x918   : > { %v5210_v24 = vpop.f32.mrf.mxu0  ;;  %v5359_v52 = vpop.f32.mrf.mxu3 }
 0x919   : > { %v5251_v57 = vadd.f32 %v5250_v54, %v5210_v24 }
 0x920   : > { %v5212_v43 = vpop.f32.mrf.mxu0 }
 0x922   : > { %v5305_v3 = vpop.f32.mrf.mxu2 }
 0x923   : > { %v5309_v0 = vadd.f32 %v5305_v3, %v5251_v57 }
 0x925   : > { %v5361_v50 = vadd.f32 %v5357_v47, %v5309_v0 }
 0x928   : > { %v5417_v29 = vpop.f32.mrf.mxu0 }
 0x929   : > { %v5421_v23 = vadd.f32 %v5417_v29, %v5361_v50 }
 0x92a   : > { %v5307_v26 = vpop.f32.mrf.mxu2 }
 0x92c   : > { %v5473_v25 = vpop.f32.mrf.mxu1 }
 0x92d   : > { %v5477_v6 = vadd.f32 %v5473_v25, %v5421_v23 }
 0x930   : > { %v5419_v22 = vpop.f32.mrf.mxu0 }
 0x932   : > { %v5525_v17 = vpop.f32.mrf.mxu2 }
 0x933   : > { %v5529_v5 = vadd.f32 %v5525_v17, %v5477_v6 }
 0x934   : > { %v5475_v19 = vpop.f32.mrf.mxu1 }
 0x93a   : > { %v5527_v8 = vpop.f32.mrf.mxu2 }
 0x93c   : > { %v5641_v34 = vpop.f32.mrf.mxu0 }
 0x93e   : > { %v5585_v16 = vpop.f32.mrf.mxu3 }
 0x93f   : > { %v5589_v32 = vadd.f32 %v5585_v16, %v5529_v5 }
 0x941   : > { %v5645_v59 = vadd.f32 %v5641_v34, %v5589_v32 }
 0x943   : > { %v5649_v60 = vmul.f32 %v7620_v62, %v5645_v59 }
 0x944   : > { %v5643_v1 = vpop.f32.mrf.mxu0 }
 0x945   : > { %v5653_v2 = vadd.f32 %v7621_v31, %v5649_v60 }
 0x946   : > { %v5587_v11 = vpop.f32.mrf.mxu3 }
 0x947   : > { %v5654_v35 = vmax.f32 %v5653_v2, 0.0 }
 0x949   : > { %7319 = vmatmul.msk.f32.vlgmr.msra.gmra.mxu1 %vm5663_vm15, %v5654_v35  ;;  %v5658_v14 = vmul.f32 %v7622_v13, %v5654_v35 }
 0x94a   : > { %5900 = vmatpush.msra.mxu1 %v9660_v55 }
 0x94b   : > { %v5660_v9 = vsel %vm5659_vm0, %v5658_v14, 0.0 }
 0x94c   : > { %5661 = vadd.xlane.f32.xlu0 %v5660_v9  ;;  %5901 = vmatpush.msra.mxu1 %v9665_v49  ;;  %v5750_v42 = vpop.f32.mrf.mxu0 }
 0x94e   : > { %5902 = vmatpush.msra.mxu1 %v9673_v27  ;;  %v5730_v41 = vpop.f32.mrf.mxu3  ;;  %v5717_v55 = vpop.f32.mrf.mxu2 }
 0x94f   : > { %v5731_v49 = vadd.f32 %v5730_v41, %v5717_v55 }
 0x950   : > { %5903 = vmatpush.msra.mxu1 %v9681_v48 }
 0x951   : > { %7325 = vmatmul.msk.bf16.vlgmr.msrb.gmra.mxu1 %vm1756_vm12, %v5797_v45  ;;  %v5754_v24 = vadd.f32 %v5750_v42, %v5731_v49  ;;  %vm5688_vm12 = vcmask 33792  }
 0x952   : > { %5904 = vmatpush.msra.mxu1 %v9686_v18 }
 0x954   : > { %5905 = vmatpush.msra.mxu1 %v9696_v28  ;;  %v5752_v27 = vpop.f32.mrf.mxu0 }
 0x956   : > { %5906 = vmatpush.msra.mxu1 %v9702_v38  ;;  %v5732_v56 = vpop.f32.mrf.mxu3  ;;  %v5719_v46 = vpop.f32.mrf.mxu2 }
 0x958   : > { %5907 = vmatpush.msra.mxu1 %v9709_v12 }
 0x95a   : > { %5908 = vmatpush.msra.mxu1 %v9715_v39 }
 0x95c   : > { %5909 = vmatpush.msra.mxu1 %v5135_v21  ;;  %v5829_v10 = vpop.f32.mrf.mxu0 }
 0x95e   : > { %v5764_v51 = vpop.f32.mrf.mxu2  ;;  %v5789_v63 = vpop.f32.mrf.mxu3 }
 0x95f   : > { %v5768_v47 = vadd.f32 %v5764_v51, %v5754_v24 }
 0x961   : > { %v5793_v12 = vadd.f32 %v5789_v63, %v5768_v47 }
 0x964   : > { %v5831_v44 = vpop.f32.mrf.mxu0 }
 0x966   : > { %v5766_v48 = vpop.f32.mrf.mxu2  ;;  %v5791_v15 = vpop.f32.mrf.mxu3 }
 0x96e   : > { %v5856_v18 = vpop.f32.mrf.mxu2 }
 0x972   : > { %v5879_v54 = vpop.f32.mrf.mxu3 }
 0x976   : > { %v5858_v28 = vpop.f32.mrf.mxu2 }
 0x97a   : > { %v5881_v61 = vpop.f32.mrf.mxu3 }
 0x9bf   : > { %v5662_v30 = vpop.xlane.xlu0 %5661 }
 0x9c6   : > { %v5684_v38 = vpop.f32.mrf.mxu1 }
 0x9c7   : > { %v5687_v53 = vmul.f32 %v5684_v38, %v5662_v30 }
 0x9c9   : > { %v5689_v37 = vsel %vm5688_vm12, %v5687_v53, 0.0 }
 0x9ca   : > { %v5690_v29 = vrot.slane %v5689_v37, 4 }
 0x9cc   : > { %v5691_v33 = vadd.f32 %v5690_v29, %v5689_v37 }
 0x9ce   : > { %v5810_v40 = vpop.f32.mrf.mxu1  ;;  %v5692_v22 = vrot.slane %v5691_v33, 2 }
 0x9cf   : > { %v5814_v39 = vadd.f32 %v5810_v40, %v5793_v12 }
 0x9d0   : > { %v5693_v19 = vadd.f32 %v5692_v22, %v5691_v33 }
 0x9d1   : > { %v5833_v20 = vadd.f32 %v5829_v10, %v5814_v39 }
 0x9d2   : > { %v5694_v8 = vrot.slane %v5693_v19, 1 }
 0x9d3   : > { %v5860_v58 = vadd.f32 %v5856_v18, %v5833_v20 }
 0x9d4   : > { %v5695_v5 = vadd.f32 %v5694_v8, %v5693_v19 }
 0x9d5   : > { %v5883_v43 = vadd.f32 %v5879_v54, %v5860_v58 }
 0x9d6   : > { %v5812_v21 = vpop.f32.mrf.mxu1 }
 0x9d7   : > { %v5884_v7 = vmul.f32 %v7620_v62, %v5883_v43 }
 0x9d9   : > { %v5885_v3 = vadd.f32 %v7621_v31, %v5884_v7 }
 0x9db   : > { %v5886_v36 = vmax.f32 %v5885_v3, 0.0 }
 0x9dd   : > { %7329 = vmatmul.msk.f32.vlgmr.msra.gmra.mxu1 %vm5663_vm15, %v5886_v36  ;;  %v5887_v4 = vmul.f32 %v7622_v13, %v5886_v36 }
 0x9df   : > { %v5888_v52 = vsel %vm5659_vm0, %v5887_v4, 0.0 }
 0x9e0   : > { %5889 = vadd.xlane.f32.xlu0 %v5888_v52 }
 0xa53   : > { %v5890_v26 = vpop.xlane.xlu0 %5889 }
 0xa5a   : > { %v5911_v25 = vpop.f32.mrf.mxu1 }
 0xa5b   : > { %v5914_v57 = vmul.f32 %v5911_v25, %v5890_v26 }
 0xa5d   : > { %v5915_v0 = vsel %vm5688_vm12, %v5914_v57, 0.0 }
 0xa5e   : > { %v5916_v17 = vrot.slane %v5915_v0, 4 }
 0xa60   : > { %v5917_v50 = vadd.f32 %v5916_v17, %v5915_v0 }
 0xa62   : > { %v5918_v23 = vrot.slane %v5917_v50, 2 }
 0xa64   : > { %v5919_v6 = vadd.f32 %v5918_v23, %v5917_v50 }
 0xa66   : > { %v5920_v34 = vrot.slane %v5919_v6, 1 }
 0xa68   : > { %v5921_v16 = vadd.f32 %v5920_v34, %v5919_v6 }
 0xa6a   : > { %v5922_v32 = vadd.f32 %v5921_v16, %v5695_v5 }
 0xa6c   : > { %v5923_v62 = vmul.f32 0.25, %v5922_v32 }
 0xa6e   : > { %v5927_v59 = vsel %vm5926_vm1, %v5923_v62, -inf  ;;  %5925 = vst.msk [vmem:[%s9934_s25] sm:$0x1] %vm5924_vm2, %v5923_v62  ;;  %s7651_s25 = scalar_lea.hbm %s9829_s20, 2 }
 0xa6f   : > { %5928 = vmax.xlane.f32.xlu1 %v5927_v59  ;;  %p7653_p7 = scmp.lt.s32.totalorder %s7651_s25, %s7647_s0 }
 0xa71   : > { %p7654_p8 = por %p7653_p7, %p7652_p4 }
 0xa73   : > { %p7655_p9 = pnand %p7654_p8, %p7650_p3 }
 0xae2   : > { %v5929_v31 = vpop.xlane.xlu1 %5928 }
 0xae3   : > { %v5930_v60 = vsub.f32 %v5923_v62, %v5929_v31 }
 0xae5   : > { %v5931_v1 = vmul.f32 1.442695, %v5930_v60 }
 0xae7   : > { %7623 = vpow2.f32 %v5931_v1 }
 0xaed   : > { %v7624_v2 = vpop.eup %7623 }
 0xaee   : > { %v5933_v13 = vsel %vm5926_vm1, %v7624_v2, 0.0 }
 0xaef   : > { %5934 = vadd.xlane.f32.xlu1 %v5933_v13 }
 0xaf0   : > { %7658 = shalt.err (!%p7655_p9)
}
 0xaf1   : > { %7542 = dma.vmem_to_hbm [thread:$0]  (%p7920_p5), %s5968_s6, 16, %s5970_s26, %s5953_s30  }
 0xaf2   : > { %s5978_s29 = scalar_lea.hbm %s9830_s21, %s7903_s3  ;;  %s9936_s2 = scalar_lea.vmem [#allocation8], %s7931_s23 }
 0xaf3   : > { %s5980_s6 = sshll.u32 %s9936_s2, 4  ;;  %s5982_s26 = sshll.u32 %s5978_s29, 4  ;;  %s5981_s6 = int_to_ptr.vmem [resolvable:$true] %s5980_s6  ;;  %s5983_s26 = int_to_ptr.hbm [resolvable:$true] %s5982_s26 }
 0xaf4   : > { %s9937_s30 = smov %s9936_s2  ;;  %s5957_s27 = scalar_lea.sflag [#allocation9], %s7931_s23 }
 0xaf5   : > { %s7673_s0 = sshra.s32 %s5983_s26, 4  ;;  %s7679_s25 = scalar_lea.hbm %s9830_s21, 2  ;;  %s7674_s0 = int_to_ptr.hbm [resolvable:$true] %s7673_s0 }
 0xaf6   : > { %s7675_s3 = scalar_lea.hbm %s7674_s0, 1  ;;  %p7680_p13 = scmp.lt.s32.totalorder %s7674_s0, %s9830_s21 }
 0xaf7   : > { %p7676_p10 = scmp.ne.s32.totalorder %s7674_s0, %s7675_s3  ;;  %p7681_p0 = scmp.lt.s32.totalorder %s7679_s25, %s7675_s3 }
 0xaf9   : > { %p7677_p11 = pnand %p7676_p10, %p7920_p5  ;;  %p7682_p1 = por %p7681_p0, %p7680_p13 }
 0xafb   : > { %p7678_p12 = pneg %p7677_p11 }
 0xafd   : > { %p7683_p2 = pnand %p7682_p1, %p7678_p12 }
 0xb62   : > { %v5935_v11 = vpop.xlane.xlu1 %5934 }
 0xb63   : > { %7625 = vrcp.f32 %v5935_v11  ;;  %v5947_v45 = vand.u32 2147483648, %v5935_v11  ;;  %v5945_v56 = vand.u32 2147483647, %v5935_v11  ;;  %vm5941_vm4 = vweird.f32 %v5935_v11 }
 0xb65   : > { %v5948_v49 = vor.u32 1.1754944e-38, %v5947_v45  ;;  %vm5946_vm6 = vcmp.eq.f32.partialorder %v5945_v56, 8.507059e+37 }
 0xb69   : > { %v7626_v35 = vpop.eup %7625 }
 0xb6a   : > { %v5937_v14 = vmul.f32 %v7626_v35, %v5935_v11  ;;  %vm5942_vm3 = vweird.f32 %v7626_v35 }
 0xb6b   : > { %vm5943_vm5 = vmor %vm5941_vm4, %vm5942_vm3 }
 0xb6c   : > { %v5938_v9 = vsub.f32 1.0, %v5937_v14 }
 0xb6e   : > { %v5939_v41 = vmul.f32 %v7626_v35, %v5938_v9 }
 0xb70   : > { %v5940_v55 = vadd.f32 %v7626_v35, %v5939_v41 }
 0xb72   : > { %v5944_v46 = vsel %vm5943_vm5, %v7626_v35, %v5940_v55 }
 0xb73   : > { %v5949_v42 = vsel %vm5946_vm6, %v5948_v49, %v5944_v46 }
 0xb74   : > { %v5950_v51 = vmul.f32 %v7624_v2, %v5949_v42 }
 0xb76   : > { %5951 = vst.msk [vmem:[%s9937_s30] sm:$0x1] %vm5924_vm2, %v5950_v51 }
 0xb77   : > { %7686 = shalt.err (!%p7683_p2)
}
 0xb78   : > { %7543 = dma.vmem_to_hbm [thread:$0]  (%p7920_p5), %s5981_s6, 16, %s5983_s26, %s5957_s27  }
 0xb79 PF: > { %s9938_s23 = sld [smem:[#allocation15_spill]] }
 0xb7a   : > { %s9939_s1 = sld [smem:[#allocation12_spill]] }
 0xb7f   : > { %p7553_p3 = scmp.ge.s32.totalorder %s9938_s23, 2 }
 0xb80   : > { %s5994_s2 = sand.u32 1, %s9939_s1  }
 0xb81   : > { %p7547_p4 = pnand %p7553_p3, %p7924_p6  ;;  %s5995_s30 = scalar_lea.sflag [#allocation7], %s5994_s2 }
 0xb83   : > { %p7548_p7 = pneg %p7547_p4 }
 0xb85   : > { %7720 = dma.done.wait (%p7548_p7), %s5995_s30, 16  }
 0xb86   : > { %7722 = vsyncadd (%p7548_p7), %s5995_s30, 4294967280  ;;  %s6004_s0 = scalar_lea.sflag [#allocation9], %s5994_s2 }
 0xb87   : > { %7724 = dma.done.wait (%p7548_p7), %s6004_s0, 16  }
 0xb88   : > { %7726 = vsyncadd (%p7548_p7), %s6004_s0, 4294967280  ;;  %s9941_s27 = sld [smem:[#allocation16_spill]] }
 0xb89   : > { %s9942_s2 = sld [smem:[#allocation13_spill]] }
 0xb8a   : > { %s9943_s25 = sld [smem:[#allocation14_spill]] }
 0xb8b   : > { %s9944_s26 = sld [smem:[#allocation17_spill]] }
 0xb8e   : > { %p35_p5 = scmp.ge.s32.totalorder %s9941_s27, 4  }
 0xb90   :  { %37 = sbr.rel (!%p35_p5) target bundleno = 14 (0xe), region = 302 }
 0xb95   :  { %6009 = vsyncpa [#allocation7], 1 }
 0xb96   :  { %6011 = vsyncpa [#allocation7 + $0x1], 1 }
 0xb97   :  { %6012 = vsyncpa [#allocation9], 1 }
 0xb98   :  { %6014 = vsyncpa [#allocation9 + $0x1], 1 }

</bundles_post_ra>
